<compile_context>
chip_gen: v5e
topology: v5e:2x2
jax: 0.10.0
libtpu: 0.0.40
codegen_flags: <defaults>
</compile_context>

<pallas_src>
import functools
from typing import NamedTuple

import jax
import jax.numpy as jnp
import numpy as np
from jax.experimental import pallas as pl
from jax.experimental.pallas import tpu as pltpu


# ---------------------------------------------------------------------------
# Static geometry (all Python ints, resolved at trace time).
# ---------------------------------------------------------------------------
class _ConvGeom(NamedTuple):
    Hp: int   # padded height
    Wp: int   # padded width == flat row stride
    Ho: int   # conv output height
    Wo: int   # conv output width
    L: int    # rows of the flat implicit-GEMM accumulator


def _conv_geom(Hi, Wi, pad):
    Hp, Wp = Hi + 2 * pad, Wi + 2 * pad
    Ho, Wo = Hp - 2, Wp - 2                      # 3x3 kernel, stride 1
    return _ConvGeom(Hp, Wp, Ho, Wo, (Ho - 1) * Wp + Wo)


def _net_geom(H, W):
    g1 = _conv_geom(H, W, 2)                     # conv1, pad 2
    q1 = (g1.Ho // 2, g1.Wo // 2)                # maxpool 2x2 / 2
    g2 = _conv_geom(q1[0], q1[1], 2)             # conv2, pad 2
    g3 = _conv_geom(g2.Ho, g2.Wo, 2)             # conv3, pad 2
    q2 = (g3.Ho // 2, g3.Wo // 2)                # maxpool 2x2 / 2
    g4 = _conv_geom(q2[0], q2[1], 0)             # lastcnn, pad 0
    # maxpool2 must rewrite every position of lastcnn's (unzeroed) input.
    assert q2 == (g4.Hp, g4.Wp)
    return g1, q1, g2, g3, q2, g4


# ---------------------------------------------------------------------------
# Fused kernel: one grid step == B images, everything stays in VMEM.
# ---------------------------------------------------------------------------
def _fused_kernel(x_ref, w1_ref, b1_ref, w2_ref, b2_ref, w3_ref, b3_ref,
                  w4_ref, b4_ref, sel_ref, o_ref,
                  p1, p2, p3, p4, vrow1, vrow2, *, H, W, B):
    f32 = jnp.float32
    g1, q1, g2, g3, q2, g4 = _net_geom(H, W)

    def conv_flat(p_ref, w_ref, b_ref, g, relu):
        """3x3 conv over a flattened (Hp*Wp, Cin) zero-padded image: 9
        shifted (L, Cin) x (Cin, Cout) MXU matmuls.  The accumulation is one
        uninterrupted value chain (no scratch round trip between taps)."""
        acc = None
        for kh in range(3):
            for kw in range(3):
                slab = p_ref[pl.ds(kh * g.Wp + kw, g.L), :]        # (L, Cin)
                part = jnp.dot(slab, w_ref[kh * 3 + kw],
                               preferred_element_type=f32)
                acc = part if acc is None else acc + part
        acc = acc + b_ref[...]          # bias: one broadcast add per layer
        if relu:
            acc = jnp.maximum(acc, 0.0)
        return acc

    def zero_halo(p_ref, g, pad, Hd, Wd, C):
        """Zero only the padding halo; the interior data window is fully
        rewritten for every image, so it never needs a zero fill."""
        head = pad * g.Wp + pad
        p_ref[pl.ds(0, head), :] = jnp.zeros((head, C), f32)
        gap = g.Wp - Wd
        for h in range(Hd - 1):
            s = (pad + h) * g.Wp + pad + Wd
            p_ref[pl.ds(s, gap), :] = jnp.zeros((gap, C), f32)
        s = (pad + Hd - 1) * g.Wp + pad + Wd
        tail = g.Hp * g.Wp - s
        p_ref[pl.ds(s, tail), :] = jnp.zeros((tail, C), f32)

    def maxpool_rows(acc, g, hq, wq, vrow, emit):
        """2x2/stride-2 maxpool applied directly to the conv accumulator
        value: two contiguous full-width row slices + vertical max, one tiny
        staging store, then a single pair of stride-2 sublane reads."""
        for i in range(hq):
            r0 = (2 * i) * g.Wp
            v = jnp.maximum(acc[r0:r0 + 2 * wq, :],
                            acc[r0 + g.Wp:r0 + g.Wp + 2 * wq, :])
            vrow[...] = v
            even = vrow[pl.ds(0, wq, stride=2), :]
            odd = vrow[pl.ds(1, wq, stride=2), :]
            emit(i, jnp.maximum(even, odd))

    # Halo zeroing hoisted out of the per-image loop: written once per grid
    # step, never touched by the interior stores below.  Not gated on
    # program_id: with "parallel" semantics every core must init its scratch.
    zero_halo(p1, g1, 2, H, W, 3)
    zero_halo(p2, g2, 2, q1[0], q1[1], 64)
    zero_halo(p3, g3, 2, g2.Ho, g2.Wo, 32)
    # p4 (pad=0): maxpool2 rewrites all Hp*Wp positions -> no zeroing needed.

    def per_image(b, stack):
        img = x_ref[b]                                            # (H, W, 3)

        # ---- conv1 (+folded BN) + ReLU ----------------------------------
        for h in range(H):
            p1[pl.ds((h + 2) * g1.Wp + 2, W), :] = img[h]
        a1 = conv_flat(p1, w1_ref, b1_ref, g1, relu=True)

        # ---- maxpool1 fused into conv2's padded-input build --------------
        def emit1(i, pooled):
            p2[pl.ds((i + 2) * g2.Wp + 2, q1[1]), :] = pooled
        maxpool_rows(a1, g1, q1[0], q1[1], vrow1, emit1)

        # ---- conv2 (+folded BN) + ReLU -----------------------------------
        a2 = conv_flat(p2, w2_ref, b2_ref, g2, relu=True)

        # ---- conv3 (+folded BN) + ReLU -----------------------------------
        for h in range(g2.Ho):
            p3[pl.ds((h + 2) * g3.Wp + 2, g2.Wo), :] = \
                a2[h * g2.Wp:h * g2.Wp + g2.Wo, :]
        a3 = conv_flat(p3, w3_ref, b3_ref, g3, relu=True)

        # ---- maxpool2 fused into lastcnn's input build -------------------
        def emit2(i, pooled):
            p4[pl.ds(i * g4.Wp, q2[1]), :] = pooled
        maxpool_rows(a3, g3, q2[0], q2[1], vrow2, emit2)

        # ---- lastcnn (no BN, no ReLU) ------------------------------------
        # Scatter each (Wo, 2) row block into the lane-dense per-step output
        # slab with a tiny selector matmul: the MXU performs the
        # sublane->lane relayout, avoiding masked 2-lane output stores.
        a4 = conv_flat(p4, w4_ref, b4_ref, g4, relu=False)
        for h in range(g4.Ho):
            piece = a4[h * g4.Wp:h * g4.Wp + g4.Wo, :]            # (Wo, 2)
            stack = stack + jnp.dot(piece, sel_ref[b * g4.Ho + h],
                                    preferred_element_type=f32)
        return stack

    stack0 = jnp.zeros((g4.Wo, 2 * g4.Ho * B), f32)
    stack = jax.lax.fori_loop(0, B, per_image, stack0)
    o_ref[0] = stack.astype(o_ref.dtype)         # one dense store per step


# ---------------------------------------------------------------------------
# Public forward (accepts / returns NCHW like the PyTorch module).
# ---------------------------------------------------------------------------
def forward(params, x_nchw, *, block_n=4):
    x = jnp.transpose(x_nchw, (0, 2, 3, 1)).astype(jnp.float32)   # NCHW->NHWC
    N, H, W, cin = x.shape
    assert cin == 3
    B = block_n
    S = -(-N // B)                       # grid steps (cdiv)
    Npad = S * B
    if Npad != N:                        # pad batch to a multiple of B
        x = jnp.concatenate(
            [x, jnp.zeros((Npad - N, H, W, cin), x.dtype)], axis=0)

    g1, q1, g2, g3, q2, g4 = _net_geom(H, W)

    (w1, b1), (w2, b2) = params["conv1"], params["conv2"]
    (w3, b3), (w4, b4) = params["conv3"], params["lastcnn"]

    def tap_major(w):    # (3,3,Cin,Cout) -> (9,Cin,Cout), tap index kh*3+kw
        return jnp.reshape(w.astype(jnp.float32), (9, w.shape[2], w.shape[3]))

    def row_bias(b):
        return jnp.reshape(b.astype(jnp.float32), (1, -1))

    # Selector matrices: place each lastcnn (Wo,2) row block at its
    # (image, row) lane slot of the (Wo, 2*Ho*B) per-step output slab.
    cols = 2 * g4.Ho * B
    sel_np = np.zeros((B * g4.Ho, 2, cols), np.float32)
    for b in range(B):
        for h in range(g4.Ho):
            for c in range(2):
                sel_np[b * g4.Ho + h, c, b * 2 * g4.Ho + h * 2 + c] = 1.0
    sel = jnp.asarray(sel_np)

    args = (x, tap_major(w1), row_bias(b1), tap_major(w2), row_bias(b2),
            tap_major(w3), row_bias(b3), tap_major(w4), row_bias(b4), sel)

    def const_spec(a):   # whole array; same block each step -> stays resident
        if a.ndim == 2:
            return pl.BlockSpec(a.shape, lambda n: (0, 0))
        return pl.BlockSpec(a.shape, lambda n: (0, 0, 0))

    in_specs = ([pl.BlockSpec((B, H, W, 3), lambda n: (n, 0, 0, 0))]
                + [const_spec(a) for a in args[1:]])

    scratch = [
        pltpu.VMEM((g1.Hp * g1.Wp, 3), jnp.float32),    # p1: conv1 padded in
        pltpu.VMEM((g2.Hp * g2.Wp, 64), jnp.float32),   # p2: conv2 padded in
        pltpu.VMEM((g3.Hp * g3.Wp, 32), jnp.float32),   # p3: conv3 padded in
        pltpu.VMEM((g4.Hp * g4.Wp, 16), jnp.float32),   # p4: lastcnn input
        pltpu.VMEM((2 * q1[1], 64), jnp.float32),       # pool1 row staging
        pltpu.VMEM((2 * q2[1], 16), jnp.float32),       # pool2 row staging
    ]

    macs = (g1.Ho * g1.Wo * 64 * 9 * 3 + g2.Ho * g2.Wo * 32 * 9 * 64 +
            g3.Ho * g3.Wo * 16 * 9 * 32 + g4.Ho * g4.Wo * 2 * 9 * 16)
    bytes_in = int(sum(int(np.prod(a.shape)) for a in args)) * 4
    cost = pl.CostEstimate(flops=int(2 * macs * Npad), transcendentals=0,
                           bytes_accessed=bytes_in + S * g4.Wo * cols * 4)

    out = pl.pallas_call(
        functools.partial(_fused_kernel, H=H, W=W, B=B),
        out_shape=jax.ShapeDtypeStruct((S, g4.Wo, cols), jnp.float32),
        grid=(S,),
        in_specs=in_specs,
        out_specs=pl.BlockSpec((1, g4.Wo, cols), lambda n: (n, 0, 0)),
        scratch_shapes=scratch,
        compiler_params=pltpu.CompilerParams(
            dimension_semantics=("parallel",)),   # batch steps feed both TCs
        cost_estimate=cost,
    )(*args)

    # out[s, w, b*2*Ho + h*2 + c]  ->  NCHW logits
    y = out.reshape(S, g4.Wo, B, g4.Ho, 2)       # (s, w, b, h, c)
    y = jnp.transpose(y, (0, 2, 4, 3, 1))        # (s, b, c, h, w)
    y = y.reshape(S * B, 2, g4.Ho, g4.Wo)[:N]
    return y


# ---------------------------------------------------------------------------
# Parameter init (deterministic, PyTorch-default-style) + BN folding.
# ---------------------------------------------------------------------------
def _conv_init(key, kh, kw, cin, cout):
    k1, k2 = jax.random.split(key)
    fan_in = cin * kh * kw
    bound = 1.0 / float(fan_in) ** 0.5
    w = jax.random.uniform(k1, (kh, kw, cin, cout), jnp.float32, -bound, bound)
    b = jax.random.uniform(k2, (cout,), jnp.float32, -bound, bound)
    return w, b


def _fold_bn(w, b, cout, eps=1e-5):
    # Eval-mode BatchNorm with PyTorch default init:
    # gamma=1, beta=0, running_mean=0, running_var=1.
    # NOTE: with a real trained checkpoint, fold the actual running stats.
    gamma = jnp.ones((cout,), jnp.float32)
    beta = jnp.zeros((cout,), jnp.float32)
    mean = jnp.zeros((cout,), jnp.float32)
    var = jnp.ones((cout,), jnp.float32)
    scale = gamma / jnp.sqrt(var + eps)
    return w * scale[None, None, None, :], (b - mean) * scale + beta


def init_params(key):
    k1, k2, k3, k4 = jax.random.split(key, 4)
    w1, b1 = _conv_init(k1, 3, 3, 3, 64)
    w2, b2 = _conv_init(k2, 3, 3, 64, 32)
    w3, b3 = _conv_init(k3, 3, 3, 32, 16)
    w4, b4 = _conv_init(k4, 3, 3, 16, 2)         # lastcnn (no BN)
    w1, b1 = _fold_bn(w1, b1, 64)
    w2, b2 = _fold_bn(w2, b2, 32)
    w3, b3 = _fold_bn(w3, b3, 16)
    return {"conv1": (w1, b1), "conv2": (w2, b2),
            "conv3": (w3, b3), "lastcnn": (w4, b4)}


# ---------------------------------------------------------------------------
# Pure-JAX reference for validation.
# ---------------------------------------------------------------------------
def ref_forward(params, x_nchw):
    x = jnp.transpose(x_nchw, (0, 2, 3, 1))

    def conv(x, w, b, pad, relu):
        y = jax.lax.conv_general_dilated(
            x, w, (1, 1), [(pad, pad), (pad, pad)],
            dimension_numbers=("NHWC", "HWIO", "NHWC")) + b
        return jnp.maximum(y, 0.0) if relu else y

    def pool(x):
        N, H, W, C = x.shape
        Ho, Wo = H // 2, W // 2
        x = x[:, :2 * Ho, :2 * Wo, :].reshape(N, Ho, 2, Wo, 2, C)
        return x.max(axis=(2, 4))

    x = conv(x, *params["conv1"], 2, True)
    x = pool(x)
    x = conv(x, *params["conv2"], 2, True)
    x = conv(x, *params["conv3"], 2, True)
    x = pool(x)
    x = conv(x, *params["lastcnn"], 0, False)
    return jnp.transpose(x, (0, 3, 1, 2))


if __name__ == "__main__":
    key = jax.random.PRNGKey(0)
    kp, kx = jax.random.split(key)
    params = init_params(kp)
    x = jax.random.normal(kx, (8, 3, 16, 16), jnp.float32)        # NCHW

    out = jax.block_until_ready(forward(params, x, block_n=4))    # grid=(2,)
    assert out.shape == (8, 2, 4, 4), out.shape

    ref = jax.block_until_ready(ref_forward(params, x))
    err = float(jnp.max(jnp.abs(out - ref)))
    assert err < 5e-3, f"max abs error vs reference too large: {err}"

    print("KERNEL_OK")
</pallas_src>

<mosaic_0001>
module attributes {stable_mosaic.version = 11 : i64} {
  func.func @_fused_kernel(%arg0: i32, %arg1: memref<4x16x16x3xf32, #tpu.memory_space<vmem>>, %arg2: memref<9x3x64xf32, #tpu.memory_space<vmem>>, %arg3: memref<1x64xf32, #tpu.memory_space<vmem>>, %arg4: memref<9x64x32xf32, #tpu.memory_space<vmem>>, %arg5: memref<1x32xf32, #tpu.memory_space<vmem>>, %arg6: memref<9x32x16xf32, #tpu.memory_space<vmem>>, %arg7: memref<1x16xf32, #tpu.memory_space<vmem>>, %arg8: memref<9x16x2xf32, #tpu.memory_space<vmem>>, %arg9: memref<1x2xf32, #tpu.memory_space<vmem>>, %arg10: memref<16x2x32xf32, #tpu.memory_space<vmem>>, %arg11: memref<1x4x32xf32, #tpu.memory_space<vmem>>, %arg12: memref<400x3xf32, #tpu.memory_space<vmem>>, %arg13: memref<169x64xf32, #tpu.memory_space<vmem>>, %arg14: memref<225x32xf32, #tpu.memory_space<vmem>>, %arg15: memref<36x16xf32, #tpu.memory_space<vmem>>, %arg16: memref<18x64xf32, #tpu.memory_space<vmem>>, %arg17: memref<12x16xf32, #tpu.memory_space<vmem>>) attributes {dimension_semantics = [#tpu.dimension_semantics<parallel>], iteration_bounds = array<i64: 2>, scalar_prefetch = 0 : i64, scratch_operands = 6 : i64, tpu.core_type = #tpu.core_type<tc>, window_params = [{transform_indices = @transform_0, window_bounds = array<i64: 4, 16, 16, 3>}, {pipeline_mode = #tpu.pipeline_mode<synchronous>, transform_indices = @transform_1, window_bounds = array<i64: 9, 3, 64>}, {pipeline_mode = #tpu.pipeline_mode<synchronous>, transform_indices = @transform_2, window_bounds = array<i64: 1, 64>}, {pipeline_mode = #tpu.pipeline_mode<synchronous>, transform_indices = @transform_3, window_bounds = array<i64: 9, 64, 32>}, {pipeline_mode = #tpu.pipeline_mode<synchronous>, transform_indices = @transform_4, window_bounds = array<i64: 1, 32>}, {pipeline_mode = #tpu.pipeline_mode<synchronous>, transform_indices = @transform_5, window_bounds = array<i64: 9, 32, 16>}, {pipeline_mode = #tpu.pipeline_mode<synchronous>, transform_indices = @transform_6, window_bounds = array<i64: 1, 16>}, {pipeline_mode = #tpu.pipeline_mode<synchronous>, transform_indices = @transform_7, window_bounds = array<i64: 9, 16, 2>}, {pipeline_mode = #tpu.pipeline_mode<synchronous>, transform_indices = @transform_8, window_bounds = array<i64: 1, 2>}, {pipeline_mode = #tpu.pipeline_mode<synchronous>, transform_indices = @transform_9, window_bounds = array<i64: 16, 2, 32>}, {transform_indices = @transform_10, window_bounds = array<i64: 1, 4, 32>}]} {
    %cst = arith.constant 0.000000e+00 : f32
    %0 = vector.broadcast %cst : f32 to vector<42x3xf32>
    %c0 = arith.constant 0 : index
    %c0_0 = arith.constant 0 : index
    %1 = vector.load %arg12[%c0, %c0_0] : memref<400x3xf32, #tpu.memory_space<vmem>>, vector<42x3xf32>
    tpu.vector_store %arg12[%c0, %c0_0], %0 {strides = array<i32>} : memref<400x3xf32, #tpu.memory_space<vmem>>, vector<42x3xf32>,
    %cst_1 = arith.constant 0.000000e+00 : f32
    %2 = vector.broadcast %cst_1 : f32 to vector<4x3xf32>
    %c58 = arith.constant 58 : index
    %c0_2 = arith.constant 0 : index
    %3 = vector.load %arg12[%c58, %c0_2] : memref<400x3xf32, #tpu.memory_space<vmem>>, vector<4x3xf32>
    tpu.vector_store %arg12[%c58, %c0_2], %2 {strides = array<i32>} : memref<400x3xf32, #tpu.memory_space<vmem>>, vector<4x3xf32>,
    %cst_3 = arith.constant 0.000000e+00 : f32
    %4 = vector.broadcast %cst_3 : f32 to vector<4x3xf32>
    %c78 = arith.constant 78 : index
    %c0_4 = arith.constant 0 : index
    %5 = vector.load %arg12[%c78, %c0_4] : memref<400x3xf32, #tpu.memory_space<vmem>>, vector<4x3xf32>
    tpu.vector_store %arg12[%c78, %c0_4], %4 {strides = array<i32>} : memref<400x3xf32, #tpu.memory_space<vmem>>, vector<4x3xf32>,
    %cst_5 = arith.constant 0.000000e+00 : f32
    %6 = vector.broadcast %cst_5 : f32 to vector<4x3xf32>
    %c98 = arith.constant 98 : index
    %c0_6 = arith.constant 0 : index
    %7 = vector.load %arg12[%c98, %c0_6] : memref<400x3xf32, #tpu.memory_space<vmem>>, vector<4x3xf32>
    tpu.vector_store %arg12[%c98, %c0_6], %6 {strides = array<i32>} : memref<400x3xf32, #tpu.memory_space<vmem>>, vector<4x3xf32>,
    %cst_7 = arith.constant 0.000000e+00 : f32
    %8 = vector.broadcast %cst_7 : f32 to vector<4x3xf32>
    %c118 = arith.constant 118 : index
    %c0_8 = arith.constant 0 : index
    %9 = vector.load %arg12[%c118, %c0_8] : memref<400x3xf32, #tpu.memory_space<vmem>>, vector<4x3xf32>
    tpu.vector_store %arg12[%c118, %c0_8], %8 {strides = array<i32>} : memref<400x3xf32, #tpu.memory_space<vmem>>, vector<4x3xf32>,
    %cst_9 = arith.constant 0.000000e+00 : f32
    %10 = vector.broadcast %cst_9 : f32 to vector<4x3xf32>
    %c138 = arith.constant 138 : index
    %c0_10 = arith.constant 0 : index
    %11 = vector.load %arg12[%c138, %c0_10] : memref<400x3xf32, #tpu.memory_space<vmem>>, vector<4x3xf32>
    tpu.vector_store %arg12[%c138, %c0_10], %10 {strides = array<i32>} : memref<400x3xf32, #tpu.memory_space<vmem>>, vector<4x3xf32>,
    %cst_11 = arith.constant 0.000000e+00 : f32
    %12 = vector.broadcast %cst_11 : f32 to vector<4x3xf32>
    %c158 = arith.constant 158 : index
    %c0_12 = arith.constant 0 : index
    %13 = vector.load %arg12[%c158, %c0_12] : memref<400x3xf32, #tpu.memory_space<vmem>>, vector<4x3xf32>
    tpu.vector_store %arg12[%c158, %c0_12], %12 {strides = array<i32>} : memref<400x3xf32, #tpu.memory_space<vmem>>, vector<4x3xf32>,
    %cst_13 = arith.constant 0.000000e+00 : f32
    %14 = vector.broadcast %cst_13 : f32 to vector<4x3xf32>
    %c178 = arith.constant 178 : index
    %c0_14 = arith.constant 0 : index
    %15 = vector.load %arg12[%c178, %c0_14] : memref<400x3xf32, #tpu.memory_space<vmem>>, vector<4x3xf32>
    tpu.vector_store %arg12[%c178, %c0_14], %14 {strides = array<i32>} : memref<400x3xf32, #tpu.memory_space<vmem>>, vector<4x3xf32>,
    %cst_15 = arith.constant 0.000000e+00 : f32
    %16 = vector.broadcast %cst_15 : f32 to vector<4x3xf32>
    %c198 = arith.constant 198 : index
    %c0_16 = arith.constant 0 : index
    %17 = vector.load %arg12[%c198, %c0_16] : memref<400x3xf32, #tpu.memory_space<vmem>>, vector<4x3xf32>
    tpu.vector_store %arg12[%c198, %c0_16], %16 {strides = array<i32>} : memref<400x3xf32, #tpu.memory_space<vmem>>, vector<4x3xf32>,
    %cst_17 = arith.constant 0.000000e+00 : f32
    %18 = vector.broadcast %cst_17 : f32 to vector<4x3xf32>
    %c218 = arith.constant 218 : index
    %c0_18 = arith.constant 0 : index
    %19 = vector.load %arg12[%c218, %c0_18] : memref<400x3xf32, #tpu.memory_space<vmem>>, vector<4x3xf32>
    tpu.vector_store %arg12[%c218, %c0_18], %18 {strides = array<i32>} : memref<400x3xf32, #tpu.memory_space<vmem>>, vector<4x3xf32>,
    %cst_19 = arith.constant 0.000000e+00 : f32
    %20 = vector.broadcast %cst_19 : f32 to vector<4x3xf32>
    %c238 = arith.constant 238 : index
    %c0_20 = arith.constant 0 : index
    %21 = vector.load %arg12[%c238, %c0_20] : memref<400x3xf32, #tpu.memory_space<vmem>>, vector<4x3xf32>
    tpu.vector_store %arg12[%c238, %c0_20], %20 {strides = array<i32>} : memref<400x3xf32, #tpu.memory_space<vmem>>, vector<4x3xf32>,
    %cst_21 = arith.constant 0.000000e+00 : f32
    %22 = vector.broadcast %cst_21 : f32 to vector<4x3xf32>
    %c258 = arith.constant 258 : index
    %c0_22 = arith.constant 0 : index
    %23 = vector.load %arg12[%c258, %c0_22] : memref<400x3xf32, #tpu.memory_space<vmem>>, vector<4x3xf32>
    tpu.vector_store %arg12[%c258, %c0_22], %22 {strides = array<i32>} : memref<400x3xf32, #tpu.memory_space<vmem>>, vector<4x3xf32>,
    %cst_23 = arith.constant 0.000000e+00 : f32
    %24 = vector.broadcast %cst_23 : f32 to vector<4x3xf32>
    %c278 = arith.constant 278 : index
    %c0_24 = arith.constant 0 : index
    %25 = vector.load %arg12[%c278, %c0_24] : memref<400x3xf32, #tpu.memory_space<vmem>>, vector<4x3xf32>
    tpu.vector_store %arg12[%c278, %c0_24], %24 {strides = array<i32>} : memref<400x3xf32, #tpu.memory_space<vmem>>, vector<4x3xf32>,
    %cst_25 = arith.constant 0.000000e+00 : f32
    %26 = vector.broadcast %cst_25 : f32 to vector<4x3xf32>
    %c298 = arith.constant 298 : index
    %c0_26 = arith.constant 0 : index
    %27 = vector.load %arg12[%c298, %c0_26] : memref<400x3xf32, #tpu.memory_space<vmem>>, vector<4x3xf32>
    tpu.vector_store %arg12[%c298, %c0_26], %26 {strides = array<i32>} : memref<400x3xf32, #tpu.memory_space<vmem>>, vector<4x3xf32>,
    %cst_27 = arith.constant 0.000000e+00 : f32
    %28 = vector.broadcast %cst_27 : f32 to vector<4x3xf32>
    %c318 = arith.constant 318 : index
    %c0_28 = arith.constant 0 : index
    %29 = vector.load %arg12[%c318, %c0_28] : memref<400x3xf32, #tpu.memory_space<vmem>>, vector<4x3xf32>
    tpu.vector_store %arg12[%c318, %c0_28], %28 {strides = array<i32>} : memref<400x3xf32, #tpu.memory_space<vmem>>, vector<4x3xf32>,
    %cst_29 = arith.constant 0.000000e+00 : f32
    %30 = vector.broadcast %cst_29 : f32 to vector<4x3xf32>
    %c338 = arith.constant 338 : index
    %c0_30 = arith.constant 0 : index
    %31 = vector.load %arg12[%c338, %c0_30] : memref<400x3xf32, #tpu.memory_space<vmem>>, vector<4x3xf32>
    tpu.vector_store %arg12[%c338, %c0_30], %30 {strides = array<i32>} : memref<400x3xf32, #tpu.memory_space<vmem>>, vector<4x3xf32>,
    %cst_31 = arith.constant 0.000000e+00 : f32
    %32 = vector.broadcast %cst_31 : f32 to vector<42x3xf32>
    %c358 = arith.constant 358 : index
    %c0_32 = arith.constant 0 : index
    %33 = vector.load %arg12[%c358, %c0_32] : memref<400x3xf32, #tpu.memory_space<vmem>>, vector<42x3xf32>
    tpu.vector_store %arg12[%c358, %c0_32], %32 {strides = array<i32>} : memref<400x3xf32, #tpu.memory_space<vmem>>, vector<42x3xf32>,
    %cst_33 = arith.constant 0.000000e+00 : f32
    %34 = vector.broadcast %cst_33 : f32 to vector<28x64xf32>
    %c0_34 = arith.constant 0 : index
    %c0_35 = arith.constant 0 : index
    %35 = vector.load %arg13[%c0_34, %c0_35] : memref<169x64xf32, #tpu.memory_space<vmem>>, vector<28x64xf32>
    tpu.vector_store %arg13[%c0_34, %c0_35], %34 {strides = array<i32>} : memref<169x64xf32, #tpu.memory_space<vmem>>, vector<28x64xf32>,
    %cst_36 = arith.constant 0.000000e+00 : f32
    %36 = vector.broadcast %cst_36 : f32 to vector<4x64xf32>
    %c37 = arith.constant 37 : index
    %c0_37 = arith.constant 0 : index
    %37 = vector.load %arg13[%c37, %c0_37] : memref<169x64xf32, #tpu.memory_space<vmem>>, vector<4x64xf32>
    tpu.vector_store %arg13[%c37, %c0_37], %36 {strides = array<i32>} : memref<169x64xf32, #tpu.memory_space<vmem>>, vector<4x64xf32>,
    %cst_38 = arith.constant 0.000000e+00 : f32
    %38 = vector.broadcast %cst_38 : f32 to vector<4x64xf32>
    %c50 = arith.constant 50 : index
    %c0_39 = arith.constant 0 : index
    %39 = vector.load %arg13[%c50, %c0_39] : memref<169x64xf32, #tpu.memory_space<vmem>>, vector<4x64xf32>
    tpu.vector_store %arg13[%c50, %c0_39], %38 {strides = array<i32>} : memref<169x64xf32, #tpu.memory_space<vmem>>, vector<4x64xf32>,
    %cst_40 = arith.constant 0.000000e+00 : f32
    %40 = vector.broadcast %cst_40 : f32 to vector<4x64xf32>
    %c63 = arith.constant 63 : index
    %c0_41 = arith.constant 0 : index
    %41 = vector.load %arg13[%c63, %c0_41] : memref<169x64xf32, #tpu.memory_space<vmem>>, vector<4x64xf32>
    tpu.vector_store %arg13[%c63, %c0_41], %40 {strides = array<i32>} : memref<169x64xf32, #tpu.memory_space<vmem>>, vector<4x64xf32>,
    %cst_42 = arith.constant 0.000000e+00 : f32
    %42 = vector.broadcast %cst_42 : f32 to vector<4x64xf32>
    %c76 = arith.constant 76 : index
    %c0_43 = arith.constant 0 : index
    %43 = vector.load %arg13[%c76, %c0_43] : memref<169x64xf32, #tpu.memory_space<vmem>>, vector<4x64xf32>
    tpu.vector_store %arg13[%c76, %c0_43], %42 {strides = array<i32>} : memref<169x64xf32, #tpu.memory_space<vmem>>, vector<4x64xf32>,
    %cst_44 = arith.constant 0.000000e+00 : f32
    %44 = vector.broadcast %cst_44 : f32 to vector<4x64xf32>
    %c89 = arith.constant 89 : index
    %c0_45 = arith.constant 0 : index
    %45 = vector.load %arg13[%c89, %c0_45] : memref<169x64xf32, #tpu.memory_space<vmem>>, vector<4x64xf32>
    tpu.vector_store %arg13[%c89, %c0_45], %44 {strides = array<i32>} : memref<169x64xf32, #tpu.memory_space<vmem>>, vector<4x64xf32>,
    %cst_46 = arith.constant 0.000000e+00 : f32
    %46 = vector.broadcast %cst_46 : f32 to vector<4x64xf32>
    %c102 = arith.constant 102 : index
    %c0_47 = arith.constant 0 : index
    %47 = vector.load %arg13[%c102, %c0_47] : memref<169x64xf32, #tpu.memory_space<vmem>>, vector<4x64xf32>
    tpu.vector_store %arg13[%c102, %c0_47], %46 {strides = array<i32>} : memref<169x64xf32, #tpu.memory_space<vmem>>, vector<4x64xf32>,
    %cst_48 = arith.constant 0.000000e+00 : f32
    %48 = vector.broadcast %cst_48 : f32 to vector<4x64xf32>
    %c115 = arith.constant 115 : index
    %c0_49 = arith.constant 0 : index
    %49 = vector.load %arg13[%c115, %c0_49] : memref<169x64xf32, #tpu.memory_space<vmem>>, vector<4x64xf32>
    tpu.vector_store %arg13[%c115, %c0_49], %48 {strides = array<i32>} : memref<169x64xf32, #tpu.memory_space<vmem>>, vector<4x64xf32>,
    %cst_50 = arith.constant 0.000000e+00 : f32
    %50 = vector.broadcast %cst_50 : f32 to vector<4x64xf32>
    %c128 = arith.constant 128 : index
    %c0_51 = arith.constant 0 : index
    %51 = vector.load %arg13[%c128, %c0_51] : memref<169x64xf32, #tpu.memory_space<vmem>>, vector<4x64xf32>
    tpu.vector_store %arg13[%c128, %c0_51], %50 {strides = array<i32>} : memref<169x64xf32, #tpu.memory_space<vmem>>, vector<4x64xf32>,
    %cst_52 = arith.constant 0.000000e+00 : f32
    %52 = vector.broadcast %cst_52 : f32 to vector<28x64xf32>
    %c141 = arith.constant 141 : index
    %c0_53 = arith.constant 0 : index
    %53 = vector.load %arg13[%c141, %c0_53] : memref<169x64xf32, #tpu.memory_space<vmem>>, vector<28x64xf32>
    tpu.vector_store %arg13[%c141, %c0_53], %52 {strides = array<i32>} : memref<169x64xf32, #tpu.memory_space<vmem>>, vector<28x64xf32>,
    %cst_54 = arith.constant 0.000000e+00 : f32
    %54 = vector.broadcast %cst_54 : f32 to vector<32x32xf32>
    %c0_55 = arith.constant 0 : index
    %c0_56 = arith.constant 0 : index
    %55 = vector.load %arg14[%c0_55, %c0_56] : memref<225x32xf32, #tpu.memory_space<vmem>>, vector<32x32xf32>
    tpu.vector_store %arg14[%c0_55, %c0_56], %54 {strides = array<i32>} : memref<225x32xf32, #tpu.memory_space<vmem>>, vector<32x32xf32>,
    %cst_57 = arith.constant 0.000000e+00 : f32
    %56 = vector.broadcast %cst_57 : f32 to vector<4x32xf32>
    %c43 = arith.constant 43 : index
    %c0_58 = arith.constant 0 : index
    %57 = vector.load %arg14[%c43, %c0_58] : memref<225x32xf32, #tpu.memory_space<vmem>>, vector<4x32xf32>
    tpu.vector_store %arg14[%c43, %c0_58], %56 {strides = array<i32>} : memref<225x32xf32, #tpu.memory_space<vmem>>, vector<4x32xf32>,
    %cst_59 = arith.constant 0.000000e+00 : f32
    %58 = vector.broadcast %cst_59 : f32 to vector<4x32xf32>
    %c58_60 = arith.constant 58 : index
    %c0_61 = arith.constant 0 : index
    %59 = vector.load %arg14[%c58_60, %c0_61] : memref<225x32xf32, #tpu.memory_space<vmem>>, vector<4x32xf32>
    tpu.vector_store %arg14[%c58_60, %c0_61], %58 {strides = array<i32>} : memref<225x32xf32, #tpu.memory_space<vmem>>, vector<4x32xf32>,
    %cst_62 = arith.constant 0.000000e+00 : f32
    %60 = vector.broadcast %cst_62 : f32 to vector<4x32xf32>
    %c73 = arith.constant 73 : index
    %c0_63 = arith.constant 0 : index
    %61 = vector.load %arg14[%c73, %c0_63] : memref<225x32xf32, #tpu.memory_space<vmem>>, vector<4x32xf32>
    tpu.vector_store %arg14[%c73, %c0_63], %60 {strides = array<i32>} : memref<225x32xf32, #tpu.memory_space<vmem>>, vector<4x32xf32>,
    %cst_64 = arith.constant 0.000000e+00 : f32
    %62 = vector.broadcast %cst_64 : f32 to vector<4x32xf32>
    %c88 = arith.constant 88 : index
    %c0_65 = arith.constant 0 : index
    %63 = vector.load %arg14[%c88, %c0_65] : memref<225x32xf32, #tpu.memory_space<vmem>>, vector<4x32xf32>
    tpu.vector_store %arg14[%c88, %c0_65], %62 {strides = array<i32>} : memref<225x32xf32, #tpu.memory_space<vmem>>, vector<4x32xf32>,
    %cst_66 = arith.constant 0.000000e+00 : f32
    %64 = vector.broadcast %cst_66 : f32 to vector<4x32xf32>
    %c103 = arith.constant 103 : index
    %c0_67 = arith.constant 0 : index
    %65 = vector.load %arg14[%c103, %c0_67] : memref<225x32xf32, #tpu.memory_space<vmem>>, vector<4x32xf32>
    tpu.vector_store %arg14[%c103, %c0_67], %64 {strides = array<i32>} : memref<225x32xf32, #tpu.memory_space<vmem>>, vector<4x32xf32>,
    %cst_68 = arith.constant 0.000000e+00 : f32
    %66 = vector.broadcast %cst_68 : f32 to vector<4x32xf32>
    %c118_69 = arith.constant 118 : index
    %c0_70 = arith.constant 0 : index
    %67 = vector.load %arg14[%c118_69, %c0_70] : memref<225x32xf32, #tpu.memory_space<vmem>>, vector<4x32xf32>
    tpu.vector_store %arg14[%c118_69, %c0_70], %66 {strides = array<i32>} : memref<225x32xf32, #tpu.memory_space<vmem>>, vector<4x32xf32>,
    %cst_71 = arith.constant 0.000000e+00 : f32
    %68 = vector.broadcast %cst_71 : f32 to vector<4x32xf32>
    %c133 = arith.constant 133 : index
    %c0_72 = arith.constant 0 : index
    %69 = vector.load %arg14[%c133, %c0_72] : memref<225x32xf32, #tpu.memory_space<vmem>>, vector<4x32xf32>
    tpu.vector_store %arg14[%c133, %c0_72], %68 {strides = array<i32>} : memref<225x32xf32, #tpu.memory_space<vmem>>, vector<4x32xf32>,
    %cst_73 = arith.constant 0.000000e+00 : f32
    %70 = vector.broadcast %cst_73 : f32 to vector<4x32xf32>
    %c148 = arith.constant 148 : index
    %c0_74 = arith.constant 0 : index
    %71 = vector.load %arg14[%c148, %c0_74] : memref<225x32xf32, #tpu.memory_space<vmem>>, vector<4x32xf32>
    tpu.vector_store %arg14[%c148, %c0_74], %70 {strides = array<i32>} : memref<225x32xf32, #tpu.memory_space<vmem>>, vector<4x32xf32>,
    %cst_75 = arith.constant 0.000000e+00 : f32
    %72 = vector.broadcast %cst_75 : f32 to vector<4x32xf32>
    %c163 = arith.constant 163 : index
    %c0_76 = arith.constant 0 : index
    %73 = vector.load %arg14[%c163, %c0_76] : memref<225x32xf32, #tpu.memory_space<vmem>>, vector<4x32xf32>
    tpu.vector_store %arg14[%c163, %c0_76], %72 {strides = array<i32>} : memref<225x32xf32, #tpu.memory_space<vmem>>, vector<4x32xf32>,
    %cst_77 = arith.constant 0.000000e+00 : f32
    %74 = vector.broadcast %cst_77 : f32 to vector<4x32xf32>
    %c178_78 = arith.constant 178 : index
    %c0_79 = arith.constant 0 : index
    %75 = vector.load %arg14[%c178_78, %c0_79] : memref<225x32xf32, #tpu.memory_space<vmem>>, vector<4x32xf32>
    tpu.vector_store %arg14[%c178_78, %c0_79], %74 {strides = array<i32>} : memref<225x32xf32, #tpu.memory_space<vmem>>, vector<4x32xf32>,
    %cst_80 = arith.constant 0.000000e+00 : f32
    %76 = vector.broadcast %cst_80 : f32 to vector<32x32xf32>
    %c193 = arith.constant 193 : index
    %c0_81 = arith.constant 0 : index
    %77 = vector.load %arg14[%c193, %c0_81] : memref<225x32xf32, #tpu.memory_space<vmem>>, vector<32x32xf32>
    tpu.vector_store %arg14[%c193, %c0_81], %76 {strides = array<i32>} : memref<225x32xf32, #tpu.memory_space<vmem>>, vector<32x32xf32>,
    %cst_82 = arith.constant 0.000000e+00 : f32
    %78 = vector.broadcast %cst_82 : f32 to vector<4x32xf32>
    %c0_i32 = arith.constant 0 : i32
    %c4_i32 = arith.constant 4 : i32
    %79 = arith.addi %c0_i32, %c4_i32 : i32
    %c1_i32 = arith.constant 1 : i32
    %80 = scf.for %arg18 = %c0_i32 to %79 step %c1_i32 iter_args(%arg19 = %78) -> (vector<4x32xf32>)  : i32 {
      %84 = arith.index_cast %arg18 : i32 to index
      %c0_87 = arith.constant 0 : index
      %c0_88 = arith.constant 0 : index
      %c0_89 = arith.constant 0 : index
      %85 = vector.load %arg1[%84, %c0_87, %c0_88, %c0_89] : memref<4x16x16x3xf32, #tpu.memory_space<vmem>>, vector<1x16x16x3xf32>
      %86 = vector.shape_cast %85 : vector<1x16x16x3xf32> to vector<16x16x3xf32>
      %87 = vector.extract_strided_slice %86 {offsets = [0, 0, 0], sizes = [1, 16, 3], strides = [1, 1, 1]} : vector<16x16x3xf32> to vector<1x16x3xf32>
      %88 = vector.shape_cast %87 : vector<1x16x3xf32> to vector<16x3xf32>
      %c42 = arith.constant 42 : index
      %c0_90 = arith.constant 0 : index
      %89 = vector.load %arg12[%c42, %c0_90] : memref<400x3xf32, #tpu.memory_space<vmem>>, vector<16x3xf32>
      tpu.vector_store %arg12[%c42, %c0_90], %88 {strides = array<i32>} : memref<400x3xf32, #tpu.memory_space<vmem>>, vector<16x3xf32>,
      %90 = vector.extract_strided_slice %86 {offsets = [1, 0, 0], sizes = [1, 16, 3], strides = [1, 1, 1]} : vector<16x16x3xf32> to vector<1x16x3xf32>
      %91 = vector.shape_cast %90 : vector<1x16x3xf32> to vector<16x3xf32>
      %c62 = arith.constant 62 : index
      %c0_91 = arith.constant 0 : index
      %92 = vector.load %arg12[%c62, %c0_91] : memref<400x3xf32, #tpu.memory_space<vmem>>, vector<16x3xf32>
      tpu.vector_store %arg12[%c62, %c0_91], %91 {strides = array<i32>} : memref<400x3xf32, #tpu.memory_space<vmem>>, vector<16x3xf32>,
      %93 = vector.extract_strided_slice %86 {offsets = [2, 0, 0], sizes = [1, 16, 3], strides = [1, 1, 1]} : vector<16x16x3xf32> to vector<1x16x3xf32>
      %94 = vector.shape_cast %93 : vector<1x16x3xf32> to vector<16x3xf32>
      %c82 = arith.constant 82 : index
      %c0_92 = arith.constant 0 : index
      %95 = vector.load %arg12[%c82, %c0_92] : memref<400x3xf32, #tpu.memory_space<vmem>>, vector<16x3xf32>
      tpu.vector_store %arg12[%c82, %c0_92], %94 {strides = array<i32>} : memref<400x3xf32, #tpu.memory_space<vmem>>, vector<16x3xf32>,
      %96 = vector.extract_strided_slice %86 {offsets = [3, 0, 0], sizes = [1, 16, 3], strides = [1, 1, 1]} : vector<16x16x3xf32> to vector<1x16x3xf32>
      %97 = vector.shape_cast %96 : vector<1x16x3xf32> to vector<16x3xf32>
      %c102_93 = arith.constant 102 : index
      %c0_94 = arith.constant 0 : index
      %98 = vector.load %arg12[%c102_93, %c0_94] : memref<400x3xf32, #tpu.memory_space<vmem>>, vector<16x3xf32>
      tpu.vector_store %arg12[%c102_93, %c0_94], %97 {strides = array<i32>} : memref<400x3xf32, #tpu.memory_space<vmem>>, vector<16x3xf32>,
      %99 = vector.extract_strided_slice %86 {offsets = [4, 0, 0], sizes = [1, 16, 3], strides = [1, 1, 1]} : vector<16x16x3xf32> to vector<1x16x3xf32>
      %100 = vector.shape_cast %99 : vector<1x16x3xf32> to vector<16x3xf32>
      %c122 = arith.constant 122 : index
      %c0_95 = arith.constant 0 : index
      %101 = vector.load %arg12[%c122, %c0_95] : memref<400x3xf32, #tpu.memory_space<vmem>>, vector<16x3xf32>
      tpu.vector_store %arg12[%c122, %c0_95], %100 {strides = array<i32>} : memref<400x3xf32, #tpu.memory_space<vmem>>, vector<16x3xf32>,
      %102 = vector.extract_strided_slice %86 {offsets = [5, 0, 0], sizes = [1, 16, 3], strides = [1, 1, 1]} : vector<16x16x3xf32> to vector<1x16x3xf32>
      %103 = vector.shape_cast %102 : vector<1x16x3xf32> to vector<16x3xf32>
      %c142 = arith.constant 142 : index
      %c0_96 = arith.constant 0 : index
      %104 = vector.load %arg12[%c142, %c0_96] : memref<400x3xf32, #tpu.memory_space<vmem>>, vector<16x3xf32>
      tpu.vector_store %arg12[%c142, %c0_96], %103 {strides = array<i32>} : memref<400x3xf32, #tpu.memory_space<vmem>>, vector<16x3xf32>,
      %105 = vector.extract_strided_slice %86 {offsets = [6, 0, 0], sizes = [1, 16, 3], strides = [1, 1, 1]} : vector<16x16x3xf32> to vector<1x16x3xf32>
      %106 = vector.shape_cast %105 : vector<1x16x3xf32> to vector<16x3xf32>
      %c162 = arith.constant 162 : index
      %c0_97 = arith.constant 0 : index
      %107 = vector.load %arg12[%c162, %c0_97] : memref<400x3xf32, #tpu.memory_space<vmem>>, vector<16x3xf32>
      tpu.vector_store %arg12[%c162, %c0_97], %106 {strides = array<i32>} : memref<400x3xf32, #tpu.memory_space<vmem>>, vector<16x3xf32>,
      %108 = vector.extract_strided_slice %86 {offsets = [7, 0, 0], sizes = [1, 16, 3], strides = [1, 1, 1]} : vector<16x16x3xf32> to vector<1x16x3xf32>
      %109 = vector.shape_cast %108 : vector<1x16x3xf32> to vector<16x3xf32>
      %c182 = arith.constant 182 : index
      %c0_98 = arith.constant 0 : index
      %110 = vector.load %arg12[%c182, %c0_98] : memref<400x3xf32, #tpu.memory_space<vmem>>, vector<16x3xf32>
      tpu.vector_store %arg12[%c182, %c0_98], %109 {strides = array<i32>} : memref<400x3xf32, #tpu.memory_space<vmem>>, vector<16x3xf32>,
      %111 = vector.extract_strided_slice %86 {offsets = [8, 0, 0], sizes = [1, 16, 3], strides = [1, 1, 1]} : vector<16x16x3xf32> to vector<1x16x3xf32>
      %112 = vector.shape_cast %111 : vector<1x16x3xf32> to vector<16x3xf32>
      %c202 = arith.constant 202 : index
      %c0_99 = arith.constant 0 : index
      %113 = vector.load %arg12[%c202, %c0_99] : memref<400x3xf32, #tpu.memory_space<vmem>>, vector<16x3xf32>
      tpu.vector_store %arg12[%c202, %c0_99], %112 {strides = array<i32>} : memref<400x3xf32, #tpu.memory_space<vmem>>, vector<16x3xf32>,
      %114 = vector.extract_strided_slice %86 {offsets = [9, 0, 0], sizes = [1, 16, 3], strides = [1, 1, 1]} : vector<16x16x3xf32> to vector<1x16x3xf32>
      %115 = vector.shape_cast %114 : vector<1x16x3xf32> to vector<16x3xf32>
      %c222 = arith.constant 222 : index
      %c0_100 = arith.constant 0 : index
      %116 = vector.load %arg12[%c222, %c0_100] : memref<400x3xf32, #tpu.memory_space<vmem>>, vector<16x3xf32>
      tpu.vector_store %arg12[%c222, %c0_100], %115 {strides = array<i32>} : memref<400x3xf32, #tpu.memory_space<vmem>>, vector<16x3xf32>,
      %117 = vector.extract_strided_slice %86 {offsets = [10, 0, 0], sizes = [1, 16, 3], strides = [1, 1, 1]} : vector<16x16x3xf32> to vector<1x16x3xf32>
      %118 = vector.shape_cast %117 : vector<1x16x3xf32> to vector<16x3xf32>
      %c242 = arith.constant 242 : index
      %c0_101 = arith.constant 0 : index
      %119 = vector.load %arg12[%c242, %c0_101] : memref<400x3xf32, #tpu.memory_space<vmem>>, vector<16x3xf32>
      tpu.vector_store %arg12[%c242, %c0_101], %118 {strides = array<i32>} : memref<400x3xf32, #tpu.memory_space<vmem>>, vector<16x3xf32>,
      %120 = vector.extract_strided_slice %86 {offsets = [11, 0, 0], sizes = [1, 16, 3], strides = [1, 1, 1]} : vector<16x16x3xf32> to vector<1x16x3xf32>
      %121 = vector.shape_cast %120 : vector<1x16x3xf32> to vector<16x3xf32>
      %c262 = arith.constant 262 : index
      %c0_102 = arith.constant 0 : index
      %122 = vector.load %arg12[%c262, %c0_102] : memref<400x3xf32, #tpu.memory_space<vmem>>, vector<16x3xf32>
      tpu.vector_store %arg12[%c262, %c0_102], %121 {strides = array<i32>} : memref<400x3xf32, #tpu.memory_space<vmem>>, vector<16x3xf32>,
      %123 = vector.extract_strided_slice %86 {offsets = [12, 0, 0], sizes = [1, 16, 3], strides = [1, 1, 1]} : vector<16x16x3xf32> to vector<1x16x3xf32>
      %124 = vector.shape_cast %123 : vector<1x16x3xf32> to vector<16x3xf32>
      %c282 = arith.constant 282 : index
      %c0_103 = arith.constant 0 : index
      %125 = vector.load %arg12[%c282, %c0_103] : memref<400x3xf32, #tpu.memory_space<vmem>>, vector<16x3xf32>
      tpu.vector_store %arg12[%c282, %c0_103], %124 {strides = array<i32>} : memref<400x3xf32, #tpu.memory_space<vmem>>, vector<16x3xf32>,
      %126 = vector.extract_strided_slice %86 {offsets = [13, 0, 0], sizes = [1, 16, 3], strides = [1, 1, 1]} : vector<16x16x3xf32> to vector<1x16x3xf32>
      %127 = vector.shape_cast %126 : vector<1x16x3xf32> to vector<16x3xf32>
      %c302 = arith.constant 302 : index
      %c0_104 = arith.constant 0 : index
      %128 = vector.load %arg12[%c302, %c0_104] : memref<400x3xf32, #tpu.memory_space<vmem>>, vector<16x3xf32>
      tpu.vector_store %arg12[%c302, %c0_104], %127 {strides = array<i32>} : memref<400x3xf32, #tpu.memory_space<vmem>>, vector<16x3xf32>,
      %129 = vector.extract_strided_slice %86 {offsets = [14, 0, 0], sizes = [1, 16, 3], strides = [1, 1, 1]} : vector<16x16x3xf32> to vector<1x16x3xf32>
      %130 = vector.shape_cast %129 : vector<1x16x3xf32> to vector<16x3xf32>
      %c322 = arith.constant 322 : index
      %c0_105 = arith.constant 0 : index
      %131 = vector.load %arg12[%c322, %c0_105] : memref<400x3xf32, #tpu.memory_space<vmem>>, vector<16x3xf32>
      tpu.vector_store %arg12[%c322, %c0_105], %130 {strides = array<i32>} : memref<400x3xf32, #tpu.memory_space<vmem>>, vector<16x3xf32>,
      %132 = vector.extract_strided_slice %86 {offsets = [15, 0, 0], sizes = [1, 16, 3], strides = [1, 1, 1]} : vector<16x16x3xf32> to vector<1x16x3xf32>
      %133 = vector.shape_cast %132 : vector<1x16x3xf32> to vector<16x3xf32>
      %c342 = arith.constant 342 : index
      %c0_106 = arith.constant 0 : index
      %134 = vector.load %arg12[%c342, %c0_106] : memref<400x3xf32, #tpu.memory_space<vmem>>, vector<16x3xf32>
      tpu.vector_store %arg12[%c342, %c0_106], %133 {strides = array<i32>} : memref<400x3xf32, #tpu.memory_space<vmem>>, vector<16x3xf32>,
      %c0_107 = arith.constant 0 : index
      %c0_108 = arith.constant 0 : index
      %135 = vector.load %arg12[%c0_107, %c0_108] : memref<400x3xf32, #tpu.memory_space<vmem>>, vector<358x3xf32>
      %c0_109 = arith.constant 0 : index
      %c0_110 = arith.constant 0 : index
      %c0_111 = arith.constant 0 : index
      %136 = vector.load %arg2[%c0_109, %c0_110, %c0_111] : memref<9x3x64xf32, #tpu.memory_space<vmem>>, vector<1x3x64xf32>
      %137 = vector.shape_cast %136 : vector<1x3x64xf32> to vector<3x64xf32>
      %cst_112 = arith.constant dense<0.000000e+00> : vector<358x64xf32>
      %138 = tpu.matmul %135, %137, %cst_112 {dimension_numbers = #tpu.dot_dimension_numbers<[1], [0], [0], [1], [0, 0, 1, 1], [], []>} : vector<358x3xf32>, vector<3x64xf32>, vector<358x64xf32> -> vector<358x64xf32>
      %c1 = arith.constant 1 : index
      %c0_113 = arith.constant 0 : index
      %139 = vector.load %arg12[%c1, %c0_113] : memref<400x3xf32, #tpu.memory_space<vmem>>, vector<358x3xf32>
      %c1_114 = arith.constant 1 : index
      %c0_115 = arith.constant 0 : index
      %c0_116 = arith.constant 0 : index
      %140 = vector.load %arg2[%c1_114, %c0_115, %c0_116] : memref<9x3x64xf32, #tpu.memory_space<vmem>>, vector<1x3x64xf32>
      %141 = vector.shape_cast %140 : vector<1x3x64xf32> to vector<3x64xf32>
      %cst_117 = arith.constant dense<0.000000e+00> : vector<358x64xf32>
      %142 = tpu.matmul %139, %141, %cst_117 {dimension_numbers = #tpu.dot_dimension_numbers<[1], [0], [0], [1], [0, 0, 1, 1], [], []>} : vector<358x3xf32>, vector<3x64xf32>, vector<358x64xf32> -> vector<358x64xf32>
      %143 = arith.addf %138, %142 : vector<358x64xf32>
      %c2 = arith.constant 2 : index
      %c0_118 = arith.constant 0 : index
      %144 = vector.load %arg12[%c2, %c0_118] : memref<400x3xf32, #tpu.memory_space<vmem>>, vector<358x3xf32>
      %c2_119 = arith.constant 2 : index
      %c0_120 = arith.constant 0 : index
      %c0_121 = arith.constant 0 : index
      %145 = vector.load %arg2[%c2_119, %c0_120, %c0_121] : memref<9x3x64xf32, #tpu.memory_space<vmem>>, vector<1x3x64xf32>
      %146 = vector.shape_cast %145 : vector<1x3x64xf32> to vector<3x64xf32>
      %cst_122 = arith.constant dense<0.000000e+00> : vector<358x64xf32>
      %147 = tpu.matmul %144, %146, %cst_122 {dimension_numbers = #tpu.dot_dimension_numbers<[1], [0], [0], [1], [0, 0, 1, 1], [], []>} : vector<358x3xf32>, vector<3x64xf32>, vector<358x64xf32> -> vector<358x64xf32>
      %148 = arith.addf %143, %147 : vector<358x64xf32>
      %c20 = arith.constant 20 : index
      %c0_123 = arith.constant 0 : index
      %149 = vector.load %arg12[%c20, %c0_123] : memref<400x3xf32, #tpu.memory_space<vmem>>, vector<358x3xf32>
      %c3 = arith.constant 3 : index
      %c0_124 = arith.constant 0 : index
      %c0_125 = arith.constant 0 : index
      %150 = vector.load %arg2[%c3, %c0_124, %c0_125] : memref<9x3x64xf32, #tpu.memory_space<vmem>>, vector<1x3x64xf32>
      %151 = vector.shape_cast %150 : vector<1x3x64xf32> to vector<3x64xf32>
      %cst_126 = arith.constant dense<0.000000e+00> : vector<358x64xf32>
      %152 = tpu.matmul %149, %151, %cst_126 {dimension_numbers = #tpu.dot_dimension_numbers<[1], [0], [0], [1], [0, 0, 1, 1], [], []>} : vector<358x3xf32>, vector<3x64xf32>, vector<358x64xf32> -> vector<358x64xf32>
      %153 = arith.addf %148, %152 : vector<358x64xf32>
      %c21 = arith.constant 21 : index
      %c0_127 = arith.constant 0 : index
      %154 = vector.load %arg12[%c21, %c0_127] : memref<400x3xf32, #tpu.memory_space<vmem>>, vector<358x3xf32>
      %c4 = arith.constant 4 : index
      %c0_128 = arith.constant 0 : index
      %c0_129 = arith.constant 0 : index
      %155 = vector.load %arg2[%c4, %c0_128, %c0_129] : memref<9x3x64xf32, #tpu.memory_space<vmem>>, vector<1x3x64xf32>
      %156 = vector.shape_cast %155 : vector<1x3x64xf32> to vector<3x64xf32>
      %cst_130 = arith.constant dense<0.000000e+00> : vector<358x64xf32>
      %157 = tpu.matmul %154, %156, %cst_130 {dimension_numbers = #tpu.dot_dimension_numbers<[1], [0], [0], [1], [0, 0, 1, 1], [], []>} : vector<358x3xf32>, vector<3x64xf32>, vector<358x64xf32> -> vector<358x64xf32>
      %158 = arith.addf %153, %157 : vector<358x64xf32>
      %c22 = arith.constant 22 : index
      %c0_131 = arith.constant 0 : index
      %159 = vector.load %arg12[%c22, %c0_131] : memref<400x3xf32, #tpu.memory_space<vmem>>, vector<358x3xf32>
      %c5 = arith.constant 5 : index
      %c0_132 = arith.constant 0 : index
      %c0_133 = arith.constant 0 : index
      %160 = vector.load %arg2[%c5, %c0_132, %c0_133] : memref<9x3x64xf32, #tpu.memory_space<vmem>>, vector<1x3x64xf32>
      %161 = vector.shape_cast %160 : vector<1x3x64xf32> to vector<3x64xf32>
      %cst_134 = arith.constant dense<0.000000e+00> : vector<358x64xf32>
      %162 = tpu.matmul %159, %161, %cst_134 {dimension_numbers = #tpu.dot_dimension_numbers<[1], [0], [0], [1], [0, 0, 1, 1], [], []>} : vector<358x3xf32>, vector<3x64xf32>, vector<358x64xf32> -> vector<358x64xf32>
      %163 = arith.addf %158, %162 : vector<358x64xf32>
      %c40 = arith.constant 40 : index
      %c0_135 = arith.constant 0 : index
      %164 = vector.load %arg12[%c40, %c0_135] : memref<400x3xf32, #tpu.memory_space<vmem>>, vector<358x3xf32>
      %c6 = arith.constant 6 : index
      %c0_136 = arith.constant 0 : index
      %c0_137 = arith.constant 0 : index
      %165 = vector.load %arg2[%c6, %c0_136, %c0_137] : memref<9x3x64xf32, #tpu.memory_space<vmem>>, vector<1x3x64xf32>
      %166 = vector.shape_cast %165 : vector<1x3x64xf32> to vector<3x64xf32>
      %cst_138 = arith.constant dense<0.000000e+00> : vector<358x64xf32>
      %167 = tpu.matmul %164, %166, %cst_138 {dimension_numbers = #tpu.dot_dimension_numbers<[1], [0], [0], [1], [0, 0, 1, 1], [], []>} : vector<358x3xf32>, vector<3x64xf32>, vector<358x64xf32> -> vector<358x64xf32>
      %168 = arith.addf %163, %167 : vector<358x64xf32>
      %c41 = arith.constant 41 : index
      %c0_139 = arith.constant 0 : index
      %169 = vector.load %arg12[%c41, %c0_139] : memref<400x3xf32, #tpu.memory_space<vmem>>, vector<358x3xf32>
      %c7 = arith.constant 7 : index
      %c0_140 = arith.constant 0 : index
      %c0_141 = arith.constant 0 : index
      %170 = vector.load %arg2[%c7, %c0_140, %c0_141] : memref<9x3x64xf32, #tpu.memory_space<vmem>>, vector<1x3x64xf32>
      %171 = vector.shape_cast %170 : vector<1x3x64xf32> to vector<3x64xf32>
      %cst_142 = arith.constant dense<0.000000e+00> : vector<358x64xf32>
      %172 = tpu.matmul %169, %171, %cst_142 {dimension_numbers = #tpu.dot_dimension_numbers<[1], [0], [0], [1], [0, 0, 1, 1], [], []>} : vector<358x3xf32>, vector<3x64xf32>, vector<358x64xf32> -> vector<358x64xf32>
      %173 = arith.addf %168, %172 : vector<358x64xf32>
      %c42_143 = arith.constant 42 : index
      %c0_144 = arith.constant 0 : index
      %174 = vector.load %arg12[%c42_143, %c0_144] : memref<400x3xf32, #tpu.memory_space<vmem>>, vector<358x3xf32>
      %c8 = arith.constant 8 : index
      %c0_145 = arith.constant 0 : index
      %c0_146 = arith.constant 0 : index
      %175 = vector.load %arg2[%c8, %c0_145, %c0_146] : memref<9x3x64xf32, #tpu.memory_space<vmem>>, vector<1x3x64xf32>
      %176 = vector.shape_cast %175 : vector<1x3x64xf32> to vector<3x64xf32>
      %cst_147 = arith.constant dense<0.000000e+00> : vector<358x64xf32>
      %177 = tpu.matmul %174, %176, %cst_147 {dimension_numbers = #tpu.dot_dimension_numbers<[1], [0], [0], [1], [0, 0, 1, 1], [], []>} : vector<358x3xf32>, vector<3x64xf32>, vector<358x64xf32> -> vector<358x64xf32>
      %178 = arith.addf %173, %177 : vector<358x64xf32>
      %c0_148 = arith.constant 0 : index
      %c0_149 = arith.constant 0 : index
      %179 = vector.load %arg3[%c0_148, %c0_149] : memref<1x64xf32, #tpu.memory_space<vmem>>, vector<1x64xf32>
      %180 = vector.broadcast %179 : vector<1x64xf32> to vector<358x64xf32>
      %181 = arith.addf %178, %180 : vector<358x64xf32>
      %cst_150 = arith.constant 0.000000e+00 : f32
      %182 = vector.broadcast %cst_150 : f32 to vector<358x64xf32>
      %183 = arith.maximumf %181, %182 : vector<358x64xf32>
      %184 = vector.extract_strided_slice %183 {offsets = [0, 0], sizes = [18, 64], strides = [1, 1]} : vector<358x64xf32> to vector<18x64xf32>
      %185 = vector.extract_strided_slice %183 {offsets = [20, 0], sizes = [18, 64], strides = [1, 1]} : vector<358x64xf32> to vector<18x64xf32>
      %186 = arith.maximumf %184, %185 : vector<18x64xf32>
      %c0_151 = arith.constant 0 : index
      %c0_152 = arith.constant 0 : index
      %187 = vector.load %arg16[%c0_151, %c0_152] : memref<18x64xf32, #tpu.memory_space<vmem>>, vector<18x64xf32>
      tpu.vector_store %arg16[%c0_151, %c0_152], %186 {strides = array<i32>} : memref<18x64xf32, #tpu.memory_space<vmem>>, vector<18x64xf32>,
      %c0_153 = arith.constant 0 : index
      %c0_154 = arith.constant 0 : index
      %188 = tpu.strided_load %arg16[%c0_153, %c0_154] {strides = array<i32: 2, 1>} : memref<18x64xf32, #tpu.memory_space<vmem>>, vector<9x64xf32>
      %c1_155 = arith.constant 1 : index
      %c0_156 = arith.constant 0 : index
      %189 = tpu.strided_load %arg16[%c1_155, %c0_156] {strides = array<i32: 2, 1>} : memref<18x64xf32, #tpu.memory_space<vmem>>, vector<9x64xf32>
      %190 = arith.maximumf %188, %189 : vector<9x64xf32>
      %c28 = arith.constant 28 : index
      %c0_157 = arith.constant 0 : index
      %191 = vector.load %arg13[%c28, %c0_157] : memref<169x64xf32, #tpu.memory_space<vmem>>, vector<9x64xf32>
      tpu.vector_store %arg13[%c28, %c0_157], %190 {strides = array<i32>} : memref<169x64xf32, #tpu.memory_space<vmem>>, vector<9x64xf32>,
      %192 = vector.extract_strided_slice %183 {offsets = [40, 0], sizes = [18, 64], strides = [1, 1]} : vector<358x64xf32> to vector<18x64xf32>
      %193 = vector.extract_strided_slice %183 {offsets = [60, 0], sizes = [18, 64], strides = [1, 1]} : vector<358x64xf32> to vector<18x64xf32>
      %194 = arith.maximumf %192, %193 : vector<18x64xf32>
      %c0_158 = arith.constant 0 : index
      %c0_159 = arith.constant 0 : index
      %195 = vector.load %arg16[%c0_158, %c0_159] : memref<18x64xf32, #tpu.memory_space<vmem>>, vector<18x64xf32>
      tpu.vector_store %arg16[%c0_158, %c0_159], %194 {strides = array<i32>} : memref<18x64xf32, #tpu.memory_space<vmem>>, vector<18x64xf32>,
      %c0_160 = arith.constant 0 : index
      %c0_161 = arith.constant 0 : index
      %196 = tpu.strided_load %arg16[%c0_160, %c0_161] {strides = array<i32: 2, 1>} : memref<18x64xf32, #tpu.memory_space<vmem>>, vector<9x64xf32>
      %c1_162 = arith.constant 1 : index
      %c0_163 = arith.constant 0 : index
      %197 = tpu.strided_load %arg16[%c1_162, %c0_163] {strides = array<i32: 2, 1>} : memref<18x64xf32, #tpu.memory_space<vmem>>, vector<9x64xf32>
      %198 = arith.maximumf %196, %197 : vector<9x64xf32>
      %c41_164 = arith.constant 41 : index
      %c0_165 = arith.constant 0 : index
      %199 = vector.load %arg13[%c41_164, %c0_165] : memref<169x64xf32, #tpu.memory_space<vmem>>, vector<9x64xf32>
      tpu.vector_store %arg13[%c41_164, %c0_165], %198 {strides = array<i32>} : memref<169x64xf32, #tpu.memory_space<vmem>>, vector<9x64xf32>,
      %200 = vector.extract_strided_slice %183 {offsets = [80, 0], sizes = [18, 64], strides = [1, 1]} : vector<358x64xf32> to vector<18x64xf32>
      %201 = vector.extract_strided_slice %183 {offsets = [100, 0], sizes = [18, 64], strides = [1, 1]} : vector<358x64xf32> to vector<18x64xf32>
      %202 = arith.maximumf %200, %201 : vector<18x64xf32>
      %c0_166 = arith.constant 0 : index
      %c0_167 = arith.constant 0 : index
      %203 = vector.load %arg16[%c0_166, %c0_167] : memref<18x64xf32, #tpu.memory_space<vmem>>, vector<18x64xf32>
      tpu.vector_store %arg16[%c0_166, %c0_167], %202 {strides = array<i32>} : memref<18x64xf32, #tpu.memory_space<vmem>>, vector<18x64xf32>,
      %c0_168 = arith.constant 0 : index
      %c0_169 = arith.constant 0 : index
      %204 = tpu.strided_load %arg16[%c0_168, %c0_169] {strides = array<i32: 2, 1>} : memref<18x64xf32, #tpu.memory_space<vmem>>, vector<9x64xf32>
      %c1_170 = arith.constant 1 : index
      %c0_171 = arith.constant 0 : index
      %205 = tpu.strided_load %arg16[%c1_170, %c0_171] {strides = array<i32: 2, 1>} : memref<18x64xf32, #tpu.memory_space<vmem>>, vector<9x64xf32>
      %206 = arith.maximumf %204, %205 : vector<9x64xf32>
      %c54 = arith.constant 54 : index
      %c0_172 = arith.constant 0 : index
      %207 = vector.load %arg13[%c54, %c0_172] : memref<169x64xf32, #tpu.memory_space<vmem>>, vector<9x64xf32>
      tpu.vector_store %arg13[%c54, %c0_172], %206 {strides = array<i32>} : memref<169x64xf32, #tpu.memory_space<vmem>>, vector<9x64xf32>,
      %208 = vector.extract_strided_slice %183 {offsets = [120, 0], sizes = [18, 64], strides = [1, 1]} : vector<358x64xf32> to vector<18x64xf32>
      %209 = vector.extract_strided_slice %183 {offsets = [140, 0], sizes = [18, 64], strides = [1, 1]} : vector<358x64xf32> to vector<18x64xf32>
      %210 = arith.maximumf %208, %209 : vector<18x64xf32>
      %c0_173 = arith.constant 0 : index
      %c0_174 = arith.constant 0 : index
      %211 = vector.load %arg16[%c0_173, %c0_174] : memref<18x64xf32, #tpu.memory_space<vmem>>, vector<18x64xf32>
      tpu.vector_store %arg16[%c0_173, %c0_174], %210 {strides = array<i32>} : memref<18x64xf32, #tpu.memory_space<vmem>>, vector<18x64xf32>,
      %c0_175 = arith.constant 0 : index
      %c0_176 = arith.constant 0 : index
      %212 = tpu.strided_load %arg16[%c0_175, %c0_176] {strides = array<i32: 2, 1>} : memref<18x64xf32, #tpu.memory_space<vmem>>, vector<9x64xf32>
      %c1_177 = arith.constant 1 : index
      %c0_178 = arith.constant 0 : index
      %213 = tpu.strided_load %arg16[%c1_177, %c0_178] {strides = array<i32: 2, 1>} : memref<18x64xf32, #tpu.memory_space<vmem>>, vector<9x64xf32>
      %214 = arith.maximumf %212, %213 : vector<9x64xf32>
      %c67 = arith.constant 67 : index
      %c0_179 = arith.constant 0 : index
      %215 = vector.load %arg13[%c67, %c0_179] : memref<169x64xf32, #tpu.memory_space<vmem>>, vector<9x64xf32>
      tpu.vector_store %arg13[%c67, %c0_179], %214 {strides = array<i32>} : memref<169x64xf32, #tpu.memory_space<vmem>>, vector<9x64xf32>,
      %216 = vector.extract_strided_slice %183 {offsets = [160, 0], sizes = [18, 64], strides = [1, 1]} : vector<358x64xf32> to vector<18x64xf32>
      %217 = vector.extract_strided_slice %183 {offsets = [180, 0], sizes = [18, 64], strides = [1, 1]} : vector<358x64xf32> to vector<18x64xf32>
      %218 = arith.maximumf %216, %217 : vector<18x64xf32>
      %c0_180 = arith.constant 0 : index
      %c0_181 = arith.constant 0 : index
      %219 = vector.load %arg16[%c0_180, %c0_181] : memref<18x64xf32, #tpu.memory_space<vmem>>, vector<18x64xf32>
      tpu.vector_store %arg16[%c0_180, %c0_181], %218 {strides = array<i32>} : memref<18x64xf32, #tpu.memory_space<vmem>>, vector<18x64xf32>,
      %c0_182 = arith.constant 0 : index
      %c0_183 = arith.constant 0 : index
      %220 = tpu.strided_load %arg16[%c0_182, %c0_183] {strides = array<i32: 2, 1>} : memref<18x64xf32, #tpu.memory_space<vmem>>, vector<9x64xf32>
      %c1_184 = arith.constant 1 : index
      %c0_185 = arith.constant 0 : index
      %221 = tpu.strided_load %arg16[%c1_184, %c0_185] {strides = array<i32: 2, 1>} : memref<18x64xf32, #tpu.memory_space<vmem>>, vector<9x64xf32>
      %222 = arith.maximumf %220, %221 : vector<9x64xf32>
      %c80 = arith.constant 80 : index
      %c0_186 = arith.constant 0 : index
      %223 = vector.load %arg13[%c80, %c0_186] : memref<169x64xf32, #tpu.memory_space<vmem>>, vector<9x64xf32>
      tpu.vector_store %arg13[%c80, %c0_186], %222 {strides = array<i32>} : memref<169x64xf32, #tpu.memory_space<vmem>>, vector<9x64xf32>,
      %224 = vector.extract_strided_slice %183 {offsets = [200, 0], sizes = [18, 64], strides = [1, 1]} : vector<358x64xf32> to vector<18x64xf32>
      %225 = vector.extract_strided_slice %183 {offsets = [220, 0], sizes = [18, 64], strides = [1, 1]} : vector<358x64xf32> to vector<18x64xf32>
      %226 = arith.maximumf %224, %225 : vector<18x64xf32>
      %c0_187 = arith.constant 0 : index
      %c0_188 = arith.constant 0 : index
      %227 = vector.load %arg16[%c0_187, %c0_188] : memref<18x64xf32, #tpu.memory_space<vmem>>, vector<18x64xf32>
      tpu.vector_store %arg16[%c0_187, %c0_188], %226 {strides = array<i32>} : memref<18x64xf32, #tpu.memory_space<vmem>>, vector<18x64xf32>,
      %c0_189 = arith.constant 0 : index
      %c0_190 = arith.constant 0 : index
      %228 = tpu.strided_load %arg16[%c0_189, %c0_190] {strides = array<i32: 2, 1>} : memref<18x64xf32, #tpu.memory_space<vmem>>, vector<9x64xf32>
      %c1_191 = arith.constant 1 : index
      %c0_192 = arith.constant 0 : index
      %229 = tpu.strided_load %arg16[%c1_191, %c0_192] {strides = array<i32: 2, 1>} : memref<18x64xf32, #tpu.memory_space<vmem>>, vector<9x64xf32>
      %230 = arith.maximumf %228, %229 : vector<9x64xf32>
      %c93 = arith.constant 93 : index
      %c0_193 = arith.constant 0 : index
      %231 = vector.load %arg13[%c93, %c0_193] : memref<169x64xf32, #tpu.memory_space<vmem>>, vector<9x64xf32>
      tpu.vector_store %arg13[%c93, %c0_193], %230 {strides = array<i32>} : memref<169x64xf32, #tpu.memory_space<vmem>>, vector<9x64xf32>,
      %232 = vector.extract_strided_slice %183 {offsets = [240, 0], sizes = [18, 64], strides = [1, 1]} : vector<358x64xf32> to vector<18x64xf32>
      %233 = vector.extract_strided_slice %183 {offsets = [260, 0], sizes = [18, 64], strides = [1, 1]} : vector<358x64xf32> to vector<18x64xf32>
      %234 = arith.maximumf %232, %233 : vector<18x64xf32>
      %c0_194 = arith.constant 0 : index
      %c0_195 = arith.constant 0 : index
      %235 = vector.load %arg16[%c0_194, %c0_195] : memref<18x64xf32, #tpu.memory_space<vmem>>, vector<18x64xf32>
      tpu.vector_store %arg16[%c0_194, %c0_195], %234 {strides = array<i32>} : memref<18x64xf32, #tpu.memory_space<vmem>>, vector<18x64xf32>,
      %c0_196 = arith.constant 0 : index
      %c0_197 = arith.constant 0 : index
      %236 = tpu.strided_load %arg16[%c0_196, %c0_197] {strides = array<i32: 2, 1>} : memref<18x64xf32, #tpu.memory_space<vmem>>, vector<9x64xf32>
      %c1_198 = arith.constant 1 : index
      %c0_199 = arith.constant 0 : index
      %237 = tpu.strided_load %arg16[%c1_198, %c0_199] {strides = array<i32: 2, 1>} : memref<18x64xf32, #tpu.memory_space<vmem>>, vector<9x64xf32>
      %238 = arith.maximumf %236, %237 : vector<9x64xf32>
      %c106 = arith.constant 106 : index
      %c0_200 = arith.constant 0 : index
      %239 = vector.load %arg13[%c106, %c0_200] : memref<169x64xf32, #tpu.memory_space<vmem>>, vector<9x64xf32>
      tpu.vector_store %arg13[%c106, %c0_200], %238 {strides = array<i32>} : memref<169x64xf32, #tpu.memory_space<vmem>>, vector<9x64xf32>,
      %240 = vector.extract_strided_slice %183 {offsets = [280, 0], sizes = [18, 64], strides = [1, 1]} : vector<358x64xf32> to vector<18x64xf32>
      %241 = vector.extract_strided_slice %183 {offsets = [300, 0], sizes = [18, 64], strides = [1, 1]} : vector<358x64xf32> to vector<18x64xf32>
      %242 = arith.maximumf %240, %241 : vector<18x64xf32>
      %c0_201 = arith.constant 0 : index
      %c0_202 = arith.constant 0 : index
      %243 = vector.load %arg16[%c0_201, %c0_202] : memref<18x64xf32, #tpu.memory_space<vmem>>, vector<18x64xf32>
      tpu.vector_store %arg16[%c0_201, %c0_202], %242 {strides = array<i32>} : memref<18x64xf32, #tpu.memory_space<vmem>>, vector<18x64xf32>,
      %c0_203 = arith.constant 0 : index
      %c0_204 = arith.constant 0 : index
      %244 = tpu.strided_load %arg16[%c0_203, %c0_204] {strides = array<i32: 2, 1>} : memref<18x64xf32, #tpu.memory_space<vmem>>, vector<9x64xf32>
      %c1_205 = arith.constant 1 : index
      %c0_206 = arith.constant 0 : index
      %245 = tpu.strided_load %arg16[%c1_205, %c0_206] {strides = array<i32: 2, 1>} : memref<18x64xf32, #tpu.memory_space<vmem>>, vector<9x64xf32>
      %246 = arith.maximumf %244, %245 : vector<9x64xf32>
      %c119 = arith.constant 119 : index
      %c0_207 = arith.constant 0 : index
      %247 = vector.load %arg13[%c119, %c0_207] : memref<169x64xf32, #tpu.memory_space<vmem>>, vector<9x64xf32>
      tpu.vector_store %arg13[%c119, %c0_207], %246 {strides = array<i32>} : memref<169x64xf32, #tpu.memory_space<vmem>>, vector<9x64xf32>,
      %248 = vector.extract_strided_slice %183 {offsets = [320, 0], sizes = [18, 64], strides = [1, 1]} : vector<358x64xf32> to vector<18x64xf32>
      %249 = vector.extract_strided_slice %183 {offsets = [340, 0], sizes = [18, 64], strides = [1, 1]} : vector<358x64xf32> to vector<18x64xf32>
      %250 = arith.maximumf %248, %249 : vector<18x64xf32>
      %c0_208 = arith.constant 0 : index
      %c0_209 = arith.constant 0 : index
      %251 = vector.load %arg16[%c0_208, %c0_209] : memref<18x64xf32, #tpu.memory_space<vmem>>, vector<18x64xf32>
      tpu.vector_store %arg16[%c0_208, %c0_209], %250 {strides = array<i32>} : memref<18x64xf32, #tpu.memory_space<vmem>>, vector<18x64xf32>,
      %c0_210 = arith.constant 0 : index
      %c0_211 = arith.constant 0 : index
      %252 = tpu.strided_load %arg16[%c0_210, %c0_211] {strides = array<i32: 2, 1>} : memref<18x64xf32, #tpu.memory_space<vmem>>, vector<9x64xf32>
      %c1_212 = arith.constant 1 : index
      %c0_213 = arith.constant 0 : index
      %253 = tpu.strided_load %arg16[%c1_212, %c0_213] {strides = array<i32: 2, 1>} : memref<18x64xf32, #tpu.memory_space<vmem>>, vector<9x64xf32>
      %254 = arith.maximumf %252, %253 : vector<9x64xf32>
      %c132 = arith.constant 132 : index
      %c0_214 = arith.constant 0 : index
      %255 = vector.load %arg13[%c132, %c0_214] : memref<169x64xf32, #tpu.memory_space<vmem>>, vector<9x64xf32>
      tpu.vector_store %arg13[%c132, %c0_214], %254 {strides = array<i32>} : memref<169x64xf32, #tpu.memory_space<vmem>>, vector<9x64xf32>,
      %c0_215 = arith.constant 0 : index
      %c0_216 = arith.constant 0 : index
      %256 = vector.load %arg13[%c0_215, %c0_216] : memref<169x64xf32, #tpu.memory_space<vmem>>, vector<141x64xf32>
      %c0_217 = arith.constant 0 : index
      %c0_218 = arith.constant 0 : index
      %c0_219 = arith.constant 0 : index
      %257 = vector.load %arg4[%c0_217, %c0_218, %c0_219] : memref<9x64x32xf32, #tpu.memory_space<vmem>>, vector<1x64x32xf32>
      %258 = vector.shape_cast %257 : vector<1x64x32xf32> to vector<64x32xf32>
      %cst_220 = arith.constant dense<0.000000e+00> : vector<141x32xf32>
      %259 = tpu.matmul %256, %258, %cst_220 {dimension_numbers = #tpu.dot_dimension_numbers<[1], [0], [0], [1], [0, 0, 1, 1], [], []>} : vector<141x64xf32>, vector<64x32xf32>, vector<141x32xf32> -> vector<141x32xf32>
      %c1_221 = arith.constant 1 : index
      %c0_222 = arith.constant 0 : index
      %260 = vector.load %arg13[%c1_221, %c0_222] : memref<169x64xf32, #tpu.memory_space<vmem>>, vector<141x64xf32>
      %c1_223 = arith.constant 1 : index
      %c0_224 = arith.constant 0 : index
      %c0_225 = arith.constant 0 : index
      %261 = vector.load %arg4[%c1_223, %c0_224, %c0_225] : memref<9x64x32xf32, #tpu.memory_space<vmem>>, vector<1x64x32xf32>
      %262 = vector.shape_cast %261 : vector<1x64x32xf32> to vector<64x32xf32>
      %cst_226 = arith.constant dense<0.000000e+00> : vector<141x32xf32>
      %263 = tpu.matmul %260, %262, %cst_226 {dimension_numbers = #tpu.dot_dimension_numbers<[1], [0], [0], [1], [0, 0, 1, 1], [], []>} : vector<141x64xf32>, vector<64x32xf32>, vector<141x32xf32> -> vector<141x32xf32>
      %264 = arith.addf %259, %263 : vector<141x32xf32>
      %c2_227 = arith.constant 2 : index
      %c0_228 = arith.constant 0 : index
      %265 = vector.load %arg13[%c2_227, %c0_228] : memref<169x64xf32, #tpu.memory_space<vmem>>, vector<141x64xf32>
      %c2_229 = arith.constant 2 : index
      %c0_230 = arith.constant 0 : index
      %c0_231 = arith.constant 0 : index
      %266 = vector.load %arg4[%c2_229, %c0_230, %c0_231] : memref<9x64x32xf32, #tpu.memory_space<vmem>>, vector<1x64x32xf32>
      %267 = vector.shape_cast %266 : vector<1x64x32xf32> to vector<64x32xf32>
      %cst_232 = arith.constant dense<0.000000e+00> : vector<141x32xf32>
      %268 = tpu.matmul %265, %267, %cst_232 {dimension_numbers = #tpu.dot_dimension_numbers<[1], [0], [0], [1], [0, 0, 1, 1], [], []>} : vector<141x64xf32>, vector<64x32xf32>, vector<141x32xf32> -> vector<141x32xf32>
      %269 = arith.addf %264, %268 : vector<141x32xf32>
      %c13 = arith.constant 13 : index
      %c0_233 = arith.constant 0 : index
      %270 = vector.load %arg13[%c13, %c0_233] : memref<169x64xf32, #tpu.memory_space<vmem>>, vector<141x64xf32>
      %c3_234 = arith.constant 3 : index
      %c0_235 = arith.constant 0 : index
      %c0_236 = arith.constant 0 : index
      %271 = vector.load %arg4[%c3_234, %c0_235, %c0_236] : memref<9x64x32xf32, #tpu.memory_space<vmem>>, vector<1x64x32xf32>
      %272 = vector.shape_cast %271 : vector<1x64x32xf32> to vector<64x32xf32>
      %cst_237 = arith.constant dense<0.000000e+00> : vector<141x32xf32>
      %273 = tpu.matmul %270, %272, %cst_237 {dimension_numbers = #tpu.dot_dimension_numbers<[1], [0], [0], [1], [0, 0, 1, 1], [], []>} : vector<141x64xf32>, vector<64x32xf32>, vector<141x32xf32> -> vector<141x32xf32>
      %274 = arith.addf %269, %273 : vector<141x32xf32>
      %c14 = arith.constant 14 : index
      %c0_238 = arith.constant 0 : index
      %275 = vector.load %arg13[%c14, %c0_238] : memref<169x64xf32, #tpu.memory_space<vmem>>, vector<141x64xf32>
      %c4_239 = arith.constant 4 : index
      %c0_240 = arith.constant 0 : index
      %c0_241 = arith.constant 0 : index
      %276 = vector.load %arg4[%c4_239, %c0_240, %c0_241] : memref<9x64x32xf32, #tpu.memory_space<vmem>>, vector<1x64x32xf32>
      %277 = vector.shape_cast %276 : vector<1x64x32xf32> to vector<64x32xf32>
      %cst_242 = arith.constant dense<0.000000e+00> : vector<141x32xf32>
      %278 = tpu.matmul %275, %277, %cst_242 {dimension_numbers = #tpu.dot_dimension_numbers<[1], [0], [0], [1], [0, 0, 1, 1], [], []>} : vector<141x64xf32>, vector<64x32xf32>, vector<141x32xf32> -> vector<141x32xf32>
      %279 = arith.addf %274, %278 : vector<141x32xf32>
      %c15 = arith.constant 15 : index
      %c0_243 = arith.constant 0 : index
      %280 = vector.load %arg13[%c15, %c0_243] : memref<169x64xf32, #tpu.memory_space<vmem>>, vector<141x64xf32>
      %c5_244 = arith.constant 5 : index
      %c0_245 = arith.constant 0 : index
      %c0_246 = arith.constant 0 : index
      %281 = vector.load %arg4[%c5_244, %c0_245, %c0_246] : memref<9x64x32xf32, #tpu.memory_space<vmem>>, vector<1x64x32xf32>
      %282 = vector.shape_cast %281 : vector<1x64x32xf32> to vector<64x32xf32>
      %cst_247 = arith.constant dense<0.000000e+00> : vector<141x32xf32>
      %283 = tpu.matmul %280, %282, %cst_247 {dimension_numbers = #tpu.dot_dimension_numbers<[1], [0], [0], [1], [0, 0, 1, 1], [], []>} : vector<141x64xf32>, vector<64x32xf32>, vector<141x32xf32> -> vector<141x32xf32>
      %284 = arith.addf %279, %283 : vector<141x32xf32>
      %c26 = arith.constant 26 : index
      %c0_248 = arith.constant 0 : index
      %285 = vector.load %arg13[%c26, %c0_248] : memref<169x64xf32, #tpu.memory_space<vmem>>, vector<141x64xf32>
      %c6_249 = arith.constant 6 : index
      %c0_250 = arith.constant 0 : index
      %c0_251 = arith.constant 0 : index
      %286 = vector.load %arg4[%c6_249, %c0_250, %c0_251] : memref<9x64x32xf32, #tpu.memory_space<vmem>>, vector<1x64x32xf32>
      %287 = vector.shape_cast %286 : vector<1x64x32xf32> to vector<64x32xf32>
      %cst_252 = arith.constant dense<0.000000e+00> : vector<141x32xf32>
      %288 = tpu.matmul %285, %287, %cst_252 {dimension_numbers = #tpu.dot_dimension_numbers<[1], [0], [0], [1], [0, 0, 1, 1], [], []>} : vector<141x64xf32>, vector<64x32xf32>, vector<141x32xf32> -> vector<141x32xf32>
      %289 = arith.addf %284, %288 : vector<141x32xf32>
      %c27 = arith.constant 27 : index
      %c0_253 = arith.constant 0 : index
      %290 = vector.load %arg13[%c27, %c0_253] : memref<169x64xf32, #tpu.memory_space<vmem>>, vector<141x64xf32>
      %c7_254 = arith.constant 7 : index
      %c0_255 = arith.constant 0 : index
      %c0_256 = arith.constant 0 : index
      %291 = vector.load %arg4[%c7_254, %c0_255, %c0_256] : memref<9x64x32xf32, #tpu.memory_space<vmem>>, vector<1x64x32xf32>
      %292 = vector.shape_cast %291 : vector<1x64x32xf32> to vector<64x32xf32>
      %cst_257 = arith.constant dense<0.000000e+00> : vector<141x32xf32>
      %293 = tpu.matmul %290, %292, %cst_257 {dimension_numbers = #tpu.dot_dimension_numbers<[1], [0], [0], [1], [0, 0, 1, 1], [], []>} : vector<141x64xf32>, vector<64x32xf32>, vector<141x32xf32> -> vector<141x32xf32>
      %294 = arith.addf %289, %293 : vector<141x32xf32>
      %c28_258 = arith.constant 28 : index
      %c0_259 = arith.constant 0 : index
      %295 = vector.load %arg13[%c28_258, %c0_259] : memref<169x64xf32, #tpu.memory_space<vmem>>, vector<141x64xf32>
      %c8_260 = arith.constant 8 : index
      %c0_261 = arith.constant 0 : index
      %c0_262 = arith.constant 0 : index
      %296 = vector.load %arg4[%c8_260, %c0_261, %c0_262] : memref<9x64x32xf32, #tpu.memory_space<vmem>>, vector<1x64x32xf32>
      %297 = vector.shape_cast %296 : vector<1x64x32xf32> to vector<64x32xf32>
      %cst_263 = arith.constant dense<0.000000e+00> : vector<141x32xf32>
      %298 = tpu.matmul %295, %297, %cst_263 {dimension_numbers = #tpu.dot_dimension_numbers<[1], [0], [0], [1], [0, 0, 1, 1], [], []>} : vector<141x64xf32>, vector<64x32xf32>, vector<141x32xf32> -> vector<141x32xf32>
      %299 = arith.addf %294, %298 : vector<141x32xf32>
      %c0_264 = arith.constant 0 : index
      %c0_265 = arith.constant 0 : index
      %300 = vector.load %arg5[%c0_264, %c0_265] : memref<1x32xf32, #tpu.memory_space<vmem>>, vector<1x32xf32>
      %301 = vector.broadcast %300 : vector<1x32xf32> to vector<141x32xf32>
      %302 = arith.addf %299, %301 : vector<141x32xf32>
      %cst_266 = arith.constant 0.000000e+00 : f32
      %303 = vector.broadcast %cst_266 : f32 to vector<141x32xf32>
      %304 = arith.maximumf %302, %303 : vector<141x32xf32>
      %305 = vector.extract_strided_slice %304 {offsets = [0, 0], sizes = [11, 32], strides = [1, 1]} : vector<141x32xf32> to vector<11x32xf32>
      %c32 = arith.constant 32 : index
      %c0_267 = arith.constant 0 : index
      %306 = vector.load %arg14[%c32, %c0_267] : memref<225x32xf32, #tpu.memory_space<vmem>>, vector<11x32xf32>
      tpu.vector_store %arg14[%c32, %c0_267], %305 {strides = array<i32>} : memref<225x32xf32, #tpu.memory_space<vmem>>, vector<11x32xf32>,
      %307 = vector.extract_strided_slice %304 {offsets = [13, 0], sizes = [11, 32], strides = [1, 1]} : vector<141x32xf32> to vector<11x32xf32>
      %c47 = arith.constant 47 : index
      %c0_268 = arith.constant 0 : index
      %308 = vector.load %arg14[%c47, %c0_268] : memref<225x32xf32, #tpu.memory_space<vmem>>, vector<11x32xf32>
      tpu.vector_store %arg14[%c47, %c0_268], %307 {strides = array<i32>} : memref<225x32xf32, #tpu.memory_space<vmem>>, vector<11x32xf32>,
      %309 = vector.extract_strided_slice %304 {offsets = [26, 0], sizes = [11, 32], strides = [1, 1]} : vector<141x32xf32> to vector<11x32xf32>
      %c62_269 = arith.constant 62 : index
      %c0_270 = arith.constant 0 : index
      %310 = vector.load %arg14[%c62_269, %c0_270] : memref<225x32xf32, #tpu.memory_space<vmem>>, vector<11x32xf32>
      tpu.vector_store %arg14[%c62_269, %c0_270], %309 {strides = array<i32>} : memref<225x32xf32, #tpu.memory_space<vmem>>, vector<11x32xf32>,
      %311 = vector.extract_strided_slice %304 {offsets = [39, 0], sizes = [11, 32], strides = [1, 1]} : vector<141x32xf32> to vector<11x32xf32>
      %c77 = arith.constant 77 : index
      %c0_271 = arith.constant 0 : index
      %312 = vector.load %arg14[%c77, %c0_271] : memref<225x32xf32, #tpu.memory_space<vmem>>, vector<11x32xf32>
      tpu.vector_store %arg14[%c77, %c0_271], %311 {strides = array<i32>} : memref<225x32xf32, #tpu.memory_space<vmem>>, vector<11x32xf32>,
      %313 = vector.extract_strided_slice %304 {offsets = [52, 0], sizes = [11, 32], strides = [1, 1]} : vector<141x32xf32> to vector<11x32xf32>
      %c92 = arith.constant 92 : index
      %c0_272 = arith.constant 0 : index
      %314 = vector.load %arg14[%c92, %c0_272] : memref<225x32xf32, #tpu.memory_space<vmem>>, vector<11x32xf32>
      tpu.vector_store %arg14[%c92, %c0_272], %313 {strides = array<i32>} : memref<225x32xf32, #tpu.memory_space<vmem>>, vector<11x32xf32>,
      %315 = vector.extract_strided_slice %304 {offsets = [65, 0], sizes = [11, 32], strides = [1, 1]} : vector<141x32xf32> to vector<11x32xf32>
      %c107 = arith.constant 107 : index
      %c0_273 = arith.constant 0 : index
      %316 = vector.load %arg14[%c107, %c0_273] : memref<225x32xf32, #tpu.memory_space<vmem>>, vector<11x32xf32>
      tpu.vector_store %arg14[%c107, %c0_273], %315 {strides = array<i32>} : memref<225x32xf32, #tpu.memory_space<vmem>>, vector<11x32xf32>,
      %317 = vector.extract_strided_slice %304 {offsets = [78, 0], sizes = [11, 32], strides = [1, 1]} : vector<141x32xf32> to vector<11x32xf32>
      %c122_274 = arith.constant 122 : index
      %c0_275 = arith.constant 0 : index
      %318 = vector.load %arg14[%c122_274, %c0_275] : memref<225x32xf32, #tpu.memory_space<vmem>>, vector<11x32xf32>
      tpu.vector_store %arg14[%c122_274, %c0_275], %317 {strides = array<i32>} : memref<225x32xf32, #tpu.memory_space<vmem>>, vector<11x32xf32>,
      %319 = vector.extract_strided_slice %304 {offsets = [91, 0], sizes = [11, 32], strides = [1, 1]} : vector<141x32xf32> to vector<11x32xf32>
      %c137 = arith.constant 137 : index
      %c0_276 = arith.constant 0 : index
      %320 = vector.load %arg14[%c137, %c0_276] : memref<225x32xf32, #tpu.memory_space<vmem>>, vector<11x32xf32>
      tpu.vector_store %arg14[%c137, %c0_276], %319 {strides = array<i32>} : memref<225x32xf32, #tpu.memory_space<vmem>>, vector<11x32xf32>,
      %321 = vector.extract_strided_slice %304 {offsets = [104, 0], sizes = [11, 32], strides = [1, 1]} : vector<141x32xf32> to vector<11x32xf32>
      %c152 = arith.constant 152 : index
      %c0_277 = arith.constant 0 : index
      %322 = vector.load %arg14[%c152, %c0_277] : memref<225x32xf32, #tpu.memory_space<vmem>>, vector<11x32xf32>
      tpu.vector_store %arg14[%c152, %c0_277], %321 {strides = array<i32>} : memref<225x32xf32, #tpu.memory_space<vmem>>, vector<11x32xf32>,
      %323 = vector.extract_strided_slice %304 {offsets = [117, 0], sizes = [11, 32], strides = [1, 1]} : vector<141x32xf32> to vector<11x32xf32>
      %c167 = arith.constant 167 : index
      %c0_278 = arith.constant 0 : index
      %324 = vector.load %arg14[%c167, %c0_278] : memref<225x32xf32, #tpu.memory_space<vmem>>, vector<11x32xf32>
      tpu.vector_store %arg14[%c167, %c0_278], %323 {strides = array<i32>} : memref<225x32xf32, #tpu.memory_space<vmem>>, vector<11x32xf32>,
      %325 = vector.extract_strided_slice %304 {offsets = [130, 0], sizes = [11, 32], strides = [1, 1]} : vector<141x32xf32> to vector<11x32xf32>
      %c182_279 = arith.constant 182 : index
      %c0_280 = arith.constant 0 : index
      %326 = vector.load %arg14[%c182_279, %c0_280] : memref<225x32xf32, #tpu.memory_space<vmem>>, vector<11x32xf32>
      tpu.vector_store %arg14[%c182_279, %c0_280], %325 {strides = array<i32>} : memref<225x32xf32, #tpu.memory_space<vmem>>, vector<11x32xf32>,
      %c0_281 = arith.constant 0 : index
      %c0_282 = arith.constant 0 : index
      %327 = vector.load %arg14[%c0_281, %c0_282] : memref<225x32xf32, #tpu.memory_space<vmem>>, vector<193x32xf32>
      %c0_283 = arith.constant 0 : index
      %c0_284 = arith.constant 0 : index
      %c0_285 = arith.constant 0 : index
      %328 = vector.load %arg6[%c0_283, %c0_284, %c0_285] : memref<9x32x16xf32, #tpu.memory_space<vmem>>, vector<1x32x16xf32>
      %329 = vector.shape_cast %328 : vector<1x32x16xf32> to vector<32x16xf32>
      %cst_286 = arith.constant dense<0.000000e+00> : vector<193x16xf32>
      %330 = tpu.matmul %327, %329, %cst_286 {dimension_numbers = #tpu.dot_dimension_numbers<[1], [0], [0], [1], [0, 0, 1, 1], [], []>} : vector<193x32xf32>, vector<32x16xf32>, vector<193x16xf32> -> vector<193x16xf32>
      %c1_287 = arith.constant 1 : index
      %c0_288 = arith.constant 0 : index
      %331 = vector.load %arg14[%c1_287, %c0_288] : memref<225x32xf32, #tpu.memory_space<vmem>>, vector<193x32xf32>
      %c1_289 = arith.constant 1 : index
      %c0_290 = arith.constant 0 : index
      %c0_291 = arith.constant 0 : index
      %332 = vector.load %arg6[%c1_289, %c0_290, %c0_291] : memref<9x32x16xf32, #tpu.memory_space<vmem>>, vector<1x32x16xf32>
      %333 = vector.shape_cast %332 : vector<1x32x16xf32> to vector<32x16xf32>
      %cst_292 = arith.constant dense<0.000000e+00> : vector<193x16xf32>
      %334 = tpu.matmul %331, %333, %cst_292 {dimension_numbers = #tpu.dot_dimension_numbers<[1], [0], [0], [1], [0, 0, 1, 1], [], []>} : vector<193x32xf32>, vector<32x16xf32>, vector<193x16xf32> -> vector<193x16xf32>
      %335 = arith.addf %330, %334 : vector<193x16xf32>
      %c2_293 = arith.constant 2 : index
      %c0_294 = arith.constant 0 : index
      %336 = vector.load %arg14[%c2_293, %c0_294] : memref<225x32xf32, #tpu.memory_space<vmem>>, vector<193x32xf32>
      %c2_295 = arith.constant 2 : index
      %c0_296 = arith.constant 0 : index
      %c0_297 = arith.constant 0 : index
      %337 = vector.load %arg6[%c2_295, %c0_296, %c0_297] : memref<9x32x16xf32, #tpu.memory_space<vmem>>, vector<1x32x16xf32>
      %338 = vector.shape_cast %337 : vector<1x32x16xf32> to vector<32x16xf32>
      %cst_298 = arith.constant dense<0.000000e+00> : vector<193x16xf32>
      %339 = tpu.matmul %336, %338, %cst_298 {dimension_numbers = #tpu.dot_dimension_numbers<[1], [0], [0], [1], [0, 0, 1, 1], [], []>} : vector<193x32xf32>, vector<32x16xf32>, vector<193x16xf32> -> vector<193x16xf32>
      %340 = arith.addf %335, %339 : vector<193x16xf32>
      %c15_299 = arith.constant 15 : index
      %c0_300 = arith.constant 0 : index
      %341 = vector.load %arg14[%c15_299, %c0_300] : memref<225x32xf32, #tpu.memory_space<vmem>>, vector<193x32xf32>
      %c3_301 = arith.constant 3 : index
      %c0_302 = arith.constant 0 : index
      %c0_303 = arith.constant 0 : index
      %342 = vector.load %arg6[%c3_301, %c0_302, %c0_303] : memref<9x32x16xf32, #tpu.memory_space<vmem>>, vector<1x32x16xf32>
      %343 = vector.shape_cast %342 : vector<1x32x16xf32> to vector<32x16xf32>
      %cst_304 = arith.constant dense<0.000000e+00> : vector<193x16xf32>
      %344 = tpu.matmul %341, %343, %cst_304 {dimension_numbers = #tpu.dot_dimension_numbers<[1], [0], [0], [1], [0, 0, 1, 1], [], []>} : vector<193x32xf32>, vector<32x16xf32>, vector<193x16xf32> -> vector<193x16xf32>
      %345 = arith.addf %340, %344 : vector<193x16xf32>
      %c16 = arith.constant 16 : index
      %c0_305 = arith.constant 0 : index
      %346 = vector.load %arg14[%c16, %c0_305] : memref<225x32xf32, #tpu.memory_space<vmem>>, vector<193x32xf32>
      %c4_306 = arith.constant 4 : index
      %c0_307 = arith.constant 0 : index
      %c0_308 = arith.constant 0 : index
      %347 = vector.load %arg6[%c4_306, %c0_307, %c0_308] : memref<9x32x16xf32, #tpu.memory_space<vmem>>, vector<1x32x16xf32>
      %348 = vector.shape_cast %347 : vector<1x32x16xf32> to vector<32x16xf32>
      %cst_309 = arith.constant dense<0.000000e+00> : vector<193x16xf32>
      %349 = tpu.matmul %346, %348, %cst_309 {dimension_numbers = #tpu.dot_dimension_numbers<[1], [0], [0], [1], [0, 0, 1, 1], [], []>} : vector<193x32xf32>, vector<32x16xf32>, vector<193x16xf32> -> vector<193x16xf32>
      %350 = arith.addf %345, %349 : vector<193x16xf32>
      %c17 = arith.constant 17 : index
      %c0_310 = arith.constant 0 : index
      %351 = vector.load %arg14[%c17, %c0_310] : memref<225x32xf32, #tpu.memory_space<vmem>>, vector<193x32xf32>
      %c5_311 = arith.constant 5 : index
      %c0_312 = arith.constant 0 : index
      %c0_313 = arith.constant 0 : index
      %352 = vector.load %arg6[%c5_311, %c0_312, %c0_313] : memref<9x32x16xf32, #tpu.memory_space<vmem>>, vector<1x32x16xf32>
      %353 = vector.shape_cast %352 : vector<1x32x16xf32> to vector<32x16xf32>
      %cst_314 = arith.constant dense<0.000000e+00> : vector<193x16xf32>
      %354 = tpu.matmul %351, %353, %cst_314 {dimension_numbers = #tpu.dot_dimension_numbers<[1], [0], [0], [1], [0, 0, 1, 1], [], []>} : vector<193x32xf32>, vector<32x16xf32>, vector<193x16xf32> -> vector<193x16xf32>
      %355 = arith.addf %350, %354 : vector<193x16xf32>
      %c30 = arith.constant 30 : index
      %c0_315 = arith.constant 0 : index
      %356 = vector.load %arg14[%c30, %c0_315] : memref<225x32xf32, #tpu.memory_space<vmem>>, vector<193x32xf32>
      %c6_316 = arith.constant 6 : index
      %c0_317 = arith.constant 0 : index
      %c0_318 = arith.constant 0 : index
      %357 = vector.load %arg6[%c6_316, %c0_317, %c0_318] : memref<9x32x16xf32, #tpu.memory_space<vmem>>, vector<1x32x16xf32>
      %358 = vector.shape_cast %357 : vector<1x32x16xf32> to vector<32x16xf32>
      %cst_319 = arith.constant dense<0.000000e+00> : vector<193x16xf32>
      %359 = tpu.matmul %356, %358, %cst_319 {dimension_numbers = #tpu.dot_dimension_numbers<[1], [0], [0], [1], [0, 0, 1, 1], [], []>} : vector<193x32xf32>, vector<32x16xf32>, vector<193x16xf32> -> vector<193x16xf32>
      %360 = arith.addf %355, %359 : vector<193x16xf32>
      %c31 = arith.constant 31 : index
      %c0_320 = arith.constant 0 : index
      %361 = vector.load %arg14[%c31, %c0_320] : memref<225x32xf32, #tpu.memory_space<vmem>>, vector<193x32xf32>
      %c7_321 = arith.constant 7 : index
      %c0_322 = arith.constant 0 : index
      %c0_323 = arith.constant 0 : index
      %362 = vector.load %arg6[%c7_321, %c0_322, %c0_323] : memref<9x32x16xf32, #tpu.memory_space<vmem>>, vector<1x32x16xf32>
      %363 = vector.shape_cast %362 : vector<1x32x16xf32> to vector<32x16xf32>
      %cst_324 = arith.constant dense<0.000000e+00> : vector<193x16xf32>
      %364 = tpu.matmul %361, %363, %cst_324 {dimension_numbers = #tpu.dot_dimension_numbers<[1], [0], [0], [1], [0, 0, 1, 1], [], []>} : vector<193x32xf32>, vector<32x16xf32>, vector<193x16xf32> -> vector<193x16xf32>
      %365 = arith.addf %360, %364 : vector<193x16xf32>
      %c32_325 = arith.constant 32 : index
      %c0_326 = arith.constant 0 : index
      %366 = vector.load %arg14[%c32_325, %c0_326] : memref<225x32xf32, #tpu.memory_space<vmem>>, vector<193x32xf32>
      %c8_327 = arith.constant 8 : index
      %c0_328 = arith.constant 0 : index
      %c0_329 = arith.constant 0 : index
      %367 = vector.load %arg6[%c8_327, %c0_328, %c0_329] : memref<9x32x16xf32, #tpu.memory_space<vmem>>, vector<1x32x16xf32>
      %368 = vector.shape_cast %367 : vector<1x32x16xf32> to vector<32x16xf32>
      %cst_330 = arith.constant dense<0.000000e+00> : vector<193x16xf32>
      %369 = tpu.matmul %366, %368, %cst_330 {dimension_numbers = #tpu.dot_dimension_numbers<[1], [0], [0], [1], [0, 0, 1, 1], [], []>} : vector<193x32xf32>, vector<32x16xf32>, vector<193x16xf32> -> vector<193x16xf32>
      %370 = arith.addf %365, %369 : vector<193x16xf32>
      %c0_331 = arith.constant 0 : index
      %c0_332 = arith.constant 0 : index
      %371 = vector.load %arg7[%c0_331, %c0_332] : memref<1x16xf32, #tpu.memory_space<vmem>>, vector<1x16xf32>
      %372 = vector.broadcast %371 : vector<1x16xf32> to vector<193x16xf32>
      %373 = arith.addf %370, %372 : vector<193x16xf32>
      %cst_333 = arith.constant 0.000000e+00 : f32
      %374 = vector.broadcast %cst_333 : f32 to vector<193x16xf32>
      %375 = arith.maximumf %373, %374 : vector<193x16xf32>
      %376 = vector.extract_strided_slice %375 {offsets = [0, 0], sizes = [12, 16], strides = [1, 1]} : vector<193x16xf32> to vector<12x16xf32>
      %377 = vector.extract_strided_slice %375 {offsets = [15, 0], sizes = [12, 16], strides = [1, 1]} : vector<193x16xf32> to vector<12x16xf32>
      %378 = arith.maximumf %376, %377 : vector<12x16xf32>
      %c0_334 = arith.constant 0 : index
      %c0_335 = arith.constant 0 : index
      %379 = vector.load %arg17[%c0_334, %c0_335] : memref<12x16xf32, #tpu.memory_space<vmem>>, vector<12x16xf32>
      tpu.vector_store %arg17[%c0_334, %c0_335], %378 {strides = array<i32>} : memref<12x16xf32, #tpu.memory_space<vmem>>, vector<12x16xf32>,
      %c0_336 = arith.constant 0 : index
      %c0_337 = arith.constant 0 : index
      %380 = tpu.strided_load %arg17[%c0_336, %c0_337] {strides = array<i32: 2, 1>} : memref<12x16xf32, #tpu.memory_space<vmem>>, vector<6x16xf32>
      %c1_338 = arith.constant 1 : index
      %c0_339 = arith.constant 0 : index
      %381 = tpu.strided_load %arg17[%c1_338, %c0_339] {strides = array<i32: 2, 1>} : memref<12x16xf32, #tpu.memory_space<vmem>>, vector<6x16xf32>
      %382 = arith.maximumf %380, %381 : vector<6x16xf32>
      %c0_340 = arith.constant 0 : index
      %c0_341 = arith.constant 0 : index
      %383 = vector.load %arg15[%c0_340, %c0_341] : memref<36x16xf32, #tpu.memory_space<vmem>>, vector<6x16xf32>
      tpu.vector_store %arg15[%c0_340, %c0_341], %382 {strides = array<i32>} : memref<36x16xf32, #tpu.memory_space<vmem>>, vector<6x16xf32>,
      %384 = vector.extract_strided_slice %375 {offsets = [30, 0], sizes = [12, 16], strides = [1, 1]} : vector<193x16xf32> to vector<12x16xf32>
      %385 = vector.extract_strided_slice %375 {offsets = [45, 0], sizes = [12, 16], strides = [1, 1]} : vector<193x16xf32> to vector<12x16xf32>
      %386 = arith.maximumf %384, %385 : vector<12x16xf32>
      %c0_342 = arith.constant 0 : index
      %c0_343 = arith.constant 0 : index
      %387 = vector.load %arg17[%c0_342, %c0_343] : memref<12x16xf32, #tpu.memory_space<vmem>>, vector<12x16xf32>
      tpu.vector_store %arg17[%c0_342, %c0_343], %386 {strides = array<i32>} : memref<12x16xf32, #tpu.memory_space<vmem>>, vector<12x16xf32>,
      %c0_344 = arith.constant 0 : index
      %c0_345 = arith.constant 0 : index
      %388 = tpu.strided_load %arg17[%c0_344, %c0_345] {strides = array<i32: 2, 1>} : memref<12x16xf32, #tpu.memory_space<vmem>>, vector<6x16xf32>
      %c1_346 = arith.constant 1 : index
      %c0_347 = arith.constant 0 : index
      %389 = tpu.strided_load %arg17[%c1_346, %c0_347] {strides = array<i32: 2, 1>} : memref<12x16xf32, #tpu.memory_space<vmem>>, vector<6x16xf32>
      %390 = arith.maximumf %388, %389 : vector<6x16xf32>
      %c6_348 = arith.constant 6 : index
      %c0_349 = arith.constant 0 : index
      %391 = vector.load %arg15[%c6_348, %c0_349] : memref<36x16xf32, #tpu.memory_space<vmem>>, vector<6x16xf32>
      tpu.vector_store %arg15[%c6_348, %c0_349], %390 {strides = array<i32>} : memref<36x16xf32, #tpu.memory_space<vmem>>, vector<6x16xf32>,
      %392 = vector.extract_strided_slice %375 {offsets = [60, 0], sizes = [12, 16], strides = [1, 1]} : vector<193x16xf32> to vector<12x16xf32>
      %393 = vector.extract_strided_slice %375 {offsets = [75, 0], sizes = [12, 16], strides = [1, 1]} : vector<193x16xf32> to vector<12x16xf32>
      %394 = arith.maximumf %392, %393 : vector<12x16xf32>
      %c0_350 = arith.constant 0 : index
      %c0_351 = arith.constant 0 : index
      %395 = vector.load %arg17[%c0_350, %c0_351] : memref<12x16xf32, #tpu.memory_space<vmem>>, vector<12x16xf32>
      tpu.vector_store %arg17[%c0_350, %c0_351], %394 {strides = array<i32>} : memref<12x16xf32, #tpu.memory_space<vmem>>, vector<12x16xf32>,
      %c0_352 = arith.constant 0 : index
      %c0_353 = arith.constant 0 : index
      %396 = tpu.strided_load %arg17[%c0_352, %c0_353] {strides = array<i32: 2, 1>} : memref<12x16xf32, #tpu.memory_space<vmem>>, vector<6x16xf32>
      %c1_354 = arith.constant 1 : index
      %c0_355 = arith.constant 0 : index
      %397 = tpu.strided_load %arg17[%c1_354, %c0_355] {strides = array<i32: 2, 1>} : memref<12x16xf32, #tpu.memory_space<vmem>>, vector<6x16xf32>
      %398 = arith.maximumf %396, %397 : vector<6x16xf32>
      %c12 = arith.constant 12 : index
      %c0_356 = arith.constant 0 : index
      %399 = vector.load %arg15[%c12, %c0_356] : memref<36x16xf32, #tpu.memory_space<vmem>>, vector<6x16xf32>
      tpu.vector_store %arg15[%c12, %c0_356], %398 {strides = array<i32>} : memref<36x16xf32, #tpu.memory_space<vmem>>, vector<6x16xf32>,
      %400 = vector.extract_strided_slice %375 {offsets = [90, 0], sizes = [12, 16], strides = [1, 1]} : vector<193x16xf32> to vector<12x16xf32>
      %401 = vector.extract_strided_slice %375 {offsets = [105, 0], sizes = [12, 16], strides = [1, 1]} : vector<193x16xf32> to vector<12x16xf32>
      %402 = arith.maximumf %400, %401 : vector<12x16xf32>
      %c0_357 = arith.constant 0 : index
      %c0_358 = arith.constant 0 : index
      %403 = vector.load %arg17[%c0_357, %c0_358] : memref<12x16xf32, #tpu.memory_space<vmem>>, vector<12x16xf32>
      tpu.vector_store %arg17[%c0_357, %c0_358], %402 {strides = array<i32>} : memref<12x16xf32, #tpu.memory_space<vmem>>, vector<12x16xf32>,
      %c0_359 = arith.constant 0 : index
      %c0_360 = arith.constant 0 : index
      %404 = tpu.strided_load %arg17[%c0_359, %c0_360] {strides = array<i32: 2, 1>} : memref<12x16xf32, #tpu.memory_space<vmem>>, vector<6x16xf32>
      %c1_361 = arith.constant 1 : index
      %c0_362 = arith.constant 0 : index
      %405 = tpu.strided_load %arg17[%c1_361, %c0_362] {strides = array<i32: 2, 1>} : memref<12x16xf32, #tpu.memory_space<vmem>>, vector<6x16xf32>
      %406 = arith.maximumf %404, %405 : vector<6x16xf32>
      %c18 = arith.constant 18 : index
      %c0_363 = arith.constant 0 : index
      %407 = vector.load %arg15[%c18, %c0_363] : memref<36x16xf32, #tpu.memory_space<vmem>>, vector<6x16xf32>
      tpu.vector_store %arg15[%c18, %c0_363], %406 {strides = array<i32>} : memref<36x16xf32, #tpu.memory_space<vmem>>, vector<6x16xf32>,
      %408 = vector.extract_strided_slice %375 {offsets = [120, 0], sizes = [12, 16], strides = [1, 1]} : vector<193x16xf32> to vector<12x16xf32>
      %409 = vector.extract_strided_slice %375 {offsets = [135, 0], sizes = [12, 16], strides = [1, 1]} : vector<193x16xf32> to vector<12x16xf32>
      %410 = arith.maximumf %408, %409 : vector<12x16xf32>
      %c0_364 = arith.constant 0 : index
      %c0_365 = arith.constant 0 : index
      %411 = vector.load %arg17[%c0_364, %c0_365] : memref<12x16xf32, #tpu.memory_space<vmem>>, vector<12x16xf32>
      tpu.vector_store %arg17[%c0_364, %c0_365], %410 {strides = array<i32>} : memref<12x16xf32, #tpu.memory_space<vmem>>, vector<12x16xf32>,
      %c0_366 = arith.constant 0 : index
      %c0_367 = arith.constant 0 : index
      %412 = tpu.strided_load %arg17[%c0_366, %c0_367] {strides = array<i32: 2, 1>} : memref<12x16xf32, #tpu.memory_space<vmem>>, vector<6x16xf32>
      %c1_368 = arith.constant 1 : index
      %c0_369 = arith.constant 0 : index
      %413 = tpu.strided_load %arg17[%c1_368, %c0_369] {strides = array<i32: 2, 1>} : memref<12x16xf32, #tpu.memory_space<vmem>>, vector<6x16xf32>
      %414 = arith.maximumf %412, %413 : vector<6x16xf32>
      %c24 = arith.constant 24 : index
      %c0_370 = arith.constant 0 : index
      %415 = vector.load %arg15[%c24, %c0_370] : memref<36x16xf32, #tpu.memory_space<vmem>>, vector<6x16xf32>
      tpu.vector_store %arg15[%c24, %c0_370], %414 {strides = array<i32>} : memref<36x16xf32, #tpu.memory_space<vmem>>, vector<6x16xf32>,
      %416 = vector.extract_strided_slice %375 {offsets = [150, 0], sizes = [12, 16], strides = [1, 1]} : vector<193x16xf32> to vector<12x16xf32>
      %417 = vector.extract_strided_slice %375 {offsets = [165, 0], sizes = [12, 16], strides = [1, 1]} : vector<193x16xf32> to vector<12x16xf32>
      %418 = arith.maximumf %416, %417 : vector<12x16xf32>
      %c0_371 = arith.constant 0 : index
      %c0_372 = arith.constant 0 : index
      %419 = vector.load %arg17[%c0_371, %c0_372] : memref<12x16xf32, #tpu.memory_space<vmem>>, vector<12x16xf32>
      tpu.vector_store %arg17[%c0_371, %c0_372], %418 {strides = array<i32>} : memref<12x16xf32, #tpu.memory_space<vmem>>, vector<12x16xf32>,
      %c0_373 = arith.constant 0 : index
      %c0_374 = arith.constant 0 : index
      %420 = tpu.strided_load %arg17[%c0_373, %c0_374] {strides = array<i32: 2, 1>} : memref<12x16xf32, #tpu.memory_space<vmem>>, vector<6x16xf32>
      %c1_375 = arith.constant 1 : index
      %c0_376 = arith.constant 0 : index
      %421 = tpu.strided_load %arg17[%c1_375, %c0_376] {strides = array<i32: 2, 1>} : memref<12x16xf32, #tpu.memory_space<vmem>>, vector<6x16xf32>
      %422 = arith.maximumf %420, %421 : vector<6x16xf32>
      %c30_377 = arith.constant 30 : index
      %c0_378 = arith.constant 0 : index
      %423 = vector.load %arg15[%c30_377, %c0_378] : memref<36x16xf32, #tpu.memory_space<vmem>>, vector<6x16xf32>
      tpu.vector_store %arg15[%c30_377, %c0_378], %422 {strides = array<i32>} : memref<36x16xf32, #tpu.memory_space<vmem>>, vector<6x16xf32>,
      %c0_379 = arith.constant 0 : index
      %c0_380 = arith.constant 0 : index
      %424 = vector.load %arg15[%c0_379, %c0_380] : memref<36x16xf32, #tpu.memory_space<vmem>>, vector<22x16xf32>
      %c0_381 = arith.constant 0 : index
      %c0_382 = arith.constant 0 : index
      %c0_383 = arith.constant 0 : index
      %425 = vector.load %arg8[%c0_381, %c0_382, %c0_383] : memref<9x16x2xf32, #tpu.memory_space<vmem>>, vector<1x16x2xf32>
      %426 = vector.shape_cast %425 : vector<1x16x2xf32> to vector<16x2xf32>
      %cst_384 = arith.constant dense<0.000000e+00> : vector<22x2xf32>
      %427 = tpu.matmul %424, %426, %cst_384 {dimension_numbers = #tpu.dot_dimension_numbers<[1], [0], [0], [1], [0, 0, 1, 1], [], []>} : vector<22x16xf32>, vector<16x2xf32>, vector<22x2xf32> -> vector<22x2xf32>
      %c1_385 = arith.constant 1 : index
      %c0_386 = arith.constant 0 : index
      %428 = vector.load %arg15[%c1_385, %c0_386] : memref<36x16xf32, #tpu.memory_space<vmem>>, vector<22x16xf32>
      %c1_387 = arith.constant 1 : index
      %c0_388 = arith.constant 0 : index
      %c0_389 = arith.constant 0 : index
      %429 = vector.load %arg8[%c1_387, %c0_388, %c0_389] : memref<9x16x2xf32, #tpu.memory_space<vmem>>, vector<1x16x2xf32>
      %430 = vector.shape_cast %429 : vector<1x16x2xf32> to vector<16x2xf32>
      %cst_390 = arith.constant dense<0.000000e+00> : vector<22x2xf32>
      %431 = tpu.matmul %428, %430, %cst_390 {dimension_numbers = #tpu.dot_dimension_numbers<[1], [0], [0], [1], [0, 0, 1, 1], [], []>} : vector<22x16xf32>, vector<16x2xf32>, vector<22x2xf32> -> vector<22x2xf32>
      %432 = arith.addf %427, %431 : vector<22x2xf32>
      %c2_391 = arith.constant 2 : index
      %c0_392 = arith.constant 0 : index
      %433 = vector.load %arg15[%c2_391, %c0_392] : memref<36x16xf32, #tpu.memory_space<vmem>>, vector<22x16xf32>
      %c2_393 = arith.constant 2 : index
      %c0_394 = arith.constant 0 : index
      %c0_395 = arith.constant 0 : index
      %434 = vector.load %arg8[%c2_393, %c0_394, %c0_395] : memref<9x16x2xf32, #tpu.memory_space<vmem>>, vector<1x16x2xf32>
      %435 = vector.shape_cast %434 : vector<1x16x2xf32> to vector<16x2xf32>
      %cst_396 = arith.constant dense<0.000000e+00> : vector<22x2xf32>
      %436 = tpu.matmul %433, %435, %cst_396 {dimension_numbers = #tpu.dot_dimension_numbers<[1], [0], [0], [1], [0, 0, 1, 1], [], []>} : vector<22x16xf32>, vector<16x2xf32>, vector<22x2xf32> -> vector<22x2xf32>
      %437 = arith.addf %432, %436 : vector<22x2xf32>
      %c6_397 = arith.constant 6 : index
      %c0_398 = arith.constant 0 : index
      %438 = vector.load %arg15[%c6_397, %c0_398] : memref<36x16xf32, #tpu.memory_space<vmem>>, vector<22x16xf32>
      %c3_399 = arith.constant 3 : index
      %c0_400 = arith.constant 0 : index
      %c0_401 = arith.constant 0 : index
      %439 = vector.load %arg8[%c3_399, %c0_400, %c0_401] : memref<9x16x2xf32, #tpu.memory_space<vmem>>, vector<1x16x2xf32>
      %440 = vector.shape_cast %439 : vector<1x16x2xf32> to vector<16x2xf32>
      %cst_402 = arith.constant dense<0.000000e+00> : vector<22x2xf32>
      %441 = tpu.matmul %438, %440, %cst_402 {dimension_numbers = #tpu.dot_dimension_numbers<[1], [0], [0], [1], [0, 0, 1, 1], [], []>} : vector<22x16xf32>, vector<16x2xf32>, vector<22x2xf32> -> vector<22x2xf32>
      %442 = arith.addf %437, %441 : vector<22x2xf32>
      %c7_403 = arith.constant 7 : index
      %c0_404 = arith.constant 0 : index
      %443 = vector.load %arg15[%c7_403, %c0_404] : memref<36x16xf32, #tpu.memory_space<vmem>>, vector<22x16xf32>
      %c4_405 = arith.constant 4 : index
      %c0_406 = arith.constant 0 : index
      %c0_407 = arith.constant 0 : index
      %444 = vector.load %arg8[%c4_405, %c0_406, %c0_407] : memref<9x16x2xf32, #tpu.memory_space<vmem>>, vector<1x16x2xf32>
      %445 = vector.shape_cast %444 : vector<1x16x2xf32> to vector<16x2xf32>
      %cst_408 = arith.constant dense<0.000000e+00> : vector<22x2xf32>
      %446 = tpu.matmul %443, %445, %cst_408 {dimension_numbers = #tpu.dot_dimension_numbers<[1], [0], [0], [1], [0, 0, 1, 1], [], []>} : vector<22x16xf32>, vector<16x2xf32>, vector<22x2xf32> -> vector<22x2xf32>
      %447 = arith.addf %442, %446 : vector<22x2xf32>
      %c8_409 = arith.constant 8 : index
      %c0_410 = arith.constant 0 : index
      %448 = vector.load %arg15[%c8_409, %c0_410] : memref<36x16xf32, #tpu.memory_space<vmem>>, vector<22x16xf32>
      %c5_411 = arith.constant 5 : index
      %c0_412 = arith.constant 0 : index
      %c0_413 = arith.constant 0 : index
      %449 = vector.load %arg8[%c5_411, %c0_412, %c0_413] : memref<9x16x2xf32, #tpu.memory_space<vmem>>, vector<1x16x2xf32>
      %450 = vector.shape_cast %449 : vector<1x16x2xf32> to vector<16x2xf32>
      %cst_414 = arith.constant dense<0.000000e+00> : vector<22x2xf32>
      %451 = tpu.matmul %448, %450, %cst_414 {dimension_numbers = #tpu.dot_dimension_numbers<[1], [0], [0], [1], [0, 0, 1, 1], [], []>} : vector<22x16xf32>, vector<16x2xf32>, vector<22x2xf32> -> vector<22x2xf32>
      %452 = arith.addf %447, %451 : vector<22x2xf32>
      %c12_415 = arith.constant 12 : index
      %c0_416 = arith.constant 0 : index
      %453 = vector.load %arg15[%c12_415, %c0_416] : memref<36x16xf32, #tpu.memory_space<vmem>>, vector<22x16xf32>
      %c6_417 = arith.constant 6 : index
      %c0_418 = arith.constant 0 : index
      %c0_419 = arith.constant 0 : index
      %454 = vector.load %arg8[%c6_417, %c0_418, %c0_419] : memref<9x16x2xf32, #tpu.memory_space<vmem>>, vector<1x16x2xf32>
      %455 = vector.shape_cast %454 : vector<1x16x2xf32> to vector<16x2xf32>
      %cst_420 = arith.constant dense<0.000000e+00> : vector<22x2xf32>
      %456 = tpu.matmul %453, %455, %cst_420 {dimension_numbers = #tpu.dot_dimension_numbers<[1], [0], [0], [1], [0, 0, 1, 1], [], []>} : vector<22x16xf32>, vector<16x2xf32>, vector<22x2xf32> -> vector<22x2xf32>
      %457 = arith.addf %452, %456 : vector<22x2xf32>
      %c13_421 = arith.constant 13 : index
      %c0_422 = arith.constant 0 : index
      %458 = vector.load %arg15[%c13_421, %c0_422] : memref<36x16xf32, #tpu.memory_space<vmem>>, vector<22x16xf32>
      %c7_423 = arith.constant 7 : index
      %c0_424 = arith.constant 0 : index
      %c0_425 = arith.constant 0 : index
      %459 = vector.load %arg8[%c7_423, %c0_424, %c0_425] : memref<9x16x2xf32, #tpu.memory_space<vmem>>, vector<1x16x2xf32>
      %460 = vector.shape_cast %459 : vector<1x16x2xf32> to vector<16x2xf32>
      %cst_426 = arith.constant dense<0.000000e+00> : vector<22x2xf32>
      %461 = tpu.matmul %458, %460, %cst_426 {dimension_numbers = #tpu.dot_dimension_numbers<[1], [0], [0], [1], [0, 0, 1, 1], [], []>} : vector<22x16xf32>, vector<16x2xf32>, vector<22x2xf32> -> vector<22x2xf32>
      %462 = arith.addf %457, %461 : vector<22x2xf32>
      %c14_427 = arith.constant 14 : index
      %c0_428 = arith.constant 0 : index
      %463 = vector.load %arg15[%c14_427, %c0_428] : memref<36x16xf32, #tpu.memory_space<vmem>>, vector<22x16xf32>
      %c8_429 = arith.constant 8 : index
      %c0_430 = arith.constant 0 : index
      %c0_431 = arith.constant 0 : index
      %464 = vector.load %arg8[%c8_429, %c0_430, %c0_431] : memref<9x16x2xf32, #tpu.memory_space<vmem>>, vector<1x16x2xf32>
      %465 = vector.shape_cast %464 : vector<1x16x2xf32> to vector<16x2xf32>
      %cst_432 = arith.constant dense<0.000000e+00> : vector<22x2xf32>
      %466 = tpu.matmul %463, %465, %cst_432 {dimension_numbers = #tpu.dot_dimension_numbers<[1], [0], [0], [1], [0, 0, 1, 1], [], []>} : vector<22x16xf32>, vector<16x2xf32>, vector<22x2xf32> -> vector<22x2xf32>
      %467 = arith.addf %462, %466 : vector<22x2xf32>
      %c0_433 = arith.constant 0 : index
      %c0_434 = arith.constant 0 : index
      %468 = vector.load %arg9[%c0_433, %c0_434] : memref<1x2xf32, #tpu.memory_space<vmem>>, vector<1x2xf32>
      %469 = vector.broadcast %468 : vector<1x2xf32> to vector<22x2xf32>
      %470 = arith.addf %467, %469 : vector<22x2xf32>
      %471 = vector.extract_strided_slice %470 {offsets = [0, 0], sizes = [4, 2], strides = [1, 1]} : vector<22x2xf32> to vector<4x2xf32>
      %c4_i32_435 = arith.constant 4 : i32
      %472 = arith.muli %arg18, %c4_i32_435 : i32
      %c0_i32_436 = arith.constant 0 : i32
      %473 = arith.addi %472, %c0_i32_436 : i32
      %474 = arith.index_cast %473 : i32 to index
      %c0_437 = arith.constant 0 : index
      %c0_438 = arith.constant 0 : index
      %475 = vector.load %arg10[%474, %c0_437, %c0_438] : memref<16x2x32xf32, #tpu.memory_space<vmem>>, vector<1x2x32xf32>
      %476 = vector.shape_cast %475 : vector<1x2x32xf32> to vector<2x32xf32>
      %cst_439 = arith.constant dense<0.000000e+00> : vector<4x32xf32>
      %477 = tpu.matmul %471, %476, %cst_439 {dimension_numbers = #tpu.dot_dimension_numbers<[1], [0], [0], [1], [0, 0, 1, 1], [], []>} : vector<4x2xf32>, vector<2x32xf32>, vector<4x32xf32> -> vector<4x32xf32>
      %478 = arith.addf %arg19, %477 : vector<4x32xf32>
      %479 = vector.extract_strided_slice %470 {offsets = [6, 0], sizes = [4, 2], strides = [1, 1]} : vector<22x2xf32> to vector<4x2xf32>
      %c4_i32_440 = arith.constant 4 : i32
      %480 = arith.muli %arg18, %c4_i32_440 : i32
      %c1_i32_441 = arith.constant 1 : i32
      %481 = arith.addi %480, %c1_i32_441 : i32
      %482 = arith.index_cast %481 : i32 to index
      %c0_442 = arith.constant 0 : index
      %c0_443 = arith.constant 0 : index
      %483 = vector.load %arg10[%482, %c0_442, %c0_443] : memref<16x2x32xf32, #tpu.memory_space<vmem>>, vector<1x2x32xf32>
      %484 = vector.shape_cast %483 : vector<1x2x32xf32> to vector<2x32xf32>
      %cst_444 = arith.constant dense<0.000000e+00> : vector<4x32xf32>
      %485 = tpu.matmul %479, %484, %cst_444 {dimension_numbers = #tpu.dot_dimension_numbers<[1], [0], [0], [1], [0, 0, 1, 1], [], []>} : vector<4x2xf32>, vector<2x32xf32>, vector<4x32xf32> -> vector<4x32xf32>
      %486 = arith.addf %478, %485 : vector<4x32xf32>
      %487 = vector.extract_strided_slice %470 {offsets = [12, 0], sizes = [4, 2], strides = [1, 1]} : vector<22x2xf32> to vector<4x2xf32>
      %c4_i32_445 = arith.constant 4 : i32
      %488 = arith.muli %arg18, %c4_i32_445 : i32
      %c2_i32 = arith.constant 2 : i32
      %489 = arith.addi %488, %c2_i32 : i32
      %490 = arith.index_cast %489 : i32 to index
      %c0_446 = arith.constant 0 : index
      %c0_447 = arith.constant 0 : index
      %491 = vector.load %arg10[%490, %c0_446, %c0_447] : memref<16x2x32xf32, #tpu.memory_space<vmem>>, vector<1x2x32xf32>
      %492 = vector.shape_cast %491 : vector<1x2x32xf32> to vector<2x32xf32>
      %cst_448 = arith.constant dense<0.000000e+00> : vector<4x32xf32>
      %493 = tpu.matmul %487, %492, %cst_448 {dimension_numbers = #tpu.dot_dimension_numbers<[1], [0], [0], [1], [0, 0, 1, 1], [], []>} : vector<4x2xf32>, vector<2x32xf32>, vector<4x32xf32> -> vector<4x32xf32>
      %494 = arith.addf %486, %493 : vector<4x32xf32>
      %495 = vector.extract_strided_slice %470 {offsets = [18, 0], sizes = [4, 2], strides = [1, 1]} : vector<22x2xf32> to vector<4x2xf32>
      %c4_i32_449 = arith.constant 4 : i32
      %496 = arith.muli %arg18, %c4_i32_449 : i32
      %c3_i32 = arith.constant 3 : i32
      %497 = arith.addi %496, %c3_i32 : i32
      %498 = arith.index_cast %497 : i32 to index
      %c0_450 = arith.constant 0 : index
      %c0_451 = arith.constant 0 : index
      %499 = vector.load %arg10[%498, %c0_450, %c0_451] : memref<16x2x32xf32, #tpu.memory_space<vmem>>, vector<1x2x32xf32>
      %500 = vector.shape_cast %499 : vector<1x2x32xf32> to vector<2x32xf32>
      %cst_452 = arith.constant dense<0.000000e+00> : vector<4x32xf32>
      %501 = tpu.matmul %495, %500, %cst_452 {dimension_numbers = #tpu.dot_dimension_numbers<[1], [0], [0], [1], [0, 0, 1, 1], [], []>} : vector<4x2xf32>, vector<2x32xf32>, vector<4x32xf32> -> vector<4x32xf32>
      %502 = arith.addf %494, %501 : vector<4x32xf32>
      scf.yield %502 : vector<4x32xf32>
    }
    %c4_i32_83 = arith.constant 4 : i32
    %c0_84 = arith.constant 0 : index
    %c0_85 = arith.constant 0 : index
    %c0_86 = arith.constant 0 : index
    %81 = vector.load %arg11[%c0_84, %c0_85, %c0_86] : memref<1x4x32xf32, #tpu.memory_space<vmem>>, vector<1x4x32xf32>
    %82 = vector.shape_cast %81 : vector<1x4x32xf32> to vector<4x32xf32>
    %83 = vector.shape_cast %80 : vector<4x32xf32> to vector<1x4x32xf32>
    tpu.vector_store %arg11[%c0_84, %c0_85, %c0_86], %83 {strides = array<i32>} : memref<1x4x32xf32, #tpu.memory_space<vmem>>, vector<1x4x32xf32>,
    return
  }
  func.func @transform_0(%arg0: i32) -> (i32, i32, i32, i32) {
    %c0_i32 = arith.constant 0 : i32
    %c0_i32_0 = arith.constant 0 : i32
    %c0_i32_1 = arith.constant 0 : i32
    %c0_i32_2 = arith.constant 0 : i32
    return %arg0, %c0_i32, %c0_i32_0, %c0_i32_1 : i32, i32, i32, i32
  }
  func.func @transform_1(%arg0: i32) -> (i32, i32, i32) {
    %c0_i32 = arith.constant 0 : i32
    %c0_i32_0 = arith.constant 0 : i32
    %c0_i32_1 = arith.constant 0 : i32
    %c0_i32_2 = arith.constant 0 : i32
    return %c0_i32, %c0_i32_0, %c0_i32_1 : i32, i32, i32
  }
  func.func @transform_2(%arg0: i32) -> (i32, i32) {
    %c0_i32 = arith.constant 0 : i32
    %c0_i32_0 = arith.constant 0 : i32
    %c0_i32_1 = arith.constant 0 : i32
    return %c0_i32, %c0_i32_0 : i32, i32
  }
  func.func @transform_3(%arg0: i32) -> (i32, i32, i32) {
    %c0_i32 = arith.constant 0 : i32
    %c0_i32_0 = arith.constant 0 : i32
    %c0_i32_1 = arith.constant 0 : i32
    %c0_i32_2 = arith.constant 0 : i32
    return %c0_i32, %c0_i32_0, %c0_i32_1 : i32, i32, i32
  }
  func.func @transform_4(%arg0: i32) -> (i32, i32) {
    %c0_i32 = arith.constant 0 : i32
    %c0_i32_0 = arith.constant 0 : i32
    %c0_i32_1 = arith.constant 0 : i32
    return %c0_i32, %c0_i32_0 : i32, i32
  }
  func.func @transform_5(%arg0: i32) -> (i32, i32, i32) {
    %c0_i32 = arith.constant 0 : i32
    %c0_i32_0 = arith.constant 0 : i32
    %c0_i32_1 = arith.constant 0 : i32
    %c0_i32_2 = arith.constant 0 : i32
    return %c0_i32, %c0_i32_0, %c0_i32_1 : i32, i32, i32
  }
  func.func @transform_6(%arg0: i32) -> (i32, i32) {
    %c0_i32 = arith.constant 0 : i32
    %c0_i32_0 = arith.constant 0 : i32
    %c0_i32_1 = arith.constant 0 : i32
    return %c0_i32, %c0_i32_0 : i32, i32
  }
  func.func @transform_7(%arg0: i32) -> (i32, i32, i32) {
    %c0_i32 = arith.constant 0 : i32
    %c0_i32_0 = arith.constant 0 : i32
    %c0_i32_1 = arith.constant 0 : i32
    %c0_i32_2 = arith.constant 0 : i32
    return %c0_i32, %c0_i32_0, %c0_i32_1 : i32, i32, i32
  }
  func.func @transform_8(%arg0: i32) -> (i32, i32) {
    %c0_i32 = arith.constant 0 : i32
    %c0_i32_0 = arith.constant 0 : i32
    %c0_i32_1 = arith.constant 0 : i32
    return %c0_i32, %c0_i32_0 : i32, i32
  }
  func.func @transform_9(%arg0: i32) -> (i32, i32, i32) {
    %c0_i32 = arith.constant 0 : i32
    %c0_i32_0 = arith.constant 0 : i32
    %c0_i32_1 = arith.constant 0 : i32
    %c0_i32_2 = arith.constant 0 : i32
    return %c0_i32, %c0_i32_0, %c0_i32_1 : i32, i32, i32
  }
  func.func @transform_10(%arg0: i32) -> (i32, i32, i32) {
    %c0_i32 = arith.constant 0 : i32
    %c0_i32_0 = arith.constant 0 : i32
    %c0_i32_1 = arith.constant 0 : i32
    return %arg0, %c0_i32, %c0_i32_0 : i32, i32, i32
  }
}

</mosaic_0001>

<bundles_post_ra>
// kernel: tpu_custom_call.1
= control target key start
LH: loop header
LB: loop body
LE: loop exit
PB: predicated region body
PF: predicated region fallthrough
CT: control target
= control target key end

     0   :  { %s12899_s0 = inlined_call_operand.vmem [shape: f32[8,16,16,3], index: 0, kind: input, shape index: {}]   ;;  %s12900_s1 = inlined_call_operand.vmem [shape: f32[9,3,64], index: 1, kind: input, shape index: {}]   ;;  %s12901_s2 = inlined_call_operand.vmem [shape: f32[1,64], index: 2, kind: input, shape index: {}]   ;;  %s12902_s3 = inlined_call_operand.vmem [shape: f32[9,64,32], index: 3, kind: input, shape index: {}]   ;;  %s12903_s4 = inlined_call_operand.vmem [shape: f32[1,32], index: 4, kind: input, shape index: {}]   ;;  %s12904_s5 = inlined_call_operand.vmem [shape: f32[9,32,16], index: 5, kind: input, shape index: {}]   ;;  %s12905_s6 = inlined_call_operand.vmem [shape: f32[1,16], index: 6, kind: input, shape index: {}]   ;;  %s12906_s7 = inlined_call_operand.vmem [shape: f32[9,16,2], index: 7, kind: input, shape index: {}]   ;;  %s12907_s8 = inlined_call_operand.vmem [shape: f32[1,2], index: 8, kind: input, shape index: {}]   ;;  %s12908_s9 = inlined_call_operand.vmem [shape: f32[16,2,32], index: 9, kind: input, shape index: {}]   ;;  %s12909_s10 = inlined_call_operand.hbm [shape: f32[2,4,32], index: 10, kind: output, shape index: {}]  }
   0x1   :  { %12928 = sst [smem:[#allocation42_spill]] %s12899_s0 }
   0x2   :  { %12929 = sst [smem:[#allocation43_spill]] %s12900_s1 }
   0x3   :  { %12930 = sst [smem:[#allocation44_spill]] %s12901_s2 }
   0x4   :  { %15 = vsyncpa [#allocation9], 0 }
   0x5   :  { %17 = vsyncpa [#allocation9 + $0x1], 0  ;;  %s9641_s13 = smov 0   ;;  %s9643_s14 = smov 0  }
   0x6   :  { %s9645_s15 = smov 0   ;;  %s9647_s16 = smov 0  }
   0x7 LB: > { %s8454_s17 = sadd.s32 4294967295, %s9575_s16   ;;  %s8455_s18 = sadd.s32 4294967294, %s9575_s16   ;;  %s9575_s16 = sphi %s9647_s16, %s13083_s16   ;;  %s9571_s15 = sphi %s9645_s15, %s13082_s15   ;;  %s9567_s14 = sphi %s9643_s14, %s13081_s14   ;;  %s9563_s13 = sphi %s9641_s13, %s13080_s13  }
   0x8   : > { %s9664_s19 = sadd.s32 1, %s9575_s16   ;;  %s245_s20 = sadd.s32 1, %s9571_s15 }
   0x9   : > { %s242_s21 = ssub.s32 %s9575_s16, %s9664_s19  ;;  %p255_p0 = scmp.ne.s32.totalorder %s9571_s15, %s9567_s14 }
   0xa   : > { %p243_p1 = scmp.eq.s32.totalorder %s242_s21, 0  ;;  %p256_p2 = scmp.eq.s32.totalorder %s8454_s17, 1 }
   0xb   : > { %p261_p3 = scmp.ne.s32.totalorder %s9567_s14, %s9563_s13  ;;  %p262_p4 = scmp.eq.s32.totalorder %s8455_s18, 1 }
   0xc   : > { %s9674_s22 = scalar_select %p243_p1, %s9571_s15, %s245_s20  }
   0xd   : > { %p9676_p5 = por %p256_p2, %p255_p0  ;;  %p9680_p6 = por %p262_p4, %p261_p3 }
   0xe   : > { %p8458_p7 = scmp.ge.s32.totalorder %s9575_s16, 1  ;;  %p317_p8 = scmp.lt.s32.totalorder %s9575_s16, 3 }
  0x10   : > { %p318_p9 = pnand %p8458_p7, %p317_p8 }
  0x11   : > { %s12910_s25 = sand.u32 (!%p318_p9), 1, %s9567_s14   ;;  %s9687_s26 = sshll.u32 (!%p318_p9), %s8454_s17, 2 }
  0x12   : > { %321 = sbr.rel (%p318_p9) target bundleno = 2576 (0xa10), region = 60  ;;  %s9691_s27 = sshll.u32 (!%p318_p9), %s12910_s25, 2 }
  0x13   : > { %p357_p10 = scmp.lt.s32.totalorder (!%p318_p9), %s9687_s26, 7  ;;  %s12933_s0 = sld [smem:[#allocation42_spill]] (!%p318_p9) }
  0x14   : > { %s9813_s18 = smov (!%p318_p9), 0  }
  0x17   : > { %vm363_vm0 = vcmask 23552   ;;  %v9585_v0 = vmov 0.0   ;;  %s358_s28 = scalar_select %p357_p10, %s9687_s26, 7  ;;  %vm369_vm1 = vcmask 17408   ;;  %vm371_vm2 = vcmask 19456  }
  0x18   : > { %364 = vst.msk [vmem:[#allocation2] sm:$0xff] %vm363_vm0, %v9585_v0  ;;  %vm393_vm3 = vcmask 523264   ;;  %vm397_vm4 = vcmask 519168   ;;  %vm411_vm5 = vcmask 261120   ;;  %vm416_vm6 = vcmask 257024  }
  0x19   : > { %365 = vst.msk [vmem:[#allocation2 + $0x8] sm:$0xff] %vm363_vm0, %v9585_v0  ;;  %s9435_s29 = sshll.u32 %s358_s28, 8  ;;  %v9811_v1 = vmov 0.0  }
  0x1a   : > { %366 = vst.msk [vmem:[#allocation2 + $0x10] sm:$0xff] %vm363_vm0, %v9585_v0  ;;  %s9708_s12 = scalar_lea.vmem %s12933_s0, %s9435_s29 }
  0x1b   : > { %367 = vst.msk [vmem:[#allocation2 + $0x18] sm:$0xff] %vm363_vm0, %v9585_v0 }
  0x1c   : > { %368 = vst.msk [vmem:[#allocation2 + $0x20] sm:$0xff] %vm363_vm0, %v9585_v0 }
  0x1d   : > { %387 = vst.msk [vmem:[#allocation2 + $0x166] sm:$0xff] %vm363_vm0, %v9585_v0 }
  0x1e   : > { %388 = vst.msk [vmem:[#allocation2 + $0x16e] sm:$0xff] %vm363_vm0, %v9585_v0 }
  0x1f   : > { %389 = vst.msk [vmem:[#allocation2 + $0x176] sm:$0xff] %vm363_vm0, %v9585_v0 }
  0x20   : > { %390 = vst.msk [vmem:[#allocation2 + $0x17e] sm:$0xff] %vm363_vm0, %v9585_v0 }
  0x21   : > { %391 = vst.msk [vmem:[#allocation2 + $0x186] sm:$0xff] %vm363_vm0, %v9585_v0 }
  0x22   : > { %370 = vst.msk [vmem:[#allocation2 + $0x28] sm:$0x3] %vm369_vm1, %v9585_v0 }
  0x23   : > { %392 = vst.msk [vmem:[#allocation2 + $0x18e] sm:$0x3] %vm369_vm1, %v9585_v0 }
  0x24   : > { %372 = vst.msk [vmem:[#allocation2 + $0x3a] sm:$0xf] %vm371_vm2, %v9585_v0 }
  0x25   : > { %373 = vst.msk [vmem:[#allocation2 + $0x4e] sm:$0xf] %vm371_vm2, %v9585_v0 }
  0x26   : > { %374 = vst.msk [vmem:[#allocation2 + $0x62] sm:$0xf] %vm371_vm2, %v9585_v0 }
  0x27   : > { %375 = vst.msk [vmem:[#allocation2 + $0x76] sm:$0xf] %vm371_vm2, %v9585_v0 }
  0x28   : > { %376 = vst.msk [vmem:[#allocation2 + $0x8a] sm:$0xf] %vm371_vm2, %v9585_v0 }
  0x29   : > { %377 = vst.msk [vmem:[#allocation2 + $0x9e] sm:$0xf] %vm371_vm2, %v9585_v0 }
  0x2a   : > { %378 = vst.msk [vmem:[#allocation2 + $0xb2] sm:$0xf] %vm371_vm2, %v9585_v0 }
  0x2b   : > { %379 = vst.msk [vmem:[#allocation2 + $0xc6] sm:$0xf] %vm371_vm2, %v9585_v0 }
  0x2c   : > { %380 = vst.msk [vmem:[#allocation2 + $0xda] sm:$0xf] %vm371_vm2, %v9585_v0 }
  0x2d   : > { %381 = vst.msk [vmem:[#allocation2 + $0xee] sm:$0xf] %vm371_vm2, %v9585_v0 }
  0x2e   : > { %382 = vst.msk [vmem:[#allocation2 + $0x102] sm:$0xf] %vm371_vm2, %v9585_v0 }
  0x2f   : > { %383 = vst.msk [vmem:[#allocation2 + $0x116] sm:$0xf] %vm371_vm2, %v9585_v0 }
  0x30   : > { %384 = vst.msk [vmem:[#allocation2 + $0x12a] sm:$0xf] %vm371_vm2, %v9585_v0 }
  0x31   : > { %385 = vst.msk [vmem:[#allocation2 + $0x13e] sm:$0xf] %vm371_vm2, %v9585_v0 }
  0x32   : > { %386 = vst.msk [vmem:[#allocation2 + $0x152] sm:$0xf] %vm371_vm2, %v9585_v0 }
  0x33   : > { %394 = vst.msk [vmem:[#allocation3] sm:$0xff] %vm393_vm3, %v9585_v0 }
  0x34   : > { %395 = vst.msk [vmem:[#allocation3 + $0x8] sm:$0xff] %vm393_vm3, %v9585_v0 }
  0x35   : > { %396 = vst.msk [vmem:[#allocation3 + $0x10] sm:$0xff] %vm393_vm3, %v9585_v0 }
  0x36   : > { %407 = vst.msk [vmem:[#allocation3 + $0x8d] sm:$0xff] %vm393_vm3, %v9585_v0 }
  0x37   : > { %408 = vst.msk [vmem:[#allocation3 + $0x95] sm:$0xff] %vm393_vm3, %v9585_v0 }
  0x38   : > { %409 = vst.msk [vmem:[#allocation3 + $0x9d] sm:$0xff] %vm393_vm3, %v9585_v0 }
  0x39   : > { %398 = vst.msk [vmem:[#allocation3 + $0x18] sm:$0xf] %vm397_vm4, %v9585_v0 }
  0x3a   : > { %399 = vst.msk [vmem:[#allocation3 + $0x25] sm:$0xf] %vm397_vm4, %v9585_v0 }
  0x3b   : > { %400 = vst.msk [vmem:[#allocation3 + $0x32] sm:$0xf] %vm397_vm4, %v9585_v0 }
  0x3c   : > { %401 = vst.msk [vmem:[#allocation3 + $0x3f] sm:$0xf] %vm397_vm4, %v9585_v0 }
  0x3d   : > { %402 = vst.msk [vmem:[#allocation3 + $0x4c] sm:$0xf] %vm397_vm4, %v9585_v0 }
  0x3e   : > { %403 = vst.msk [vmem:[#allocation3 + $0x59] sm:$0xf] %vm397_vm4, %v9585_v0 }
  0x3f   : > { %404 = vst.msk [vmem:[#allocation3 + $0x66] sm:$0xf] %vm397_vm4, %v9585_v0 }
  0x40   : > { %405 = vst.msk [vmem:[#allocation3 + $0x73] sm:$0xf] %vm397_vm4, %v9585_v0 }
  0x41   : > { %406 = vst.msk [vmem:[#allocation3 + $0x80] sm:$0xf] %vm397_vm4, %v9585_v0 }
  0x42   : > { %410 = vst.msk [vmem:[#allocation3 + $0xa5] sm:$0xf] %vm397_vm4, %v9585_v0 }
  0x43   : > { %412 = vst.msk [vmem:[#allocation4] sm:$0xff] %vm411_vm5, %v9585_v0 }
  0x44   : > { %413 = vst.msk [vmem:[#allocation4 + $0x8] sm:$0xff] %vm411_vm5, %v9585_v0 }
  0x45   : > { %414 = vst.msk [vmem:[#allocation4 + $0x10] sm:$0xff] %vm411_vm5, %v9585_v0 }
  0x46   : > { %415 = vst.msk [vmem:[#allocation4 + $0x18] sm:$0xff] %vm411_vm5, %v9585_v0 }
  0x47   : > { %427 = vst.msk [vmem:[#allocation4 + $0xc1] sm:$0xff] %vm411_vm5, %v9585_v0 }
  0x48   : > { %428 = vst.msk [vmem:[#allocation4 + $0xc9] sm:$0xff] %vm411_vm5, %v9585_v0 }
  0x49   : > { %429 = vst.msk [vmem:[#allocation4 + $0xd1] sm:$0xff] %vm411_vm5, %v9585_v0 }
  0x4a   : > { %430 = vst.msk [vmem:[#allocation4 + $0xd9] sm:$0xff] %vm411_vm5, %v9585_v0 }
  0x4b   : > { %417 = vst.msk [vmem:[#allocation4 + $0x2b] sm:$0xf] %vm416_vm6, %v9585_v0 }
  0x4c   : > { %418 = vst.msk [vmem:[#allocation4 + $0x3a] sm:$0xf] %vm416_vm6, %v9585_v0 }
  0x4d   : > { %419 = vst.msk [vmem:[#allocation4 + $0x49] sm:$0xf] %vm416_vm6, %v9585_v0 }
  0x4e   : > { %420 = vst.msk [vmem:[#allocation4 + $0x58] sm:$0xf] %vm416_vm6, %v9585_v0 }
  0x4f   : > { %421 = vst.msk [vmem:[#allocation4 + $0x67] sm:$0xf] %vm416_vm6, %v9585_v0 }
  0x50   : > { %422 = vst.msk [vmem:[#allocation4 + $0x76] sm:$0xf] %vm416_vm6, %v9585_v0 }
  0x51   : > { %423 = vst.msk [vmem:[#allocation4 + $0x85] sm:$0xf] %vm416_vm6, %v9585_v0 }
  0x52   : > { %424 = vst.msk [vmem:[#allocation4 + $0x94] sm:$0xf] %vm416_vm6, %v9585_v0 }
  0x53   : > { %425 = vst.msk [vmem:[#allocation4 + $0xa3] sm:$0xf] %vm416_vm6, %v9585_v0 }
  0x54   : > { %426 = vst.msk [vmem:[#allocation4 + $0xb2] sm:$0xf] %vm416_vm6, %v9585_v0 }
  0x55 LB: >> { %12934 = vst [vmem:[#allocation11_spill] sm:$0xff] %v9579_v1  ;;  %s12935_s1 = sld [smem:[#allocation43_spill]]  ;;  %vm732_vm7 = vcmask 1042432   ;;  %v550_v4 = vld [vmem:[#allocation2 + $0x1] sm:$0xff]  ;;  %s8463_s20 = sshll.u32 %s9583_s18, 8  ;;  %v551_v13 = vld [vmem:[#allocation2 + $0x9] sm:$0xff]  ;;  %s9583_s18 = sphi %s9813_s18, %s436_s18   ;;  %v9579_v1 = vphi %v9811_v1, %v13076_v1  }
  0x56   : >> { %v504_v5 = vld [vmem:[#allocation2] sm:$0xff]  ;;  %s9838_s21 = scalar_lea.vmem %s9708_s12, %s8463_s20  ;;  %v505_v14 = vld [vmem:[#allocation2 + $0x8] sm:$0xff]  ;;  %v552_v19 = vld [vmem:[#allocation2 + $0x11] sm:$0xff]  ;;  %s12966_s2 = sld [smem:[#allocation44_spill]]  ;;  %vm3949_vm8 = vcmask 1043456   ;;  %vm3963_vm9 = vcmask 517120  }
  0x57   : >> { %v468_v8 = vld [vmem:[%s9838_s21 + $0xe0] sm:$0xff]  ;;  %v469_v9 = vld [vmem:[%s9838_s21 + $0xe8] sm:$0xff]  ;;  %v470_v10 = vld [vmem:[%s9838_s21 + $0xf0] sm:$0xff]  ;;  %vm3975_vm10 = vcmask 516096   ;;  %vm5711_vm11 = vcmask 256000   ;;  %vm5713_vm12 = vcmask 261125  }
  0x58   : >> { %500 = vst.msk [vmem:[#allocation2 + $0x142] sm:$0xff] %vm363_vm0, %v468_v8  ;;  %v471_v11 = vld [vmem:[%s9838_s21 + $0xf8] sm:$0xff]  ;;  %v440_v15 = vld [vmem:[%s9838_s21] sm:$0xff]  ;;  %v441_v16 = vld [vmem:[%s9838_s21 + $0x8] sm:$0xff]  ;;  %vm5716_vm13 = vcmask 261122   ;;  %vm5718_vm14 = vcmask 258048  }
  0x59   : >> { %501 = vst.msk [vmem:[#allocation2 + $0x14a] sm:$0xff] %vm363_vm0, %v469_v9  ;;  %v506_v20 = vld [vmem:[#allocation2 + $0x10] sm:$0xff]  ;;  %v553_v24 = vld [vmem:[#allocation2 + $0x19] sm:$0xff]  ;;  %v1178_v27 = vld [vmem:[#allocation2 + $0x2] sm:$0xff]  ;;  %vm5720_vm15 = vcmask 261127   ;;  %vm5723_vm1 = vcmask 254976  }
  0x5a   : >> { %502 = vst.msk [vmem:[#allocation2 + $0x156] sm:$0xff] %vm363_vm0, %v470_v10  ;;  %v442_v22 = vld [vmem:[%s9838_s21 + $0x10] sm:$0xff]  ;;  %v507_v25 = vld [vmem:[#allocation2 + $0x18] sm:$0xff]  ;;  %v554_v29 = vld [vmem:[#allocation2 + $0x21] sm:$0xff]  ;;  %vm5725_vm2 = vcmask 261124   ;;  %vm5727_vm4 = vcmask 260096  }
  0x5b   : >> { %v8464_v2 = vld [vmem:[%s12935_s1 + $0x4] sm:$0x7]  ;;  %v549_v3 = vld [vmem:[%s12935_s1] sm:$0x7]  ;;  %v8651_v6 = vld [vmem:[%s12935_s1 + $0x10] sm:$0x7] }
  0x5c   : >> { %8465 = vmatpush.msk.msra.mxu0 %vm732_vm7, %v8464_v2  ;;  %8511 = vmatpush.msk.msra.mxu1 %vm732_vm7, %v549_v3  ;;  %v8557_v7 = vld [vmem:[%s12935_s1 + $0x8] sm:$0x7]  ;;  %v8604_v12 = vld [vmem:[%s12935_s1 + $0xc] sm:$0x7]  ;;  %503 = vst.msk [vmem:[#allocation2 + $0x15e] sm:$0xff] %vm363_vm0, %v471_v11  ;;  %v443_v26 = vld [vmem:[%s9838_s21 + $0x18] sm:$0xff] }
  0x5d   : >> { %8466 = vmatmul.msk.f32.vlgmr.msra.gmra.mxu0 %vm363_vm0, %v550_v4  ;;  %8512 = vmatmul.msk.f32.vlgmr.msra.gmra.mxu1 %vm363_vm0, %v504_v5  ;;  %472 = vst.msk [vmem:[#allocation2 + $0x2a] sm:$0xff] %vm363_vm0, %v440_v15  ;;  %v1560_v28 = vld [vmem:[#allocation2 + $0x14] sm:$0xff]  ;;  %v508_v30 = vld [vmem:[#allocation2 + $0x20] sm:$0xff]  ;;  %v1179_v31 = vld [vmem:[#allocation2 + $0xa] sm:$0xff]  ;;  %s9436_s30 = sshll.u32 %s9583_s18, 3  ;;  %s436_s18 = sadd.s32 1, %s9583_s18  }
  0x5e   : >> { %8652 = vmatpush.msk.msrb.mxu0 %vm732_vm7, %v8651_v6  ;;  %9440 = vmatpush.msk.msra.mxu2 %vm732_vm7, %v8464_v2  ;;  %473 = vst.msk [vmem:[#allocation2 + $0x32] sm:$0xff] %vm363_vm0, %v441_v16  ;;  %v1561_v32 = vld [vmem:[#allocation2 + $0x1c] sm:$0xff]  ;;  %v1180_v36 = vld [vmem:[#allocation2 + $0x12] sm:$0xff]  ;;  %v445_v41 = vld [vmem:[%s9838_s21 + $0x28] sm:$0xff]  ;;  %s8227_s25 = scalar_lea.vmem %s12908_s9, %s9436_s30  ;;  %p433_p11 = scmp.ge.s32.totalorder %s436_s18, 4  }
  0x5f   : >> { %9441 = vmatpush.msk.msra.mxu3 %vm732_vm7, %v8464_v2  ;;  %474 = vst.msk [vmem:[#allocation2 + $0x3e] sm:$0xff] %vm363_vm0, %v442_v22  ;;  %v444_v35 = vld [vmem:[%s9838_s21 + $0x20] sm:$0xff]  ;;  %v446_v45 = vld [vmem:[%s9838_s21 + $0x30] sm:$0xff]  ;;  %v447_v51 = vld [vmem:[%s9838_s21 + $0x38] sm:$0xff]  ;;  %s8367_s29 = scalar_lea.hbm (%p433_p11), %s12909_s10, %s9687_s26 }
  0x60   : >> { %8558 = vmatpush.msk.msrb.mxu2 %vm732_vm7, %v8557_v7  ;;  %v591_v17 = vld [vmem:[#allocation2 + $0x149] sm:$0xff]  ;;  %475 = vst.msk [vmem:[#allocation2 + $0x46] sm:$0xff] %vm363_vm0, %v443_v26  ;;  %v1181_v40 = vld [vmem:[#allocation2 + $0x1a] sm:$0xff]  ;;  %s8371_s20 = sshll.u32 (%p433_p11), %s8367_s29, 4  ;;  %s8372_s20 = int_to_ptr.hbm [resolvable:$true] %s8371_s20 }
  0x61   : >> { %8605 = vmatpush.msk.msrb.mxu3 %vm732_vm7, %v8604_v12  ;;  %8507 = vmatmul.msk.f32.vlgmr.msra.gmra.mxu2 %vm363_vm0, %v591_v17  ;;  %v592_v21 = vld [vmem:[#allocation2 + $0x151] sm:$0xff]  ;;  %476 = vst.msk [vmem:[#allocation2 + $0x52] sm:$0xff] %vm363_vm0, %v444_v35  ;;  %v1182_v46 = vld [vmem:[#allocation2 + $0x22] sm:$0xff]  ;;  %s9519_s17 = sshra.s32 (%p433_p11), %s8372_s20, 4  ;;  %s9520_s17 = int_to_ptr.hbm [resolvable:$true] %s9519_s17 }
  0x62   : >> { %477 = vst.msk [vmem:[#allocation2 + $0x5a] sm:$0xff] %vm363_vm0, %v445_v41  ;;  %v448_v59 = vld [vmem:[%s9838_s21 + $0x40] sm:$0xff]  ;;  %v449_v2 = vld [vmem:[%s9838_s21 + $0x48] sm:$0xff]  ;;  %v450_v6 = vld [vmem:[%s9838_s21 + $0x50] sm:$0xff]  ;;  %s9521_s12 = scalar_lea.hbm (%p433_p11), %s9520_s17, 4  ;;  %p9526_p1 = scmp.lt.s32.totalorder (%p433_p11), %s9520_s17, %s12909_s10 }
  0x63   : >> { %v593_v18 = vld [vmem:[#allocation2 + $0x159] sm:$0xff]  ;;  %v594_v23 = vld [vmem:[#allocation2 + $0x161] sm:$0x3f]  ;;  %478 = vst.msk [vmem:[#allocation2 + $0x66] sm:$0xff] %vm363_vm0, %v446_v45  ;;  %p9522_p12 = scmp.ne.s32.totalorder (%p433_p11), %s9520_s17, %s9521_s12 }
  0x64   : >> { %8509 = vmatmul.msk.f32.vlgmr.msra.gmra.mxu3 %vm363_vm0, %v593_v18  ;;  %v555_v33 = vld [vmem:[#allocation2 + $0x29] sm:$0xff]  ;;  %479 = vst.msk [vmem:[#allocation2 + $0x6e] sm:$0xff] %vm363_vm0, %v447_v51  ;;  %v451_v12 = vld [vmem:[%s9838_s21 + $0x58] sm:$0xff] }
  0x65   : >> { %8467 = vmatmul.msk.f32.gmra.mxu0 %vm363_vm0, %v551_v13  ;;  %8513 = vmatmul.msk.f32.gmra.mxu1 %vm363_vm0, %v505_v14  ;;  %v509_v34 = vld [vmem:[#allocation2 + $0x28] sm:$0xff]  ;;  %v556_v38 = vld [vmem:[#allocation2 + $0x31] sm:$0xff]  ;;  %480 = vst.msk [vmem:[#allocation2 + $0x7a] sm:$0xff] %vm363_vm0, %v448_v59  ;;  %p9523_p13 = pnand (%p433_p11), %p9522_p12, %p9676_p5 }
  0x66   : >> { %v1562_v37 = vld [vmem:[#allocation2 + $0x24] sm:$0xff]  ;;  %v510_v39 = vld [vmem:[#allocation2 + $0x30] sm:$0xff]  ;;  %v557_v43 = vld [vmem:[#allocation2 + $0x39] sm:$0xff]  ;;  %481 = vst.msk [vmem:[#allocation2 + $0x82] sm:$0xff] %vm363_vm0, %v449_v2 }
  0x67   : >> { %v1563_v42 = vld [vmem:[#allocation2 + $0x2c] sm:$0xff]  ;;  %v511_v44 = vld [vmem:[#allocation2 + $0x38] sm:$0xff]  ;;  %v558_v48 = vld [vmem:[#allocation2 + $0x41] sm:$0xff]  ;;  %482 = vst.msk [vmem:[#allocation2 + $0x8e] sm:$0xff] %vm363_vm0, %v450_v6  ;;  %p9524_p0 = pneg (%p433_p11), %p9523_p13 }
  0x68   : >> { %v1564_v47 = vld [vmem:[#allocation2 + $0x34] sm:$0xff]  ;;  %v512_v49 = vld [vmem:[#allocation2 + $0x40] sm:$0xff]  ;;  %v1183_v50 = vld [vmem:[#allocation2 + $0x2a] sm:$0xff]  ;;  %483 = vst.msk [vmem:[#allocation2 + $0x96] sm:$0xff] %vm363_vm0, %v451_v12 }
  0x69   : >> { %8508 = vmatmul.msk.f32.gmra.mxu2 %vm363_vm0, %v592_v21  ;;  %v1565_v52 = vld [vmem:[#allocation2 + $0x3c] sm:$0xff]  ;;  %v559_v53 = vld [vmem:[#allocation2 + $0x49] sm:$0xff]  ;;  %v1184_v55 = vld [vmem:[#allocation2 + $0x32] sm:$0xff] }
  0x6a   : >> { %v513_v54 = vld [vmem:[#allocation2 + $0x48] sm:$0xff]  ;;  %v560_v57 = vld [vmem:[#allocation2 + $0x51] sm:$0xff]  ;;  %v1185_v60 = vld [vmem:[#allocation2 + $0x3a] sm:$0xff] }
  0x6b   : >> { %v1566_v56 = vld [vmem:[#allocation2 + $0x44] sm:$0xff]  ;;  %v514_v58 = vld [vmem:[#allocation2 + $0x50] sm:$0xff]  ;;  %v561_v62 = vld [vmem:[#allocation2 + $0x59] sm:$0xff] }
  0x6c   : >> { %8510 = vmatmul.msk.f32.gmra.mxu3 %vm363_vm0, %v594_v23  ;;  %v1567_v61 = vld [vmem:[#allocation2 + $0x4c] sm:$0xff]  ;;  %v515_v63 = vld [vmem:[#allocation2 + $0x58] sm:$0xff]  ;;  %v1186_v0 = vld [vmem:[#allocation2 + $0x42] sm:$0xff] }
  0x6d   : >> { %8468 = vmatmul.msk.f32.gmra.mxu0 %vm363_vm0, %v552_v19  ;;  %8514 = vmatmul.msk.f32.gmra.mxu1 %vm363_vm0, %v506_v20  ;;  %v1568_v3 = vld [vmem:[#allocation2 + $0x54] sm:$0xff]  ;;  %v562_v4 = vld [vmem:[#allocation2 + $0x61] sm:$0xff]  ;;  %v1187_v7 = vld [vmem:[#allocation2 + $0x4a] sm:$0xff] }
  0x6e   : >> { %v516_v5 = vld [vmem:[#allocation2 + $0x60] sm:$0xff]  ;;  %v563_v9 = vld [vmem:[#allocation2 + $0x69] sm:$0xff]  ;;  %v1188_v11 = vld [vmem:[#allocation2 + $0x52] sm:$0xff] }
  0x6f   : >> { %v1569_v8 = vld [vmem:[#allocation2 + $0x5c] sm:$0xff]  ;;  %v517_v10 = vld [vmem:[#allocation2 + $0x68] sm:$0xff]  ;;  %v564_v14 = vld [vmem:[#allocation2 + $0x71] sm:$0xff] }
  0x70   : >> { %v1570_v13 = vld [vmem:[#allocation2 + $0x64] sm:$0xff]  ;;  %v518_v15 = vld [vmem:[#allocation2 + $0x70] sm:$0xff]  ;;  %v1189_v16 = vld [vmem:[#allocation2 + $0x5a] sm:$0xff] }
  0x71   : >> { %8559 = vmatmul.msk.f32.vlgmr.msrb.gmra.mxu2 %vm363_vm0, %v1178_v27  ;;  %v1571_v17 = vld [vmem:[#allocation2 + $0x6c] sm:$0xff]  ;;  %v565_v18 = vld [vmem:[#allocation2 + $0x79] sm:$0xff]  ;;  %v1190_v21 = vld [vmem:[#allocation2 + $0x62] sm:$0xff] }
  0x72   : >> { %v519_v19 = vld [vmem:[#allocation2 + $0x78] sm:$0xff]  ;;  %v452_v20 = vld [vmem:[%s9838_s21 + $0x60] sm:$0xff]  ;;  %v453_v27 = vld [vmem:[%s9838_s21 + $0x68] sm:$0xff] }
  0x73   : >> { %484 = vst.msk [vmem:[#allocation2 + $0xa2] sm:$0xff] %vm363_vm0, %v452_v20  ;;  %v1572_v22 = vld [vmem:[#allocation2 + $0x74] sm:$0xff]  ;;  %v520_v26 = vld [vmem:[#allocation2 + $0x80] sm:$0xff]  ;;  %v1575_v45 = vld [vmem:[#allocation2 + $0x8c] sm:$0xff] }
  0x74   : >> { %8606 = vmatmul.msk.f32.vlgmr.msrb.gmra.mxu3 %vm363_vm0, %v1560_v28  ;;  %v1191_v28 = vld [vmem:[#allocation2 + $0x6a] sm:$0xff]  ;;  %485 = vst.msk [vmem:[#allocation2 + $0xaa] sm:$0xff] %vm363_vm0, %v453_v27  ;;  %v1192_v35 = vld [vmem:[#allocation2 + $0x72] sm:$0xff] }
  0x75   : >> { %8469 = vmatmul.msk.f32.gmra.mxu0 %vm363_vm0, %v553_v24  ;;  %8515 = vmatmul.msk.f32.gmra.mxu1 %vm363_vm0, %v507_v25  ;;  %v566_v25 = vld [vmem:[#allocation2 + $0x81] sm:$0xff]  ;;  %v1196_v12 = vld [vmem:[#allocation2 + $0x92] sm:$0xff] }
  0x79   : >> { %8560 = vmatmul.msk.f32.gmra.mxu2 %vm363_vm0, %v1179_v31 }
  0x7a   : >> { %v1577_v2 = vld [vmem:[#allocation2 + $0x9c] sm:$0xff] }
  0x7b   : >> { %v525_v6 = vld [vmem:[#allocation2 + $0xa8] sm:$0xff] }
  0x7c   : >> { %8607 = vmatmul.msk.f32.gmra.mxu3 %vm363_vm0, %v1561_v32  ;;  %v567_v32 = vld [vmem:[#allocation2 + $0x89] sm:$0xff] }
  0x7d   : >> { %8470 = vmatmul.msk.f32.gmra.mxu0 %vm363_vm0, %v554_v29  ;;  %8516 = vmatmul.msk.f32.gmra.mxu1 %vm363_vm0, %v508_v30  ;;  %v1573_v29 = vld [vmem:[#allocation2 + $0x7c] sm:$0xff] }
  0x81   : >> { %8561 = vmatmul.msk.f32.gmra.mxu2 %vm363_vm0, %v1180_v36  ;;  %v1574_v36 = vld [vmem:[#allocation2 + $0x84] sm:$0xff] }
  0x84   : >> { %8608 = vmatmul.msk.f32.gmra.mxu3 %vm363_vm0, %v1562_v37 }
  0x85   : >> { %8471 = vmatmul.msk.f32.gmra.mxu0 %vm363_vm0, %v555_v33  ;;  %8517 = vmatmul.msk.f32.gmra.mxu1 %vm363_vm0, %v509_v34  ;;  %v521_v33 = vld [vmem:[#allocation2 + $0x88] sm:$0xff]  ;;  %v454_v34 = vld [vmem:[%s9838_s21 + $0x70] sm:$0xff] }
  0x86   : >> { %486 = vst.msk [vmem:[#allocation2 + $0xb6] sm:$0xff] %vm363_vm0, %v454_v34  ;;  %v459_v34 = vld [vmem:[%s9838_s21 + $0x98] sm:$0xff] }
  0x87   : >> { %491 = vst.msk [vmem:[#allocation2 + $0xe6] sm:$0xff] %vm363_vm0, %v459_v34 }
  0x89   : >> { %8562 = vmatmul.msk.f32.gmra.mxu2 %vm363_vm0, %v1181_v40  ;;  %v522_v40 = vld [vmem:[#allocation2 + $0x90] sm:$0xff] }
  0x8c   : >> { %8609 = vmatmul.msk.f32.gmra.mxu3 %vm363_vm0, %v1563_v42  ;;  %v455_v42 = vld [vmem:[%s9838_s21 + $0x78] sm:$0xff] }
  0x8d   : >> { %8472 = vmatmul.msk.f32.gmra.mxu0 %vm363_vm0, %v556_v38  ;;  %8518 = vmatmul.msk.f32.gmra.mxu1 %vm363_vm0, %v510_v39  ;;  %v568_v39 = vld [vmem:[#allocation2 + $0x91] sm:$0xff]  ;;  %487 = vst.msk [vmem:[#allocation2 + $0xbe] sm:$0xff] %vm363_vm0, %v455_v42 }
  0x91   : >> { %8563 = vmatmul.msk.f32.gmra.mxu2 %vm363_vm0, %v1182_v46 }
  0x94   : >> { %8610 = vmatmul.msk.f32.gmra.mxu3 %vm363_vm0, %v1564_v47  ;;  %v574_v42 = vld [vmem:[#allocation2 + $0xc1] sm:$0xff] }
  0x95   : >> { %8473 = vmatmul.msk.f32.gmra.mxu0 %vm363_vm0, %v557_v43  ;;  %8519 = vmatmul.msk.f32.gmra.mxu1 %vm363_vm0, %v511_v44  ;;  %v1193_v44 = vld [vmem:[#allocation2 + $0x7a] sm:$0xff] }
  0x99   : >> { %8564 = vmatmul.msk.f32.gmra.mxu2 %vm363_vm0, %v1183_v50 }
  0x9c   : >> { %8611 = vmatmul.msk.f32.gmra.mxu3 %vm363_vm0, %v1565_v52  ;;  %v1194_v52 = vld [vmem:[#allocation2 + $0x82] sm:$0xff] }
  0x9d   : >> { %8474 = vmatmul.msk.f32.gmra.mxu0 %vm363_vm0, %v558_v48  ;;  %8520 = vmatmul.msk.f32.gmra.mxu1 %vm363_vm0, %v512_v49  ;;  %v569_v48 = vld [vmem:[#allocation2 + $0x99] sm:$0xff] }
  0x9e   : >> { %v523_v49 = vld [vmem:[#allocation2 + $0x98] sm:$0xff] }
  0xa1   : >> { %8565 = vmatmul.msk.f32.gmra.mxu2 %vm363_vm0, %v1184_v55 }
  0xa4   : >> { %8612 = vmatmul.msk.f32.gmra.mxu3 %vm363_vm0, %v1566_v56  ;;  %v570_v56 = vld [vmem:[#allocation2 + $0xa1] sm:$0xff] }
  0xa5   : >> { %8475 = vmatmul.msk.f32.gmra.mxu0 %vm363_vm0, %v559_v53  ;;  %8521 = vmatmul.msk.f32.gmra.mxu1 %vm363_vm0, %v513_v54  ;;  %v1576_v53 = vld [vmem:[#allocation2 + $0x94] sm:$0xff] }
  0xa9   : >> { %8566 = vmatmul.msk.f32.gmra.mxu2 %vm363_vm0, %v1185_v60 }
  0xac   : >> { %8613 = vmatmul.msk.f32.gmra.mxu3 %vm363_vm0, %v1567_v61  ;;  %v456_v61 = vld [vmem:[%s9838_s21 + $0x80] sm:$0xff] }
  0xad   : >> { %8476 = vmatmul.msk.f32.gmra.mxu0 %vm363_vm0, %v560_v57  ;;  %8522 = vmatmul.msk.f32.gmra.mxu1 %vm363_vm0, %v514_v58  ;;  %v524_v57 = vld [vmem:[#allocation2 + $0xa0] sm:$0xff]  ;;  %488 = vst.msk [vmem:[#allocation2 + $0xca] sm:$0xff] %vm363_vm0, %v456_v61 }
  0xae   : >> { %v460_v61 = vld [vmem:[%s9838_s21 + $0xa0] sm:$0xff] }
  0xaf   : >> { %492 = vst.msk [vmem:[#allocation2 + $0xf2] sm:$0xff] %vm363_vm0, %v460_v61 }
  0xb1   : >> { %8567 = vmatmul.msk.f32.gmra.mxu2 %vm363_vm0, %v1186_v0 }
  0xb4   : >> { %8614 = vmatmul.msk.f32.gmra.mxu3 %vm363_vm0, %v1568_v3 }
  0xb5   : >> { %8477 = vmatmul.msk.f32.gmra.mxu0 %vm363_vm0, %v561_v62  ;;  %8523 = vmatmul.msk.f32.gmra.mxu1 %vm363_vm0, %v515_v63  ;;  %v1195_v63 = vld [vmem:[#allocation2 + $0x8a] sm:$0xff] }
  0xb9   : >> { %8568 = vmatmul.msk.f32.gmra.mxu2 %vm363_vm0, %v1187_v7 }
  0xbc   : >> { %8615 = vmatmul.msk.f32.gmra.mxu3 %vm363_vm0, %v1569_v8 }
  0xbd   : >> { %8478 = vmatmul.msk.f32.gmra.mxu0 %vm363_vm0, %v562_v4  ;;  %8524 = vmatmul.msk.f32.gmra.mxu1 %vm363_vm0, %v516_v5  ;;  %v571_v5 = vld [vmem:[#allocation2 + $0xa9] sm:$0xff] }
  0xc1   : >> { %8569 = vmatmul.msk.f32.gmra.mxu2 %vm363_vm0, %v1188_v11 }
  0xc4   : >> { %8616 = vmatmul.msk.f32.gmra.mxu3 %vm363_vm0, %v1570_v13 }
  0xc5   : >> { %8479 = vmatmul.msk.f32.gmra.mxu0 %vm363_vm0, %v563_v9  ;;  %8525 = vmatmul.msk.f32.gmra.mxu1 %vm363_vm0, %v517_v10  ;;  %v457_v10 = vld [vmem:[%s9838_s21 + $0x88] sm:$0xff] }
  0xc6   : >> { %489 = vst.msk [vmem:[#allocation2 + $0xd2] sm:$0xff] %vm363_vm0, %v457_v10 }
  0xc9   : >> { %8570 = vmatmul.msk.f32.gmra.mxu2 %vm363_vm0, %v1189_v16 }
  0xcc   : >> { %8617 = vmatmul.msk.f32.gmra.mxu3 %vm363_vm0, %v1571_v17  ;;  %v572_v17 = vld [vmem:[#allocation2 + $0xb1] sm:$0xff] }
  0xcd   : >> { %8480 = vmatmul.msk.f32.gmra.mxu0 %vm363_vm0, %v564_v14  ;;  %8526 = vmatmul.msk.f32.gmra.mxu1 %vm363_vm0, %v518_v15  ;;  %v1578_v14 = vld [vmem:[#allocation2 + $0xa4] sm:$0xff] }
  0xd1   : >> { %8571 = vmatmul.msk.f32.gmra.mxu2 %vm363_vm0, %v1190_v21 }
  0xd4   : >> { %8618 = vmatmul.msk.f32.gmra.mxu3 %vm363_vm0, %v1572_v22  ;;  %v458_v22 = vld [vmem:[%s9838_s21 + $0x90] sm:$0xff] }
  0xd5   : >> { %8481 = vmatmul.msk.f32.gmra.mxu0 %vm363_vm0, %v565_v18  ;;  %8527 = vmatmul.msk.f32.gmra.mxu1 %vm363_vm0, %v519_v19  ;;  %v526_v18 = vld [vmem:[#allocation2 + $0xb0] sm:$0xff]  ;;  %490 = vst.msk [vmem:[#allocation2 + $0xde] sm:$0xff] %vm363_vm0, %v458_v22 }
  0xd9   : >> { %8572 = vmatmul.msk.f32.gmra.mxu2 %vm363_vm0, %v1191_v28 }
  0xda   : >> { %v753_v23 = vpop.f32.mrf.mxu0  ;;  %v1043_v24 = vpop.f32.mrf.mxu1 }
  0xdb   : >> { %v1044_v58 = vadd.f32 %v1043_v24, %v753_v23  ;;  %v1197_v24 = vld [vmem:[#allocation2 + $0x9a] sm:$0xff] }
  0xdc   : >> { %8619 = vmatmul.msk.f32.gmra.mxu3 %vm363_vm0, %v1573_v29  ;;  %v573_v29 = vld [vmem:[#allocation2 + $0xb9] sm:$0xff] }
  0xdd   : >> { %8482 = vmatmul.msk.f32.gmra.mxu0 %vm363_vm0, %v566_v25  ;;  %8528 = vmatmul.msk.f32.gmra.mxu1 %vm363_vm0, %v520_v26  ;;  %v1579_v26 = vld [vmem:[#allocation2 + $0xac] sm:$0xff] }
  0xe1   : >> { %8573 = vmatmul.msk.f32.gmra.mxu2 %vm363_vm0, %v1192_v35 }
  0xe2   : >> { %v756_v30 = vpop.f32.mrf.mxu0  ;;  %v1046_v31 = vpop.f32.mrf.mxu1 }
  0xe3   : >> { %v1047_v7 = vadd.f32 %v1046_v31, %v756_v30  ;;  %v527_v30 = vld [vmem:[#allocation2 + $0xb8] sm:$0xff] }
  0xe4   : >> { %8620 = vmatmul.msk.f32.gmra.mxu3 %vm363_vm0, %v1574_v36  ;;  %v9959_v41 = vpop.f32.mrf.mxu2  ;;  %v1198_v36 = vld [vmem:[#allocation2 + $0xa2] sm:$0xff] }
  0xe5   : >> { %8483 = vmatmul.msk.f32.gmra.mxu0 %vm363_vm0, %v567_v32  ;;  %8529 = vmatmul.msk.f32.gmra.mxu1 %vm363_vm0, %v521_v33 }
  0xe7   : >> { %v9964_v43 = vpop.f32.mrf.mxu3 }
  0xe9   : >> { %8574 = vmatmul.msk.f32.gmra.mxu2 %vm363_vm0, %v1193_v44  ;;  %v528_v44 = vld [vmem:[#allocation2 + $0xc0] sm:$0xff] }
  0xea   : >> { %v9954_v37 = vpop.f32.mrf.mxu0  ;;  %v9956_v38 = vpop.f32.mrf.mxu1 }
  0xeb   : >> { %v1050_v19 = vadd.f32 %v9956_v38, %v9954_v37  ;;  %v1580_v38 = vld [vmem:[#allocation2 + $0xb4] sm:$0xff] }
  0xec   : >> { %8621 = vmatmul.msk.f32.gmra.mxu3 %vm363_vm0, %v1575_v45  ;;  %v9973_v50 = vpop.f32.mrf.mxu2 }
  0xed   : >> { %8484 = vmatmul.msk.f32.gmra.mxu0 %vm363_vm0, %v568_v39  ;;  %8530 = vmatmul.msk.f32.gmra.mxu1 %vm363_vm0, %v522_v40 }
  0xef   : >> { %v9977_v51 = vpop.f32.mrf.mxu3 }
  0xf1   : >> { %8575 = vmatmul.msk.f32.gmra.mxu2 %vm363_vm0, %v1194_v52 }
  0xf2   : >> { %v9968_v46 = vpop.f32.mrf.mxu0  ;;  %v9970_v47 = vpop.f32.mrf.mxu1 }
  0xf3   : >> { %v1053_v31 = vadd.f32 %v9970_v47, %v9968_v46 }
  0xf4   : >> { %8622 = vmatmul.msk.f32.gmra.mxu3 %vm363_vm0, %v1576_v53  ;;  %v1380_v59 = vpop.f32.mrf.mxu2  ;;  %v1581_v53 = vld [vmem:[#allocation2 + $0xbc] sm:$0xff] }
  0xf5   : >> { %8485 = vmatmul.msk.f32.gmra.mxu0 %vm363_vm0, %v569_v48  ;;  %8531 = vmatmul.msk.f32.gmra.mxu1 %vm363_vm0, %v523_v49  ;;  %v1515_v60 = vadd.f32 %v1380_v59, %v1044_v58  ;;  %v1199_v49 = vld [vmem:[#allocation2 + $0xaa] sm:$0xff] }
  0xf7   : >> { %v1762_v62 = vpop.f32.mrf.mxu3 }
  0xf8   : >> { %v9989_v0 = vadd.f32 %v1762_v62, %v1515_v60 }
  0xf9   : >> { %8576 = vmatmul.msk.f32.gmra.mxu2 %vm363_vm0, %v1195_v63  ;;  %v1200_v63 = vld [vmem:[#allocation2 + $0xb2] sm:$0xff] }
  0xfa   : >> { %v9980_v54 = vpop.f32.mrf.mxu0  ;;  %v9982_v55 = vpop.f32.mrf.mxu1 }
  0xfb   : >> { %v1056_v45 = vadd.f32 %v9982_v55, %v9980_v54  ;;  %v575_v54 = vld [vmem:[#allocation2 + $0xc9] sm:$0xff] }
  0xfc   : >> { %8623 = vmatmul.msk.f32.gmra.mxu3 %vm363_vm0, %v1577_v2  ;;  %v1383_v8 = vpop.f32.mrf.mxu2  ;;  %v529_v55 = vld [vmem:[#allocation2 + $0xc8] sm:$0xff] }
  0xfd   : >> { %8486 = vmatmul.msk.f32.gmra.mxu0 %vm363_vm0, %v570_v56  ;;  %8532 = vmatmul.msk.f32.gmra.mxu1 %vm363_vm0, %v524_v57  ;;  %v1516_v9 = vadd.f32 %v1383_v8, %v1047_v7  ;;  %v530_v7 = vld [vmem:[#allocation2 + $0xd0] sm:$0xff] }
  0xff   : >> { %v1765_v11 = vpop.f32.mrf.mxu3 }
 0x100   : >> { %v10001_v13 = vadd.f32 %v1765_v11, %v1516_v9  ;;  %v461_v11 = vld [vmem:[%s9838_s21 + $0xa8] sm:$0xff] }
 0x101   : >> { %8577 = vmatmul.msk.f32.gmra.mxu2 %vm363_vm0, %v1196_v12  ;;  %493 = vst.msk [vmem:[#allocation2 + $0xfa] sm:$0xff] %vm363_vm0, %v461_v11  ;;  %v1587_v11 = vld [vmem:[#allocation2 + $0xec] sm:$0xff] }
 0x102   : >> { %v9992_v3 = vpop.f32.mrf.mxu0  ;;  %v9994_v4 = vpop.f32.mrf.mxu1 }
 0x103   : >> { %v1059_v58 = vadd.f32 %v9994_v4, %v9992_v3 }
 0x104   : >> { %8624 = vmatmul.msk.f32.gmra.mxu3 %vm363_vm0, %v1578_v14  ;;  %v1386_v20 = vpop.f32.mrf.mxu2  ;;  %v1201_v14 = vld [vmem:[#allocation2 + $0xba] sm:$0xff] }
 0x105   : >> { %8487 = vmatmul.msk.f32.gmra.mxu0 %vm363_vm0, %v571_v5  ;;  %8533 = vmatmul.msk.f32.gmra.mxu1 %vm363_vm0, %v525_v6  ;;  %v1517_v21 = vadd.f32 %v1386_v20, %v1050_v19  ;;  %v1582_v5 = vld [vmem:[#allocation2 + $0xc4] sm:$0xff]  ;;  %v576_v6 = vld [vmem:[#allocation2 + $0xd1] sm:$0xff]  ;;  %v577_v19 = vld [vmem:[#allocation2 + $0xd9] sm:$0xff] }
 0x106   : >> { %v531_v20 = vld [vmem:[#allocation2 + $0xd8] sm:$0xff] }
 0x107   : >> { %v1768_v23 = vpop.f32.mrf.mxu3 }
 0x108   : >> { %v10015_v25 = vadd.f32 %v1768_v23, %v1517_v21 }
 0x109   : >> { %8578 = vmatmul.msk.f32.gmra.mxu2 %vm363_vm0, %v1197_v24  ;;  %v462_v24 = vld [vmem:[%s9838_s21 + $0xb0] sm:$0xff] }
 0x10a   : >> { %v10004_v15 = vpop.f32.mrf.mxu0  ;;  %v10006_v16 = vpop.f32.mrf.mxu1  ;;  %494 = vst.msk [vmem:[#allocation2 + $0x106] sm:$0xff] %vm363_vm0, %v462_v24 }
 0x10b   : >> { %v1062_v8 = vadd.f32 %v10006_v16, %v10004_v15 }
 0x10c   : >> { %8625 = vmatmul.msk.f32.gmra.mxu3 %vm363_vm0, %v1579_v26  ;;  %v1389_v32 = vpop.f32.mrf.mxu2 }
 0x10d   : >> { %8488 = vmatmul.msk.f32.gmra.mxu0 %vm363_vm0, %v572_v17  ;;  %8534 = vmatmul.msk.f32.gmra.mxu1 %vm363_vm0, %v526_v18  ;;  %v1518_v33 = vadd.f32 %v1389_v32, %v1053_v31  ;;  %v1583_v18 = vld [vmem:[#allocation2 + $0xcc] sm:$0xff]  ;;  %v1584_v31 = vld [vmem:[#allocation2 + $0xd4] sm:$0xff]  ;;  %v578_v32 = vld [vmem:[#allocation2 + $0xe1] sm:$0xff] }
 0x10f   : >> { %v1771_v35 = vpop.f32.mrf.mxu3 }
 0x110   : >> { %v10029_v37 = vadd.f32 %v1771_v35, %v1518_v33  ;;  %v532_v33 = vld [vmem:[#allocation2 + $0xe0] sm:$0xff] }
 0x111   : >> { %8579 = vmatmul.msk.f32.gmra.mxu2 %vm363_vm0, %v1198_v36 }
 0x112   : >> { %v10018_v27 = vpop.f32.mrf.mxu0  ;;  %v10020_v28 = vpop.f32.mrf.mxu1 }
 0x113   : >> { %v1065_v21 = vadd.f32 %v10020_v28, %v10018_v27 }
 0x114   : >> { %8626 = vmatmul.msk.f32.gmra.mxu3 %vm363_vm0, %v1580_v38  ;;  %v1392_v46 = vpop.f32.mrf.mxu2  ;;  %v463_v38 = vld [vmem:[%s9838_s21 + $0xb8] sm:$0xff] }
 0x115   : >> { %8489 = vmatmul.msk.f32.gmra.mxu0 %vm363_vm0, %v573_v29  ;;  %8535 = vmatmul.msk.f32.gmra.mxu1 %vm363_vm0, %v527_v30  ;;  %v1519_v47 = vadd.f32 %v1392_v46, %v1056_v45  ;;  %v1202_v29 = vld [vmem:[#allocation2 + $0xc2] sm:$0xff]  ;;  %495 = vst.msk [vmem:[#allocation2 + $0x10e] sm:$0xff] %vm363_vm0, %v463_v38  ;;  %v1207_v38 = vld [vmem:[#allocation2 + $0xea] sm:$0xff] }
 0x116   : >> { %v1585_v46 = vld [vmem:[#allocation2 + $0xdc] sm:$0xff] }
 0x117   : >> { %v1774_v48 = vpop.f32.mrf.mxu3 }
 0x118   : >> { %v10041_v52 = vadd.f32 %v1774_v48, %v1519_v47  ;;  %v533_v48 = vld [vmem:[#allocation2 + $0xe8] sm:$0xff] }
 0x119   : >> { %8580 = vmatmul.msk.f32.gmra.mxu2 %vm363_vm0, %v1199_v49 }
 0x11a   : >> { %v10032_v39 = vpop.f32.mrf.mxu0  ;;  %v10034_v40 = vpop.f32.mrf.mxu1 }
 0x11b   : >> { %v1068_v34 = vadd.f32 %v10034_v40, %v10032_v39  ;;  %v579_v40 = vld [vmem:[#allocation2 + $0xe9] sm:$0xff] }
 0x11c   : >> { %8627 = vmatmul.msk.f32.gmra.mxu3 %vm363_vm0, %v1581_v53  ;;  %v1395_v59 = vpop.f32.mrf.mxu2 }
 0x11d   : >> { %8490 = vmatmul.msk.f32.gmra.mxu0 %vm363_vm0, %v574_v42  ;;  %8536 = vmatmul.msk.f32.gmra.mxu1 %vm363_vm0, %v528_v44  ;;  %v1520_v60 = vadd.f32 %v1395_v59, %v1059_v58  ;;  %v1203_v44 = vld [vmem:[#allocation2 + $0xca] sm:$0xff]  ;;  %v1204_v58 = vld [vmem:[#allocation2 + $0xd2] sm:$0xff] }
 0x11f   : >> { %v1777_v62 = vpop.f32.mrf.mxu3 }
 0x120   : >> { %v10055_v2 = vadd.f32 %v1777_v62, %v1520_v60  ;;  %v1586_v60 = vld [vmem:[#allocation2 + $0xe4] sm:$0xff] }
 0x121   : >> { %8581 = vmatmul.msk.f32.gmra.mxu2 %vm363_vm0, %v1200_v63 }
 0x122   : >> { %v10044_v56 = vpop.f32.mrf.mxu0  ;;  %v10046_v57 = vpop.f32.mrf.mxu1 }
 0x123   : >> { %v1071_v49 = vadd.f32 %v10046_v57, %v10044_v56  ;;  %v580_v56 = vld [vmem:[#allocation2 + $0xf1] sm:$0xff] }
 0x124   : >> { %8628 = vmatmul.msk.f32.gmra.mxu3 %vm363_vm0, %v1582_v5  ;;  %v1398_v9 = vpop.f32.mrf.mxu2  ;;  %v534_v57 = vld [vmem:[#allocation2 + $0xf0] sm:$0xff] }
 0x125   : >> { %8491 = vmatmul.msk.f32.gmra.mxu0 %vm363_vm0, %v575_v54  ;;  %8537 = vmatmul.msk.f32.gmra.mxu1 %vm363_vm0, %v529_v55  ;;  %v1521_v10 = vadd.f32 %v1398_v9, %v1062_v8  ;;  %v1205_v9 = vld [vmem:[#allocation2 + $0xda] sm:$0xff] }
 0x127   : >> { %v1780_v12 = vpop.f32.mrf.mxu3 }
 0x128   : >> { %v10069_v17 = vadd.f32 %v1780_v12, %v1521_v10  ;;  %v581_v12 = vld [vmem:[#allocation2 + $0xf9] sm:$0xff] }
 0x129   : >> { %8582 = vmatmul.msk.f32.gmra.mxu2 %vm363_vm0, %v1201_v14  ;;  %v535_v14 = vld [vmem:[#allocation2 + $0xf8] sm:$0xff] }
 0x12a   : >> { %v10058_v3 = vpop.f32.mrf.mxu0  ;;  %v10060_v4 = vpop.f32.mrf.mxu1 }
 0x12b   : >> { %v1074_v63 = vadd.f32 %v10060_v4, %v10058_v3 }
 0x12c   : >> { %8629 = vmatmul.msk.f32.gmra.mxu3 %vm363_vm0, %v1583_v18  ;;  %v1401_v22 = vpop.f32.mrf.mxu2 }
 0x12d   : >> { %8492 = vmatmul.msk.f32.gmra.mxu0 %vm363_vm0, %v576_v6  ;;  %8538 = vmatmul.msk.f32.gmra.mxu1 %vm363_vm0, %v530_v7  ;;  %v1522_v23 = vadd.f32 %v1401_v22, %v1065_v21  ;;  %v464_v7 = vld [vmem:[%s9838_s21 + $0xc0] sm:$0xff]  ;;  %v465_v21 = vld [vmem:[%s9838_s21 + $0xc8] sm:$0xff] }
 0x12e   : >> { %496 = vst.msk [vmem:[#allocation2 + $0x11a] sm:$0xff] %vm363_vm0, %v464_v7 }
 0x12f   : >> { %v1783_v26 = vpop.f32.mrf.mxu3  ;;  %497 = vst.msk [vmem:[#allocation2 + $0x122] sm:$0xff] %vm363_vm0, %v465_v21 }
 0x130   : >> { %v10083_v30 = vadd.f32 %v1783_v26, %v1522_v23  ;;  %v1206_v23 = vld [vmem:[#allocation2 + $0xe2] sm:$0xff]  ;;  %v1588_v26 = vld [vmem:[#allocation2 + $0xf4] sm:$0xff] }
 0x131   : >> { %8583 = vmatmul.msk.f32.gmra.mxu2 %vm363_vm0, %v1202_v29  ;;  %v582_v29 = vld [vmem:[#allocation2 + $0x101] sm:$0xff] }
 0x132   : >> { %v10072_v15 = vpop.f32.mrf.mxu0  ;;  %v10074_v16 = vpop.f32.mrf.mxu1 }
 0x133   : >> { %v1077_v18 = vadd.f32 %v10074_v16, %v10072_v15 }
 0x134   : >> { %8630 = vmatmul.msk.f32.gmra.mxu3 %vm363_vm0, %v1584_v31  ;;  %v1404_v35 = vpop.f32.mrf.mxu2  ;;  %v536_v31 = vld [vmem:[#allocation2 + $0x100] sm:$0xff] }
 0x135   : >> { %8493 = vmatmul.msk.f32.gmra.mxu0 %vm363_vm0, %v577_v19  ;;  %8539 = vmatmul.msk.f32.gmra.mxu1 %vm363_vm0, %v531_v20  ;;  %v1523_v36 = vadd.f32 %v1404_v35, %v1068_v34  ;;  %v466_v35 = vld [vmem:[%s9838_s21 + $0xd0] sm:$0xff] }
 0x136   : >> { %498 = vst.msk [vmem:[#allocation2 + $0x12e] sm:$0xff] %vm363_vm0, %v466_v35 }
 0x137   : >> { %v1786_v42 = vpop.f32.mrf.mxu3 }
 0x138   : >> { %v10097_v45 = vadd.f32 %v1786_v42, %v1523_v36 }
 0x139   : >> { %8584 = vmatmul.msk.f32.gmra.mxu2 %vm363_vm0, %v1203_v44  ;;  %v1589_v44 = vld [vmem:[#allocation2 + $0xfc] sm:$0xff] }
 0x13a   : >> { %v10086_v27 = vpop.f32.mrf.mxu0  ;;  %v10088_v28 = vpop.f32.mrf.mxu1 }
 0x13c   : >> { %8631 = vmatmul.msk.f32.gmra.mxu3 %vm363_vm0, %v1585_v46  ;;  %v1407_v53 = vpop.f32.mrf.mxu2  ;;  %v583_v46 = vld [vmem:[#allocation2 + $0x109] sm:$0xff] }
 0x13d   : >> { %8494 = vmatmul.msk.f32.gmra.mxu0 %vm363_vm0, %v578_v32  ;;  %8540 = vmatmul.msk.f32.gmra.mxu1 %vm363_vm0, %v532_v33  ;;  %v1524_v54 = vadd.f32 %v1407_v53, %v1071_v49  ;;  %v1080_v32 = vadd.f32 %v10088_v28, %v10086_v27 }
 0x13f   : >> { %v1789_v55 = vpop.f32.mrf.mxu3 }
 0x140   : >> { %v10109_v59 = vadd.f32 %v1789_v55, %v1524_v54  ;;  %v467_v54 = vld [vmem:[%s9838_s21 + $0xd8] sm:$0xff] }
 0x141   : >> { %8585 = vmatmul.msk.f32.gmra.mxu2 %vm363_vm0, %v1204_v58  ;;  %v1208_v58 = vld [vmem:[#allocation2 + $0xf2] sm:$0xff]  ;;  %499 = vst.msk [vmem:[#allocation2 + $0x136] sm:$0xff] %vm363_vm0, %v467_v54  ;;  %v541_v54 = vld [vmem:[#allocation2 + $0x128] sm:$0xff] }
 0x142   : >> { %v10100_v47 = vpop.f32.mrf.mxu0  ;;  %v10102_v39 = vpop.f32.mrf.mxu1 }
 0x144   : >> { %8632 = vmatmul.msk.f32.gmra.mxu3 %vm363_vm0, %v1586_v60  ;;  %v1410_v5 = vpop.f32.mrf.mxu2 }
 0x145   : >> { %8495 = vmatmul.msk.f32.gmra.mxu0 %vm363_vm0, %v579_v40  ;;  %8541 = vmatmul.msk.f32.gmra.mxu1 %vm363_vm0, %v533_v48  ;;  %v1525_v6 = vadd.f32 %v1410_v5, %v1074_v63  ;;  %v537_v40 = vld [vmem:[#allocation2 + $0x108] sm:$0xff]  ;;  %v1083_v48 = vadd.f32 %v10102_v39, %v10100_v47  ;;  %v584_v39 = vld [vmem:[#allocation2 + $0x111] sm:$0xff] }
 0x146   : >> { %v538_v63 = vld [vmem:[#allocation2 + $0x110] sm:$0xff] }
 0x147   : >> { %v1792_v8 = vpop.f32.mrf.mxu3 }
 0x148   : >> { %v10123_v10 = vadd.f32 %v1792_v8, %v1525_v6 }
 0x149   : >> { %8586 = vmatmul.msk.f32.gmra.mxu2 %vm363_vm0, %v1205_v9  ;;  %v1209_v9 = vld [vmem:[#allocation2 + $0xfa] sm:$0xff] }
 0x14a   : >> { %v10112_v61 = vpop.f32.mrf.mxu0  ;;  %v10114_v62 = vpop.f32.mrf.mxu1 }
 0x14b   : >> { %v1086_v5 = vadd.f32 %v10114_v62, %v10112_v61  ;;  %v585_v61 = vld [vmem:[#allocation2 + $0x119] sm:$0xff] }
 0x14c   : >> { %8633 = vmatmul.msk.f32.gmra.mxu3 %vm363_vm0, %v1587_v11  ;;  %v1413_v19 = vpop.f32.mrf.mxu2  ;;  %v539_v62 = vld [vmem:[#allocation2 + $0x118] sm:$0xff] }
 0x14d   : >> { %8496 = vmatmul.msk.f32.gmra.mxu0 %vm363_vm0, %v580_v56  ;;  %8542 = vmatmul.msk.f32.gmra.mxu1 %vm363_vm0, %v534_v57  ;;  %v1526_v20 = vadd.f32 %v1413_v19, %v1077_v18  ;;  %v1590_v56 = vld [vmem:[#allocation2 + $0x104] sm:$0xff] }
 0x14f   : >> { %v1795_v22 = vpop.f32.mrf.mxu3 }
 0x150   : >> { %v10137_v24 = vadd.f32 %v1795_v22, %v1526_v20 }
 0x151   : >> { %8587 = vmatmul.msk.f32.gmra.mxu2 %vm363_vm0, %v1206_v23  ;;  %v1210_v23 = vld [vmem:[#allocation2 + $0x102] sm:$0xff] }
 0x152   : >> { %v10126_v3 = vpop.f32.mrf.mxu0  ;;  %v10128_v4 = vpop.f32.mrf.mxu1 }
 0x153   : >> { %v1089_v19 = vadd.f32 %v10128_v4, %v10126_v3  ;;  %v586_v3 = vld [vmem:[#allocation2 + $0x121] sm:$0xff] }
 0x154   : >> { %8634 = vmatmul.msk.f32.gmra.mxu3 %vm363_vm0, %v1588_v26  ;;  %v1416_v33 = vpop.f32.mrf.mxu2  ;;  %v540_v4 = vld [vmem:[#allocation2 + $0x120] sm:$0xff] }
 0x155   : >> { %8497 = vmatmul.msk.f32.gmra.mxu0 %vm363_vm0, %v581_v12  ;;  %8543 = vmatmul.msk.f32.gmra.mxu1 %vm363_vm0, %v535_v14  ;;  %v1527_v34 = vadd.f32 %v1416_v33, %v1080_v32  ;;  %v1591_v12 = vld [vmem:[#allocation2 + $0x10c] sm:$0xff] }
 0x157   : >> { %v1798_v36 = vpop.f32.mrf.mxu3 }
 0x158   : >> { %v10151_v42 = vadd.f32 %v1798_v36, %v1527_v34  ;;  %v8745_v36 = vld [vmem:[%s12935_s1 + $0x18] sm:$0x7] }
 0x159   : >> { %8588 = vmatmul.msk.f32.gmra.mxu2 %vm363_vm0, %v1207_v38 }
 0x15a   : >> { %v10140_v15 = vpop.f32.mrf.mxu0  ;;  %v10142_v16 = vpop.f32.mrf.mxu1  ;;  %8746 = vmatpush.msk.msra.mxu2 %vm732_vm7, %v8745_v36 }
 0x15b   : >> { %v1092_v33 = vadd.f32 %v10142_v16, %v10140_v15  ;;  %v8792_v15 = vld [vmem:[%s12935_s1 + $0x1c] sm:$0x7]  ;;  %v8698_v16 = vld [vmem:[%s12935_s1 + $0x14] sm:$0x7] }
 0x15c   : >> { %8635 = vmatmul.msk.f32.gmra.mxu3 %vm363_vm0, %v1589_v44  ;;  %v1419_v49 = vpop.f32.mrf.mxu2  ;;  %v1211_v44 = vld [vmem:[#allocation2 + $0x10a] sm:$0xff]  ;;  %8699 = vmatpush.msk.msrb.mxu1 %vm732_vm7, %v8698_v16 }
 0x15d   : >> { %8498 = vmatmul.msk.f32.gmra.mxu0 %vm363_vm0, %v582_v29  ;;  %8544 = vmatmul.msk.f32.gmra.mxu1 %vm363_vm0, %v536_v31  ;;  %v1528_v53 = vadd.f32 %v1419_v49, %v1083_v48  ;;  %v1592_v29 = vld [vmem:[#allocation2 + $0x114] sm:$0xff] }
 0x15e   : >> { %8793 = vmatpush.msk.msra.mxu3 %vm732_vm7, %v8792_v15 }
 0x15f   : >> { %v1801_v55 = vpop.f32.mrf.mxu3 }
 0x160   : >> { %v10165_v60 = vadd.f32 %v1801_v55, %v1528_v53  ;;  %v587_v53 = vld [vmem:[#allocation2 + $0x129] sm:$0xff] }
 0x161   : >> { %8589 = vmatmul.msk.f32.gmra.mxu2 %vm363_vm0, %v1208_v58 }
 0x162   : >> { %v10154_v27 = vpop.f32.mrf.mxu0  ;;  %v10156_v28 = vpop.f32.mrf.mxu1 }
 0x163   : >> { %v1095_v55 = vadd.f32 %v10156_v28, %v10154_v27 }
 0x164   : >> { %8636 = vmatmul.msk.f32.gmra.mxu3 %vm363_vm0, %v1590_v56  ;;  %v1422_v6 = vpop.f32.mrf.mxu2 }
 0x165   : >> { %8499 = vmatmul.msk.f32.gmra.mxu0 %vm363_vm0, %v583_v46  ;;  %8545 = vmatmul.msk.f32.gmra.mxu1 %vm363_vm0, %v537_v40  ;;  %v1529_v7 = vadd.f32 %v1422_v6, %v1086_v5  ;;  %v1593_v40 = vld [vmem:[#allocation2 + $0x11c] sm:$0xff] }
 0x166   : >> { %v8839_v6 = vld [vmem:[%s12935_s1 + $0x20] sm:$0x7]  ;;  %s13077_s1 = scalar_lea.vmem (%p433_p11), [#allocation8], %s9691_s27 }
 0x167   : >> { %v1804_v8 = vpop.f32.mrf.mxu3  ;;  %8840 = vmatpush.msk.msra.mxu0 %vm732_vm7, %v8839_v6  ;;  %vm5729_vm7 = vcmask 261121   ;;  %s13078_s30 = smov (%p433_p11), %s13077_s1 }
 0x168   : >> { %v10177_v11 = vadd.f32 %v1804_v8, %v1529_v7  ;;  %v1594_v7 = vld [vmem:[#allocation2 + $0x124] sm:$0xff]  ;;  %v588_v8 = vld [vmem:[#allocation2 + $0x131] sm:$0xff]  ;;  %s8369_s11 = sshll.u32 (%p433_p11), %s13078_s30, 4  ;;  %s8370_s11 = int_to_ptr.vmem [resolvable:$true] %s8369_s11 }
 0x169   : >> { %8590 = vmatmul.msk.f32.gmra.mxu2 %vm363_vm0, %v1209_v9  ;;  %v542_v9 = vld [vmem:[#allocation2 + $0x130] sm:$0xff] }
 0x16a   : >> { %v10168_v57 = vpop.f32.mrf.mxu0  ;;  %v10170_v47 = vpop.f32.mrf.mxu1 }
 0x16c   : >> { %8637 = vmatmul.msk.f32.gmra.mxu3 %vm363_vm0, %v1591_v12  ;;  %v1425_v20 = vpop.f32.mrf.mxu2  ;;  %v1098_v12 = vadd.f32 %v10170_v47, %v10168_v57  ;;  %v589_v57 = vld [vmem:[#allocation2 + $0x139] sm:$0xff] }
 0x16d   : >> { %8500 = vmatmul.msk.f32.gmra.mxu0 %vm363_vm0, %v584_v39  ;;  %8546 = vmatmul.msk.f32.gmra.mxu1 %vm363_vm0, %v538_v63  ;;  %v1530_v21 = vadd.f32 %v1425_v20, %v1089_v19  ;;  %v1212_v63 = vld [vmem:[#allocation2 + $0x112] sm:$0xff]  ;;  %v1213_v20 = vld [vmem:[#allocation2 + $0x11a] sm:$0xff] }
 0x16e   : >> { %v543_v47 = vld [vmem:[#allocation2 + $0x138] sm:$0xff] }
 0x16f   : >> { %v1807_v22 = vpop.f32.mrf.mxu3 }
 0x170   : >> { %v10189_v26 = vadd.f32 %v1807_v22, %v1530_v21  ;;  %v1595_v22 = vld [vmem:[#allocation2 + $0x12c] sm:$0xff] }
 0x171   : >> { %8591 = vmatmul.msk.f32.gmra.mxu2 %vm363_vm0, %v1210_v23 }
 0x172   : >> { %v10180_v14 = vpop.f32.mrf.mxu0  ;;  %v10182_v18 = vpop.f32.mrf.mxu1 }
 0x174   : >> { %8638 = vmatmul.msk.f32.gmra.mxu3 %vm363_vm0, %v1592_v29  ;;  %v1428_v34 = vpop.f32.mrf.mxu2 }
 0x175   : >> { %8501 = vmatmul.msk.f32.gmra.mxu0 %vm363_vm0, %v585_v61  ;;  %8547 = vmatmul.msk.f32.gmra.mxu1 %vm363_vm0, %v539_v62  ;;  %v1531_v35 = vadd.f32 %v1428_v34, %v1092_v33 }
 0x177   : >> { %v1810_v38 = vpop.f32.mrf.mxu3 }
 0x178   : >> { %v10205_v46 = vadd.f32 %v1810_v38, %v1531_v35  ;;  %v1214_v35 = vld [vmem:[#allocation2 + $0x122] sm:$0xff]  ;;  %v1596_v38 = vld [vmem:[#allocation2 + $0x134] sm:$0xff] }
 0x179   : >> { %8592 = vmatmul.msk.f32.gmra.mxu2 %vm363_vm0, %v1211_v44 }
 0x17a   : >> { %v10192_v31 = vpop.f32.mrf.mxu0  ;;  %v10194_v32 = vpop.f32.mrf.mxu1 }
 0x17b   : >> { %v1104_v16 = vadd.f32 %v10194_v32, %v10192_v31  ;;  %v545_v31 = vld [vmem:[#allocation2 + $0x148] sm:$0xff]  ;;  %v1942_v32 = vld [vmem:[#allocation2 + $0x15] sm:$0xff] }
 0x17c   : >> { %8639 = vmatmul.msk.f32.gmra.mxu3 %vm363_vm0, %v1593_v40  ;;  %v1431_v58 = vpop.f32.mrf.mxu2 }
 0x17d   : >> { %8502 = vmatmul.msk.f32.gmra.mxu0 %vm363_vm0, %v586_v3  ;;  %8548 = vmatmul.msk.f32.gmra.mxu1 %vm363_vm0, %v540_v4  ;;  %v1532_v56 = vadd.f32 %v1431_v58, %v1095_v55  ;;  %v1101_v3 = vadd.f32 %v10182_v18, %v10180_v14  ;;  %v590_v14 = vld [vmem:[#allocation2 + $0x141] sm:$0xff]  ;;  %v1215_v55 = vld [vmem:[#allocation2 + $0x12a] sm:$0xff] }
 0x17e   : >> { %v544_v18 = vld [vmem:[#allocation2 + $0x140] sm:$0xff] }
 0x17f   : >> { %v1813_v39 = vpop.f32.mrf.mxu3 }
 0x180   : >> { %v10225_v5 = vadd.f32 %v1813_v39, %v1532_v56  ;;  %v1597_v56 = vld [vmem:[#allocation2 + $0x13c] sm:$0xff] }
 0x181   : >> { %8593 = vmatmul.msk.f32.gmra.mxu2 %vm363_vm0, %v1212_v63 }
 0x182   : >> { %v10216_v48 = vpop.f32.mrf.mxu0  ;;  %v10218_v49 = vpop.f32.mrf.mxu1 }
 0x183   : >> { %v1107_v6 = vadd.f32 %v10218_v49, %v10216_v48  ;;  %v546_v48 = vld [vmem:[#allocation2 + $0x150] sm:$0xff]  ;;  %v1943_v49 = vld [vmem:[#allocation2 + $0x1d] sm:$0xff] }
 0x184   : >> { %8640 = vmatmul.msk.f32.gmra.mxu3 %vm363_vm0, %v1594_v7  ;;  %v1434_v61 = vpop.f32.mrf.mxu2 }
 0x185   : >> { %8503 = vmatmul.msk.f32.gmra.mxu0 %vm363_vm0, %v587_v53  ;;  %8549 = vmatmul.msk.f32.gmra.mxu1 %vm363_vm0, %v541_v54  ;;  %v1533_v62 = vadd.f32 %v1434_v61, %v1098_v12  ;;  %v1216_v12 = vld [vmem:[#allocation2 + $0x132] sm:$0xff] }
 0x187   : >> { %v1816_v19 = vpop.f32.mrf.mxu3 }
 0x188   : >> { %v10241_v21 = vadd.f32 %v1816_v19, %v1533_v62  ;;  %v1598_v62 = vld [vmem:[#allocation2 + $0x144] sm:$0xff] }
 0x189   : >> { %8594 = vmatmul.msk.f32.gmra.mxu2 %vm363_vm0, %v1213_v20 }
 0x18a   : >> { %v10232_v27 = vpop.f32.mrf.mxu0  ;;  %v10234_v28 = vpop.f32.mrf.mxu1 }
 0x18c   : >> { %8641 = vmatmul.msk.f32.gmra.mxu3 %vm363_vm0, %v1595_v22  ;;  %v1437_v4 = vpop.f32.mrf.mxu2  ;;  %v1110_v22 = vadd.f32 %v10234_v28, %v10232_v27  ;;  %v547_v27 = vld [vmem:[#allocation2 + $0x158] sm:$0xff]  ;;  %v1944_v28 = vld [vmem:[#allocation2 + $0x25] sm:$0xff] }
 0x18d   : >> { %8504 = vmatmul.msk.f32.gmra.mxu0 %vm363_vm0, %v588_v8  ;;  %8550 = vmatmul.msk.f32.gmra.mxu1 %vm363_vm0, %v542_v9  ;;  %v1534_v33 = vadd.f32 %v1437_v4, %v1101_v3  ;;  %v1217_v4 = vld [vmem:[#allocation2 + $0x13a] sm:$0xff] }
 0x18f   : >> { %v1819_v34 = vpop.f32.mrf.mxu3 }
 0x190   : >> { %v10253_v36 = vadd.f32 %v1819_v34, %v1534_v33  ;;  %v1599_v34 = vld [vmem:[#allocation2 + $0x14c] sm:$0xff] }
 0x191   : >> { %8595 = vmatmul.msk.f32.gmra.mxu2 %vm363_vm0, %v1214_v35 }
 0x192   : >> { %v10244_v23 = vpop.f32.mrf.mxu0  ;;  %v10246_v29 = vpop.f32.mrf.mxu1 }
 0x194   : >> { %8642 = vmatmul.msk.f32.gmra.mxu3 %vm363_vm0, %v1596_v38  ;;  %v1440_v40 = vpop.f32.mrf.mxu2 }
 0x195   : >> { %8505 = vmatmul.msk.f32.gmra.mxu0 %vm363_vm0, %v589_v57  ;;  %8551 = vmatmul.msk.f32.gmra.mxu1 %vm363_vm0, %v543_v47  ;;  %v1535_v53 = vadd.f32 %v1440_v40, %v1104_v16 }
 0x197   : >> { %v1822_v54 = vpop.f32.mrf.mxu3 }
 0x198   : >> { %v10265_v58 = vadd.f32 %v1822_v54, %v1535_v53  ;;  %v1218_v53 = vld [vmem:[#allocation2 + $0x142] sm:$0xff] }
 0x199   : >> { %8596 = vmatmul.msk.f32.gmra.mxu2 %vm363_vm0, %v1215_v55  ;;  %v1600_v55 = vld [vmem:[#allocation2 + $0x154] sm:$0xff] }
 0x19a   : >> { %v10256_v44 = vpop.f32.mrf.mxu0  ;;  %v10258_v15 = vpop.f32.mrf.mxu1 }
 0x19c   : >> { %8643 = vmatmul.msk.f32.gmra.mxu3 %vm363_vm0, %v1597_v56  ;;  %v1443_v7 = vpop.f32.mrf.mxu2 }
 0x19d   : >> { %8506 = vmatmul.msk.f32.gmra.mxu0 %vm363_vm0, %v590_v14  ;;  %8552 = vmatmul.msk.f32.gmra.mxu1 %vm363_vm0, %v544_v18  ;;  %v1536_v8 = vadd.f32 %v1443_v7, %v1107_v6  ;;  %v1113_v14 = vadd.f32 %v10246_v29, %v10244_v23  ;;  %v548_v23 = vld [vmem:[#allocation2 + $0x160] sm:$0x3f]  ;;  %v1945_v29 = vld [vmem:[#allocation2 + $0x2d] sm:$0xff] }
 0x19f   : >> { %v1825_v9 = vpop.f32.mrf.mxu3 }
 0x1a0   : >> { %v10277_v61 = vadd.f32 %v1825_v9, %v1536_v8  ;;  %v1219_v9 = vld [vmem:[#allocation2 + $0x14a] sm:$0xff] }
 0x1a1   : >> { %8597 = vmatmul.msk.f32.gmra.mxu2 %vm363_vm0, %v1216_v12 }
 0x1a2   : >> { %v10268_v39 = vpop.f32.mrf.mxu0  ;;  %v10270_v63 = vpop.f32.mrf.mxu1 }
 0x1a4   : >> { %8644 = vmatmul.msk.f32.gmra.mxu3 %vm363_vm0, %v1598_v62  ;;  %v1446_v57 = vpop.f32.mrf.mxu2  ;;  %v1601_v62 = vld [vmem:[#allocation2 + $0x15c] sm:$0xff] }
 0x1a5   : >> { %8553 = vmatmul.msk.f32.gmra.mxu1 %vm363_vm0, %v545_v31  ;;  %8653 = vmatmul.msk.f32.vlgmr.msrb.gmra.mxu0 %vm363_vm0, %v1942_v32  ;;  %v1537_v47 = vadd.f32 %v1446_v57, %v1110_v22  ;;  %v1116_v32 = vadd.f32 %v10258_v15, %v10256_v44  ;;  %v1946_v44 = vld [vmem:[#allocation2 + $0x35] sm:$0xff]  ;;  %v1119_v22 = vadd.f32 %v10270_v63, %v10268_v39  ;;  %v1947_v39 = vld [vmem:[#allocation2 + $0x3d] sm:$0xff] }
 0x1a6   : >> { %v2324_v15 = vld [vmem:[#allocation2 + $0x16] sm:$0xff]  ;;  %v2325_v63 = vld [vmem:[#allocation2 + $0x1e] sm:$0xff] }
 0x1a7   : >> { %v1828_v3 = vpop.f32.mrf.mxu3 }
 0x1a8   : >> { %v10289_v33 = vadd.f32 %v1828_v3, %v1537_v47 }
 0x1a9   : >> { %8598 = vmatmul.msk.f32.gmra.mxu2 %vm363_vm0, %v1217_v4  ;;  %v1220_v4 = vld [vmem:[#allocation2 + $0x152] sm:$0xff] }
 0x1aa   : >> { %v10280_v19 = vpop.f32.mrf.mxu0  ;;  %v10282_v20 = vpop.f32.mrf.mxu1 }
 0x1ac   : >> { %8645 = vmatmul.msk.f32.gmra.mxu3 %vm363_vm0, %v1599_v34  ;;  %v1449_v18 = vpop.f32.mrf.mxu2 }
 0x1ad   : >> { %8554 = vmatmul.msk.f32.gmra.mxu1 %vm363_vm0, %v546_v48  ;;  %8654 = vmatmul.msk.f32.gmra.mxu0 %vm363_vm0, %v1943_v49  ;;  %v1538_v16 = vadd.f32 %v1449_v18, %v1113_v14  ;;  %v1122_v18 = vadd.f32 %v10282_v20, %v10280_v19  ;;  %v1948_v19 = vld [vmem:[#allocation2 + $0x45] sm:$0xff] }
 0x1ae   : >> { %v2326_v20 = vld [vmem:[#allocation2 + $0x26] sm:$0xff] }
 0x1af   : >> { %v1831_v40 = vpop.f32.mrf.mxu3 }
 0x1b0   : >> { %v10301_v54 = vadd.f32 %v1831_v40, %v1538_v16 }
 0x1b1   : >> { %8599 = vmatmul.msk.f32.gmra.mxu2 %vm363_vm0, %v1218_v53 }
 0x1b2   : >> { %v10292_v35 = vpop.f32.mrf.mxu0  ;;  %v10294_v38 = vpop.f32.mrf.mxu1 }
 0x1b4   : >> { %8646 = vmatmul.msk.f32.gmra.mxu3 %vm363_vm0, %v1600_v55  ;;  %v1452_v6 = vpop.f32.mrf.mxu2  ;;  %v1221_v55 = vld [vmem:[#allocation2 + $0x15a] sm:$0xff] }
 0x1b5   : >> { %8555 = vmatmul.msk.f32.gmra.mxu1 %vm363_vm0, %v547_v27  ;;  %8655 = vmatmul.msk.f32.gmra.mxu0 %vm363_vm0, %v1944_v28  ;;  %v1539_v7 = vadd.f32 %v1452_v6, %v1116_v32  ;;  %v1602_v27 = vld [vmem:[#allocation2 + $0x164] sm:$0xff] }
 0x1b7   : >> { %v1834_v8 = vpop.f32.mrf.mxu3 }
 0x1b8   : >> { %v10313_v12 = vadd.f32 %v1834_v8, %v1539_v7  ;;  %v1125_v7 = vadd.f32 %v10294_v38, %v10292_v35  ;;  %v1949_v35 = vld [vmem:[#allocation2 + $0x4d] sm:$0xff] }
 0x1b9   : >> { %8600 = vmatmul.msk.f32.gmra.mxu2 %vm363_vm0, %v1219_v9  ;;  %v2327_v38 = vld [vmem:[#allocation2 + $0x2e] sm:$0xff] }
 0x1ba   : >> { %v10304_v56 = vpop.f32.mrf.mxu0  ;;  %v10306_v31 = vpop.f32.mrf.mxu1 }
 0x1bc   : >> { %8647 = vmatmul.msk.f32.gmra.mxu3 %vm363_vm0, %v1601_v62  ;;  %v1455_v57 = vpop.f32.mrf.mxu2 }
 0x1bd   : >> { %8556 = vmatmul.msk.f32.gmra.mxu1 %vm363_vm0, %v548_v23  ;;  %8656 = vmatmul.msk.f32.gmra.mxu0 %vm363_vm0, %v1945_v29  ;;  %v1540_v47 = vadd.f32 %v1455_v57, %v1119_v22  ;;  %v1603_v29 = vld [vmem:[#allocation2 + $0x16c] sm:$0xff]  ;;  %v1604_v22 = vld [vmem:[#allocation2 + $0x174] sm:$0x3f] }
 0x1bf   : >> { %v1837_v3 = vpop.f32.mrf.mxu3 }
 0x1c0   : >> { %v10325_v34 = vadd.f32 %v1837_v3, %v1540_v47  ;;  %v1128_v3 = vadd.f32 %v10306_v31, %v10304_v56  ;;  %v1950_v56 = vld [vmem:[#allocation2 + $0x55] sm:$0xff] }
 0x1c1   : >> { %8601 = vmatmul.msk.f32.gmra.mxu2 %vm363_vm0, %v1220_v4  ;;  %v2328_v31 = vld [vmem:[#allocation2 + $0x36] sm:$0xff] }
 0x1c2   : >> { %v10316_v48 = vpop.f32.mrf.mxu0  ;;  %v10318_v49 = vpop.f32.mrf.mxu1 }
 0x1c4   : >> { %8648 = vmatmul.msk.f32.gmra.mxu3 %vm363_vm0, %v1602_v27  ;;  %v1458_v16 = vpop.f32.mrf.mxu2 }
 0x1c5   : >> { %8657 = vmatmul.msk.f32.gmra.mxu0 %vm363_vm0, %v1946_v44  ;;  %8700 = vmatmul.msk.f32.vlgmr.msrb.gmra.mxu1 %vm363_vm0, %v2324_v15  ;;  %v1541_v40 = vadd.f32 %v1458_v16, %v1122_v18  ;;  %v1222_v44 = vld [vmem:[#allocation2 + $0x162] sm:$0x3f]  ;;  %v3088_v16 = vld [vmem:[#allocation2 + $0x29] sm:$0xff] }
 0x1c7   : >> { %v1840_v53 = vpop.f32.mrf.mxu3 }
 0x1c8   : >> { %v10337_v23 = vadd.f32 %v1840_v53, %v1541_v40 }
 0x1c9   : >> { %8602 = vmatmul.msk.f32.gmra.mxu2 %vm363_vm0, %v1221_v55  ;;  %v1131_v55 = vadd.f32 %v10318_v49, %v10316_v48  ;;  %v1951_v48 = vld [vmem:[#allocation2 + $0x5d] sm:$0xff] }
 0x1ca   : >> { %v10328_v28 = vpop.f32.mrf.mxu0  ;;  %v10330_v14 = vpop.f32.mrf.mxu1  ;;  %v2329_v49 = vld [vmem:[#allocation2 + $0x3e] sm:$0xff] }
 0x1cc   : >> { %8649 = vmatmul.msk.f32.gmra.mxu3 %vm363_vm0, %v1603_v29  ;;  %v1461_v8 = vpop.f32.mrf.mxu2 }
 0x1cd   : >> { %8658 = vmatmul.msk.f32.gmra.mxu0 %vm363_vm0, %v1947_v39  ;;  %8701 = vmatmul.msk.f32.gmra.mxu1 %vm363_vm0, %v2325_v63  ;;  %v1542_v9 = vadd.f32 %v1461_v8, %v1125_v7  ;;  %v2706_v63 = vld [vmem:[#allocation2 + $0x28] sm:$0xff]  ;;  %v2707_v7 = vld [vmem:[#allocation2 + $0x30] sm:$0xff] }
 0x1cf   : >> { %v1843_v62 = vpop.f32.mrf.mxu3 }
 0x1d0   : >> { %v10349_v15 = vadd.f32 %v1843_v62, %v1542_v9  ;;  %v3089_v9 = vld [vmem:[#allocation2 + $0x31] sm:$0xff] }
 0x1d1   : >> { %8603 = vmatmul.msk.f32.gmra.mxu2 %vm363_vm0, %v1222_v44 }
 0x1d2   : >> { %v10340_v32 = vpop.f32.mrf.mxu0  ;;  %v10342_v6 = vpop.f32.mrf.mxu1 }
 0x1d4   : >> { %8650 = vmatmul.msk.f32.gmra.mxu3 %vm363_vm0, %v1604_v22  ;;  %v1464_v4 = vpop.f32.mrf.mxu2  ;;  %v1134_v22 = vadd.f32 %v10330_v14, %v10328_v28  ;;  %v1952_v28 = vld [vmem:[#allocation2 + $0x65] sm:$0xff] }
 0x1d5   : >> { %8659 = vmatmul.msk.f32.gmra.mxu0 %vm363_vm0, %v1948_v19  ;;  %8702 = vmatmul.msk.f32.gmra.mxu1 %vm363_vm0, %v2326_v20  ;;  %v1543_v27 = vadd.f32 %v1464_v4, %v1128_v3  ;;  %v2708_v4 = vld [vmem:[#allocation2 + $0x38] sm:$0xff]  ;;  %v2330_v14 = vld [vmem:[#allocation2 + $0x46] sm:$0xff] }
 0x1d7   : >> { %v1846_v39 = vpop.f32.mrf.mxu3 }
 0x1d8   : >> { %v10361_v18 = vadd.f32 %v1846_v39, %v1543_v27  ;;  %v3090_v39 = vld [vmem:[#allocation2 + $0x39] sm:$0xff] }
 0x1d9   : >> { %8747 = vmatmul.msk.f32.vlgmr.msra.gmra.mxu2 %vm363_vm0, %v2706_v63 }
 0x1da   : >> { %v10352_v57 = vpop.f32.mrf.mxu0  ;;  %v10354_v47 = vpop.f32.mrf.mxu1 }
 0x1dc   : >> { %8794 = vmatmul.msk.f32.vlgmr.msra.gmra.mxu3 %vm363_vm0, %v3088_v16  ;;  %v1467_v29 = vpop.f32.mrf.mxu2 }
 0x1dd   : >> { %8660 = vmatmul.msk.f32.gmra.mxu0 %vm363_vm0, %v1949_v35  ;;  %8703 = vmatmul.msk.f32.gmra.mxu1 %vm363_vm0, %v2327_v38  ;;  %v1544_v19 = vadd.f32 %v1467_v29, %v1131_v55 }
 0x1df   : >> { %v1849_v20 = vpop.f32.mrf.mxu3 }
 0x1e0   : >> { %v10373_v8 = vadd.f32 %v1849_v20, %v1544_v19  ;;  %v2709_v19 = vld [vmem:[#allocation2 + $0x40] sm:$0xff] }
 0x1e1   : >> { %8748 = vmatmul.msk.f32.gmra.mxu2 %vm363_vm0, %v2707_v7  ;;  %v3091_v7 = vld [vmem:[#allocation2 + $0x41] sm:$0xff] }
 0x1e2   : >> { %v10364_v40 = vpop.f32.mrf.mxu0  ;;  %v10366_v53 = vpop.f32.mrf.mxu1 }
 0x1e4   : >> { %8795 = vmatmul.msk.f32.gmra.mxu3 %vm363_vm0, %v3089_v9  ;;  %v1470_v35 = vpop.f32.mrf.mxu2 }
 0x1e5   : >> { %8661 = vmatmul.msk.f32.gmra.mxu0 %vm363_vm0, %v1950_v56  ;;  %8704 = vmatmul.msk.f32.gmra.mxu1 %vm363_vm0, %v2328_v31  ;;  %v1545_v38 = vadd.f32 %v1470_v35, %v1134_v22  ;;  %v1137_v56 = vadd.f32 %v10342_v6, %v10340_v32  ;;  %v1953_v32 = vld [vmem:[#allocation2 + $0x6d] sm:$0xff] }
 0x1e6   : >> { %v2331_v6 = vld [vmem:[#allocation2 + $0x4e] sm:$0xff] }
 0x1e7   : >> { %v1852_v3 = vpop.f32.mrf.mxu3 }
 0x1e8   : >> { %v10385_v27 = vadd.f32 %v1852_v3, %v1545_v38  ;;  %v2710_v3 = vld [vmem:[#allocation2 + $0x48] sm:$0xff] }
 0x1e9   : >> { %8749 = vmatmul.msk.f32.gmra.mxu2 %vm363_vm0, %v2708_v4 }
 0x1ea   : >> { %v10376_v62 = vpop.f32.mrf.mxu0  ;;  %v10378_v44 = vpop.f32.mrf.mxu1  ;;  %12936 = vst [vmem:[#allocation12_spill] sm:$0xff] %v10385_v27 }
 0x1ec   : >> { %8796 = vmatmul.msk.f32.gmra.mxu3 %vm363_vm0, %v3090_v39  ;;  %v1473_v31 = vpop.f32.mrf.mxu2  ;;  %v3092_v39 = vld [vmem:[#allocation2 + $0x49] sm:$0xff] }
 0x1ed   : >> { %8662 = vmatmul.msk.f32.gmra.mxu0 %vm363_vm0, %v1951_v48  ;;  %8705 = vmatmul.msk.f32.gmra.mxu1 %vm363_vm0, %v2329_v49  ;;  %v1546_v55 = vadd.f32 %v1473_v31, %v1137_v56  ;;  %v1140_v49 = vadd.f32 %v10354_v47, %v10352_v57  ;;  %v1954_v57 = vld [vmem:[#allocation2 + $0x75] sm:$0xff]  ;;  %v1143_v56 = vadd.f32 %v10366_v53, %v10364_v40  ;;  %v1955_v40 = vld [vmem:[#allocation2 + $0x7d] sm:$0xff] }
 0x1ee   : >> { %v2332_v47 = vld [vmem:[#allocation2 + $0x56] sm:$0xff]  ;;  %v2333_v53 = vld [vmem:[#allocation2 + $0x5e] sm:$0xff] }
 0x1ef   : >> { %v1855_v29 = vpop.f32.mrf.mxu3 }
 0x1f0   : >> { %v10397_v20 = vadd.f32 %v1855_v29, %v1546_v55 }
 0x1f1   : >> { %8750 = vmatmul.msk.f32.gmra.mxu2 %vm363_vm0, %v2709_v19  ;;  %v2711_v19 = vld [vmem:[#allocation2 + $0x50] sm:$0xff] }
 0x1f2   : >> { %v10388_v63 = vpop.f32.mrf.mxu0  ;;  %v10390_v16 = vpop.f32.mrf.mxu1  ;;  %12937 = vst [vmem:[#allocation13_spill] sm:$0xff] %v10397_v20 }
 0x1f4   : >> { %8797 = vmatmul.msk.f32.gmra.mxu3 %vm363_vm0, %v3091_v7  ;;  %v1476_v22 = vpop.f32.mrf.mxu2 }
 0x1f5   : >> { %8663 = vmatmul.msk.f32.gmra.mxu0 %vm363_vm0, %v1952_v28  ;;  %8706 = vmatmul.msk.f32.gmra.mxu1 %vm363_vm0, %v2330_v14  ;;  %v1547_v35 = vadd.f32 %v1476_v22, %v1140_v49  ;;  %v1146_v22 = vadd.f32 %v10378_v44, %v10376_v62  ;;  %v1956_v62 = vld [vmem:[#allocation2 + $0x85] sm:$0xff] }
 0x1f6   : >> { %v2334_v44 = vld [vmem:[#allocation2 + $0x66] sm:$0xff] }
 0x1f7   : >> { %v1858_v38 = vpop.f32.mrf.mxu3 }
 0x1f8   : >> { %v10409_v4 = vadd.f32 %v1858_v38, %v1547_v35 }
 0x1f9   : >> { %8751 = vmatmul.msk.f32.gmra.mxu2 %vm363_vm0, %v2710_v3 }
 0x1fa   : >> { %v10400_v9 = vpop.f32.mrf.mxu0  ;;  %v10402_v48 = vpop.f32.mrf.mxu1  ;;  %12938 = vst [vmem:[#allocation14_spill] sm:$0xff] %v10409_v4 }
 0x1fc   : >> { %8798 = vmatmul.msk.f32.gmra.mxu3 %vm363_vm0, %v3092_v39  ;;  %v1479_v31 = vpop.f32.mrf.mxu2  ;;  %v2712_v39 = vld [vmem:[#allocation2 + $0x58] sm:$0xff] }
 0x1fd   : >> { %8664 = vmatmul.msk.f32.gmra.mxu0 %vm363_vm0, %v1953_v32  ;;  %8707 = vmatmul.msk.f32.gmra.mxu1 %vm363_vm0, %v2331_v6  ;;  %v1548_v55 = vadd.f32 %v1479_v31, %v1143_v56  ;;  %v3093_v32 = vld [vmem:[#allocation2 + $0x51] sm:$0xff] }
 0x1ff   : >> { %v1861_v29 = vpop.f32.mrf.mxu3 }
 0x200   : >> { %v10421_v7 = vadd.f32 %v1861_v29, %v1548_v55  ;;  %v1149_v55 = vadd.f32 %v10390_v16, %v10388_v63  ;;  %v1957_v63 = vld [vmem:[#allocation2 + $0x8d] sm:$0xff] }
 0x201   : >> { %8752 = vmatmul.msk.f32.gmra.mxu2 %vm363_vm0, %v2711_v19  ;;  %v2335_v16 = vld [vmem:[#allocation2 + $0x6e] sm:$0xff] }
 0x202   : >> { %v10412_v28 = vpop.f32.mrf.mxu0  ;;  %v10414_v14 = vpop.f32.mrf.mxu1  ;;  %12939 = vst [vmem:[#allocation15_spill] sm:$0xff] %v10421_v7 }
 0x204   : >> { %8799 = vmatmul.msk.f32.gmra.mxu3 %vm363_vm0, %v3093_v32  ;;  %v1482_v35 = vpop.f32.mrf.mxu2 }
 0x205   : >> { %8665 = vmatmul.msk.f32.gmra.mxu0 %vm363_vm0, %v1954_v57  ;;  %8708 = vmatmul.msk.f32.gmra.mxu1 %vm363_vm0, %v2332_v47  ;;  %v1549_v38 = vadd.f32 %v1482_v35, %v1146_v22  ;;  %v3094_v47 = vld [vmem:[#allocation2 + $0x59] sm:$0xff]  ;;  %v3095_v22 = vld [vmem:[#allocation2 + $0x61] sm:$0xff] }
 0x207   : >> { %v1864_v3 = vpop.f32.mrf.mxu3 }
 0x208   : >> { %v10433_v57 = vadd.f32 %v1864_v3, %v1549_v38  ;;  %v1152_v3 = vadd.f32 %v10402_v48, %v10400_v9  ;;  %v1958_v9 = vld [vmem:[#allocation2 + $0x95] sm:$0xff] }
 0x209   : >> { %8753 = vmatmul.msk.f32.gmra.mxu2 %vm363_vm0, %v2712_v39  ;;  %v2336_v48 = vld [vmem:[#allocation2 + $0x76] sm:$0xff] }
 0x20a   : >> { %v10424_v6 = vpop.f32.mrf.mxu0  ;;  %v10426_v49 = vpop.f32.mrf.mxu1  ;;  %12940 = vst [vmem:[#allocation16_spill] sm:$0xff] %v10433_v57  ;;  %v4179_v57 = vld [vmem:[#allocation3 + $0x10] sm:$0xff] }
 0x20c   : >> { %8800 = vmatmul.msk.f32.gmra.mxu3 %vm363_vm0, %v3094_v47  ;;  %v1485_v29 = vpop.f32.mrf.mxu2 }
 0x20d   : >> { %8666 = vmatmul.msk.f32.gmra.mxu0 %vm363_vm0, %v1955_v40  ;;  %8709 = vmatmul.msk.f32.gmra.mxu1 %vm363_vm0, %v2333_v53  ;;  %v1550_v19 = vadd.f32 %v1485_v29, %v1149_v55  ;;  %v2713_v40 = vld [vmem:[#allocation2 + $0x60] sm:$0xff]  ;;  %v3096_v29 = vld [vmem:[#allocation2 + $0x69] sm:$0xff] }
 0x20f   : >> { %v1867_v32 = vpop.f32.mrf.mxu3 }
 0x210   : >> { %v10445_v53 = vadd.f32 %v1867_v32, %v1550_v19 }
 0x211   : >> { %8754 = vmatmul.msk.f32.gmra.mxu2 %vm363_vm0, %v2713_v40  ;;  %v1155_v40 = vadd.f32 %v10414_v14, %v10412_v28  ;;  %v1959_v28 = vld [vmem:[#allocation2 + $0x9d] sm:$0xff] }
 0x212   : >> { %v10436_v56 = vpop.f32.mrf.mxu0  ;;  %v10438_v31 = vpop.f32.mrf.mxu1  ;;  %12941 = vst [vmem:[#allocation17_spill] sm:$0xff] %v10445_v53  ;;  %v2337_v14 = vld [vmem:[#allocation2 + $0x7e] sm:$0xff] }
 0x214   : >> { %8801 = vmatmul.msk.f32.gmra.mxu3 %vm363_vm0, %v3095_v22  ;;  %v1488_v39 = vpop.f32.mrf.mxu2 }
 0x215   : >> { %8667 = vmatmul.msk.f32.gmra.mxu0 %vm363_vm0, %v1956_v62  ;;  %8710 = vmatmul.msk.f32.gmra.mxu1 %vm363_vm0, %v2334_v44  ;;  %v1551_v47 = vadd.f32 %v1488_v39, %v1152_v3  ;;  %v2714_v44 = vld [vmem:[#allocation2 + $0x68] sm:$0xff]  ;;  %v2715_v3 = vld [vmem:[#allocation2 + $0x70] sm:$0xff] }
 0x217   : >> { %v1870_v62 = vpop.f32.mrf.mxu3 }
 0x218   : >> { %v10457_v55 = vadd.f32 %v1870_v62, %v1551_v47  ;;  %v3097_v47 = vld [vmem:[#allocation2 + $0x71] sm:$0xff] }
 0x219   : >> { %8755 = vmatmul.msk.f32.gmra.mxu2 %vm363_vm0, %v2714_v44 }
 0x21a   : >> { %v10448_v35 = vpop.f32.mrf.mxu0  ;;  %v10450_v38 = vpop.f32.mrf.mxu1  ;;  %12942 = vst [vmem:[#allocation18_spill] sm:$0xff] %v10457_v55 }
 0x21c   : >> { %8802 = vmatmul.msk.f32.gmra.mxu3 %vm363_vm0, %v3096_v29  ;;  %v1491_v22 = vpop.f32.mrf.mxu2  ;;  %v1158_v29 = vadd.f32 %v10426_v49, %v10424_v6  ;;  %v1960_v6 = vld [vmem:[#allocation2 + $0xa5] sm:$0xff] }
 0x21d   : >> { %8668 = vmatmul.msk.f32.gmra.mxu0 %vm363_vm0, %v1957_v63  ;;  %8711 = vmatmul.msk.f32.gmra.mxu1 %vm363_vm0, %v2335_v16  ;;  %v1552_v63 = vadd.f32 %v1491_v22, %v1155_v40  ;;  %v2716_v22 = vld [vmem:[#allocation2 + $0x78] sm:$0xff]  ;;  %v2338_v49 = vld [vmem:[#allocation2 + $0x86] sm:$0xff] }
 0x21f   : >> { %v1873_v16 = vpop.f32.mrf.mxu3 }
 0x220   : >> { %v10469_v39 = vadd.f32 %v1873_v16, %v1552_v63  ;;  %v3098_v16 = vld [vmem:[#allocation2 + $0x79] sm:$0xff] }
 0x221   : >> { %8756 = vmatmul.msk.f32.gmra.mxu2 %vm363_vm0, %v2715_v3 }
 0x222   : >> { %v10460_v19 = vpop.f32.mrf.mxu1  ;;  %v10462_v32 = vpop.f32.mrf.mxu0  ;;  %12943 = vst [vmem:[#allocation19_spill] sm:$0xff] %v10469_v39  ;;  %v4178_v39 = vld [vmem:[#allocation3 + $0x8] sm:$0xff] }
 0x224   : >> { %8803 = vmatmul.msk.f32.gmra.mxu3 %vm363_vm0, %v3097_v47  ;;  %v1161_v47 = vadd.f32 %v10438_v31, %v10436_v56  ;;  %v1961_v56 = vld [vmem:[#allocation2 + $0xad] sm:$0xff] }
 0x225   : >> { %8669 = vmatmul.msk.f32.gmra.mxu0 %vm363_vm0, %v1958_v9  ;;  %8712 = vmatmul.msk.f32.gmra.mxu1 %vm363_vm0, %v2336_v48  ;;  %v1494_v9 = vpop.f32.mrf.mxu2  ;;  %v2339_v31 = vld [vmem:[#allocation2 + $0x8e] sm:$0xff] }
 0x226   : >> { %v1553_v48 = vadd.f32 %v1494_v9, %v1158_v29  ;;  %v2717_v9 = vld [vmem:[#allocation2 + $0x80] sm:$0xff] }
 0x227   : >> { %v1876_v40 = vpop.f32.mrf.mxu3 }
 0x228   : >> { %v10481_v63 = vadd.f32 %v1876_v40, %v1553_v48  ;;  %v3099_v40 = vld [vmem:[#allocation2 + $0x81] sm:$0xff] }
 0x229   : >> { %8757 = vmatmul.msk.f32.gmra.mxu2 %vm363_vm0, %v2716_v22 }
 0x22a   : >> { %v10472_v62 = vpop.f32.mrf.mxu1  ;;  %v10474_v44 = vpop.f32.mrf.mxu0  ;;  %12944 = vst [vmem:[#allocation20_spill] sm:$0xff] %v10481_v63  ;;  %v4480_v63 = vld [vmem:[#allocation3 + $0x2] sm:$0xff] }
 0x22c   : >> { %8804 = vmatmul.msk.f32.gmra.mxu3 %vm363_vm0, %v3098_v16  ;;  %v1164_v16 = vadd.f32 %v10450_v38, %v10448_v35  ;;  %v1962_v35 = vld [vmem:[#allocation2 + $0xb5] sm:$0xff] }
 0x22d   : >> { %8670 = vmatmul.msk.f32.gmra.mxu0 %vm363_vm0, %v1959_v28  ;;  %8713 = vmatmul.msk.f32.gmra.mxu1 %vm363_vm0, %v2337_v14  ;;  %v1497_v28 = vpop.f32.mrf.mxu2  ;;  %v2340_v38 = vld [vmem:[#allocation2 + $0x96] sm:$0xff] }
 0x22e   : >> { %v1554_v14 = vadd.f32 %v1497_v28, %v1161_v47  ;;  %v2718_v28 = vld [vmem:[#allocation2 + $0x88] sm:$0xff] }
 0x22f   : >> { %v1879_v29 = vpop.f32.mrf.mxu3 }
 0x230   : >> { %v10493_v48 = vadd.f32 %v1879_v29, %v1554_v14  ;;  %v3100_v29 = vld [vmem:[#allocation2 + $0x89] sm:$0xff] }
 0x231   : >> { %8758 = vmatmul.msk.f32.gmra.mxu2 %vm363_vm0, %v2717_v9 }
 0x232   : >> { %v10484_v3 = vpop.f32.mrf.mxu1  ;;  %v10486_v1 = vpop.f32.mrf.mxu0  ;;  %12945 = vst [vmem:[#allocation21_spill] sm:$0xff] %v10493_v48 }
 0x234   : >> { %8805 = vmatmul.msk.f32.gmra.mxu3 %vm363_vm0, %v3099_v40  ;;  %v1167_v40 = vadd.f32 %v10460_v19, %v9959_v41  ;;  %v1963_v41 = vld [vmem:[#allocation2 + $0xbd] sm:$0xff] }
 0x235   : >> { %8671 = vmatmul.msk.f32.gmra.mxu0 %vm363_vm0, %v1960_v6  ;;  %8714 = vmatmul.msk.f32.gmra.mxu1 %vm363_vm0, %v2338_v49  ;;  %v1500_v6 = vpop.f32.mrf.mxu2  ;;  %v2341_v19 = vld [vmem:[#allocation2 + $0x9e] sm:$0xff] }
 0x236   : >> { %v1555_v49 = vadd.f32 %v1500_v6, %v1164_v16  ;;  %v2719_v6 = vld [vmem:[#allocation2 + $0x90] sm:$0xff] }
 0x237   : >> { %v1882_v47 = vpop.f32.mrf.mxu3 }
 0x238   : >> { %v10505_v14 = vadd.f32 %v1882_v47, %v1555_v49  ;;  %v3101_v47 = vld [vmem:[#allocation2 + $0x91] sm:$0xff] }
 0x239   : >> { %8759 = vmatmul.msk.f32.gmra.mxu2 %vm363_vm0, %v2718_v28 }
 0x23a   : >> { %v10496_v22 = vpop.f32.mrf.mxu1  ;;  %v10498_v55 = vpop.f32.mrf.mxu0  ;;  %12946 = vst [vmem:[#allocation22_spill] sm:$0xff] %v10505_v14 }
 0x23c   : >> { %8806 = vmatmul.msk.f32.gmra.mxu3 %vm363_vm0, %v3100_v29  ;;  %v1170_v29 = vadd.f32 %v10472_v62, %v9973_v50  ;;  %v1964_v50 = vld [vmem:[#allocation2 + $0xc5] sm:$0xff] }
 0x23d   : >> { %8672 = vmatmul.msk.f32.gmra.mxu0 %vm363_vm0, %v1961_v56  ;;  %8715 = vmatmul.msk.f32.gmra.mxu1 %vm363_vm0, %v2339_v31  ;;  %v1503_v56 = vpop.f32.mrf.mxu2  ;;  %v2342_v62 = vld [vmem:[#allocation2 + $0xa6] sm:$0xff] }
 0x23e   : >> { %v1556_v31 = vadd.f32 %v1503_v56, %v1167_v40  ;;  %v2720_v56 = vld [vmem:[#allocation2 + $0x98] sm:$0xff] }
 0x23f   : >> { %v1885_v16 = vpop.f32.mrf.mxu3 }
 0x240   : >> { %v10517_v49 = vadd.f32 %v1885_v16, %v1556_v31  ;;  %v3102_v16 = vld [vmem:[#allocation2 + $0x99] sm:$0xff] }
 0x241   : >> { %8760 = vmatmul.msk.f32.gmra.mxu2 %vm363_vm0, %v2719_v6 }
 0x242   : >> { %v10508_v9 = vpop.f32.mrf.mxu0  ;;  %v10510_v48 = vpop.f32.mrf.mxu1  ;;  %12947 = vst [vmem:[#allocation23_spill] sm:$0xff] %v10517_v49 }
 0x244   : >> { %8807 = vmatmul.msk.f32.gmra.mxu3 %vm363_vm0, %v3101_v47  ;;  %v1173_v47 = vadd.f32 %v10484_v3, %v9964_v43  ;;  %v1965_v43 = vld [vmem:[#allocation2 + $0xcd] sm:$0xff] }
 0x245   : >> { %8673 = vmatmul.msk.f32.gmra.mxu0 %vm363_vm0, %v1962_v35  ;;  %8716 = vmatmul.msk.f32.gmra.mxu1 %vm363_vm0, %v2340_v38  ;;  %v1506_v35 = vpop.f32.mrf.mxu2  ;;  %v2343_v3 = vld [vmem:[#allocation2 + $0xae] sm:$0xff] }
 0x246   : >> { %v1557_v38 = vadd.f32 %v1506_v35, %v1170_v29  ;;  %v2721_v35 = vld [vmem:[#allocation2 + $0xa0] sm:$0xff] }
 0x247   : >> { %v1888_v40 = vpop.f32.mrf.mxu3 }
 0x248   : >> { %v10529_v31 = vadd.f32 %v1888_v40, %v1557_v38  ;;  %v3103_v40 = vld [vmem:[#allocation2 + $0xa1] sm:$0xff] }
 0x249   : >> { %8761 = vmatmul.msk.f32.gmra.mxu2 %vm363_vm0, %v2720_v56 }
 0x24a   : >> { %v10520_v28 = vpop.f32.mrf.mxu0  ;;  %v10522_v14 = vpop.f32.mrf.mxu1  ;;  %12948 = vst [vmem:[#allocation24_spill] sm:$0xff] %v10529_v31 }
 0x24c   : >> { %8808 = vmatmul.msk.f32.gmra.mxu3 %vm363_vm0, %v3102_v16  ;;  %v1176_v16 = vadd.f32 %v10496_v22, %v9977_v51  ;;  %v1966_v22 = vld [vmem:[#allocation2 + $0xd5] sm:$0xff] }
 0x24d   : >> { %8674 = vmatmul.msk.f32.gmra.mxu0 %vm363_vm0, %v1963_v41  ;;  %8717 = vmatmul.msk.f32.gmra.mxu1 %vm363_vm0, %v2341_v19  ;;  %v1509_v41 = vpop.f32.mrf.mxu2 }
 0x24e   : >> { %v1558_v19 = vadd.f32 %v1509_v41, %v1173_v47  ;;  %v2722_v41 = vld [vmem:[#allocation2 + $0xa8] sm:$0xff] }
 0x24f   : >> { %v1891_v29 = vpop.f32.mrf.mxu3 }
 0x250   : >> { %v10541_v38 = vadd.f32 %v1891_v29, %v1558_v19  ;;  %v3104_v29 = vld [vmem:[#allocation2 + $0xa9] sm:$0xff] }
 0x251   : >> { %8762 = vmatmul.msk.f32.gmra.mxu2 %vm363_vm0, %v2721_v35  ;;  %v2279_v35 = vadd.f32 %v10462_v32, %v9989_v0  ;;  %v2723_v0 = vld [vmem:[#allocation2 + $0xb0] sm:$0xff] }
 0x252   : >> { %v10532_v6 = vpop.f32.mrf.mxu0  ;;  %v10534_v49 = vpop.f32.mrf.mxu1  ;;  %12949 = vst [vmem:[#allocation25_spill] sm:$0xff] %v10541_v38 }
 0x254   : >> { %8809 = vmatmul.msk.f32.gmra.mxu3 %vm363_vm0, %v3103_v40  ;;  %v2344_v40 = vld [vmem:[#allocation2 + $0xb6] sm:$0xff] }
 0x255   : >> { %8675 = vmatmul.msk.f32.gmra.mxu0 %vm363_vm0, %v1964_v50  ;;  %8718 = vmatmul.msk.f32.gmra.mxu1 %vm363_vm0, %v2342_v62  ;;  %v1512_v50 = vpop.f32.mrf.mxu2 }
 0x256   : >> { %v1559_v62 = vadd.f32 %v1512_v50, %v1176_v16 }
 0x257   : >> { %v1894_v47 = vpop.f32.mrf.mxu3 }
 0x258   : >> { %v10553_v19 = vadd.f32 %v1894_v47, %v1559_v62  ;;  %v3105_v62 = vld [vmem:[#allocation2 + $0xb1] sm:$0xff]  ;;  %v2280_v47 = vadd.f32 %v10474_v44, %v10001_v13 }
 0x259   : >> { %8763 = vmatmul.msk.f32.gmra.mxu2 %vm363_vm0, %v2722_v41  ;;  %v2724_v13 = vld [vmem:[#allocation2 + $0xb8] sm:$0xff] }
 0x25a   : >> { %v10544_v56 = vpop.f32.mrf.mxu0  ;;  %v10546_v31 = vpop.f32.mrf.mxu1  ;;  %12950 = vst [vmem:[#allocation26_spill] sm:$0xff] %v10553_v19 }
 0x25c   : >> { %8810 = vmatmul.msk.f32.gmra.mxu3 %vm363_vm0, %v3104_v29  ;;  %v1967_v29 = vld [vmem:[#allocation2 + $0xdd] sm:$0xff] }
 0x25d   : >> { %8676 = vmatmul.msk.f32.gmra.mxu0 %vm363_vm0, %v1965_v43  ;;  %8719 = vmatmul.msk.f32.gmra.mxu1 %vm363_vm0, %v2343_v3  ;;  %v2661_v43 = vadd.f32 %v10510_v48, %v2279_v35  ;;  %v2908_v3 = vpop.f32.mrf.mxu2  ;;  %v2345_v35 = vld [vmem:[#allocation2 + $0xbe] sm:$0xff] }
 0x25f   : >> { %v3043_v16 = vadd.f32 %v2908_v3, %v2661_v43  ;;  %v3290_v50 = vpop.f32.mrf.mxu3 }
 0x261   : >> { %v10566_v32 = vadd.f32 %v3290_v50, %v3043_v16  ;;  %8764 = vmatmul.msk.f32.gmra.mxu2 %vm363_vm0, %v2723_v0  ;;  %v3106_v16 = vld [vmem:[#allocation2 + $0xb9] sm:$0xff]  ;;  %v2281_v50 = vadd.f32 %v10486_v1, %v10015_v25  ;;  %v3107_v25 = vld [vmem:[#allocation2 + $0xc1] sm:$0xff] }
 0x262   : >> { %v10558_v38 = vpop.f32.mrf.mxu0  ;;  %v10560_v51 = vpop.f32.mrf.mxu1 }
 0x264   : >> { %8811 = vmatmul.msk.f32.gmra.mxu3 %vm363_vm0, %v3105_v62  ;;  %v2346_v62 = vld [vmem:[#allocation2 + $0xc6] sm:$0xff] }
 0x265   : >> { %8677 = vmatmul.msk.f32.gmra.mxu0 %vm363_vm0, %v1966_v22  ;;  %8720 = vmatmul.msk.f32.gmra.mxu1 %vm363_vm0, %v2344_v40  ;;  %v2662_v22 = vadd.f32 %v10522_v14, %v2280_v47  ;;  %v2911_v40 = vpop.f32.mrf.mxu2  ;;  %v1968_v14 = vld [vmem:[#allocation2 + $0xe5] sm:$0xff]  ;;  %v2663_v47 = vadd.f32 %v10534_v49, %v2281_v50 }
 0x267   : >> { %v3044_v43 = vadd.f32 %v2911_v40, %v2662_v22  ;;  %v3293_v3 = vpop.f32.mrf.mxu3 }
 0x269   : >> { %v10579_v44 = vadd.f32 %v3293_v3, %v3044_v43  ;;  %8765 = vmatmul.msk.f32.gmra.mxu2 %vm363_vm0, %v2724_v13  ;;  %v2725_v43 = vld [vmem:[#allocation2 + $0xc0] sm:$0xff]  ;;  %v2282_v3 = vadd.f32 %v10498_v55, %v10029_v37  ;;  %v1969_v13 = vld [vmem:[#allocation2 + $0xed] sm:$0xff] }
 0x26a   : >> { %v10571_v41 = vpop.f32.mrf.mxu0  ;;  %v10573_v48 = vpop.f32.mrf.mxu1  ;;  %v3108_v55 = vld [vmem:[#allocation2 + $0xc9] sm:$0xff] }
 0x26b   : >> { %v2664_v50 = vadd.f32 %v10546_v31, %v2282_v3 }
 0x26c   : >> { %8812 = vmatmul.msk.f32.gmra.mxu3 %vm363_vm0, %v3106_v16  ;;  %v2347_v16 = vld [vmem:[#allocation2 + $0xce] sm:$0xff] }
 0x26d   : >> { %8678 = vmatmul.msk.f32.gmra.mxu0 %vm363_vm0, %v1967_v29  ;;  %8721 = vmatmul.msk.f32.gmra.mxu1 %vm363_vm0, %v2345_v35  ;;  %v2914_v35 = vpop.f32.mrf.mxu2 }
 0x26e   : >> { %v3045_v22 = vadd.f32 %v2914_v35, %v2663_v47 }
 0x26f   : >> { %v3296_v40 = vpop.f32.mrf.mxu3 }
 0x270   : >> { %v10590_v1 = vadd.f32 %v3296_v40, %v3045_v22  ;;  %v2726_v22 = vld [vmem:[#allocation2 + $0xc8] sm:$0xff]  ;;  %v2283_v40 = vadd.f32 %v10508_v9, %v10041_v52  ;;  %v3109_v9 = vld [vmem:[#allocation2 + $0xd1] sm:$0xff] }
 0x271   : >> { %8766 = vmatmul.msk.f32.gmra.mxu2 %vm363_vm0, %v2725_v43  ;;  %v1970_v43 = vld [vmem:[#allocation2 + $0xf5] sm:$0xff] }
 0x272   : >> { %v10584_v0 = vpop.f32.mrf.mxu0  ;;  %v2544_v29 = vpop.f32.mrf.mxu1  ;;  %v2665_v3 = vadd.f32 %v10560_v51, %v2283_v40 }
 0x274   : >> { %8813 = vmatmul.msk.f32.gmra.mxu3 %vm363_vm0, %v3107_v25  ;;  %v2348_v25 = vld [vmem:[#allocation2 + $0xd6] sm:$0xff] }
 0x275   : >> { %8679 = vmatmul.msk.f32.gmra.mxu0 %vm363_vm0, %v1968_v14  ;;  %8722 = vmatmul.msk.f32.gmra.mxu1 %vm363_vm0, %v2346_v62  ;;  %v2917_v14 = vpop.f32.mrf.mxu2 }
 0x276   : >> { %v3046_v62 = vadd.f32 %v2917_v14, %v2664_v50  ;;  %v2727_v14 = vld [vmem:[#allocation2 + $0xd0] sm:$0xff] }
 0x277   : >> { %v3299_v35 = vpop.f32.mrf.mxu3 }
 0x278   : >> { %v10601_v37 = vadd.f32 %v3299_v35, %v3046_v62  ;;  %v2284_v35 = vadd.f32 %v10520_v28, %v10055_v2  ;;  %v3110_v2 = vld [vmem:[#allocation2 + $0xd9] sm:$0xff]  ;;  %v2285_v28 = vadd.f32 %v10532_v6, %v10069_v17  ;;  %v3111_v17 = vld [vmem:[#allocation2 + $0xe1] sm:$0xff]  ;;  %v2286_v6 = vadd.f32 %v10544_v56, %v10083_v30  ;;  %v3112_v30 = vld [vmem:[#allocation2 + $0xe9] sm:$0xff] }
 0x279   : >> { %8767 = vmatmul.msk.f32.gmra.mxu2 %vm363_vm0, %v2726_v22  ;;  %v1971_v22 = vld [vmem:[#allocation2 + $0xfd] sm:$0xff]  ;;  %v2287_v56 = vadd.f32 %v10558_v38, %v10097_v45  ;;  %v3113_v45 = vld [vmem:[#allocation2 + $0xf1] sm:$0xff]  ;;  %v2288_v38 = vadd.f32 %v10571_v41, %v10109_v59 }
 0x27a   : >> { %v10595_v49 = vpop.f32.mrf.mxu0  ;;  %v2547_v47 = vpop.f32.mrf.mxu1  ;;  %v2666_v40 = vadd.f32 %v10573_v48, %v2284_v35  ;;  %v2667_v35 = vadd.f32 %v2544_v29, %v2285_v28  ;;  %v1973_v29 = vld [vmem:[#allocation2 + $0x10d] sm:$0xff]  ;;  %v3114_v41 = vld [vmem:[#allocation2 + $0xf9] sm:$0xff] }
 0x27c   : >> { %8814 = vmatmul.msk.f32.gmra.mxu3 %vm363_vm0, %v3108_v55  ;;  %v2349_v55 = vld [vmem:[#allocation2 + $0xde] sm:$0xff] }
 0x27d   : >> { %8680 = vmatmul.msk.f32.gmra.mxu0 %vm363_vm0, %v1969_v13  ;;  %8723 = vmatmul.msk.f32.gmra.mxu1 %vm363_vm0, %v2347_v16  ;;  %v2920_v13 = vpop.f32.mrf.mxu2 }
 0x27e   : >> { %v3047_v16 = vadd.f32 %v2920_v13, %v2665_v3  ;;  %v2728_v13 = vld [vmem:[#allocation2 + $0xd8] sm:$0xff] }
 0x27f   : >> { %v3302_v50 = vpop.f32.mrf.mxu3 }
 0x280   : >> { %v10612_v62 = vadd.f32 %v3302_v50, %v3047_v16 }
 0x281   : >> { %8768 = vmatmul.msk.f32.gmra.mxu2 %vm363_vm0, %v2727_v14  ;;  %v1972_v14 = vld [vmem:[#allocation2 + $0x105] sm:$0xff] }
 0x282   : >> { %v10606_v31 = vpop.f32.mrf.mxu0  ;;  %v2550_v52 = vpop.f32.mrf.mxu1 }
 0x284   : >> { %8815 = vmatmul.msk.f32.gmra.mxu3 %vm363_vm0, %v3109_v9  ;;  %v2350_v9 = vld [vmem:[#allocation2 + $0xe6] sm:$0xff] }
 0x285   : >> { %8681 = vmatmul.msk.f32.gmra.mxu0 %vm363_vm0, %v1970_v43  ;;  %8724 = vmatmul.msk.f32.gmra.mxu1 %vm363_vm0, %v2348_v25  ;;  %v2923_v43 = vpop.f32.mrf.mxu2 }
 0x286   : >> { %v3048_v25 = vadd.f32 %v2923_v43, %v2666_v40  ;;  %v2729_v43 = vld [vmem:[#allocation2 + $0xe0] sm:$0xff] }
 0x287   : >> { %v3305_v3 = vpop.f32.mrf.mxu3 }
 0x288   : >> { %v10623_v16 = vadd.f32 %v3305_v3, %v3048_v25 }
 0x289   : >> { %8769 = vmatmul.msk.f32.gmra.mxu2 %vm363_vm0, %v2728_v13  ;;  %v2351_v13 = vld [vmem:[#allocation2 + $0xee] sm:$0xff] }
 0x28a   : >> { %v10617_v51 = vpop.f32.mrf.mxu0  ;;  %v2553_v50 = vpop.f32.mrf.mxu1 }
 0x28c   : >> { %8816 = vmatmul.msk.f32.gmra.mxu3 %vm363_vm0, %v3110_v2  ;;  %v2668_v2 = vadd.f32 %v2547_v47, %v2286_v6 }
 0x28d   : >> { %8682 = vmatmul.msk.f32.gmra.mxu0 %vm363_vm0, %v1971_v22  ;;  %8725 = vmatmul.msk.f32.gmra.mxu1 %vm363_vm0, %v2349_v55  ;;  %v2926_v22 = vpop.f32.mrf.mxu2 }
 0x28e   : >> { %v3049_v55 = vadd.f32 %v2926_v22, %v2667_v35  ;;  %v2730_v22 = vld [vmem:[#allocation2 + $0xe8] sm:$0xff] }
 0x28f   : >> { %v3308_v40 = vpop.f32.mrf.mxu3 }
 0x290   : >> { %v10633_v25 = vadd.f32 %v3308_v40, %v3049_v55  ;;  %v1974_v40 = vld [vmem:[#allocation2 + $0x115] sm:$0xff] }
 0x291   : >> { %8770 = vmatmul.msk.f32.gmra.mxu2 %vm363_vm0, %v2729_v43  ;;  %v2352_v43 = vld [vmem:[#allocation2 + $0xf6] sm:$0xff] }
 0x292   : >> { %v10628_v48 = vpop.f32.mrf.mxu0  ;;  %v2556_v28 = vpop.f32.mrf.mxu1 }
 0x294   : >> { %8817 = vmatmul.msk.f32.gmra.mxu3 %vm363_vm0, %v3111_v17  ;;  %v2669_v17 = vadd.f32 %v2550_v52, %v2287_v56 }
 0x295   : >> { %8683 = vmatmul.msk.f32.gmra.mxu0 %vm363_vm0, %v1972_v14  ;;  %8726 = vmatmul.msk.f32.gmra.mxu1 %vm363_vm0, %v2350_v9  ;;  %v2929_v14 = vpop.f32.mrf.mxu2 }
 0x296   : >> { %v3050_v9 = vadd.f32 %v2929_v14, %v2668_v2  ;;  %v2731_v14 = vld [vmem:[#allocation2 + $0xf0] sm:$0xff] }
 0x297   : >> { %v3311_v35 = vpop.f32.mrf.mxu3 }
 0x298   : >> { %v10643_v55 = vadd.f32 %v3311_v35, %v3050_v9  ;;  %v1975_v35 = vld [vmem:[#allocation2 + $0x11d] sm:$0xff] }
 0x299   : >> { %8771 = vmatmul.msk.f32.gmra.mxu2 %vm363_vm0, %v2730_v22  ;;  %v2353_v22 = vld [vmem:[#allocation2 + $0xfe] sm:$0xff] }
 0x29a   : >> { %v10638_v3 = vpop.f32.mrf.mxu0 }
 0x29c   : >> { %8818 = vmatmul.msk.f32.gmra.mxu3 %vm363_vm0, %v3112_v30  ;;  %v2670_v30 = vadd.f32 %v2553_v50, %v2288_v38 }
 0x29d   : >> { %8684 = vmatmul.msk.f32.gmra.mxu0 %vm363_vm0, %v1973_v29  ;;  %8727 = vmatmul.msk.f32.gmra.mxu1 %vm363_vm0, %v2351_v13  ;;  %v2932_v6 = vpop.f32.mrf.mxu2  ;;  %v2559_v13 = vpop.f32.mrf.mxu1 }
 0x29e   : >> { %v3051_v29 = vadd.f32 %v2932_v6, %v2669_v17  ;;  %v2732_v17 = vld [vmem:[#allocation2 + $0xf8] sm:$0xff] }
 0x29f   : >> { %v3314_v2 = vpop.f32.mrf.mxu3 }
 0x2a0   : >> { %v10653_v9 = vadd.f32 %v3314_v2, %v3051_v29  ;;  %v2289_v29 = vadd.f32 %v10584_v0, %v10123_v10  ;;  %v1976_v2 = vld [vmem:[#allocation2 + $0x125] sm:$0xff]  ;;  %v2290_v0 = vadd.f32 %v10595_v49, %v10137_v24  ;;  %v2291_v49 = vadd.f32 %v10606_v31, %v10151_v42  ;;  %v3117_v42 = vld [vmem:[#allocation2 + $0x111] sm:$0xff] }
 0x2a1   : >> { %8772 = vmatmul.msk.f32.gmra.mxu2 %vm363_vm0, %v2731_v14  ;;  %v2354_v14 = vld [vmem:[#allocation2 + $0x106] sm:$0xff]  ;;  %v2292_v31 = vadd.f32 %v10617_v51, %v10165_v60  ;;  %v3118_v60 = vld [vmem:[#allocation2 + $0x119] sm:$0xff]  ;;  %v2293_v51 = vadd.f32 %v10628_v48, %v10177_v11 }
 0x2a2   : >> { %v10648_v47 = vpop.f32.mrf.mxu0  ;;  %v3115_v10 = vld [vmem:[#allocation2 + $0x101] sm:$0xff]  ;;  %v3116_v24 = vld [vmem:[#allocation2 + $0x109] sm:$0xff] }
 0x2a3   : >> { %v3119_v48 = vld [vmem:[#allocation2 + $0x121] sm:$0xff] }
 0x2a4   : >> { %8819 = vmatmul.msk.f32.gmra.mxu3 %vm363_vm0, %v3113_v45  ;;  %v2671_v45 = vadd.f32 %v2556_v28, %v2289_v29 }
 0x2a5   : >> { %8685 = vmatmul.msk.f32.gmra.mxu0 %vm363_vm0, %v1974_v40  ;;  %8728 = vmatmul.msk.f32.gmra.mxu1 %vm363_vm0, %v2352_v43  ;;  %v2935_v56 = vpop.f32.mrf.mxu2  ;;  %v2562_v59 = vpop.f32.mrf.mxu1 }
 0x2a6   : >> { %v3052_v40 = vadd.f32 %v2935_v56, %v2670_v30  ;;  %v2733_v30 = vld [vmem:[#allocation2 + $0x100] sm:$0xff] }
 0x2a7   : >> { %v3317_v43 = vpop.f32.mrf.mxu3 }
 0x2a8   : >> { %v10663_v6 = vadd.f32 %v3317_v43, %v3052_v40  ;;  %v1977_v43 = vld [vmem:[#allocation2 + $0x12d] sm:$0xff] }
 0x2a9   : >> { %8773 = vmatmul.msk.f32.gmra.mxu2 %vm363_vm0, %v2732_v17  ;;  %v2355_v17 = vld [vmem:[#allocation2 + $0x10e] sm:$0xff] }
 0x2aa   : >> { %v10658_v52 = vpop.f32.mrf.mxu0 }
 0x2ac   : >> { %8820 = vmatmul.msk.f32.gmra.mxu3 %vm363_vm0, %v3114_v41  ;;  %v2672_v41 = vadd.f32 %v2559_v13, %v2290_v0  ;;  %v1978_v13 = vld [vmem:[#allocation2 + $0x135] sm:$0xff] }
 0x2ad   : >> { %8686 = vmatmul.msk.f32.gmra.mxu0 %vm363_vm0, %v1975_v35  ;;  %8729 = vmatmul.msk.f32.gmra.mxu1 %vm363_vm0, %v2353_v22  ;;  %v2938_v38 = vpop.f32.mrf.mxu2  ;;  %v2565_v40 = vpop.f32.mrf.mxu1 }
 0x2ae   : >> { %v3053_v35 = vadd.f32 %v2938_v38, %v2671_v45  ;;  %v2734_v45 = vld [vmem:[#allocation2 + $0x108] sm:$0xff] }
 0x2af   : >> { %v3320_v22 = vpop.f32.mrf.mxu3 }
 0x2b0   : >> { %v10673_v56 = vadd.f32 %v3320_v22, %v3053_v35  ;;  %v2356_v22 = vld [vmem:[#allocation2 + $0x116] sm:$0xff] }
 0x2b1   : >> { %8774 = vmatmul.msk.f32.gmra.mxu2 %vm363_vm0, %v2733_v30  ;;  %v2673_v30 = vadd.f32 %v2562_v59, %v2291_v49 }
 0x2b2   : >> { %v10668_v50 = vpop.f32.mrf.mxu0 }
 0x2b4   : >> { %8821 = vmatmul.msk.f32.gmra.mxu3 %vm363_vm0, %v3115_v10 }
 0x2b5   : >> { %8687 = vmatmul.msk.f32.gmra.mxu0 %vm363_vm0, %v1976_v2  ;;  %8730 = vmatmul.msk.f32.gmra.mxu1 %vm363_vm0, %v2354_v14  ;;  %v2941_v29 = vpop.f32.mrf.mxu2  ;;  %v2568_v10 = vpop.f32.mrf.mxu1 }
 0x2b6   : >> { %v3054_v2 = vadd.f32 %v2941_v29, %v2672_v41  ;;  %v2735_v41 = vld [vmem:[#allocation2 + $0x110] sm:$0xff] }
 0x2b7   : >> { %v3323_v14 = vpop.f32.mrf.mxu3 }
 0x2b8   : >> { %v10683_v38 = vadd.f32 %v3323_v14, %v3054_v2  ;;  %v1979_v2 = vld [vmem:[#allocation2 + $0x13d] sm:$0xff] }
 0x2b9   : >> { %8775 = vmatmul.msk.f32.gmra.mxu2 %vm363_vm0, %v2734_v45  ;;  %v2357_v14 = vld [vmem:[#allocation2 + $0x11e] sm:$0xff]  ;;  %v2674_v45 = vadd.f32 %v2565_v40, %v2292_v31 }
 0x2ba   : >> { %v10678_v28 = vpop.f32.mrf.mxu0 }
 0x2bc   : >> { %8822 = vmatmul.msk.f32.gmra.mxu3 %vm363_vm0, %v3116_v24 }
 0x2bd   : >> { %8688 = vmatmul.msk.f32.gmra.mxu0 %vm363_vm0, %v1977_v43  ;;  %8731 = vmatmul.msk.f32.gmra.mxu1 %vm363_vm0, %v2355_v17  ;;  %v2944_v0 = vpop.f32.mrf.mxu2 }
 0x2be   : >> { %v3055_v43 = vadd.f32 %v2944_v0, %v2673_v30  ;;  %v2736_v30 = vld [vmem:[#allocation2 + $0x118] sm:$0xff] }
 0x2bf   : >> { %v3326_v17 = vpop.f32.mrf.mxu3 }
 0x2c0   : >> { %v10693_v29 = vadd.f32 %v3326_v17, %v3055_v43  ;;  %v1980_v43 = vld [vmem:[#allocation2 + $0x145] sm:$0xff] }
 0x2c1   : >> { %8776 = vmatmul.msk.f32.gmra.mxu2 %vm363_vm0, %v2735_v41  ;;  %v2358_v17 = vld [vmem:[#allocation2 + $0x126] sm:$0xff]  ;;  %v2675_v41 = vadd.f32 %v2568_v10, %v2293_v51 }
 0x2c2   : >> { %v10688_v35 = vpop.f32.mrf.mxu0 }
 0x2c4   : >> { %8823 = vmatmul.msk.f32.gmra.mxu3 %vm363_vm0, %v3117_v42 }
 0x2c5   : >> { %8689 = vmatmul.msk.f32.gmra.mxu0 %vm363_vm0, %v1978_v13  ;;  %8732 = vmatmul.msk.f32.gmra.mxu1 %vm363_vm0, %v2356_v22  ;;  %v2947_v24 = vpop.f32.mrf.mxu2  ;;  %v2571_v13 = vpop.f32.mrf.mxu1 }
 0x2c6   : >> { %v3056_v49 = vadd.f32 %v2947_v24, %v2674_v45  ;;  %v2294_v24 = vadd.f32 %v10638_v3, %v10189_v26  ;;  %v3120_v26 = vld [vmem:[#allocation2 + $0x129] sm:$0xff]  ;;  %v2295_v3 = vadd.f32 %v10648_v47, %v10205_v46  ;;  %v3121_v46 = vld [vmem:[#allocation2 + $0x131] sm:$0xff]  ;;  %v2296_v47 = vadd.f32 %v10658_v52, %v10225_v5  ;;  %v3122_v5 = vld [vmem:[#allocation2 + $0x139] sm:$0xff] }
 0x2c7   : >> { %v3329_v22 = vpop.f32.mrf.mxu3  ;;  %v2297_v52 = vadd.f32 %v10668_v50, %v10241_v21  ;;  %v3123_v21 = vld [vmem:[#allocation2 + $0x141] sm:$0xff]  ;;  %v2298_v50 = vadd.f32 %v10678_v28, %v10253_v36  ;;  %v3124_v28 = vld [vmem:[#allocation2 + $0x149] sm:$0xff] }
 0x2c8   : >> { %v10703_v0 = vadd.f32 %v3329_v22, %v3056_v49  ;;  %v1981_v49 = vld [vmem:[#allocation2 + $0x14d] sm:$0xff] }
 0x2c9   : >> { %8777 = vmatmul.msk.f32.gmra.mxu2 %vm363_vm0, %v2736_v30  ;;  %v2359_v22 = vld [vmem:[#allocation2 + $0x12e] sm:$0xff]  ;;  %v2676_v30 = vadd.f32 %v2571_v13, %v2294_v24 }
 0x2ca   : >> { %v10698_v59 = vpop.f32.mrf.mxu0 }
 0x2cc   : >> { %8824 = vmatmul.msk.f32.gmra.mxu3 %vm363_vm0, %v3118_v60 }
 0x2cd   : >> { %8690 = vmatmul.msk.f32.gmra.mxu0 %vm363_vm0, %v1979_v2  ;;  %8733 = vmatmul.msk.f32.gmra.mxu1 %vm363_vm0, %v2357_v14  ;;  %v2950_v42 = vpop.f32.mrf.mxu2  ;;  %v2737_v14 = vld [vmem:[#allocation2 + $0x120] sm:$0xff]  ;;  %v2574_v11 = vpop.f32.mrf.mxu1 }
 0x2ce   : >> { %v3057_v31 = vadd.f32 %v2950_v42, %v2675_v41 }
 0x2cf   : >> { %v3332_v2 = vpop.f32.mrf.mxu3 }
 0x2d0   : >> { %v10713_v45 = vadd.f32 %v3332_v2, %v3057_v31  ;;  %v1982_v31 = vld [vmem:[#allocation2 + $0x155] sm:$0xff] }
 0x2d1   : >> { %8778 = vmatmul.msk.f32.gmra.mxu2 %vm363_vm0, %v2737_v14  ;;  %v2360_v2 = vld [vmem:[#allocation2 + $0x136] sm:$0xff]  ;;  %v2677_v14 = vadd.f32 %v2574_v11, %v2295_v3 }
 0x2d2   : >> { %v10708_v40 = vpop.f32.mrf.mxu0  ;;  %v1983_v11 = vld [vmem:[#allocation2 + $0x15d] sm:$0xff] }
 0x2d4   : >> { %8825 = vmatmul.msk.f32.gmra.mxu3 %vm363_vm0, %v3119_v48 }
 0x2d5   : >> { %8691 = vmatmul.msk.f32.gmra.mxu0 %vm363_vm0, %v1980_v43  ;;  %8734 = vmatmul.msk.f32.gmra.mxu1 %vm363_vm0, %v2358_v17  ;;  %v2953_v60 = vpop.f32.mrf.mxu2  ;;  %v2738_v17 = vld [vmem:[#allocation2 + $0x128] sm:$0xff]  ;;  %v2577_v42 = vpop.f32.mrf.mxu1 }
 0x2d6   : >> { %v3058_v51 = vadd.f32 %v2953_v60, %v2676_v30 }
 0x2d7   : >> { %v3335_v43 = vpop.f32.mrf.mxu3 }
 0x2d8   : >> { %v10723_v41 = vadd.f32 %v3335_v43, %v3058_v51  ;;  %v2361_v51 = vld [vmem:[#allocation2 + $0x13e] sm:$0xff]  ;;  %v2678_v43 = vadd.f32 %v2577_v42, %v2296_v47 }
 0x2d9   : >> { %8779 = vmatmul.msk.f32.gmra.mxu2 %vm363_vm0, %v2738_v17 }
 0x2da   : >> { %v10718_v10 = vpop.f32.mrf.mxu0 }
 0x2dc   : >> { %8826 = vmatmul.msk.f32.gmra.mxu3 %vm363_vm0, %v3120_v26 }
 0x2dd   : >> { %8692 = vmatmul.msk.f32.gmra.mxu0 %vm363_vm0, %v1981_v49  ;;  %8735 = vmatmul.msk.f32.gmra.mxu1 %vm363_vm0, %v2359_v22  ;;  %v2956_v48 = vpop.f32.mrf.mxu2  ;;  %v2739_v22 = vld [vmem:[#allocation2 + $0x130] sm:$0xff]  ;;  %v2580_v17 = vpop.f32.mrf.mxu1 }
 0x2de   : >> { %v3059_v24 = vadd.f32 %v2956_v48, %v2677_v14  ;;  %v1984_v48 = vld [vmem:[#allocation2 + $0x165] sm:$0xff] }
 0x2df   : >> { %v3338_v49 = vpop.f32.mrf.mxu3 }
 0x2e0   : >> { %v10733_v30 = vadd.f32 %v3338_v49, %v3059_v24  ;;  %v2362_v24 = vld [vmem:[#allocation2 + $0x146] sm:$0xff]  ;;  %v2679_v49 = vadd.f32 %v2580_v17, %v2297_v52 }
 0x2e1   : >> { %8780 = vmatmul.msk.f32.gmra.mxu2 %vm363_vm0, %v2739_v22 }
 0x2e2   : >> { %v10728_v13 = vpop.f32.mrf.mxu0 }
 0x2e4   : >> { %8827 = vmatmul.msk.f32.gmra.mxu3 %vm363_vm0, %v3121_v46 }
 0x2e5   : >> { %8693 = vmatmul.msk.f32.gmra.mxu0 %vm363_vm0, %v1982_v31  ;;  %8736 = vmatmul.msk.f32.gmra.mxu1 %vm363_vm0, %v2360_v2  ;;  %v2959_v26 = vpop.f32.mrf.mxu2  ;;  %v2740_v2 = vld [vmem:[#allocation2 + $0x138] sm:$0xff]  ;;  %v2583_v47 = vpop.f32.mrf.mxu1 }
 0x2e6   : >> { %v3060_v3 = vadd.f32 %v2959_v26, %v2678_v43  ;;  %v1985_v26 = vld [vmem:[#allocation2 + $0x16d] sm:$0xff] }
 0x2e7   : >> { %v3341_v31 = vpop.f32.mrf.mxu3 }
 0x2e8   : >> { %v10743_v14 = vadd.f32 %v3341_v31, %v3060_v3  ;;  %v2363_v3 = vld [vmem:[#allocation2 + $0x14e] sm:$0xff]  ;;  %v2680_v31 = vadd.f32 %v2583_v47, %v2298_v50 }
 0x2e9   : >> { %8781 = vmatmul.msk.f32.gmra.mxu2 %vm363_vm0, %v2740_v2  ;;  %v1986_v47 = vld [vmem:[#allocation2 + $0x175] sm:$0x3f] }
 0x2ea   : >> { %v10738_v60 = vpop.f32.mrf.mxu0 }
 0x2ec   : >> { %8828 = vmatmul.msk.f32.gmra.mxu3 %vm363_vm0, %v3122_v5 }
 0x2ed   : >> { %8694 = vmatmul.msk.f32.gmra.mxu0 %vm363_vm0, %v1983_v11  ;;  %8737 = vmatmul.msk.f32.gmra.mxu1 %vm363_vm0, %v2361_v51  ;;  %v2962_v22 = vpop.f32.mrf.mxu2  ;;  %v2741_v51 = vld [vmem:[#allocation2 + $0x140] sm:$0xff]  ;;  %v2586_v36 = vpop.f32.mrf.mxu1 }
 0x2ee   : >> { %v3061_v46 = vadd.f32 %v2962_v22, %v2679_v49  ;;  %v2299_v49 = vadd.f32 %v10688_v35, %v10265_v58  ;;  %v4202_v22 = vld [vmem:[%s12902_s3 + $0x38] sm:$0xff] }
 0x2ef   : >> { %v3344_v11 = vpop.f32.mrf.mxu3  ;;  %4417 = vmatpush.msrb.mxu2 %v4202_v22  ;;  %v8893_v35 = vld [vmem:[%s12902_s3 + $0x78] sm:$0xff]  ;;  %v2366_v22 = vld [vmem:[#allocation2 + $0x166] sm:$0xff] }
 0x2f0   : >> { %v10753_v43 = vadd.f32 %v3344_v11, %v3061_v46  ;;  %v2364_v11 = vld [vmem:[#allocation2 + $0x156] sm:$0xff]  ;;  %4292 = vmatpush.msra.mxu1 %v8893_v35  ;;  %v2746_v35 = vld [vmem:[#allocation2 + $0x168] sm:$0xff] }
 0x2f1   : >> { %8782 = vmatmul.msk.f32.gmra.mxu2 %vm363_vm0, %v2741_v51  ;;  %v2681_v51 = vadd.f32 %v2586_v36, %v2299_v49  ;;  %v2744_v36 = vld [vmem:[#allocation2 + $0x158] sm:$0xff] }
 0x2f2   : >> { %v10748_v42 = vpop.f32.mrf.mxu0 }
 0x2f4   : >> { %8829 = vmatmul.msk.f32.gmra.mxu3 %vm363_vm0, %v3123_v21  ;;  %v8937_v21 = vld [vmem:[%s12902_s3 + $0xb8] sm:$0xff] }
 0x2f5   : >> { %8695 = vmatmul.msk.f32.gmra.mxu0 %vm363_vm0, %v1984_v48  ;;  %8738 = vmatmul.msk.f32.gmra.mxu1 %vm363_vm0, %v2362_v24  ;;  %v2965_v2 = vpop.f32.mrf.mxu2  ;;  %v2742_v48 = vld [vmem:[#allocation2 + $0x148] sm:$0xff] }
 0x2f6   : >> { %v3062_v5 = vadd.f32 %v2965_v2, %v2680_v31  ;;  %4569 = vmatpush.msrb.mxu3 %v8937_v21  ;;  %v3125_v2 = vld [vmem:[#allocation2 + $0x151] sm:$0xff] }
 0x2f7   : >> { %v3347_v52 = vpop.f32.mrf.mxu3 }
 0x2f8   : >> { %v10763_v24 = vadd.f32 %v3347_v52, %v3062_v5  ;;  %v2365_v52 = vld [vmem:[#allocation2 + $0x15e] sm:$0xff] }
 0x2f9   : >> { %8783 = vmatmul.msk.f32.gmra.mxu2 %vm363_vm0, %v2742_v48  ;;  %v3470_v48 = vld [vmem:[#allocation2 + $0x2a] sm:$0xff] }
 0x2fa   : >> { %v10758_v17 = vpop.f32.mrf.mxu0 }
 0x2fc   : >> { %8830 = vmatmul.msk.f32.gmra.mxu3 %vm363_vm0, %v3124_v28  ;;  %v3126_v28 = vld [vmem:[#allocation2 + $0x159] sm:$0xff] }
 0x2fd   : >> { %8696 = vmatmul.msk.f32.gmra.mxu0 %vm363_vm0, %v1985_v26  ;;  %8739 = vmatmul.msk.f32.gmra.mxu1 %vm363_vm0, %v2363_v3  ;;  %v2968_v50 = vpop.f32.mrf.mxu2  ;;  %v2743_v3 = vld [vmem:[#allocation2 + $0x150] sm:$0xff] }
 0x2fe   : >> { %v3063_v58 = vadd.f32 %v2968_v50, %v2681_v51  ;;  %v3127_v51 = vld [vmem:[#allocation2 + $0x161] sm:$0xff]  ;;  %v2367_v50 = vld [vmem:[#allocation2 + $0x16e] sm:$0xff] }
 0x2ff   : >> { %v3350_v26 = vpop.f32.mrf.mxu3 }
 0x300   : >> { %v10782_v31 = vadd.f32 %v3350_v26, %v3063_v58  ;;  %v3472_v58 = vld [vmem:[#allocation2 + $0x3a] sm:$0xff]  ;;  %v3128_v26 = vld [vmem:[#allocation2 + $0x169] sm:$0xff] }
 0x301   : >> { %8784 = vmatmul.msk.f32.gmra.mxu2 %vm363_vm0, %v2743_v3 }
 0x302   : >> { %v10771_v46 = vpop.f32.mrf.mxu0 }
 0x304   : >> { %8831 = vmatmul.msk.f32.gmra.mxu3 %vm363_vm0, %v3125_v2  ;;  %v2368_v2 = vld [vmem:[#allocation2 + $0x176] sm:$0x3f] }
 0x305   : >> { %8697 = vmatmul.msk.f32.gmra.mxu0 %vm363_vm0, %v1986_v47  ;;  %8740 = vmatmul.msk.f32.gmra.mxu1 %vm363_vm0, %v2364_v11  ;;  %v3471_v47 = vld [vmem:[#allocation2 + $0x32] sm:$0xff]  ;;  %v2745_v11 = vld [vmem:[#allocation2 + $0x160] sm:$0xff] }
 0x309   : >> { %8785 = vmatmul.msk.f32.gmra.mxu2 %vm363_vm0, %v2744_v36  ;;  %v3129_v36 = vld [vmem:[#allocation2 + $0x171] sm:$0xff] }
 0x30a   : >> { %v10785_v5 = vpop.f32.mrf.mxu0 }
 0x30c   : >> { %8832 = vmatmul.msk.f32.gmra.mxu3 %vm363_vm0, %v3126_v28 }
 0x30d   : >> { %8741 = vmatmul.msk.f32.gmra.mxu1 %vm363_vm0, %v2365_v52  ;;  %8841 = vmatmul.msk.f32.vlgmr.msra.gmra.mxu0 %vm363_vm0, %v3470_v48  ;;  %v3473_v52 = vld [vmem:[#allocation2 + $0x42] sm:$0xff]  ;;  %v2747_v48 = vld [vmem:[#allocation2 + $0x170] sm:$0xff] }
 0x311   : >> { %8786 = vmatmul.msk.f32.gmra.mxu2 %vm363_vm0, %v2745_v11  ;;  %v4201_v11 = vld [vmem:[%s12902_s3 + $0x30] sm:$0xff] }
 0x312   : >> { %v10791_v49 = vpop.f32.mrf.mxu0  ;;  %4418 = vmatpush.msrb.mxu2 %v4201_v11 }
 0x313   : >> { %12951 = vst [vmem:[#allocation27_spill] sm:$0xff] %v10791_v49 }
 0x314   : >> { %8833 = vmatmul.msk.f32.gmra.mxu3 %vm363_vm0, %v3127_v51  ;;  %v8936_v51 = vld [vmem:[%s12902_s3 + $0xb0] sm:$0xff] }
 0x315   : >> { %8742 = vmatmul.msk.f32.gmra.mxu1 %vm363_vm0, %v2366_v22  ;;  %8842 = vmatmul.msk.f32.gmra.mxu0 %vm363_vm0, %v3471_v47  ;;  %v3474_v22 = vld [vmem:[#allocation2 + $0x4a] sm:$0xff]  ;;  %v2748_v47 = vld [vmem:[#allocation2 + $0x178] sm:$0xff] }
 0x316   : >> { %4570 = vmatpush.msrb.mxu3 %v8936_v51  ;;  %v3477_v51 = vld [vmem:[#allocation2 + $0x62] sm:$0xff] }
 0x319   : >> { %8787 = vmatmul.msk.f32.gmra.mxu2 %vm363_vm0, %v2746_v35 }
 0x31a   : >> { %v10797_v21 = vpop.f32.mrf.mxu0 }
 0x31b   : >> { %12952 = vst [vmem:[#allocation28_spill] sm:$0xff] %v10797_v21  ;;  %v4482_v21 = vld [vmem:[#allocation3 + $0x12] sm:$0xff] }
 0x31c   : >> { %8834 = vmatmul.msk.f32.gmra.mxu3 %vm363_vm0, %v3128_v26  ;;  %v3475_v26 = vld [vmem:[#allocation2 + $0x52] sm:$0xff] }
 0x31d   : >> { %8743 = vmatmul.msk.f32.gmra.mxu1 %vm363_vm0, %v2367_v50  ;;  %8843 = vmatmul.msk.f32.gmra.mxu0 %vm363_vm0, %v3472_v58  ;;  %v8892_v50 = vld [vmem:[%s12902_s3 + $0x70] sm:$0xff]  ;;  %v3130_v58 = vld [vmem:[#allocation2 + $0x179] sm:$0xff] }
 0x31e   : >> { %4293 = vmatpush.msra.mxu1 %v8892_v50 }
 0x321   : >> { %8788 = vmatmul.msk.f32.gmra.mxu2 %vm363_vm0, %v2747_v48 }
 0x322   : >> { %v10803_v3 = vpop.f32.mrf.mxu0 }
 0x323   : >> { %12953 = vst [vmem:[#allocation29_spill] sm:$0xff] %v10803_v3 }
 0x324   : >> { %8835 = vmatmul.msk.f32.gmra.mxu3 %vm363_vm0, %v3129_v36  ;;  %v3476_v36 = vld [vmem:[#allocation2 + $0x5a] sm:$0xff] }
 0x325   : >> { %8744 = vmatmul.msk.f32.gmra.mxu1 %vm363_vm0, %v2368_v2  ;;  %8844 = vmatmul.msk.f32.gmra.mxu0 %vm363_vm0, %v3473_v52  ;;  %v2749_v2 = vld [vmem:[#allocation2 + $0x180] sm:$0xff] }
 0x326   : >> { %v3131_v52 = vld [vmem:[#allocation2 + $0x181] sm:$0xff] }
 0x329   : >> { %8789 = vmatmul.msk.f32.gmra.mxu2 %vm363_vm0, %v2748_v47  ;;  %v3132_v47 = vld [vmem:[#allocation2 + $0x189] sm:$0x3f] }
 0x32a   : >> { %v10809_v28 = vpop.f32.mrf.mxu0 }
 0x32b   : >> { %12954 = vst [vmem:[#allocation30_spill] sm:$0xff] %v10809_v28 }
 0x32c   : >> { %8836 = vmatmul.msk.f32.gmra.mxu3 %vm363_vm0, %v3130_v58  ;;  %v3478_v58 = vld [vmem:[#allocation2 + $0x6a] sm:$0xff] }
 0x32d   : >> { %8845 = vmatmul.msk.f32.gmra.mxu0 %vm363_vm0, %v3474_v22  ;;  %v2750_v22 = vld [vmem:[#allocation2 + $0x188] sm:$0x3f] }
 0x331   : >> { %8790 = vmatmul.msk.f32.gmra.mxu2 %vm363_vm0, %v2749_v2  ;;  %v3479_v2 = vld [vmem:[#allocation2 + $0x72] sm:$0xff] }
 0x332   : >> { %v10823_v35 = vpop.f32.mrf.mxu0 }
 0x333   : >> { %12955 = vst [vmem:[#allocation31_spill] sm:$0xff] %v10823_v35  ;;  %v4481_v35 = vld [vmem:[#allocation3 + $0xa] sm:$0xff] }
 0x334   : >> { %8837 = vmatmul.msk.f32.gmra.mxu3 %vm363_vm0, %v3131_v52 }
 0x335   : >> { %8846 = vmatmul.msk.f32.gmra.mxu0 %vm363_vm0, %v3475_v26 }
 0x339   : >> { %8791 = vmatmul.msk.f32.gmra.mxu2 %vm363_vm0, %v2750_v22  ;;  %v4200_v22 = vld [vmem:[%s12902_s3 + $0x28] sm:$0xff] }
 0x33a   : >> { %v10828_v48 = vpop.f32.mrf.mxu0  ;;  %4419 = vmatpush.msrb.mxu2 %v4200_v22  ;;  %v3482_v22 = vld [vmem:[#allocation2 + $0x8a] sm:$0xff] }
 0x33b   : >> { %12956 = vst [vmem:[#allocation32_spill] sm:$0xff] %v10828_v48  ;;  %v3487_v48 = vld [vmem:[#allocation2 + $0xb2] sm:$0xff] }
 0x33c   : >> { %8838 = vmatmul.msk.f32.gmra.mxu3 %vm363_vm0, %v3132_v47  ;;  %v8935_v47 = vld [vmem:[%s12902_s3 + $0xa8] sm:$0xff] }
 0x33d   : >> { %8847 = vmatmul.msk.f32.gmra.mxu0 %vm363_vm0, %v3476_v36  ;;  %v3480_v36 = vld [vmem:[#allocation2 + $0x7a] sm:$0xff]  ;;  %4571 = vmatpush.msrb.mxu3 %v8935_v47 }
 0x342   : >> { %v10833_v11 = vpop.f32.mrf.mxu0 }
 0x343   : >> { %12957 = vst [vmem:[#allocation33_spill] sm:$0xff] %v10833_v11  ;;  %v3484_v11 = vld [vmem:[#allocation2 + $0x9a] sm:$0xff] }
 0x345   : >> { %8848 = vmatmul.msk.f32.gmra.mxu0 %vm363_vm0, %v3477_v51  ;;  %v8891_v51 = vld [vmem:[%s12902_s3 + $0x68] sm:$0xff] }
 0x346   : >> { %4294 = vmatpush.msra.mxu1 %v8891_v51 }
 0x34a   : >> { %v10837_v50 = vpop.f32.mrf.mxu0 }
 0x34b   : >> { %12958 = vst [vmem:[#allocation34_spill] sm:$0xff] %v10837_v50 }
 0x34d   : >> { %8849 = vmatmul.msk.f32.gmra.mxu0 %vm363_vm0, %v3478_v58 }
 0x352   : >> { %v10840_v26 = vpop.f32.mrf.mxu0 }
 0x353   : >> { %12959 = vst [vmem:[#allocation35_spill] sm:$0xff] %v10840_v26  ;;  %v10899_v26 = vpop.f32.mrf.mxu2 }
 0x355   : >> { %8850 = vmatmul.msk.f32.gmra.mxu0 %vm363_vm0, %v3479_v2  ;;  %v3481_v2 = vld [vmem:[#allocation2 + $0x82] sm:$0xff] }
 0x35a   : >> { %v10843_v52 = vpop.f32.mrf.mxu0 }
 0x35b   : >> { %12960 = vst [vmem:[#allocation36_spill] sm:$0xff] %v10843_v52  ;;  %v3483_v52 = vld [vmem:[#allocation2 + $0x92] sm:$0xff]  ;;  %v10928_v50 = vpop.f32.mrf.mxu2 }
 0x35d   : >> { %8851 = vmatmul.msk.f32.gmra.mxu0 %vm363_vm0, %v3480_v36 }
 0x362   : >> { %v10855_v58 = vpop.f32.mrf.mxu0 }
 0x363   : >> { %12961 = vst [vmem:[#allocation37_spill] sm:$0xff] %v10855_v58  ;;  %v3485_v58 = vld [vmem:[#allocation2 + $0xa2] sm:$0xff] }
 0x365   : >> { %8852 = vmatmul.msk.f32.gmra.mxu0 %vm363_vm0, %v3481_v2  ;;  %v8890_v2 = vld [vmem:[%s12902_s3 + $0x60] sm:$0xff] }
 0x366   : >> { %4295 = vmatpush.msra.mxu1 %v8890_v2  ;;  %v8888_v2 = vld [vmem:[%s12902_s3 + $0x50] sm:$0xff] }
 0x36a   : >> { %v10858_v19 = vpop.f32.mrf.mxu0 }
 0x36b   : >> { %12962 = vst [vmem:[#allocation38_spill] sm:$0xff] %v10858_v19 }
 0x36d   : >> { %8853 = vmatmul.msk.f32.gmra.mxu0 %vm363_vm0, %v3482_v22  ;;  %v4199_v22 = vld [vmem:[%s12902_s3 + $0x20] sm:$0xff] }
 0x36e   : >> { %4420 = vmatpush.msrb.mxu2 %v4199_v22  ;;  %v4197_v22 = vld [vmem:[%s12902_s3 + $0x10] sm:$0xff] }
 0x372   : >> { %v10861_v36 = vpop.f32.mrf.mxu0 }
 0x373   : >> { %12963 = vst [vmem:[#allocation39_spill] sm:$0xff] %v10861_v36  ;;  %v10897_v36 = vpop.f32.mrf.mxu1 }
 0x375   : >> { %8854 = vmatmul.msk.f32.gmra.mxu0 %vm363_vm0, %v3483_v52  ;;  %v8934_v52 = vld [vmem:[%s12902_s3 + $0xa0] sm:$0xff] }
 0x376   : >> { %4572 = vmatpush.msrb.mxu3 %v8934_v52  ;;  %v8932_v52 = vld [vmem:[%s12902_s3 + $0x90] sm:$0xff] }
 0x37a   : >> { %v10864_v47 = vpop.f32.mrf.mxu0 }
 0x37b   : >> { %12964 = vst [vmem:[#allocation40_spill] sm:$0xff] %v10864_v47  ;;  %v3486_v47 = vld [vmem:[#allocation2 + $0xaa] sm:$0xff]  ;;  %v10926_v53 = vpop.f32.mrf.mxu1 }
 0x37d   : >> { %8855 = vmatmul.msk.f32.gmra.mxu0 %vm363_vm0, %v3484_v11  ;;  %v8889_v11 = vld [vmem:[%s12902_s3 + $0x58] sm:$0xff] }
 0x37e   : >> { %4296 = vmatpush.msra.mxu1 %v8889_v11  ;;  %v4196_v11 = vld [vmem:[%s12902_s3 + $0x8] sm:$0xff] }
 0x380   : >> { %4297 = vmatpush.msra.mxu1 %v8888_v2  ;;  %v8931_v2 = vld [vmem:[%s12902_s3 + $0x88] sm:$0xff] }
 0x382   : >> { %v10867_v51 = vpop.f32.mrf.mxu0 }
 0x383   : >> { %12965 = vst [vmem:[#allocation41_spill] sm:$0xff] %v10867_v51  ;;  %v8933_v51 = vld [vmem:[%s12902_s3 + $0x98] sm:$0xff]  ;;  %v10942_v20 = vpop.f32.mrf.mxu1 }
 0x384   : >> { %4573 = vmatpush.msrb.mxu3 %v8933_v51  ;;  %v8887_v51 = vld [vmem:[%s12902_s3 + $0x48] sm:$0xff] }
 0x385   : >> { %8856 = vmatmul.msk.f32.gmra.mxu0 %vm363_vm0, %v3485_v58  ;;  %v4198_v58 = vld [vmem:[%s12902_s3 + $0x18] sm:$0xff]  ;;  %4298 = vmatpush.msra.mxu1 %v8887_v51 }
 0x386   : >> { %4421 = vmatpush.msrb.mxu2 %v4198_v58  ;;  %4574 = vmatpush.msrb.mxu3 %v8932_v52  ;;  %v10908_v58 = vpop.f32.mrf.mxu3  ;;  %v8930_v52 = vld [vmem:[%s12902_s3 + $0x80] sm:$0xff]  ;;  %v4203_v51 = vld [vmem:[#allocation3 + $0x1] sm:$0xff] }
 0x388   : >> { %4422 = vmatpush.msrb.mxu2 %v4197_v22  ;;  %4575 = vmatpush.msrb.mxu3 %v8931_v2  ;;  %v4195_v22 = vld [vmem:[%s12902_s3] sm:$0xff] }
 0x38a   : >> { %v3672_v19 = vpop.f32.mrf.mxu0  ;;  %4423 = vmatpush.msrb.mxu2 %v4196_v11  ;;  %v4177_v11 = vld [vmem:[#allocation3] sm:$0xff]  ;;  %4576 = vmatpush.msrb.mxu3 %v8930_v52 }
 0x38b   : >> { %8938 = vmatmul.msk.f32.vlgmr.msrb.gmra.mxu3 %vm393_vm3, %v4480_v63 }
 0x38c   : >> { %4424 = vmatpush.msrb.mxu2 %v4195_v22  ;;  %v4204_v22 = vld [vmem:[#allocation3 + $0x9] sm:$0xff] }
 0x38d   : >> { %8857 = vmatmul.msk.f32.gmra.mxu0 %vm363_vm0, %v3486_v47  ;;  %v8886_v47 = vld [vmem:[%s12902_s3 + $0x40] sm:$0xff]  ;;  %8912 = vmatmul.msk.f32.vlgmr.msrb.gmra.mxu2 %vm393_vm3, %v4177_v11 }
 0x38e   : >> { %4299 = vmatpush.msra.mxu1 %v8886_v47  ;;  %v10930_v47 = vpop.f32.mrf.mxu3  ;;  %v4205_v11 = vld [vmem:[#allocation3 + $0x11] sm:$0xff] }
 0x38f   : >> { %8894 = vmatmul.msk.f32.vlgmr.msra.gmra.mxu1 %vm393_vm3, %v4203_v51  ;;  %v3488_v51 = vld [vmem:[#allocation2 + $0xba] sm:$0xff] }
 0x392   : >> { %v3675_v2 = vpop.f32.mrf.mxu0 }
 0x393   : >> { %8939 = vmatmul.msk.f32.gmra.mxu3 %vm393_vm3, %v4481_v35 }
 0x395   : >> { %8858 = vmatmul.msk.f32.gmra.mxu0 %vm363_vm0, %v3487_v48  ;;  %8913 = vmatmul.msk.f32.gmra.mxu2 %vm393_vm3, %v4178_v39  ;;  %v10940_v48 = vld [vmem:[%s12966_s2] ss:$0 sm:$0xff] }
 0x396   : >> { %v10948_v35 = vpop.f32.mrf.mxu3 }
 0x397   : >> { %8895 = vmatmul.msk.f32.gmra.mxu1 %vm393_vm3, %v4204_v22  ;;  %v10944_v22 = vpop.f32.mrf.mxu2 }
 0x39a   : >> { %v3678_v52 = vpop.f32.mrf.mxu0 }
 0x39b   : >> { %v3809_v63 = vadd.f32 %v3678_v52, %v10590_v1  ;;  %v3807_v1 = vadd.f32 %v3672_v19, %v10566_v32  ;;  %8940 = vmatmul.msk.f32.gmra.mxu3 %vm393_vm3, %v4482_v21  ;;  %v3808_v32 = vadd.f32 %v3675_v2, %v10579_v44  ;;  %v3491_v2 = vld [vmem:[#allocation2 + $0xd2] sm:$0xff] }
 0x39d   : >> { %8859 = vmatmul.msk.f32.gmra.mxu0 %vm363_vm0, %v3488_v51  ;;  %v3858_v39 = vadd.f32 %v10940_v48, %v3809_v63  ;;  %v3489_v51 = vld [vmem:[#allocation2 + $0xc2] sm:$0xff]  ;;  %8914 = vmatmul.msk.f32.gmra.mxu2 %vm393_vm3, %v4179_v57  ;;  %v3856_v63 = vadd.f32 %v10940_v48, %v3807_v1  ;;  %v3490_v57 = vld [vmem:[#allocation2 + $0xca] sm:$0xff]  ;;  %v3857_v1 = vadd.f32 %v10940_v48, %v3808_v32 }
 0x39f   : >> { %8896 = vmatmul.msk.f32.gmra.mxu1 %vm393_vm3, %v4205_v11  ;;  %v3903_v7 = vmax.f32 %v3858_v39, 0.0  ;;  %v3901_v19 = vmax.f32 %v3856_v63, 0.0 }
 0x3a1   : >> { %v3950_v27 = vrot.slane %v3903_v7, 4 }
 0x3a2   : >> { %v3681_v52 = vpop.f32.mrf.mxu0 }
 0x3a3   : >> { %v3810_v28 = vadd.f32 %v3681_v52, %v10601_v37 }
 0x3a5   : >> { %v3859_v49 = vadd.f32 %v10940_v48, %v3810_v28  ;;  %8860 = vmatmul.msk.f32.gmra.mxu0 %vm363_vm0, %v3489_v51  ;;  %v3902_v51 = vmax.f32 %v3857_v1, 0.0  ;;  %v10973_v1 = vpop.f32.mrf.mxu1 }
 0x3a7   : >> { %v3904_v11 = vmax.f32 %v3859_v49, 0.0 }
 0x3a9   : >> { %v3951_v3 = vrot.slane %v3904_v11, 4 }
 0x3aa   : >> { %v3684_v4 = vpop.f32.mrf.mxu0 }
 0x3ab   : >> { %v3952_v21 = vsel %vm3949_vm8, %v3950_v27, %v3951_v3  ;;  %v3811_v37 = vadd.f32 %v3684_v4, %v10612_v62  ;;  %v3492_v62 = vld [vmem:[#allocation2 + $0xda] sm:$0xff] }
 0x3ac   : >> { %v3958_v39 = vmax.f32 %v3901_v19, %v3952_v21 }
 0x3ad   : >> { %v3860_v28 = vadd.f32 %v10940_v48, %v3811_v37  ;;  %8861 = vmatmul.msk.f32.gmra.mxu0 %vm363_vm0, %v3490_v57 }
 0x3ae   : >> { %3961 = vst.msk [vmem:[#allocation6] sm:$0xff] %vm393_vm3, %v3958_v39 }
 0x3af   : >> { %v3905_v49 = vmax.f32 %v3860_v28, 0.0 }
 0x3b1   : >> { %v3953_v52 = vrot.slane %v3905_v49, 4  ;;  %v10975_v49 = vpop.f32.mrf.mxu2 }
 0x3b2   : >> { %v3687_v44 = vpop.f32.mrf.mxu0 }
 0x3b3   : >> { %v3954_v63 = vsel %vm3949_vm8, %v3951_v3, %v3953_v52  ;;  %v3960_v27 = vmax.f32 %v3903_v7, %v3953_v52  ;;  %v3493_v3 = vld [vmem:[#allocation2 + $0xe2] sm:$0xff] }
 0x3b4   : >> { %v3959_v11 = vmax.f32 %v3902_v51, %v3954_v63  ;;  %v10979_v63 = vpop.f32.mrf.mxu3 }
 0x3b5   : >> { %3964 = vst.msk [vmem:[#allocation6 + $0x10] sm:$0x3] %vm3963_vm9, %v3960_v27  ;;  %8862 = vmatmul.msk.f32.gmra.mxu0 %vm363_vm0, %v3491_v2 }
 0x3b6   : >> { %3962 = vst.msk [vmem:[#allocation6 + $0x8] sm:$0xff] %vm393_vm3, %v3959_v11 }
 0x3ba   : >> { %v3690_v4 = vpop.f32.mrf.mxu0 }
 0x3bc   : >> { %v3967_v19 = vld [vmem:[#allocation6 + $0x10] ss:$2 sm:$0x1]  ;;  %v3971_v32 = vld [vmem:[#allocation6 + $0x11] ss:$2 sm:$0x1] }
 0x3bd   : >> { %v3965_v57 = vld [vmem:[#allocation6] ss:$2 sm:$0xff]  ;;  %v3969_v21 = vld [vmem:[#allocation6 + $0x1] ss:$2 sm:$0xff]  ;;  %8863 = vmatmul.msk.f32.gmra.mxu0 %vm363_vm0, %v3492_v62  ;;  %v3973_v37 = vmax.f32 %v3967_v19, %v3971_v32 }
 0x3be   : >> { %v3972_v39 = vmax.f32 %v3965_v57, %v3969_v21  ;;  %v3494_v62 = vld [vmem:[#allocation2 + $0xea] sm:$0xff] }
 0x3bf   : >> { %3976 = vst.msk [vmem:[#allocation3 + $0x24] sm:$0x1] %vm3975_vm10, %v3973_v37 }
 0x3c0   : >> { %3974 = vst.msk [vmem:[#allocation3 + $0x1c] sm:$0xff] %vm393_vm3, %v3972_v39 }
 0x3c2   : >> { %v3693_v7 = vpop.f32.mrf.mxu0 }
 0x3c3   : >> { %v3814_v28 = vadd.f32 %v3693_v7, %v10643_v55  ;;  %v3812_v55 = vadd.f32 %v3687_v44, %v10623_v16 }
 0x3c5   : >> { %8864 = vmatmul.msk.f32.gmra.mxu0 %vm363_vm0, %v3493_v3  ;;  %v3863_v27 = vadd.f32 %v10940_v48, %v3814_v28  ;;  %v3861_v21 = vadd.f32 %v10940_v48, %v3812_v55  ;;  %v10988_v3 = vpop.f32.mrf.mxu1  ;;  %v10990_v28 = vpop.f32.mrf.mxu2 }
 0x3c7   : >> { %v4206_v52 = vld [vmem:[#allocation3 + $0x19] sm:$0xff]  ;;  %v3908_v32 = vmax.f32 %v3863_v27, 0.0  ;;  %v4207_v39 = vld [vmem:[#allocation3 + $0x21] sm:$0xff]  ;;  %v3906_v44 = vmax.f32 %v3861_v21, 0.0 }
 0x3c8   : >> { %v4180_v51 = vld [vmem:[#allocation3 + $0x18] sm:$0xff]  ;;  %8897 = vmatmul.msk.f32.gmra.mxu1 %vm393_vm3, %v4206_v52  ;;  %v4181_v7 = vld [vmem:[#allocation3 + $0x20] sm:$0xff]  ;;  %v3813_v52 = vadd.f32 %v3690_v4, %v10633_v25  ;;  %v3496_v25 = vld [vmem:[#allocation2 + $0xfa] sm:$0xff] }
 0x3c9   : >> { %v4483_v2 = vld [vmem:[#allocation3 + $0x1a] sm:$0xff]  ;;  %8915 = vmatmul.msk.f32.gmra.mxu2 %vm393_vm3, %v4180_v51  ;;  %v3980_v16 = vrot.slane %v3908_v32, 4 }
 0x3ca   : >> { %8941 = vmatmul.msk.f32.gmra.mxu3 %vm393_vm3, %v4483_v2  ;;  %v3696_v11 = vpop.f32.mrf.mxu0  ;;  %v3495_v2 = vld [vmem:[#allocation2 + $0xf2] sm:$0xff] }
 0x3cb   : >> { %v3815_v19 = vadd.f32 %v3696_v11, %v10653_v9 }
 0x3cd   : >> { %v3864_v57 = vadd.f32 %v10940_v48, %v3815_v19  ;;  %8865 = vmatmul.msk.f32.gmra.mxu0 %vm363_vm0, %v3494_v62  ;;  %v3862_v19 = vadd.f32 %v10940_v48, %v3813_v52 }
 0x3cf   : >> { %v3909_v37 = vmax.f32 %v3864_v57, 0.0  ;;  %v3907_v21 = vmax.f32 %v3862_v19, 0.0  ;;  %v11010_v19 = vpop.f32.mrf.mxu3 }
 0x3d0   : >> { %8898 = vmatmul.msk.f32.gmra.mxu1 %vm393_vm3, %v4207_v39 }
 0x3d1   : >> { %8916 = vmatmul.msk.f32.gmra.mxu2 %vm393_vm3, %v4181_v7  ;;  %v3981_v9 = vrot.slane %v3909_v37, 4 }
 0x3d2   : >> { %v3699_v51 = vpop.f32.mrf.mxu0 }
 0x3d3   : >> { %v3982_v27 = vsel %vm3949_vm8, %v3980_v16, %v3981_v9  ;;  %v3816_v55 = vadd.f32 %v3699_v51, %v10663_v6 }
 0x3d4   : >> { %v3988_v11 = vmax.f32 %v3906_v44, %v3982_v27  ;;  %v3497_v44 = vld [vmem:[#allocation2 + $0x102] sm:$0xff] }
 0x3d5   : >> { %v3865_v62 = vadd.f32 %v10940_v48, %v3816_v55  ;;  %8866 = vmatmul.msk.f32.gmra.mxu0 %vm363_vm0, %v3495_v2 }
 0x3d6   : >> { %3991 = vst.msk [vmem:[#allocation6] sm:$0xff] %vm393_vm3, %v3988_v11 }
 0x3d7   : >> { %v3910_v57 = vmax.f32 %v3865_v62, 0.0 }
 0x3d9   : >> { %v3983_v37 = vrot.slane %v3910_v57, 4 }
 0x3da   : >> { %v3702_v39 = vpop.f32.mrf.mxu0 }
 0x3db   : >> { %v3984_v4 = vsel %vm3949_vm8, %v3981_v9, %v3983_v37  ;;  %v3990_v7 = vmax.f32 %v3908_v32, %v3983_v37  ;;  %v3498_v9 = vld [vmem:[#allocation2 + $0x10a] sm:$0xff] }
 0x3dc   : >> { %v3989_v16 = vmax.f32 %v3907_v21, %v3984_v4  ;;  %v11014_v4 = vpop.f32.mrf.mxu2 }
 0x3dd   : >> { %3993 = vst.msk [vmem:[#allocation6 + $0x10] sm:$0x3] %vm3963_vm9, %v3990_v7  ;;  %8867 = vmatmul.msk.f32.gmra.mxu0 %vm363_vm0, %v3496_v25  ;;  %v11012_v25 = vpop.f32.mrf.mxu1 }
 0x3de   : >> { %3992 = vst.msk [vmem:[#allocation6 + $0x8] sm:$0xff] %vm393_vm3, %v3989_v16 }
 0x3e2   : >> { %v3705_v6 = vpop.f32.mrf.mxu0 }
 0x3e4   : >> { %v3995_v52 = vld [vmem:[#allocation6 + $0x10] ss:$2 sm:$0x1]  ;;  %v3997_v51 = vld [vmem:[#allocation6 + $0x11] ss:$2 sm:$0x1] }
 0x3e5   : >> { %v3994_v2 = vld [vmem:[#allocation6] ss:$2 sm:$0xff]  ;;  %v3996_v27 = vld [vmem:[#allocation6 + $0x1] ss:$2 sm:$0xff]  ;;  %8868 = vmatmul.msk.f32.gmra.mxu0 %vm363_vm0, %v3497_v44  ;;  %v3999_v55 = vmax.f32 %v3995_v52, %v3997_v51 }
 0x3e6   : >> { %v3998_v11 = vmax.f32 %v3994_v2, %v3996_v27  ;;  %v3499_v44 = vld [vmem:[#allocation2 + $0x112] sm:$0xff] }
 0x3e7   : >> { %4001 = vst.msk [vmem:[#allocation3 + $0x31] sm:$0x1] %vm3975_vm10, %v3999_v55 }
 0x3e8   : >> { %4000 = vst.msk [vmem:[#allocation3 + $0x29] sm:$0xff] %vm393_vm3, %v3998_v11 }
 0x3ea   : >> { %v3708_v32 = vpop.f32.mrf.mxu0 }
 0x3eb   : >> { %v3819_v62 = vadd.f32 %v3708_v32, %v10693_v29  ;;  %v3817_v29 = vadd.f32 %v3702_v39, %v10673_v56  ;;  %v11025_v32 = vpop.f32.mrf.mxu3  ;;  %v3818_v39 = vadd.f32 %v3705_v6, %v10683_v38  ;;  %v3501_v38 = vld [vmem:[#allocation2 + $0x122] sm:$0xff] }
 0x3ed   : >> { %8869 = vmatmul.msk.f32.gmra.mxu0 %vm363_vm0, %v3498_v9  ;;  %v3868_v7 = vadd.f32 %v10940_v48, %v3819_v62  ;;  %v3866_v27 = vadd.f32 %v10940_v48, %v3817_v29 }
 0x3ef   : >> { %v4208_v57 = vld [vmem:[#allocation3 + $0x29] sm:$0xff]  ;;  %v3913_v51 = vmax.f32 %v3868_v7, 0.0  ;;  %v3911_v56 = vmax.f32 %v3866_v27, 0.0 }
 0x3f0   : >> { %v4182_v37 = vld [vmem:[#allocation3 + $0x28] sm:$0xff]  ;;  %8899 = vmatmul.msk.f32.gmra.mxu1 %vm393_vm3, %v4208_v57 }
 0x3f1   : >> { %v4484_v21 = vld [vmem:[#allocation3 + $0x22] sm:$0xff]  ;;  %8917 = vmatmul.msk.f32.gmra.mxu2 %vm393_vm3, %v4182_v37  ;;  %v4485_v11 = vld [vmem:[#allocation3 + $0x2a] sm:$0xff]  ;;  %v4005_v9 = vrot.slane %v3913_v51, 4 }
 0x3f2   : >> { %8942 = vmatmul.msk.f32.gmra.mxu3 %vm393_vm3, %v4484_v21  ;;  %v3711_v16 = vpop.f32.mrf.mxu0 }
 0x3f3   : >> { %v3820_v52 = vadd.f32 %v3711_v16, %v10703_v0  ;;  %v3500_v0 = vld [vmem:[#allocation2 + $0x11a] sm:$0xff]  ;;  %v3867_v16 = vadd.f32 %v10940_v48, %v3818_v39 }
 0x3f5   : >> { %v3869_v2 = vadd.f32 %v10940_v48, %v3820_v52  ;;  %8870 = vmatmul.msk.f32.gmra.mxu0 %vm363_vm0, %v3499_v44 }
 0x3f7   : >> { %v3914_v55 = vmax.f32 %v3869_v2, 0.0  ;;  %v3912_v2 = vmax.f32 %v3867_v16, 0.0  ;;  %v11046_v16 = vpop.f32.mrf.mxu2 }
 0x3f9   : >> { %v4006_v62 = vrot.slane %v3914_v55, 4 }
 0x3fa   : >> { %8943 = vmatmul.msk.f32.gmra.mxu3 %vm393_vm3, %v4485_v11  ;;  %v3714_v57 = vpop.f32.mrf.mxu0 }
 0x3fb   : >> { %v4007_v37 = vsel %vm3949_vm8, %v4005_v9, %v4006_v62  ;;  %v3821_v21 = vadd.f32 %v3714_v57, %v10713_v45  ;;  %v3502_v9 = vld [vmem:[#allocation2 + $0x12a] sm:$0xff] }
 0x3fc   : >> { %v4013_v7 = vmax.f32 %v3911_v56, %v4007_v37 }
 0x3fd   : >> { %v3870_v29 = vadd.f32 %v10940_v48, %v3821_v21  ;;  %8871 = vmatmul.msk.f32.gmra.mxu0 %vm363_vm0, %v3500_v0 }
 0x3fe   : >> { %4016 = vst.msk [vmem:[#allocation6] sm:$0xff] %vm393_vm3, %v4013_v7 }
 0x3ff   : >> { %v3915_v44 = vmax.f32 %v3870_v29, 0.0  ;;  %v11044_v29 = vpop.f32.mrf.mxu1 }
 0x401   : >> { %v4008_v52 = vrot.slane %v3915_v44, 4  ;;  %v11048_v44 = vpop.f32.mrf.mxu3 }
 0x402   : >> { %v3717_v27 = vpop.f32.mrf.mxu0 }
 0x403   : >> { %v4009_v6 = vsel %vm3949_vm8, %v4006_v62, %v4008_v52  ;;  %v4015_v55 = vmax.f32 %v3913_v51, %v4008_v52  ;;  %v3503_v62 = vld [vmem:[#allocation2 + $0x132] sm:$0xff] }
 0x404   : >> { %v4014_v11 = vmax.f32 %v3912_v2, %v4009_v6 }
 0x405   : >> { %4018 = vst.msk [vmem:[#allocation6 + $0x10] sm:$0x3] %vm3963_vm9, %v4015_v55  ;;  %8872 = vmatmul.msk.f32.gmra.mxu0 %vm363_vm0, %v3501_v38 }
 0x406   : >> { %4017 = vst.msk [vmem:[#allocation6 + $0x8] sm:$0xff] %vm393_vm3, %v4014_v11  ;;  %v3504_v11 = vld [vmem:[#allocation2 + $0x13a] sm:$0xff] }
 0x40a   : >> { %v3720_v45 = vpop.f32.mrf.mxu0 }
 0x40c   : >> { %v4020_v56 = vld [vmem:[#allocation6 + $0x10] ss:$2 sm:$0x1]  ;;  %v4022_v39 = vld [vmem:[#allocation6 + $0x11] ss:$2 sm:$0x1] }
 0x40d   : >> { %v4019_v57 = vld [vmem:[#allocation6] ss:$2 sm:$0xff]  ;;  %v4021_v0 = vld [vmem:[#allocation6 + $0x1] ss:$2 sm:$0xff]  ;;  %8873 = vmatmul.msk.f32.gmra.mxu0 %vm363_vm0, %v3502_v9  ;;  %v4024_v37 = vmax.f32 %v4020_v56, %v4022_v39 }
 0x40e   : >> { %v4023_v21 = vmax.f32 %v4019_v57, %v4021_v0 }
 0x40f   : >> { %4026 = vst.msk [vmem:[#allocation3 + $0x3e] sm:$0x1] %vm3975_vm10, %v4024_v37 }
 0x410   : >> { %4025 = vst.msk [vmem:[#allocation3 + $0x36] sm:$0xff] %vm393_vm3, %v4023_v21 }
 0x412   : >> { %v3723_v51 = vpop.f32.mrf.mxu0 }
 0x413   : >> { %v3824_v7 = vadd.f32 %v3723_v51, %v10743_v14  ;;  %v3822_v14 = vadd.f32 %v3717_v27, %v10723_v41  ;;  %v11059_v51 = vpop.f32.mrf.mxu1 }
 0x415   : >> { %8874 = vmatmul.msk.f32.gmra.mxu0 %vm363_vm0, %v3503_v62  ;;  %v3873_v6 = vadd.f32 %v10940_v48, %v3824_v7  ;;  %v3871_v57 = vadd.f32 %v10940_v48, %v3822_v14  ;;  %v11061_v62 = vpop.f32.mrf.mxu2 }
 0x417   : >> { %v4209_v52 = vld [vmem:[#allocation3 + $0x31] sm:$0xff]  ;;  %v3918_v56 = vmax.f32 %v3873_v6, 0.0  ;;  %v4210_v37 = vld [vmem:[#allocation3 + $0x39] sm:$0xff] }
 0x418   : >> { %v4183_v2 = vld [vmem:[#allocation3 + $0x30] sm:$0xff]  ;;  %8900 = vmatmul.msk.f32.gmra.mxu1 %vm393_vm3, %v4209_v52  ;;  %v4184_v21 = vld [vmem:[#allocation3 + $0x38] sm:$0xff]  ;;  %v3916_v52 = vmax.f32 %v3871_v57, 0.0 }
 0x419   : >> { %v4486_v38 = vld [vmem:[#allocation3 + $0x32] sm:$0xff]  ;;  %8918 = vmatmul.msk.f32.gmra.mxu2 %vm393_vm3, %v4183_v2  ;;  %v4487_v41 = vld [vmem:[#allocation3 + $0x3a] sm:$0xff]  ;;  %v4030_v27 = vrot.slane %v3918_v56, 4  ;;  %v3823_v2 = vadd.f32 %v3720_v45, %v10733_v30 }
 0x41a   : >> { %8944 = vmatmul.msk.f32.gmra.mxu3 %vm393_vm3, %v4486_v38  ;;  %v3726_v55 = vpop.f32.mrf.mxu0  ;;  %v3505_v6 = vld [vmem:[#allocation2 + $0x142] sm:$0xff]  ;;  %v3506_v30 = vld [vmem:[#allocation2 + $0x14a] sm:$0xff] }
 0x41b   : >> { %v3825_v9 = vadd.f32 %v3726_v55, %v10753_v43  ;;  %v11065_v43 = vpop.f32.mrf.mxu3 }
 0x41d   : >> { %v3874_v39 = vadd.f32 %v10940_v48, %v3825_v9  ;;  %8875 = vmatmul.msk.f32.gmra.mxu0 %vm363_vm0, %v3504_v11 }
 0x41f   : >> { %v3919_v0 = vmax.f32 %v3874_v39, 0.0  ;;  %v3872_v39 = vadd.f32 %v10940_v48, %v3823_v2  ;;  %v2301_v2 = vadd.f32 %v10708_v40, %v10289_v33  ;;  %v3508_v40 = vld [vmem:[#allocation2 + $0x15a] sm:$0xff] }
 0x420   : >> { %8901 = vmatmul.msk.f32.gmra.mxu1 %vm393_vm3, %v4210_v37 }
 0x421   : >> { %8919 = vmatmul.msk.f32.gmra.mxu2 %vm393_vm3, %v4184_v21  ;;  %v4031_v7 = vrot.slane %v3919_v0, 4  ;;  %v3917_v57 = vmax.f32 %v3872_v39, 0.0  ;;  %v2302_v39 = vadd.f32 %v10718_v10, %v10301_v54  ;;  %v11096_v54 = vpop.f32.mrf.mxu1 }
 0x422   : >> { %8945 = vmatmul.msk.f32.gmra.mxu3 %vm393_vm3, %v4487_v41  ;;  %v3729_v38 = vpop.f32.mrf.mxu0 }
 0x423   : >> { %v4032_v14 = vsel %vm3949_vm8, %v4030_v27, %v4031_v7  ;;  %v3826_v55 = vadd.f32 %v3729_v38, %v10763_v24 }
 0x424   : >> { %v4038_v11 = vmax.f32 %v3916_v52, %v4032_v14  ;;  %v3507_v52 = vld [vmem:[#allocation2 + $0x152] sm:$0xff]  ;;  %v2683_v14 = vadd.f32 %v10926_v53, %v2301_v2  ;;  %v3509_v2 = vld [vmem:[#allocation2 + $0x162] sm:$0xff] }
 0x425   : >> { %v3875_v9 = vadd.f32 %v10940_v48, %v3826_v55  ;;  %8876 = vmatmul.msk.f32.gmra.mxu0 %vm363_vm0, %v3505_v6 }
 0x426   : >> { %4041 = vst.msk [vmem:[#allocation6] sm:$0xff] %vm393_vm3, %v4038_v11 }
 0x427   : >> { %v3920_v0 = vmax.f32 %v3875_v9, 0.0  ;;  %v3065_v9 = vadd.f32 %v10928_v50, %v2683_v14 }
 0x429   : >> { %v4033_v37 = vrot.slane %v3920_v0, 4  ;;  %v2684_v0 = vadd.f32 %v10942_v20, %v2302_v39  ;;  %v3447_v53 = vadd.f32 %v10930_v47, %v3065_v9  ;;  %v2303_v20 = vadd.f32 %v10728_v13, %v10313_v12  ;;  %v11103_v47 = vpop.f32.mrf.mxu3  ;;  %v3510_v39 = vld [vmem:[#allocation2 + $0x16a] sm:$0xff] }
 0x42a   : >> { %v3732_v21 = vpop.f32.mrf.mxu0 }
 0x42b   : >> { %v4034_v45 = vsel %vm3949_vm8, %v4031_v7, %v4033_v37  ;;  %v4040_v41 = vmax.f32 %v3918_v56, %v4033_v37  ;;  %v3066_v37 = vadd.f32 %v10944_v22, %v2684_v0 }
 0x42c   : >> { %v4039_v27 = vmax.f32 %v3917_v57, %v4034_v45 }
 0x42d   : >> { %4043 = vst.msk [vmem:[#allocation6 + $0x10] sm:$0x3] %vm3963_vm9, %v4040_v41  ;;  %8877 = vmatmul.msk.f32.gmra.mxu0 %vm363_vm0, %v3506_v30  ;;  %v11092_v30 = vpop.f32.mrf.mxu2  ;;  %v3448_v10 = vadd.f32 %v10948_v35, %v3066_v37 }
 0x42e   : >> { %4042 = vst.msk [vmem:[#allocation6 + $0x8] sm:$0xff] %vm393_vm3, %v4039_v27  ;;  %v2300_v27 = vadd.f32 %v10698_v59, %v10277_v61  ;;  %v3827_v61 = vadd.f32 %v3732_v21, %v10782_v31 }
 0x432   : >> { %v3735_v24 = vpop.f32.mrf.mxu0 }
 0x434   : >> { %v4045_v38 = vld [vmem:[#allocation6 + $0x10] ss:$2 sm:$0x1]  ;;  %v4047_v6 = vld [vmem:[#allocation6 + $0x11] ss:$2 sm:$0x1] }
 0x435   : >> { %8878 = vmatmul.msk.f32.gmra.mxu0 %vm363_vm0, %v3507_v52  ;;  %v4044_v7 = vld [vmem:[#allocation6] ss:$2 sm:$0xff]  ;;  %v4046_v56 = vld [vmem:[#allocation6 + $0x1] ss:$2 sm:$0xff]  ;;  %v4049_v55 = vmax.f32 %v4045_v38, %v4047_v6  ;;  %v2682_v52 = vadd.f32 %v10897_v36, %v2300_v27  ;;  %v2685_v38 = vadd.f32 %v10973_v1, %v2303_v20  ;;  %v11116_v21 = vpop.f32.mrf.mxu2  ;;  %v11126_v27 = vpop.f32.mrf.mxu1 }
 0x436   : >> { %v4048_v11 = vmax.f32 %v4044_v7, %v4046_v56  ;;  %v3876_v7 = vadd.f32 %v10940_v48, %v3827_v61  ;;  %v2306_v61 = vadd.f32 %v10758_v17, %v10349_v15  ;;  %v2307_v17 = vadd.f32 %v10771_v46, %v10361_v18 }
 0x437   : >> { %4051 = vst.msk [vmem:[#allocation3 + $0x4b] sm:$0x1] %vm3975_vm10, %v4049_v55  ;;  %v3064_v14 = vadd.f32 %v10899_v26, %v2682_v52  ;;  %v3067_v12 = vadd.f32 %v10975_v49, %v2685_v38  ;;  %v3512_v52 = vld [vmem:[#allocation2 + $0x17a] sm:$0xff]  ;;  %v2305_v46 = vadd.f32 %v10748_v42, %v10337_v23 }
 0x438   : >> { %4050 = vst.msk [vmem:[#allocation3 + $0x43] sm:$0xff] %vm393_vm3, %v4048_v11  ;;  %v3921_v49 = vmax.f32 %v3876_v7, 0.0  ;;  %v2688_v38 = vadd.f32 %v11044_v29, %v2306_v61 }
 0x439   : >> { %v3446_v31 = vadd.f32 %v10908_v58, %v3064_v14  ;;  %v3449_v1 = vadd.f32 %v10979_v63, %v3067_v12  ;;  %v2687_v23 = vadd.f32 %v11012_v25, %v2305_v46 }
 0x43a   : >> { %v3738_v33 = vpop.f32.mrf.mxu0  ;;  %v3070_v7 = vadd.f32 %v11046_v16, %v2688_v38 }
 0x43b   : >> { %v3829_v57 = vadd.f32 %v3738_v33, %v3447_v53  ;;  %v3828_v11 = vadd.f32 %v3735_v24, %v3446_v31  ;;  %v3513_v31 = vld [vmem:[#allocation2 + $0x182] sm:$0xff] }
 0x43c   : >> { %v3452_v16 = vadd.f32 %v11048_v44, %v3070_v7  ;;  %v2308_v44 = vadd.f32 %v10785_v5, %v10373_v8 }
 0x43d   : >> { %8879 = vmatmul.msk.f32.gmra.mxu0 %vm363_vm0, %v3508_v40  ;;  %v3878_v22 = vadd.f32 %v10940_v48, %v3829_v57  ;;  %v3877_v58 = vadd.f32 %v10940_v48, %v3828_v11  ;;  %v11145_v15 = vpop.f32.mrf.mxu2 }
 0x43f   : >> { %v4211_v50 = vld [vmem:[#allocation3 + $0x41] sm:$0xff]  ;;  %v3923_v13 = vmax.f32 %v3878_v22, 0.0  ;;  %v3922_v57 = vmax.f32 %v3877_v58, 0.0 }
 0x440   : >> { %v4185_v45 = vld [vmem:[#allocation3 + $0x40] sm:$0xff]  ;;  %8902 = vmatmul.msk.f32.gmra.mxu1 %vm393_vm3, %v4211_v50  ;;  %v4186_v36 = vld [vmem:[#allocation3 + $0x48] sm:$0xff] }
 0x441   : >> { %v4488_v41 = vld [vmem:[#allocation3 + $0x42] sm:$0xff]  ;;  %8920 = vmatmul.msk.f32.gmra.mxu2 %vm393_vm3, %v4185_v45  ;;  %v4055_v26 = vrot.slane %v3923_v13, 4 }
 0x442   : >> { %8946 = vmatmul.msk.f32.gmra.mxu3 %vm393_vm3, %v4488_v41  ;;  %v3741_v59 = vpop.f32.mrf.mxu0  ;;  %v3511_v45 = vld [vmem:[#allocation2 + $0x172] sm:$0xff] }
 0x443   : >> { %v3830_v6 = vadd.f32 %v3741_v59, %v3448_v10  ;;  %v11131_v10 = vpop.f32.mrf.mxu3 }
 0x445   : >> { %v3879_v35 = vadd.f32 %v10940_v48, %v3830_v6  ;;  %8880 = vmatmul.msk.f32.gmra.mxu0 %vm363_vm0, %v3509_v2  ;;  %v11174_v42 = vpop.f32.mrf.mxu2 }
 0x447   : >> { %v3924_v56 = vmax.f32 %v3879_v35, 0.0 }
 0x449   : >> { %8921 = vmatmul.msk.f32.gmra.mxu2 %vm393_vm3, %v4186_v36  ;;  %v4056_v55 = vrot.slane %v3924_v56, 4  ;;  %v2304_v56 = vadd.f32 %v10738_v60, %v10325_v34 }
 0x44a   : >> { %v3744_v9 = vpop.f32.mrf.mxu0 }
 0x44b   : >> { %v4057_v33 = vsel %vm3949_vm8, %v4055_v26, %v4056_v55  ;;  %v3831_v40 = vadd.f32 %v3744_v9, %v3449_v1  ;;  %v2686_v29 = vadd.f32 %v10988_v3, %v2304_v56  ;;  %v2689_v1 = vadd.f32 %v11059_v51, %v2307_v17 }
 0x44c   : >> { %v4063_v0 = vmax.f32 %v3921_v49, %v4057_v33  ;;  %v3514_v33 = vld [vmem:[#allocation2 + $0x18a] sm:$0x3f] }
 0x44d   : >> { %v3880_v53 = vadd.f32 %v10940_v48, %v3831_v40  ;;  %8881 = vmatmul.msk.f32.gmra.mxu0 %vm363_vm0, %v3510_v39  ;;  %v3068_v26 = vadd.f32 %v10990_v28, %v2686_v29  ;;  %v3071_v34 = vadd.f32 %v11061_v62, %v2689_v1  ;;  %v8989_v28 = vld [vmem:[%s12902_s3 + $0x138] sm:$0xff]  ;;  %v2690_v40 = vadd.f32 %v11096_v54, %v2308_v44 }
 0x44e   : >> { %4066 = vst.msk [vmem:[#allocation6] sm:$0xff] %vm393_vm3, %v4063_v0  ;;  %4909 = vmatpush.msra.mxu2 %v8989_v28 }
 0x44f   : >> { %v3925_v37 = vmax.f32 %v3880_v53, 0.0  ;;  %v3450_v3 = vadd.f32 %v11010_v19, %v3068_v26  ;;  %v3453_v62 = vadd.f32 %v11065_v43, %v3071_v34  ;;  %v3069_v53 = vadd.f32 %v11014_v4, %v2687_v23  ;;  %v12967_v26 = vld [vmem:[#allocation14_spill] sm:$0xff]  ;;  %v12968_v34 = vld [vmem:[#allocation29_spill] sm:$0xff] }
 0x450   : >> { %v3072_v8 = vadd.f32 %v11092_v30, %v2690_v40  ;;  %v9014_v23 = vld [vmem:[%s12902_s3 + $0x170] sm:$0xff] }
 0x451   : >> { %v4058_v63 = vrot.slane %v3925_v37, 4 }
 0x452   : >> { %v3747_v50 = vpop.f32.mrf.mxu0  ;;  %v3454_v4 = vadd.f32 %v11103_v47, %v3072_v8  ;;  %v12972_v8 = vld [vmem:[#allocation30_spill] sm:$0xff] }
 0x453   : >> { %v4059_v24 = vsel %vm3949_vm8, %v4056_v55, %v4058_v63  ;;  %v4065_v41 = vmax.f32 %v3923_v13, %v4058_v63  ;;  %v11139_v13 = vpop.f32.mrf.mxu1  ;;  %v11154_v55 = vpop.f32.mrf.mxu3  ;;  %v3832_v19 = vadd.f32 %v3747_v50, %v3450_v3 }
 0x454   : >> { %v4064_v20 = vmax.f32 %v3922_v57, %v4059_v24  ;;  %v3451_v57 = vadd.f32 %v11025_v32, %v3069_v53  ;;  %v8963_v24 = vld [vmem:[%s12902_s3 + $0xf8] sm:$0xff]  ;;  %v12971_v53 = vld [vmem:[#allocation15_spill] sm:$0xff] }
 0x455   : >> { %4068 = vst.msk [vmem:[#allocation6 + $0x10] sm:$0x3] %vm3963_vm9, %v4065_v41  ;;  %8882 = vmatmul.msk.f32.gmra.mxu0 %vm363_vm0, %v3511_v45  ;;  %v3881_v25 = vadd.f32 %v10940_v48, %v3832_v19  ;;  %v9015_v45 = vld [vmem:[%s12902_s3 + $0x178] sm:$0xff]  ;;  %4739 = vmatpush.msrb.mxu1 %v8963_v24  ;;  %v8962_v19 = vld [vmem:[%s12902_s3 + $0xf0] sm:$0xff] }
 0x456   : >> { %4067 = vst.msk [vmem:[#allocation6 + $0x8] sm:$0xff] %vm393_vm3, %v4064_v20  ;;  %5079 = vmatpush.msra.mxu3 %v9015_v45  ;;  %v12973_v24 = vld [vmem:[#allocation13_spill] sm:$0xff] }
 0x457   : >> { %v3926_v20 = vmax.f32 %v3881_v25, 0.0  ;;  %4740 = vmatpush.msrb.mxu1 %v8962_v19 }
 0x458   : >> { %5080 = vmatpush.msra.mxu3 %v9014_v23 }
 0x45a   : >> { %v11133_v22 = vpop.f32.mrf.mxu0 }
 0x45b   : >> { %v11161_v51 = vpop.f32.mrf.mxu1  ;;  %v11181_v58 = vpop.f32.mrf.mxu3  ;;  %v3833_v32 = vadd.f32 %v11133_v22, %v3451_v57 }
 0x45c   : >> { %v4070_v59 = vld [vmem:[#allocation6 + $0x10] ss:$2 sm:$0x1]  ;;  %v4072_v2 = vld [vmem:[#allocation6 + $0x11] ss:$2 sm:$0x1] }
 0x45d   : >> { %8883 = vmatmul.msk.f32.gmra.mxu0 %vm363_vm0, %v3512_v52  ;;  %v4069_v6 = vld [vmem:[#allocation6] ss:$2 sm:$0xff]  ;;  %v4071_v14 = vld [vmem:[#allocation6 + $0x1] ss:$2 sm:$0xff]  ;;  %v4074_v12 = vmax.f32 %v4070_v59, %v4072_v2  ;;  %v3007_v59 = vpop.f32.mrf.mxu2 }
 0x45e   : >> { %v4073_v35 = vmax.f32 %v4069_v6, %v4071_v14  ;;  %v3882_v6 = vadd.f32 %v10940_v48, %v3833_v32 }
 0x45f   : >> { %4076 = vst.msk [vmem:[#allocation3 + $0x58] sm:$0x1] %vm3975_vm10, %v4074_v12 }
 0x460   : >> { %4075 = vst.msk [vmem:[#allocation3 + $0x50] sm:$0xff] %vm393_vm3, %v4073_v35  ;;  %v3927_v7 = vmax.f32 %v3882_v6, 0.0 }
 0x462   : >> { %v3753_v36 = vpop.f32.mrf.mxu0 }
 0x463   : >> { %v3834_v60 = vadd.f32 %v3753_v36, %v3452_v16  ;;  %v2625_v41 = vpop.f32.mrf.mxu1  ;;  %v3389_v12 = vpop.f32.mrf.mxu3 }
 0x465   : >> { %8884 = vmatmul.msk.f32.gmra.mxu0 %vm363_vm0, %v3513_v31  ;;  %v3883_v9 = vadd.f32 %v10940_v48, %v3834_v60  ;;  %v3010_v31 = vpop.f32.mrf.mxu2  ;;  %v2311_v60 = vadd.f32 %v12968_v34, %v12967_v26 }
 0x467   : >> { %v4212_v49 = vld [vmem:[#allocation3 + $0x49] sm:$0xff]  ;;  %v3928_v5 = vmax.f32 %v3883_v9, 0.0  ;;  %v4213_v63 = vld [vmem:[#allocation3 + $0x51] sm:$0xff]  ;;  %v8988_v9 = vld [vmem:[%s12902_s3 + $0x130] sm:$0xff] }
 0x468   : >> { %v4187_v11 = vld [vmem:[#allocation3 + $0x50] sm:$0xff]  ;;  %8903 = vmatmul.msk.f32.gmra.mxu1 %vm393_vm3, %v4212_v49  ;;  %4910 = vmatpush.msra.mxu2 %v8988_v9 }
 0x469   : >> { %v4489_v18 = vld [vmem:[#allocation3 + $0x4a] sm:$0xff]  ;;  %8922 = vmatmul.msk.f32.gmra.mxu2 %vm393_vm3, %v4187_v11  ;;  %v4490_v54 = vld [vmem:[#allocation3 + $0x52] sm:$0xff]  ;;  %v4080_v50 = vrot.slane %v3928_v5, 4 }
 0x46a   : >> { %8947 = vmatmul.msk.f32.gmra.mxu3 %vm393_vm3, %v4489_v18  ;;  %v3756_v39 = vpop.f32.mrf.mxu0  ;;  %v2693_v18 = vadd.f32 %v11161_v51, %v2311_v60 }
 0x46b   : >> { %v3835_v0 = vadd.f32 %v3756_v39, %v3453_v62  ;;  %v2628_v29 = vpop.f32.mrf.mxu1  ;;  %v11202_v1 = vpop.f32.mrf.mxu3  ;;  %v12969_v39 = vld [vmem:[#allocation12_spill] sm:$0xff] }
 0x46c   : >> { %v3075_v51 = vadd.f32 %v11174_v42, %v2693_v18 }
 0x46d   : >> { %v3884_v43 = vadd.f32 %v10940_v48, %v3835_v0  ;;  %8885 = vmatmul.msk.f32.gmra.mxu0 %vm363_vm0, %v3514_v33  ;;  %v12970_v33 = vld [vmem:[#allocation27_spill] sm:$0xff]  ;;  %v11224_v0 = vpop.f32.mrf.mxu2 }
 0x46e   : >> { %v2309_v40 = vadd.f32 %v12970_v33, %v12969_v39  ;;  %v3457_v42 = vadd.f32 %v11181_v58, %v3075_v51 }
 0x46f   : >> { %v3929_v37 = vmax.f32 %v3884_v43, 0.0 }
 0x470   : >> { %8904 = vmatmul.msk.f32.gmra.mxu1 %vm393_vm3, %v4213_v63  ;;  %v2691_v43 = vadd.f32 %v11126_v27, %v2309_v40  ;;  %v12975_v27 = vld [vmem:[#allocation16_spill] sm:$0xff] }
 0x471   : >> { %v4081_v30 = vrot.slane %v3929_v37, 4 }
 0x472   : >> { %8948 = vmatmul.msk.f32.gmra.mxu3 %vm393_vm3, %v4490_v54  ;;  %v3759_v52 = vpop.f32.mrf.mxu0  ;;  %v3073_v63 = vadd.f32 %v11116_v21, %v2691_v43  ;;  %v12976_v21 = vld [vmem:[#allocation31_spill] sm:$0xff] }
 0x473   : >> { %v4082_v47 = vsel %vm3949_vm8, %v4080_v50, %v4081_v30  ;;  %v3836_v61 = vadd.f32 %v3759_v52, %v3454_v4  ;;  %v11209_v44 = vpop.f32.mrf.mxu1  ;;  %v11232_v57 = vpop.f32.mrf.mxu3  ;;  %v2313_v58 = vadd.f32 %v12976_v21, %v12975_v27 }
 0x474   : >> { %v4088_v2 = vmax.f32 %v3926_v20, %v4082_v47  ;;  %v12974_v20 = vld [vmem:[#allocation28_spill] sm:$0xff]  ;;  %v3455_v52 = vadd.f32 %v11131_v10, %v3073_v63  ;;  %v9012_v63 = vld [vmem:[%s12902_s3 + $0x160] sm:$0xff] }
 0x475   : >> { %v3885_v38 = vadd.f32 %v10940_v48, %v3836_v61  ;;  %v2310_v32 = vadd.f32 %v12974_v20, %v12973_v24  ;;  %v9013_v10 = vld [vmem:[%s12902_s3 + $0x168] sm:$0xff]  ;;  %v11255_v6 = vpop.f32.mrf.mxu2 }
 0x476   : >> { %4091 = vst.msk [vmem:[#allocation6] sm:$0xff] %vm393_vm3, %v4088_v2  ;;  %v8961_v2 = vld [vmem:[%s12902_s3 + $0xe8] sm:$0xff]  ;;  %5081 = vmatpush.msra.mxu3 %v9013_v10  ;;  %v8985_v10 = vld [vmem:[%s12902_s3 + $0x118] sm:$0xff] }
 0x477   : >> { %v3930_v14 = vmax.f32 %v3885_v38, 0.0  ;;  %v2692_v38 = vadd.f32 %v11139_v13, %v2310_v32  ;;  %4741 = vmatpush.msrb.mxu1 %v8961_v2  ;;  %v12979_v2 = vld [vmem:[#allocation17_spill] sm:$0xff] }
 0x478   : >> { %5082 = vmatpush.msra.mxu3 %v9012_v63 }
 0x479   : >> { %v4083_v35 = vrot.slane %v3930_v14, 4 }
 0x47a   : >> { %v3762_v56 = vpop.f32.mrf.mxu0 }
 0x47b   : >> { %v4084_v22 = vsel %vm3949_vm8, %v4081_v30, %v4083_v35  ;;  %v4090_v17 = vmax.f32 %v3928_v5, %v4083_v35  ;;  %v2312_v5 = vadd.f32 %v12972_v8, %v12971_v53  ;;  %v11237_v47 = vpop.f32.mrf.mxu1  ;;  %v3837_v14 = vadd.f32 %v3762_v56, %v3455_v52  ;;  %v11259_v34 = vpop.f32.mrf.mxu3 }
 0x47c   : >> { %v4089_v36 = vmax.f32 %v3927_v7, %v4084_v22  ;;  %v2695_v35 = vadd.f32 %v2628_v29, %v2313_v58  ;;  %v3074_v22 = vadd.f32 %v11145_v15, %v2692_v38  ;;  %v12980_v38 = vld [vmem:[#allocation32_spill] sm:$0xff] }
 0x47d   : >> { %4093 = vst.msk [vmem:[#allocation6 + $0x10] sm:$0x3] %vm3963_vm9, %v4090_v17  ;;  %v2694_v37 = vadd.f32 %v2625_v41, %v2312_v5  ;;  %v3886_v60 = vadd.f32 %v10940_v48, %v3837_v14  ;;  %v2314_v14 = vadd.f32 %v12980_v38, %v12979_v2 }
 0x47e   : >> { %4092 = vst.msk [vmem:[#allocation6 + $0x8] sm:$0xff] %vm393_vm3, %v4089_v36  ;;  %v3077_v17 = vadd.f32 %v3010_v31, %v2695_v35  ;;  %v3456_v56 = vadd.f32 %v11154_v55, %v3074_v22  ;;  %v3019_v55 = vpop.f32.mrf.mxu2  ;;  %v12981_v35 = vld [vmem:[#allocation20_spill] sm:$0xff] }
 0x47f   : >> { %v3076_v54 = vadd.f32 %v3007_v59, %v2694_v37  ;;  %v8987_v59 = vld [vmem:[%s12902_s3 + $0x128] sm:$0xff] }
 0x480   : >> { %4911 = vmatpush.msra.mxu2 %v8987_v59  ;;  %v3459_v15 = vadd.f32 %v11202_v1, %v3077_v17  ;;  %v2696_v17 = vadd.f32 %v11209_v44, %v2314_v14  ;;  %v9011_v44 = vld [vmem:[%s12902_s3 + $0x158] sm:$0xff] }
 0x481   : >> { %v3458_v41 = vadd.f32 %v3389_v12, %v3076_v54  ;;  %5083 = vmatpush.msra.mxu3 %v9011_v44  ;;  %v8957_v44 = vld [vmem:[%s12902_s3 + $0xc8] sm:$0xff] }
 0x482   : >> { %v11204_v16 = vpop.f32.mrf.mxu0 }
 0x483   : >> { %v3401_v33 = vpop.f32.mrf.mxu3 }
 0x484   : >> { %v4095_v49 = vld [vmem:[#allocation6 + $0x10] ss:$2 sm:$0x1]  ;;  %v4097_v11 = vld [vmem:[#allocation6 + $0x11] ss:$2 sm:$0x1] }
 0x485   : >> { %v4094_v46 = vld [vmem:[#allocation6] ss:$2 sm:$0xff]  ;;  %v4096_v3 = vld [vmem:[#allocation6 + $0x1] ss:$2 sm:$0xff]  ;;  %v4099_v28 = vmax.f32 %v4095_v49, %v4097_v11 }
 0x486   : >> { %v4098_v62 = vmax.f32 %v4094_v46, %v4096_v3  ;;  %v2637_v46 = vpop.f32.mrf.mxu1  ;;  %v3931_v3 = vmax.f32 %v3886_v60, 0.0  ;;  %v3022_v37 = vpop.f32.mrf.mxu2 }
 0x487   : >> { %4101 = vst.msk [vmem:[#allocation3 + $0x65] sm:$0x1] %vm3975_vm10, %v4099_v28  ;;  %v3838_v28 = vadd.f32 %v11204_v16, %v3456_v56 }
 0x488   : >> { %4100 = vst.msk [vmem:[#allocation3 + $0x5d] sm:$0xff] %vm393_vm3, %v4098_v62 }
 0x489   : >> { %v3887_v39 = vadd.f32 %v10940_v48, %v3838_v28 }
 0x48a   : >> { %v3768_v25 = vpop.f32.mrf.mxu0 }
 0x48b   : >> { %v3839_v4 = vadd.f32 %v3768_v25, %v3457_v42  ;;  %v3932_v53 = vmax.f32 %v3887_v39, 0.0  ;;  %v8986_v42 = vld [vmem:[%s12902_s3 + $0x120] sm:$0xff]  ;;  %v3404_v54 = vpop.f32.mrf.mxu3 }
 0x48c   : >> { %4912 = vmatpush.msra.mxu2 %v8986_v42 }
 0x48d   : >> { %v3888_v61 = vadd.f32 %v10940_v48, %v3839_v4 }
 0x48e   : >> { %v2640_v43 = vpop.f32.mrf.mxu1  ;;  %4913 = vmatpush.msra.mxu2 %v8985_v10 }
 0x48f   : >> { %v4214_v50 = vld [vmem:[#allocation3 + $0x59] sm:$0xff]  ;;  %v3933_v36 = vmax.f32 %v3888_v61, 0.0  ;;  %v4215_v49 = vld [vmem:[#allocation3 + $0x61] sm:$0xff]  ;;  %v8960_v61 = vld [vmem:[%s12902_s3 + $0xe0] sm:$0xff] }
 0x490   : >> { %v4188_v30 = vld [vmem:[#allocation3 + $0x58] sm:$0xff]  ;;  %8905 = vmatmul.msk.f32.gmra.mxu1 %vm393_vm3, %v4214_v50  ;;  %v4189_v11 = vld [vmem:[#allocation3 + $0x60] sm:$0xff]  ;;  %v12977_v50 = vld [vmem:[#allocation19_spill] sm:$0xff] }
 0x491   : >> { %v4491_v45 = vld [vmem:[#allocation3 + $0x5a] sm:$0xff]  ;;  %8923 = vmatmul.msk.f32.gmra.mxu2 %vm393_vm3, %v4188_v30  ;;  %v4492_v29 = vld [vmem:[#allocation3 + $0x62] sm:$0xff]  ;;  %v4105_v31 = vrot.slane %v3933_v36, 4  ;;  %4742 = vmatpush.msrb.mxu1 %v8960_v61 }
 0x492   : >> { %8949 = vmatmul.msk.f32.gmra.mxu3 %vm393_vm3, %v4491_v45  ;;  %v3771_v12 = vpop.f32.mrf.mxu0  ;;  %v12978_v30 = vld [vmem:[#allocation34_spill] sm:$0xff] }
 0x493   : >> { %v3840_v7 = vadd.f32 %v3771_v12, %v3458_v41  ;;  %v2316_v45 = vadd.f32 %v12978_v30, %v12977_v50  ;;  %v3025_v12 = vpop.f32.mrf.mxu2 }
 0x495   : >> { %v3889_v26 = vadd.f32 %v10940_v48, %v3840_v7  ;;  %v2698_v32 = vadd.f32 %v2637_v46, %v2316_v45  ;;  %v12982_v7 = vld [vmem:[#allocation35_spill] sm:$0xff]  ;;  %v12984_v46 = vld [vmem:[#allocation33_spill] sm:$0xff] }
 0x496   : >> { %v2643_v58 = vpop.f32.mrf.mxu1  ;;  %v2317_v22 = vadd.f32 %v12982_v7, %v12981_v35  ;;  %v8984_v35 = vld [vmem:[%s12902_s3 + $0x110] sm:$0xff] }
 0x497   : >> { %v3934_v13 = vmax.f32 %v3889_v26, 0.0  ;;  %v3080_v59 = vadd.f32 %v3019_v55, %v2698_v32  ;;  %v9010_v7 = vld [vmem:[%s12902_s3 + $0x150] sm:$0xff]  ;;  %4914 = vmatpush.msra.mxu2 %v8984_v35 }
 0x498   : >> { %8906 = vmatmul.msk.f32.gmra.mxu1 %vm393_vm3, %v4215_v49  ;;  %v2699_v26 = vadd.f32 %v2640_v43, %v2317_v22  ;;  %v3407_v49 = vpop.f32.mrf.mxu3  ;;  %v8958_v22 = vld [vmem:[%s12902_s3 + $0xd0] sm:$0xff]  ;;  %5084 = vmatpush.msra.mxu3 %v9010_v7 }
 0x499   : >> { %8924 = vmatmul.msk.f32.gmra.mxu2 %vm393_vm3, %v4189_v11  ;;  %v4106_v18 = vrot.slane %v3934_v13, 4  ;;  %v3462_v60 = vadd.f32 %v3401_v33, %v3080_v59  ;;  %v3078_v13 = vadd.f32 %v11224_v0, %v2696_v17  ;;  %v8959_v0 = vld [vmem:[%s12902_s3 + $0xd8] sm:$0xff] }
 0x49a   : >> { %8950 = vmatmul.msk.f32.gmra.mxu3 %vm393_vm3, %v4492_v29  ;;  %v3774_v62 = vpop.f32.mrf.mxu0  ;;  %v3081_v11 = vadd.f32 %v3022_v37, %v2699_v26  ;;  %4743 = vmatpush.msrb.mxu1 %v8959_v0  ;;  %v12987_v26 = vld [vmem:[#allocation24_spill] sm:$0xff] }
 0x49b   : >> { %v4107_v9 = vsel %vm3949_vm8, %v4105_v31, %v4106_v18  ;;  %v3841_v23 = vadd.f32 %v3774_v62, %v3459_v15  ;;  %v3460_v28 = vadd.f32 %v11232_v57, %v3078_v13  ;;  %v11320_v57 = vld [vmem:[%s12966_s2] ss:$0 sm:$0xff]  ;;  %s9525_s2 = scalar_lea.hbm (%p433_p11), %s12909_s10, 8 }
 0x49c   : >> { %v4113_v19 = vmax.f32 %v3931_v3, %v4107_v9  ;;  %v12985_v9 = vld [vmem:[#allocation21_spill] sm:$0xff]  ;;  %4744 = vmatpush.msrb.mxu1 %v8958_v22  ;;  %p9527_p2 = scmp.lt.s32.totalorder (%p433_p11), %s9525_s2, %s9521_s12 }
 0x49d   : >> { %v3890_v51 = vadd.f32 %v10940_v48, %v3841_v23  ;;  %v9115_v48 = vld [vmem:[%s12904_s5 + $0x38] sm:$0xff]  ;;  %v12986_v23 = vld [vmem:[#allocation36_spill] sm:$0xff] }
 0x49e   : >> { %4116 = vst.msk [vmem:[#allocation6] sm:$0xff] %vm393_vm3, %v4113_v19  ;;  %5893 = vmatpush.msrb.mxu0 %v9115_v48  ;;  %v11305_v62 = vpop.f32.mrf.mxu1  ;;  %v2318_v55 = vadd.f32 %v12986_v23, %v12985_v9  ;;  %v3463_v19 = vadd.f32 %v3404_v54, %v3081_v11  ;;  %v8982_v9 = vld [vmem:[%s12902_s3 + $0x100] sm:$0xff]  ;;  %v12989_v23 = vld [vmem:[#allocation22_spill] sm:$0xff]  ;;  %4745 = vmatpush.msrb.mxu1 %v8957_v44  ;;  %p9528_p3 = por (%p433_p11), %p9527_p2, %p9526_p1 }
 0x49f   : >> { %v3935_v1 = vmax.f32 %v3890_v51, 0.0 }
 0x4a0   : >> { %v11329_v48 = vpop.f32.mrf.mxu3  ;;  %p9529_p4 = pnand (%p433_p11), %p9528_p3, %p9524_p0 }
 0x4a1   : >> { %v4108_v40 = vrot.slane %v3935_v1, 4  ;;  %v11325_v1 = vpop.f32.mrf.mxu2 }
 0x4a2   : >> { %v3777_v8 = vpop.f32.mrf.mxu0 }
 0x4a3   : >> { %v4109_v5 = vsel %vm3949_vm8, %v4106_v18, %v4108_v40  ;;  %v4115_v16 = vmax.f32 %v3933_v36, %v4108_v40  ;;  %v12983_v18 = vld [vmem:[#allocation18_spill] sm:$0xff]  ;;  %v3842_v33 = vadd.f32 %v3777_v8, %v3460_v28  ;;  %v9009_v28 = vld [vmem:[%s12902_s3 + $0x148] sm:$0xff] }
 0x4a4   : >> { %v4114_v25 = vmax.f32 %v3932_v53, %v4109_v5  ;;  %v2315_v3 = vadd.f32 %v12984_v46, %v12983_v18  ;;  %v2700_v53 = vadd.f32 %v2643_v58, %v2318_v55  ;;  %5085 = vmatpush.msra.mxu3 %v9009_v28  ;;  %v12990_v55 = vld [vmem:[#allocation37_spill] sm:$0xff] }
 0x4a5   : >> { %4118 = vst.msk [vmem:[#allocation6 + $0x10] sm:$0x3] %vm3963_vm9, %v4115_v16  ;;  %v3891_v42 = vadd.f32 %v11320_v57, %v3842_v33  ;;  %v12992_v33 = vld [vmem:[#allocation40_spill] sm:$0xff] }
 0x4a6   : >> { %4117 = vst.msk [vmem:[#allocation6 + $0x8] sm:$0xff] %vm393_vm3, %v4114_v25  ;;  %v2697_v39 = vadd.f32 %v11237_v47, %v2315_v3  ;;  %v3082_v43 = vadd.f32 %v3025_v12, %v2700_v53  ;;  %v11333_v30 = vpop.f32.mrf.mxu1  ;;  %v8983_v3 = vld [vmem:[%s12902_s3 + $0x108] sm:$0xff] }
 0x4a7   : >> { %v3936_v45 = vmax.f32 %v3891_v42, 0.0  ;;  %4915 = vmatpush.msra.mxu2 %v8983_v3 }
 0x4a8   : >> { %v3079_v16 = vadd.f32 %v11255_v6, %v2697_v39  ;;  %v3464_v54 = vadd.f32 %v3407_v49, %v3082_v43  ;;  %v12991_v39 = vld [vmem:[#allocation25_spill] sm:$0xff] }
 0x4a9   : >> { %4916 = vmatpush.msra.mxu2 %v8982_v9 }
 0x4aa   : >> { %v11284_v4 = vpop.f32.mrf.mxu0  ;;  %v3461_v47 = vadd.f32 %v11259_v34, %v3079_v16 }
 0x4ac   : >> { %v4120_v24 = vld [vmem:[#allocation6 + $0x10] ss:$2 sm:$0x1]  ;;  %v4122_v20 = vld [vmem:[#allocation6 + $0x11] ss:$2 sm:$0x1] }
 0x4ad   : >> { %v4119_v52 = vld [vmem:[#allocation6] ss:$2 sm:$0xff]  ;;  %v4121_v27 = vld [vmem:[#allocation6 + $0x1] ss:$2 sm:$0xff]  ;;  %v4124_v21 = vmax.f32 %v4120_v24, %v4122_v20  ;;  %v3843_v24 = vadd.f32 %v11284_v4, %v3461_v47 }
 0x4ae   : >> { %v4123_v41 = vmax.f32 %v4119_v52, %v4121_v27  ;;  %v11337_v52 = vpop.f32.mrf.mxu2  ;;  %v2652_v38 = vpop.f32.mrf.mxu1 }
 0x4af   : >> { %4126 = vst.msk [vmem:[#allocation3 + $0x72] sm:$0x1] %vm3975_vm10, %v4124_v21  ;;  %v3892_v58 = vadd.f32 %v11320_v57, %v3843_v24 }
 0x4b0   : >> { %4125 = vst.msk [vmem:[#allocation3 + $0x6a] sm:$0xff] %vm393_vm3, %v4123_v41  ;;  %v11342_v41 = vpop.f32.mrf.mxu3 }
 0x4b1   : >> { %v3937_v59 = vmax.f32 %v3892_v58, 0.0 }
 0x4b2   : >> { %v3783_v36 = vpop.f32.mrf.mxu0 }
 0x4b3   : >> { %v3844_v56 = vadd.f32 %v3783_v36, %v3462_v60  ;;  %v12988_v60 = vld [vmem:[#allocation39_spill] sm:$0xff] }
 0x4b4   : >> { %v2321_v13 = vadd.f32 %v12988_v60, %v12987_v26 }
 0x4b5   : >> { %v3893_v51 = vadd.f32 %v11320_v57, %v3844_v56 }
 0x4b6   : >> { %v3034_v12 = vpop.f32.mrf.mxu2  ;;  %v2703_v56 = vadd.f32 %v2652_v38, %v2321_v13  ;;  %v2655_v18 = vpop.f32.mrf.mxu1 }
 0x4b7   : >> { %v4216_v29 = vld [vmem:[#allocation3 + $0x69] sm:$0xff]  ;;  %v3938_v25 = vmax.f32 %v3893_v51, 0.0 }
 0x4b8   : >> { %v4190_v15 = vld [vmem:[#allocation3 + $0x68] sm:$0xff]  ;;  %8907 = vmatmul.msk.f32.gmra.mxu1 %vm393_vm3, %v4216_v29  ;;  %v3416_v17 = vpop.f32.mrf.mxu3  ;;  %v3085_v0 = vadd.f32 %v3034_v12, %v2703_v56 }
 0x4b9   : >> { %v4493_v31 = vld [vmem:[#allocation3 + $0x6a] sm:$0xff]  ;;  %8925 = vmatmul.msk.f32.gmra.mxu2 %vm393_vm3, %v4190_v15  ;;  %v4130_v50 = vrot.slane %v3938_v25, 4 }
 0x4ba   : >> { %8951 = vmatmul.msk.f32.gmra.mxu3 %vm393_vm3, %v4493_v31  ;;  %v3786_v40 = vpop.f32.mrf.mxu0  ;;  %v3467_v43 = vadd.f32 %v3416_v17, %v3085_v0 }
 0x4bb   : >> { %v3845_v5 = vadd.f32 %v3786_v40, %v3463_v19  ;;  %v2319_v19 = vadd.f32 %v12990_v55, %v12989_v23  ;;  %v2322_v40 = vadd.f32 %v12992_v33, %v12991_v39 }
 0x4bd   : >> { %v3894_v37 = vadd.f32 %v11320_v57, %v3845_v5  ;;  %v2701_v53 = vadd.f32 %v11305_v62, %v2319_v19  ;;  %v2704_v16 = vadd.f32 %v2655_v18, %v2322_v40  ;;  %v12995_v62 = vld [vmem:[#allocation26_spill] sm:$0xff]  ;;  %v9114_v19 = vld [vmem:[%s12904_s5 + $0x30] sm:$0xff] }
 0x4be   : >> { %v3037_v51 = vpop.f32.mrf.mxu2  ;;  %5894 = vmatpush.msrb.mxu0 %v9114_v19 }
 0x4bf   : >> { %v3939_v63 = vmax.f32 %v3894_v37, 0.0  ;;  %v3086_v42 = vadd.f32 %v3037_v51, %v2704_v16  ;;  %v9093_v51 = vld [vmem:[%s12902_s3 + $0x238] sm:$0xff] }
 0x4c0   : >> { %v3419_v37 = vpop.f32.mrf.mxu3 }
 0x4c1   : >> { %v4131_v8 = vrot.slane %v3939_v63, 4 }
 0x4c2   : >> { %v3789_v6 = vpop.f32.mrf.mxu0 }
 0x4c3   : >> { %v4132_v20 = vsel %vm3949_vm8, %v4130_v50, %v4131_v8  ;;  %v3846_v32 = vadd.f32 %v3789_v6, %v3464_v54  ;;  %v2658_v6 = vpop.f32.mrf.mxu1 }
 0x4c4   : >> { %v4138_v27 = vmax.f32 %v3936_v45, %v4132_v20  ;;  %v12994_v45 = vld [vmem:[#allocation38_spill] sm:$0xff] }
 0x4c5   : >> { %v3895_v21 = vadd.f32 %v11320_v57, %v3846_v32  ;;  %v12996_v32 = vld [vmem:[#allocation41_spill] sm:$0xff] }
 0x4c6   : >> { %4141 = vst.msk [vmem:[#allocation6] sm:$0xff] %vm393_vm3, %v4138_v27  ;;  %v3468_v27 = vadd.f32 %v3419_v37, %v3086_v42  ;;  %v9041_v37 = vld [vmem:[%s12902_s3 + $0x1b8] sm:$0xff] }
 0x4c7   : >> { %v3940_v34 = vmax.f32 %v3895_v21, 0.0 }
 0x4c8   : >> { %v3422_v35 = vpop.f32.mrf.mxu3 }
 0x4c9   : >> { %v4133_v61 = vrot.slane %v3940_v34, 4  ;;  %v3040_v34 = vpop.f32.mrf.mxu2 }
 0x4ca   : >> { %v3792_v10 = vpop.f32.mrf.mxu0 }
 0x4cb   : >> { %v4134_v4 = vsel %vm3949_vm8, %v4131_v8, %v4133_v61  ;;  %v4140_v2 = vmax.f32 %v3938_v25, %v4133_v61  ;;  %v3083_v25 = vadd.f32 %v11325_v1, %v2701_v53  ;;  %v12993_v8 = vld [vmem:[#allocation23_spill] sm:$0xff]  ;;  %v2323_v1 = vadd.f32 %v12996_v32, %v12995_v62  ;;  %v11415_v55 = vpop.f32.mrf.mxu1  ;;  %v9040_v62 = vld [vmem:[%s12902_s3 + $0x1b0] sm:$0xff] }
 0x4cc   : >> { %v4139_v14 = vmax.f32 %v3937_v59, %v4134_v4  ;;  %v2320_v24 = vadd.f32 %v12994_v45, %v12993_v8 }
 0x4cd   : >> { %4143 = vst.msk [vmem:[#allocation6 + $0x10] sm:$0x3] %vm3963_vm9, %v4140_v2  ;;  %v3465_v20 = vadd.f32 %v11329_v48, %v3083_v25  ;;  %v2705_v4 = vadd.f32 %v2658_v6, %v2323_v1  ;;  %v9066_v6 = vld [vmem:[%s12902_s3 + $0x1f0] sm:$0xff] }
 0x4ce   : >> { %4142 = vst.msk [vmem:[#allocation6 + $0x8] sm:$0xff] %vm393_vm3, %v4139_v14  ;;  %v2702_v58 = vadd.f32 %v11333_v30, %v2320_v24 }
 0x4cf   : >> { %v3847_v61 = vadd.f32 %v3792_v10, %v3465_v20  ;;  %v3087_v38 = vadd.f32 %v3040_v34, %v2705_v4  ;;  %v9092_v20 = vld [vmem:[%s12902_s3 + $0x230] sm:$0xff]  ;;  %v4990_v4 = vld [vmem:[#allocation3 + $0xf] sm:$0xff] }
 0x4d0   : >> { %v3084_v2 = vadd.f32 %v11337_v52, %v2702_v58  ;;  %v11430_v33 = vpop.f32.mrf.mxu3 }
 0x4d1   : >> { %v3896_v7 = vadd.f32 %v11320_v57, %v3847_v61  ;;  %v3469_v10 = vadd.f32 %v3422_v35, %v3087_v38  ;;  %v11428_v39 = vpop.f32.mrf.mxu2  ;;  %v4650_v61 = vld [vmem:[#allocation3 + $0xd] sm:$0xff]  ;;  %v4651_v35 = vld [vmem:[#allocation3 + $0x15] sm:$0xff] }
 0x4d2   : >> { %v11356_v36 = vpop.f32.mrf.mxu0  ;;  %v3466_v60 = vadd.f32 %v11342_v41, %v3084_v2  ;;  %v8956_v41 = vld [vmem:[%s12902_s3 + $0xc0] sm:$0xff] }
 0x4d3   : >> { %4746 = vmatpush.msrb.mxu1 %v8956_v41  ;;  %v11435_v42 = vpop.f32.mrf.mxu1  ;;  %v9064_v41 = vld [vmem:[%s12902_s3 + $0x1e0] sm:$0xff] }
 0x4d4   : >> { %v4145_v49 = vld [vmem:[#allocation6 + $0x10] ss:$2 sm:$0x1]  ;;  %v4147_v11 = vld [vmem:[#allocation6 + $0x11] ss:$2 sm:$0x1]  ;;  %v3848_v56 = vadd.f32 %v11356_v36, %v3466_v60 }
 0x4d5   : >> { %v4144_v29 = vld [vmem:[#allocation6] ss:$2 sm:$0xff]  ;;  %v4146_v15 = vld [vmem:[#allocation6 + $0x1] ss:$2 sm:$0xff]  ;;  %v4149_v31 = vmax.f32 %v4145_v49, %v4147_v11  ;;  %v9008_v49 = vld [vmem:[%s12902_s3 + $0x140] sm:$0xff]  ;;  %v3941_v11 = vmax.f32 %v3896_v7, 0.0  ;;  %5249 = vmatpush.msra.mxu1 %v9041_v37 }
 0x4d6   : >> { %v4148_v46 = vmax.f32 %v4144_v29, %v4146_v15  ;;  %5086 = vmatpush.msra.mxu3 %v9008_v49  ;;  %v3897_v3 = vadd.f32 %v11320_v57, %v3848_v56  ;;  %v4821_v7 = vld [vmem:[#allocation3 + $0x16] sm:$0xff]  ;;  %v4992_v49 = vld [vmem:[#allocation3 + $0x1f] sm:$0xff] }
 0x4d7   : >> { %4151 = vst.msk [vmem:[#allocation3 + $0x7f] sm:$0x1] %vm3975_vm10, %v4149_v31  ;;  %5250 = vmatpush.msra.mxu1 %v9040_v62  ;;  %v4996_v62 = vld [vmem:[#allocation3 + $0x3f] sm:$0xff] }
 0x4d8   : >> { %4150 = vst.msk [vmem:[#allocation3 + $0x77] sm:$0xff] %vm393_vm3, %v4148_v46  ;;  %v3942_v0 = vmax.f32 %v3897_v3, 0.0  ;;  %5589 = vmatpush.msrb.mxu3 %v9093_v51  ;;  %v9038_v3 = vld [vmem:[%s12902_s3 + $0x1a0] sm:$0xff] }
 0x4da   : >> { %v3798_v5 = vpop.f32.mrf.mxu0  ;;  %5590 = vmatpush.msrb.mxu3 %v9092_v20  ;;  %v4826_v20 = vld [vmem:[#allocation3 + $0x3e] sm:$0xff] }
 0x4db   : >> { %v3849_v63 = vadd.f32 %v3798_v5, %v3467_v43  ;;  %v11447_v24 = vpop.f32.mrf.mxu1 }
 0x4dd   : >> { %v3898_v21 = vadd.f32 %v11320_v57, %v3849_v63  ;;  %v11439_v63 = vpop.f32.mrf.mxu2 }
 0x4df   : >> { %v4217_v47 = vld [vmem:[#allocation3 + $0x71] sm:$0xff]  ;;  %v3943_v14 = vmax.f32 %v3898_v21, 0.0  ;;  %v4218_v17 = vld [vmem:[#allocation3 + $0x79] sm:$0xff] }
 0x4e0   : >> { %v4191_v54 = vld [vmem:[#allocation3 + $0x70] sm:$0xff]  ;;  %8908 = vmatmul.msk.f32.gmra.mxu1 %vm393_vm3, %v4217_v47  ;;  %v4192_v26 = vld [vmem:[#allocation3 + $0x78] sm:$0xff]  ;;  %v11441_v47 = vpop.f32.mrf.mxu3 }
 0x4e1   : >> { %v11380_v50 = vld [vmem:[#allocation3 + $0x72] sm:$0xff]  ;;  %8926 = vmatmul.msk.f32.gmra.mxu2 %vm393_vm3, %v4191_v54  ;;  %v11399_v30 = vld [vmem:[#allocation3 + $0x7a] sm:$0xff]  ;;  %v4155_v52 = vrot.slane %v3943_v14, 4 }
 0x4e2   : >> { %8952 = vmatmul.msk.f32.gmra.mxu3 %vm393_vm3, %v11380_v50  ;;  %v3801_v59 = vpop.f32.mrf.mxu0 }
 0x4e3   : >> { %v3850_v48 = vadd.f32 %v3801_v59, %v3468_v27  ;;  %v11467_v34 = vpop.f32.mrf.mxu1  ;;  %v4820_v59 = vld [vmem:[#allocation3 + $0xe] sm:$0xff] }
 0x4e5   : >> { %v3899_v12 = vadd.f32 %v11320_v57, %v3850_v48  ;;  %v11460_v32 = vpop.f32.mrf.mxu2 }
 0x4e7   : >> { %v3944_v22 = vmax.f32 %v3899_v12, 0.0  ;;  %v9091_v12 = vld [vmem:[%s12902_s3 + $0x228] sm:$0xff] }
 0x4e8   : >> { %8909 = vmatmul.msk.f32.gmra.mxu1 %vm393_vm3, %v4218_v17  ;;  %v11462_v21 = vpop.f32.mrf.mxu3  ;;  %5591 = vmatpush.msrb.mxu3 %v9091_v12  ;;  %v9039_v17 = vld [vmem:[%s12902_s3 + $0x1a8] sm:$0xff]  ;;  %v9062_v12 = vld [vmem:[%s12902_s3 + $0x1d0] sm:$0xff] }
 0x4e9   : >> { %8927 = vmatmul.msk.f32.gmra.mxu2 %vm393_vm3, %v4192_v26  ;;  %v4156_v13 = vrot.slane %v3944_v22, 4  ;;  %v4991_v22 = vld [vmem:[#allocation3 + $0x17] sm:$0xff]  ;;  %5251 = vmatpush.msra.mxu1 %v9039_v17  ;;  %v4658_v17 = vld [vmem:[#allocation3 + $0x4d] sm:$0xff] }
 0x4ea   : >> { %8953 = vmatmul.msk.f32.gmra.mxu3 %vm393_vm3, %v11399_v30  ;;  %v3804_v29 = vpop.f32.mrf.mxu0 }
 0x4eb   : >> { %v4157_v15 = vsel %vm3949_vm8, %v4155_v52, %v4156_v13  ;;  %v3851_v31 = vadd.f32 %v3804_v29, %v3469_v10  ;;  %v11476_v38 = vpop.f32.mrf.mxu1  ;;  %v4652_v52 = vld [vmem:[#allocation3 + $0x1d] sm:$0xff]  ;;  %5252 = vmatpush.msra.mxu1 %v9038_v3 }
 0x4ec   : >> { %v4163_v18 = vmax.f32 %v3941_v11, %v4157_v15  ;;  %v4653_v15 = vld [vmem:[#allocation3 + $0x25] sm:$0xff]  ;;  %v4999_v3 = vld [vmem:[#allocation3 + $0x57] sm:$0xff] }
 0x4ed   : >> { %v3900_v46 = vadd.f32 %v11320_v57, %v3851_v31  ;;  %v9067_v57 = vld [vmem:[%s12902_s3 + $0x1f8] sm:$0xff]  ;;  %v11471_v48 = vpop.f32.mrf.mxu2 }
 0x4ee   : >> { %4166 = vst.msk [vmem:[#allocation6] sm:$0xff] %vm393_vm3, %v4163_v18  ;;  %5419 = vmatpush.msrb.mxu2 %v9067_v57  ;;  %v4823_v31 = vld [vmem:[#allocation3 + $0x26] sm:$0xff] }
 0x4ef   : >> { %v3945_v28 = vmax.f32 %v3900_v46, 0.0  ;;  %v4993_v18 = vld [vmem:[#allocation3 + $0x27] sm:$0xff]  ;;  %v9090_v46 = vld [vmem:[%s12902_s3 + $0x220] sm:$0xff] }
 0x4f0   : >> { %5420 = vmatpush.msrb.mxu2 %v9066_v6  ;;  %v11474_v2 = vpop.f32.mrf.mxu3  ;;  %5592 = vmatpush.msrb.mxu3 %v9090_v46  ;;  %v4656_v6 = vld [vmem:[#allocation3 + $0x3d] sm:$0xff] }
 0x4f1   : >> { %v4158_v44 = vrot.slane %v3945_v28, 4 }
 0x4f3   : >> { %v4159_v9 = vsel %vm3949_vm8, %v4156_v13, %v4158_v44  ;;  %v4165_v23 = vmax.f32 %v3943_v14, %v4158_v44  ;;  %v9065_v14 = vld [vmem:[%s12902_s3 + $0x1e8] sm:$0xff]  ;;  %v11494_v10 = vpop.f32.mrf.mxu1  ;;  %vm5732_vm8 = vcmask 261126  }
 0x4f4   : >> { %v4164_v36 = vmax.f32 %v3942_v0, %v4159_v9  ;;  %5421 = vmatpush.msrb.mxu2 %v9065_v14  ;;  %v4822_v13 = vld [vmem:[#allocation3 + $0x1e] sm:$0xff]  ;;  %v4654_v9 = vld [vmem:[#allocation3 + $0x2d] sm:$0xff] }
 0x4f5   : >> { %4168 = vst.msk [vmem:[#allocation6 + $0x10] sm:$0x3] %vm3963_vm9, %v4165_v23  ;;  %v11492_v60 = vpop.f32.mrf.mxu2  ;;  %v4824_v23 = vld [vmem:[#allocation3 + $0x2e] sm:$0xff]  ;;  %v9113_v14 = vld [vmem:[%s12904_s5 + $0x28] sm:$0xff]  ;;  %vm5735_vm9 = vcmask 253952  }
 0x4f6   : >> { %4167 = vst.msk [vmem:[#allocation6 + $0x8] sm:$0xff] %vm393_vm3, %v4164_v36  ;;  %5422 = vmatpush.msrb.mxu2 %v9064_v41  ;;  %v4994_v36 = vld [vmem:[#allocation3 + $0x2f] sm:$0xff]  ;;  %5895 = vmatpush.msrb.mxu0 %v9113_v14 }
 0x4f8   : >> { %v11490_v26 = vpop.f32.mrf.mxu3 }
 0x4fb   : >> { %v11506_v29 = vpop.f32.mrf.mxu1 }
 0x4fc   : >> { %v4170_v40 = vld [vmem:[#allocation6 + $0x10] ss:$2 sm:$0x1]  ;;  %v4172_v53 = vld [vmem:[#allocation6 + $0x11] ss:$2 sm:$0x1] }
 0x4fd   : >> { %v4169_v5 = vld [vmem:[#allocation6] ss:$2 sm:$0xff]  ;;  %v4171_v16 = vld [vmem:[#allocation6 + $0x1] ss:$2 sm:$0xff]  ;;  %v4174_v43 = vmax.f32 %v4170_v40, %v4172_v53  ;;  %v11502_v11 = vpop.f32.mrf.mxu2  ;;  %v4655_v40 = vld [vmem:[#allocation3 + $0x35] sm:$0xff] }
 0x4fe   : >> { %v4173_v25 = vmax.f32 %v4169_v5, %v4171_v16  ;;  %v4825_v53 = vld [vmem:[#allocation3 + $0x36] sm:$0xff]  ;;  %v9063_v16 = vld [vmem:[%s12902_s3 + $0x1d8] sm:$0xff] }
 0x4ff   : >> { %4176 = vst.msk [vmem:[#allocation3 + $0x8c] sm:$0x1] %vm3975_vm10, %v4174_v43  ;;  %v4995_v5 = vld [vmem:[#allocation3 + $0x37] sm:$0xff]  ;;  %v9089_v43 = vld [vmem:[%s12902_s3 + $0x218] sm:$0xff]  ;;  %5423 = vmatpush.msrb.mxu2 %v9063_v16  ;;  %vm5737_vm10 = vcmask 261123  }
 0x500   : >> { %4175 = vst.msk [vmem:[#allocation3 + $0x84] sm:$0xff] %vm393_vm3, %v4173_v25  ;;  %v11504_v56 = vpop.f32.mrf.mxu3  ;;  %5593 = vmatpush.msrb.mxu3 %v9089_v43  ;;  %v9035_v43 = vld [vmem:[%s12902_s3 + $0x188] sm:$0xff] }
 0x501   : >> { %5424 = vmatpush.msrb.mxu2 %v9062_v12  ;;  %v9060_v12 = vld [vmem:[%s12902_s3 + $0x1c0] sm:$0xff] }
 0x503   : >> { %v11521_v0 = vpop.f32.mrf.mxu1 }
 0x505   : >> { %v11517_v28 = vpop.f32.mrf.mxu2 }
 0x507   : >> { %v4219_v54 = vld [vmem:[#allocation3 + $0x81] sm:$0xff]  ;;  %v4220_v1 = vld [vmem:[#allocation3 + $0x89] sm:$0x1f] }
 0x508   : >> { %v4193_v8 = vld [vmem:[#allocation3 + $0x80] sm:$0xff]  ;;  %8910 = vmatmul.msk.f32.gmra.mxu1 %vm393_vm3, %v4219_v54  ;;  %v4194_v27 = vld [vmem:[#allocation3 + $0x88] sm:$0x1f]  ;;  %v11519_v44 = vpop.f32.mrf.mxu3 }
 0x509   : >> { %v11443_v45 = vld [vmem:[#allocation3 + $0x82] sm:$0xff]  ;;  %8928 = vmatmul.msk.f32.gmra.mxu2 %vm393_vm3, %v4193_v8  ;;  %v4497_v58 = vld [vmem:[#allocation3 + $0x8a] sm:$0x1f] }
 0x50a   : >> { %12997 = vst [vmem:[#allocation14_spill] sm:$0xff] %v11443_v45  ;;  %8954 = vmatmul.msk.f32.gmra.mxu3 %vm393_vm3, %v11443_v45  ;;  %v9037_v54 = vld [vmem:[%s12902_s3 + $0x198] sm:$0xff] }
 0x50b   : >> { %v11530_v51 = vpop.f32.mrf.mxu1  ;;  %5253 = vmatpush.msra.mxu1 %v9037_v54  ;;  %v4836_v45 = vld [vmem:[#allocation3 + $0x8e] sm:$0xff] }
 0x50d   : >> { %v11526_v19 = vpop.f32.mrf.mxu2 }
 0x510   : >> { %8911 = vmatmul.msk.f32.gmra.mxu1 %vm393_vm3, %v4220_v1  ;;  %v11528_v57 = vpop.f32.mrf.mxu3 }
 0x511   : >> { %8929 = vmatmul.msk.f32.gmra.mxu2 %vm393_vm3, %v4194_v27 }
 0x512   : >> { %8955 = vmatmul.msk.f32.gmra.mxu3 %vm393_vm3, %v4497_v58  ;;  %v4657_v58 = vld [vmem:[#allocation3 + $0x45] sm:$0xff] }
 0x513   : >> { %v11548_v8 = vpop.f32.mrf.mxu1 }
 0x515   : >> { %v11541_v25 = vpop.f32.mrf.mxu2 }
 0x518   : >> { %8964 = vmatmul.msk.f32.vlgmr.msrb.gmra.mxu1 %vm393_vm3, %v4650_v61  ;;  %v11543_v37 = vpop.f32.mrf.mxu3  ;;  %v4827_v61 = vld [vmem:[#allocation3 + $0x46] sm:$0xff] }
 0x519   : >> { %8990 = vmatmul.msk.f32.vlgmr.msra.gmra.mxu2 %vm393_vm3, %v4820_v59  ;;  %v4997_v59 = vld [vmem:[#allocation3 + $0x47] sm:$0xff] }
 0x51a   : >> { %9016 = vmatmul.msk.f32.vlgmr.msra.gmra.mxu3 %vm393_vm3, %v4990_v4 }
 0x51b   : >> { %v11559_v4 = vpop.f32.mrf.mxu1 }
 0x51d   : >> { %v11555_v27 = vpop.f32.mrf.mxu2 }
 0x520   : >> { %8965 = vmatmul.msk.f32.gmra.mxu1 %vm393_vm3, %v4651_v35  ;;  %v11553_v1 = vpop.f32.mrf.mxu3  ;;  %v9088_v35 = vld [vmem:[%s12902_s3 + $0x210] sm:$0xff] }
 0x521   : >> { %8991 = vmatmul.msk.f32.gmra.mxu2 %vm393_vm3, %v4821_v7  ;;  %v9036_v7 = vld [vmem:[%s12902_s3 + $0x190] sm:$0xff]  ;;  %5594 = vmatpush.msrb.mxu3 %v9088_v35  ;;  %v4662_v35 = vld [vmem:[#allocation3 + $0x6d] sm:$0xff] }
 0x522   : >> { %9017 = vmatmul.msk.f32.gmra.mxu3 %vm393_vm3, %v4991_v22  ;;  %5254 = vmatpush.msra.mxu1 %v9036_v7  ;;  %v4832_v7 = vld [vmem:[#allocation3 + $0x6e] sm:$0xff] }
 0x523   : >> { %v11580_v41 = vpop.f32.mrf.mxu1 }
 0x524   : >> { %5255 = vmatpush.msra.mxu1 %v9035_v43 }
 0x525   : >> { %v11574_v22 = vpop.f32.mrf.mxu2 }
 0x528   : >> { %8966 = vmatmul.msk.f32.gmra.mxu1 %vm393_vm3, %v4652_v52  ;;  %v4828_v52 = vld [vmem:[#allocation3 + $0x4e] sm:$0xff] }
 0x529   : >> { %8992 = vmatmul.msk.f32.gmra.mxu2 %vm393_vm3, %v4822_v13  ;;  %v11576_v13 = vpop.f32.mrf.mxu3 }
 0x52a   : >> { %9018 = vmatmul.msk.f32.gmra.mxu3 %vm393_vm3, %v4992_v49  ;;  %v4998_v49 = vld [vmem:[#allocation3 + $0x4f] sm:$0xff] }
 0x530   : >> { %8967 = vmatmul.msk.f32.gmra.mxu1 %vm393_vm3, %v4653_v15  ;;  %v11583_v15 = vpop.f32.mrf.mxu2 }
 0x531   : >> { %8993 = vmatmul.msk.f32.gmra.mxu2 %vm393_vm3, %v4823_v31  ;;  %v4659_v31 = vld [vmem:[#allocation3 + $0x55] sm:$0xff]  ;;  %v11585_v46 = vpop.f32.mrf.mxu3 }
 0x532   : >> { %9019 = vmatmul.msk.f32.gmra.mxu3 %vm393_vm3, %v4993_v18  ;;  %v4829_v18 = vld [vmem:[#allocation3 + $0x56] sm:$0xff] }
 0x538   : >> { %8968 = vmatmul.msk.f32.gmra.mxu1 %vm393_vm3, %v4654_v9  ;;  %v9061_v9 = vld [vmem:[%s12902_s3 + $0x1c8] sm:$0xff]  ;;  %v11600_v16 = vpop.f32.mrf.mxu2 }
 0x539   : >> { %8994 = vmatmul.msk.f32.gmra.mxu2 %vm393_vm3, %v4824_v23  ;;  %v11593_v23 = vpop.f32.mrf.mxu1  ;;  %v11606_v54 = vpop.f32.mrf.mxu3 }
 0x53a   : >> { %9020 = vmatmul.msk.f32.gmra.mxu3 %vm393_vm3, %v4994_v36  ;;  %5425 = vmatpush.msrb.mxu2 %v9061_v9  ;;  %v9087_v36 = vld [vmem:[%s12902_s3 + $0x208] sm:$0xff] }
 0x53b   : >> { %5595 = vmatpush.msrb.mxu3 %v9087_v36  ;;  %v4663_v9 = vld [vmem:[#allocation3 + $0x75] sm:$0xff] }
 0x53c   : >> { %5426 = vmatpush.msrb.mxu2 %v9060_v12  ;;  %v4833_v36 = vld [vmem:[#allocation3 + $0x76] sm:$0xff] }
 0x540   : >> { %8969 = vmatmul.msk.f32.gmra.mxu1 %vm393_vm3, %v4655_v40  ;;  %v4660_v40 = vld [vmem:[#allocation3 + $0x5d] sm:$0xff] }
 0x541   : >> { %8995 = vmatmul.msk.f32.gmra.mxu2 %vm393_vm3, %v4825_v53  ;;  %v4830_v53 = vld [vmem:[#allocation3 + $0x5e] sm:$0xff] }
 0x542   : >> { %9021 = vmatmul.msk.f32.gmra.mxu3 %vm393_vm3, %v4995_v5  ;;  %v5000_v5 = vld [vmem:[#allocation3 + $0x5f] sm:$0xff] }
 0x548   : >> { %8970 = vmatmul.msk.f32.gmra.mxu1 %vm393_vm3, %v4656_v6  ;;  %v11608_v6 = vpop.f32.mrf.mxu1 }
 0x549   : >> { %8996 = vmatmul.msk.f32.gmra.mxu2 %vm393_vm3, %v4826_v20  ;;  %v4661_v20 = vld [vmem:[#allocation3 + $0x65] sm:$0xff] }
 0x54a   : >> { %9022 = vmatmul.msk.f32.gmra.mxu3 %vm393_vm3, %v4996_v62  ;;  %v4831_v62 = vld [vmem:[#allocation3 + $0x66] sm:$0xff] }
 0x550   : >> { %8971 = vmatmul.msk.f32.gmra.mxu1 %vm393_vm3, %v4657_v58  ;;  %v5001_v58 = vld [vmem:[#allocation3 + $0x67] sm:$0xff] }
 0x551   : >> { %8997 = vmatmul.msk.f32.gmra.mxu2 %vm393_vm3, %v4827_v61  ;;  %v11612_v61 = vpop.f32.mrf.mxu2 }
 0x552   : >> { %9023 = vmatmul.msk.f32.gmra.mxu3 %vm393_vm3, %v4997_v59  ;;  %v11615_v59 = vpop.f32.mrf.mxu3 }
 0x558   : >> { %8972 = vmatmul.msk.f32.gmra.mxu1 %vm393_vm3, %v4658_v17  ;;  %v5002_v17 = vld [vmem:[#allocation3 + $0x6f] sm:$0xff] }
 0x559   : >> { %8998 = vmatmul.msk.f32.gmra.mxu2 %vm393_vm3, %v4828_v52 }
 0x55a   : >> { %9024 = vmatmul.msk.f32.gmra.mxu3 %vm393_vm3, %v4998_v49  ;;  %v9086_v49 = vld [vmem:[%s12902_s3 + $0x200] sm:$0xff] }
 0x55b   : >> { %5596 = vmatpush.msrb.mxu3 %v9086_v49 }
 0x55d   : >> { %v11617_v14 = vpop.f32.mrf.mxu1 }
 0x560   : >> { %8973 = vmatmul.msk.f32.gmra.mxu1 %vm393_vm3, %v4659_v31  ;;  %v9034_v31 = vld [vmem:[%s12902_s3 + $0x180] sm:$0xff] }
 0x561   : >> { %8999 = vmatmul.msk.f32.gmra.mxu2 %vm393_vm3, %v4829_v18  ;;  %5256 = vmatpush.msra.mxu1 %v9034_v31  ;;  %v4665_v31 = vld [vmem:[#allocation3 + $0x85] sm:$0xff] }
 0x562   : >> { %9025 = vmatmul.msk.f32.gmra.mxu3 %vm393_vm3, %v4999_v3 }
 0x564   : >> { %v11624_v52 = vpop.f32.mrf.mxu2 }
 0x565   : >> { %v11633_v18 = vpop.f32.mrf.mxu3  ;;  %v11635_v3 = vpop.f32.mrf.mxu1 }
 0x568   : >> { %8974 = vmatmul.msk.f32.gmra.mxu1 %vm393_vm3, %v4660_v40  ;;  %v5003_v40 = vld [vmem:[#allocation3 + $0x77] sm:$0xff] }
 0x569   : >> { %9000 = vmatmul.msk.f32.gmra.mxu2 %vm393_vm3, %v4830_v53 }
 0x56a   : >> { %9026 = vmatmul.msk.f32.gmra.mxu3 %vm393_vm3, %v5000_v5 }
 0x56c   : >> { %v11640_v53 = vpop.f32.mrf.mxu2 }
 0x56d   : >> { %v11642_v5 = vpop.f32.mrf.mxu3 }
 0x570   : >> { %8975 = vmatmul.msk.f32.gmra.mxu1 %vm393_vm3, %v4661_v20  ;;  %v4664_v20 = vld [vmem:[#allocation3 + $0x7d] sm:$0xff] }
 0x571   : >> { %9001 = vmatmul.msk.f32.gmra.mxu2 %vm393_vm3, %v4831_v62  ;;  %v4834_v62 = vld [vmem:[#allocation3 + $0x7e] sm:$0xff] }
 0x572   : >> { %9027 = vmatmul.msk.f32.gmra.mxu3 %vm393_vm3, %v5001_v58  ;;  %v5004_v58 = vld [vmem:[#allocation3 + $0x7f] sm:$0xff] }
 0x578   : >> { %8976 = vmatmul.msk.f32.gmra.mxu1 %vm393_vm3, %v4662_v35 }
 0x579   : >> { %9002 = vmatmul.msk.f32.gmra.mxu2 %vm393_vm3, %v4832_v7 }
 0x57a   : >> { %9028 = vmatmul.msk.f32.gmra.mxu3 %vm393_vm3, %v5002_v17 }
 0x580   : >> { %8977 = vmatmul.msk.f32.gmra.mxu1 %vm393_vm3, %v4663_v9  ;;  %v4835_v9 = vld [vmem:[#allocation3 + $0x86] sm:$0xff] }
 0x581   : >> { %9003 = vmatmul.msk.f32.gmra.mxu2 %vm393_vm3, %v4833_v36  ;;  %v5005_v36 = vld [vmem:[#allocation3 + $0x87] sm:$0xff] }
 0x582   : >> { %9029 = vmatmul.msk.f32.gmra.mxu3 %vm393_vm3, %v5003_v40 }
 0x585   : >> { %v4349_v43 = vpop.f32.mrf.mxu1 }
 0x588   : >> { %8978 = vmatmul.msk.f32.gmra.mxu1 %vm393_vm3, %v4664_v20  ;;  %v4427_v20 = vadd.f32 %v11428_v39, %v11415_v55  ;;  %v4430_v55 = vadd.f32 %v11439_v63, %v11435_v42  ;;  %v4433_v42 = vadd.f32 %v11460_v32, %v11447_v24  ;;  %v9112_v24 = vld [vmem:[%s12904_s5 + $0x20] sm:$0xff] }
 0x589   : >> { %9004 = vmatmul.msk.f32.gmra.mxu2 %vm393_vm3, %v4834_v62  ;;  %5896 = vmatpush.msrb.mxu0 %v9112_v24 }
 0x58a   : >> { %9030 = vmatmul.msk.f32.gmra.mxu3 %vm393_vm3, %v5004_v58 }
 0x58c   : >> { %v4474_v12 = vpop.f32.mrf.mxu2 }
 0x58d   : >> { %v4475_v35 = vadd.f32 %v4474_v12, %v4349_v43  ;;  %v4626_v7 = vpop.f32.mrf.mxu3  ;;  %v4352_v17 = vpop.f32.mrf.mxu1  ;;  %v4666_v12 = vld [vmem:[#allocation3 + $0x8d] sm:$0xff] }
 0x58f   : >> { %v11647_v49 = vadd.f32 %v4626_v7, %v4475_v35  ;;  %v5006_v7 = vld [vmem:[#allocation3 + $0x8f] sm:$0xff] }
 0x590   : >> { %8979 = vmatmul.msk.f32.gmra.mxu1 %vm393_vm3, %v4665_v31 }
 0x591   : >> { %12998 = vst [vmem:[#allocation29_spill] sm:$0xff] %v11647_v49  ;;  %9005 = vmatmul.msk.f32.gmra.mxu2 %vm393_vm3, %v4835_v9  ;;  %v4632_v49 = vadd.f32 %v11430_v33, %v4427_v20  ;;  %v4633_v33 = vadd.f32 %v11441_v47, %v4430_v55  ;;  %v4634_v47 = vadd.f32 %v11462_v21, %v4433_v42 }
 0x592   : >> { %9031 = vmatmul.msk.f32.gmra.mxu3 %vm393_vm3, %v5005_v36  ;;  %v4436_v55 = vadd.f32 %v11471_v48, %v11467_v34 }
 0x594   : >> { %v4477_v40 = vpop.f32.mrf.mxu2 }
 0x595   : >> { %v4478_v62 = vadd.f32 %v4477_v40, %v4352_v17  ;;  %v4629_v58 = vpop.f32.mrf.mxu3  ;;  %v4748_v43 = vpop.f32.mrf.mxu1  ;;  %v4667_v40 = vld [vmem:[#allocation3 + $0x95] sm:$0x1f] }
 0x596   : >> { %v4802_v31 = vadd.f32 %v4748_v43, %v4632_v49 }
 0x597   : >> { %v11654_v35 = vadd.f32 %v4629_v58, %v4478_v62  ;;  %v4837_v62 = vld [vmem:[#allocation3 + $0x96] sm:$0x1f] }
 0x598   : >> { %8980 = vmatmul.msk.f32.gmra.mxu1 %vm393_vm3, %v4666_v12 }
 0x599   : >> { %12999 = vst [vmem:[#allocation12_spill] sm:$0xff] %v11654_v35  ;;  %9006 = vmatmul.msk.f32.gmra.mxu2 %vm393_vm3, %v4836_v45  ;;  %v5007_v35 = vld [vmem:[#allocation3 + $0x97] sm:$0x1f] }
 0x59a   : >> { %9032 = vmatmul.msk.f32.gmra.mxu3 %vm393_vm3, %v5006_v7  ;;  %v5160_v7 = vld [vmem:[#allocation3 + $0x1a] sm:$0xff] }
 0x59c   : >> { %v4918_v9 = vpop.f32.mrf.mxu2 }
 0x59d   : >> { %v4972_v39 = vadd.f32 %v4918_v9, %v4802_v31  ;;  %v5088_v17 = vpop.f32.mrf.mxu3  ;;  %v4751_v36 = vpop.f32.mrf.mxu1  ;;  %v5330_v31 = vld [vmem:[#allocation3 + $0x1b] sm:$0xff] }
 0x59e   : >> { %v4803_v45 = vadd.f32 %v4751_v36, %v4633_v33  ;;  %v5500_v9 = vld [vmem:[#allocation3 + $0x1c] sm:$0xff]  ;;  %v4635_v33 = vadd.f32 %v11474_v2, %v4436_v55 }
 0x59f   : >> { %v11662_v58 = vadd.f32 %v5088_v17, %v4972_v39 }
 0x5a0   : >> { %8981 = vmatmul.msk.f32.gmra.mxu1 %vm393_vm3, %v4667_v40  ;;  %v5161_v40 = vld [vmem:[#allocation3 + $0x22] sm:$0xff] }
 0x5a1   : >> { %9007 = vmatmul.msk.f32.gmra.mxu2 %vm393_vm3, %v4837_v62  ;;  %v5331_v62 = vld [vmem:[#allocation3 + $0x23] sm:$0xff] }
 0x5a2   : >> { %9033 = vmatmul.msk.f32.gmra.mxu3 %vm393_vm3, %v5007_v35 }
 0x5a4   : >> { %v4921_v49 = vpop.f32.mrf.mxu2 }
 0x5a5   : >> { %v4973_v63 = vadd.f32 %v4921_v49, %v4803_v45  ;;  %v5091_v20 = vpop.f32.mrf.mxu3  ;;  %v4754_v43 = vpop.f32.mrf.mxu1  ;;  %v5501_v45 = vld [vmem:[#allocation3 + $0x24] sm:$0xff] }
 0x5a6   : >> { %v4804_v32 = vadd.f32 %v4754_v43, %v4634_v47  ;;  %v5502_v47 = vld [vmem:[#allocation3 + $0x2c] sm:$0xff] }
 0x5a7   : >> { %v11670_v12 = vadd.f32 %v5091_v20, %v4973_v63  ;;  %v4439_v20 = vadd.f32 %v11492_v60, %v11476_v38  ;;  %v4442_v38 = vadd.f32 %v11502_v11, %v11494_v10 }
 0x5a8   : >> { %9042 = vmatmul.msk.f32.vlgmr.msra.gmra.mxu1 %vm393_vm3, %v5160_v7  ;;  %v5162_v7 = vld [vmem:[#allocation3 + $0x2a] sm:$0xff] }
 0x5a9   : >> { %9068 = vmatmul.msk.f32.vlgmr.msrb.gmra.mxu2 %vm393_vm3, %v5330_v31  ;;  %v5332_v31 = vld [vmem:[#allocation3 + $0x2b] sm:$0xff]  ;;  %v4636_v2 = vadd.f32 %v11490_v26, %v4439_v20  ;;  %v4637_v26 = vadd.f32 %v11504_v56, %v4442_v38 }
 0x5aa   : >> { %9094 = vmatmul.msk.f32.vlgmr.msrb.gmra.mxu3 %vm393_vm3, %v5500_v9 }
 0x5ac   : >> { %v4924_v35 = vpop.f32.mrf.mxu2 }
 0x5ad   : >> { %v4974_v39 = vadd.f32 %v4924_v35, %v4804_v32  ;;  %v5094_v17 = vpop.f32.mrf.mxu3  ;;  %v4757_v21 = vpop.f32.mrf.mxu1 }
 0x5ae   : >> { %v4805_v49 = vadd.f32 %v4757_v21, %v4635_v33  ;;  %v5503_v21 = vld [vmem:[#allocation3 + $0x34] sm:$0xff]  ;;  %v4445_v33 = vadd.f32 %v11517_v28, %v11506_v29  ;;  %v4448_v29 = vadd.f32 %v11526_v19, %v11521_v0  ;;  %v4451_v0 = vadd.f32 %v11541_v25, %v11530_v51 }
 0x5af   : >> { %v11681_v36 = vadd.f32 %v5094_v17, %v4974_v39  ;;  %v5163_v39 = vld [vmem:[#allocation3 + $0x32] sm:$0xff] }
 0x5b0   : >> { %9043 = vmatmul.msk.f32.gmra.mxu1 %vm393_vm3, %v5161_v40  ;;  %v5333_v17 = vld [vmem:[#allocation3 + $0x33] sm:$0xff]  ;;  %v4638_v56 = vadd.f32 %v11519_v44, %v4445_v33  ;;  %v4639_v44 = vadd.f32 %v11528_v57, %v4448_v29  ;;  %v4640_v57 = vadd.f32 %v11543_v37, %v4451_v0  ;;  %v5339_v0 = vld [vmem:[#allocation3 + $0x63] sm:$0xff] }
 0x5b1   : >> { %9069 = vmatmul.msk.f32.gmra.mxu2 %vm393_vm3, %v5331_v62 }
 0x5b2   : >> { %9095 = vmatmul.msk.f32.gmra.mxu3 %vm393_vm3, %v5501_v45 }
 0x5b4   : >> { %v4927_v42 = vpop.f32.mrf.mxu2 }
 0x5b5   : >> { %v4975_v63 = vadd.f32 %v4927_v42, %v4805_v49  ;;  %v5097_v34 = vpop.f32.mrf.mxu3  ;;  %v4760_v48 = vpop.f32.mrf.mxu1  ;;  %v5164_v42 = vld [vmem:[#allocation3 + $0x3a] sm:$0xff] }
 0x5b6   : >> { %v4806_v9 = vadd.f32 %v4760_v48, %v4636_v2 }
 0x5b7   : >> { %v11689_v43 = vadd.f32 %v5097_v34, %v4975_v63  ;;  %v5334_v63 = vld [vmem:[#allocation3 + $0x3b] sm:$0xff] }
 0x5b8   : >> { %9044 = vmatmul.msk.f32.gmra.mxu1 %vm393_vm3, %v5162_v7  ;;  %v5504_v34 = vld [vmem:[#allocation3 + $0x3c] sm:$0xff] }
 0x5b9   : >> { %9070 = vmatmul.msk.f32.gmra.mxu2 %vm393_vm3, %v5332_v31 }
 0x5ba   : >> { %9096 = vmatmul.msk.f32.gmra.mxu3 %vm393_vm3, %v5502_v47  ;;  %v5165_v47 = vld [vmem:[#allocation3 + $0x42] sm:$0xff] }
 0x5bc   : >> { %v4930_v24 = vpop.f32.mrf.mxu2 }
 0x5bd   : >> { %v4976_v32 = vadd.f32 %v4930_v24, %v4806_v9  ;;  %v5100_v35 = vpop.f32.mrf.mxu3  ;;  %v4763_v55 = vpop.f32.mrf.mxu1  ;;  %v5335_v9 = vld [vmem:[#allocation3 + $0x43] sm:$0xff] }
 0x5be   : >> { %v4807_v40 = vadd.f32 %v4763_v55, %v4637_v26  ;;  %v5505_v24 = vld [vmem:[#allocation3 + $0x44] sm:$0xff] }
 0x5bf   : >> { %v11697_v60 = vadd.f32 %v5100_v35, %v4976_v32  ;;  %v5336_v26 = vld [vmem:[#allocation3 + $0x4b] sm:$0xff] }
 0x5c0   : >> { %9045 = vmatmul.msk.f32.gmra.mxu1 %vm393_vm3, %v5163_v39 }
 0x5c1   : >> { %9071 = vmatmul.msk.f32.gmra.mxu2 %vm393_vm3, %v5333_v17  ;;  %v5166_v17 = vld [vmem:[#allocation3 + $0x4a] sm:$0xff] }
 0x5c2   : >> { %9097 = vmatmul.msk.f32.gmra.mxu3 %vm393_vm3, %v5503_v21  ;;  %v5506_v21 = vld [vmem:[#allocation3 + $0x4c] sm:$0xff] }
 0x5c4   : >> { %v4933_v62 = vpop.f32.mrf.mxu2 }
 0x5c5   : >> { %v4977_v45 = vadd.f32 %v4933_v62, %v4807_v40  ;;  %v5103_v10 = vpop.f32.mrf.mxu3  ;;  %v4766_v11 = vpop.f32.mrf.mxu1 }
 0x5c6   : >> { %v4808_v48 = vadd.f32 %v4766_v11, %v4638_v56  ;;  %v5167_v11 = vld [vmem:[#allocation3 + $0x52] sm:$0xff] }
 0x5c7   : >> { %v11705_v49 = vadd.f32 %v5103_v10, %v4977_v45  ;;  %v4454_v45 = vadd.f32 %v11555_v27, %v11548_v8  ;;  %v4457_v8 = vadd.f32 %v11574_v22, %v11559_v4 }
 0x5c8   : >> { %9046 = vmatmul.msk.f32.gmra.mxu1 %vm393_vm3, %v5164_v42  ;;  %v5337_v42 = vld [vmem:[#allocation3 + $0x53] sm:$0xff] }
 0x5c9   : >> { %9072 = vmatmul.msk.f32.gmra.mxu2 %vm393_vm3, %v5334_v63  ;;  %v4641_v37 = vadd.f32 %v11553_v1, %v4454_v45  ;;  %v5507_v63 = vld [vmem:[#allocation3 + $0x54] sm:$0xff]  ;;  %v4642_v1 = vadd.f32 %v11576_v13, %v4457_v8 }
 0x5ca   : >> { %9098 = vmatmul.msk.f32.gmra.mxu3 %vm393_vm3, %v5504_v34 }
 0x5cc   : >> { %v4936_v20 = vpop.f32.mrf.mxu2 }
 0x5cd   : >> { %v4978_v28 = vadd.f32 %v4936_v20, %v4808_v48  ;;  %v5106_v7 = vpop.f32.mrf.mxu3  ;;  %v4769_v31 = vpop.f32.mrf.mxu1 }
 0x5ce   : >> { %v4809_v32 = vadd.f32 %v4769_v31, %v4639_v44  ;;  %v5508_v31 = vld [vmem:[#allocation3 + $0x5c] sm:$0xff]  ;;  %v4460_v44 = vadd.f32 %v11583_v15, %v11580_v41  ;;  %v4463_v41 = vadd.f32 %v11600_v16, %v11593_v23  ;;  %v4466_v23 = vadd.f32 %v11612_v61, %v11608_v6 }
 0x5cf   : >> { %v11713_v2 = vadd.f32 %v5106_v7, %v4978_v28  ;;  %v5168_v28 = vld [vmem:[#allocation3 + $0x5a] sm:$0xff]  ;;  %v4469_v6 = vadd.f32 %v11624_v52, %v11617_v14 }
 0x5d0   : >> { %9047 = vmatmul.msk.f32.gmra.mxu1 %vm393_vm3, %v5165_v47  ;;  %v5338_v7 = vld [vmem:[#allocation3 + $0x5b] sm:$0xff]  ;;  %v4643_v13 = vadd.f32 %v11585_v46, %v4460_v44  ;;  %v4644_v46 = vadd.f32 %v11606_v54, %v4463_v41  ;;  %v4645_v54 = vadd.f32 %v11615_v59, %v4466_v23  ;;  %v5344_v41 = vld [vmem:[#allocation3 + $0x8b] sm:$0xff] }
 0x5d1   : >> { %9073 = vmatmul.msk.f32.gmra.mxu2 %vm393_vm3, %v5335_v9  ;;  %v5342_v59 = vld [vmem:[#allocation3 + $0x7b] sm:$0xff]  ;;  %v4646_v8 = vadd.f32 %v11633_v18, %v4469_v6  ;;  %v5343_v18 = vld [vmem:[#allocation3 + $0x83] sm:$0xff]  ;;  %v5345_v6 = vld [vmem:[#allocation3 + $0x93] sm:$0xff] }
 0x5d2   : >> { %9099 = vmatmul.msk.f32.gmra.mxu3 %vm393_vm3, %v5505_v24  ;;  %v5512_v14 = vld [vmem:[#allocation3 + $0x7c] sm:$0xff] }
 0x5d3   : >> { %v9196_v23 = vld [vmem:[%s12904_s5 + $0x68] sm:$0xff] }
 0x5d4   : >> { %v4939_v35 = vpop.f32.mrf.mxu2 }
 0x5d5   : >> { %v4979_v19 = vadd.f32 %v4939_v35, %v4809_v32  ;;  %v5109_v55 = vpop.f32.mrf.mxu3  ;;  %v4772_v38 = vpop.f32.mrf.mxu1  ;;  %v5169_v35 = vld [vmem:[#allocation3 + $0x62] sm:$0xff] }
 0x5d6   : >> { %v4810_v40 = vadd.f32 %v4772_v38, %v4640_v57 }
 0x5d7   : >> { %v11721_v39 = vadd.f32 %v5109_v55, %v4979_v19  ;;  %v5509_v19 = vld [vmem:[#allocation3 + $0x64] sm:$0xff] }
 0x5d8   : >> { %9048 = vmatmul.msk.f32.gmra.mxu1 %vm393_vm3, %v5166_v17 }
 0x5d9   : >> { %9074 = vmatmul.msk.f32.gmra.mxu2 %vm393_vm3, %v5336_v26 }
 0x5da   : >> { %9100 = vmatmul.msk.f32.gmra.mxu3 %vm393_vm3, %v5506_v21  ;;  %v5340_v21 = vld [vmem:[#allocation3 + $0x6b] sm:$0xff] }
 0x5dc   : >> { %v4942_v62 = vpop.f32.mrf.mxu2 }
 0x5dd   : >> { %v4980_v33 = vadd.f32 %v4942_v62, %v4810_v40  ;;  %v5112_v51 = vpop.f32.mrf.mxu3  ;;  %v4775_v25 = vpop.f32.mrf.mxu1  ;;  %v9503_v40 = vld [vmem:[#allocation3 + $0x6a] sm:$0xff] }
 0x5de   : >> { %v4811_v56 = vadd.f32 %v4775_v25, %v4641_v37  ;;  %v5510_v62 = vld [vmem:[#allocation3 + $0x6c] sm:$0xff]  ;;  %v5511_v37 = vld [vmem:[#allocation3 + $0x74] sm:$0xff] }
 0x5df   : >> { %v11729_v10 = vadd.f32 %v5112_v51, %v4980_v33 }
 0x5e0   : >> { %9049 = vmatmul.msk.f32.gmra.mxu1 %vm393_vm3, %v5167_v11 }
 0x5e1   : >> { %9075 = vmatmul.msk.f32.gmra.mxu2 %vm393_vm3, %v5337_v42  ;;  %v5341_v42 = vld [vmem:[#allocation3 + $0x73] sm:$0xff] }
 0x5e2   : >> { %9101 = vmatmul.msk.f32.gmra.mxu3 %vm393_vm3, %v5507_v63 }
 0x5e4   : >> { %v4945_v34 = vpop.f32.mrf.mxu2 }
 0x5e5   : >> { %v4981_v48 = vadd.f32 %v4945_v34, %v4811_v56  ;;  %v5115_v20 = vpop.f32.mrf.mxu3  ;;  %v4778_v29 = vpop.f32.mrf.mxu1 }
 0x5e6   : >> { %v4812_v47 = vadd.f32 %v4778_v29, %v4642_v1  ;;  %v5776_v29 = vld [vmem:[#allocation4 + $0x1] sm:$0xff] }
 0x5e7   : >> { %v11737_v27 = vadd.f32 %v5115_v20, %v4981_v48  ;;  %9116 = vmatmul.msk.f32.vlgmr.msrb.gmra.mxu0 %vm411_vm5, %v5776_v29 }
 0x5e8   : >> { %9050 = vmatmul.msk.f32.gmra.mxu1 %vm393_vm3, %v5168_v28 }
 0x5e9   : >> { %9076 = vmatmul.msk.f32.gmra.mxu2 %vm393_vm3, %v5338_v7  ;;  %v4472_v7 = vadd.f32 %v11640_v53, %v11635_v3 }
 0x5ea   : >> { %9102 = vmatmul.msk.f32.gmra.mxu3 %vm393_vm3, %v5508_v31 }
 0x5eb   : >> { %v4647_v44 = vadd.f32 %v11642_v5, %v4472_v7  ;;  %v5775_v5 = vld [vmem:[%s12904_s5 + $0x18] sm:$0xff] }
 0x5ec   : >> { %v4948_v9 = vpop.f32.mrf.mxu2  ;;  %6058 = vmatpush.msrb.mxu1 %v5775_v5 }
 0x5ed   : >> { %v4982_v24 = vadd.f32 %v4948_v9, %v4812_v47  ;;  %v5118_v4 = vpop.f32.mrf.mxu3  ;;  %v4781_v22 = vpop.f32.mrf.mxu1 }
 0x5ee   : >> { %v4813_v55 = vadd.f32 %v4781_v22, %v4643_v13  ;;  %v9169_v13 = vld [vmem:[%s12904_s5 + $0x58] sm:$0xff] }
 0x5ef   : >> { %v11745_v32 = vadd.f32 %v5118_v4, %v4982_v24  ;;  %v5513_v24 = vld [vmem:[#allocation3 + $0x84] sm:$0xff]  ;;  %v5777_v4 = vld [vmem:[#allocation4 + $0x9] sm:$0xff]  ;;  %6253 = vmatpush.msra.mxu2 %v9169_v13 }
 0x5f0   : >> { %9051 = vmatmul.msk.f32.gmra.mxu1 %vm393_vm3, %v5169_v35  ;;  %9117 = vmatmul.msk.f32.gmra.mxu0 %vm411_vm5, %v5777_v4  ;;  %v5177_v4 = vld [vmem:[#allocation3 + $0xa2] sm:$0x1f] }
 0x5f1   : >> { %9077 = vmatmul.msk.f32.gmra.mxu2 %vm393_vm3, %v5339_v0 }
 0x5f2   : >> { %9103 = vmatmul.msk.f32.gmra.mxu3 %vm393_vm3, %v5509_v19  ;;  %v9198_v19 = vld [vmem:[%s12904_s5 + $0x78] sm:$0xff] }
 0x5f3   : >> { %6471 = vmatpush.msra.mxu3 %v9198_v19 }
 0x5f4   : >> { %v4951_v38 = vpop.f32.mrf.mxu2 }
 0x5f5   : >> { %v4983_v15 = vadd.f32 %v4951_v38, %v4813_v55  ;;  %v5121_v17 = vpop.f32.mrf.mxu3  ;;  %v4784_v26 = vpop.f32.mrf.mxu1  ;;  %v5174_v38 = vld [vmem:[#allocation3 + $0x8a] sm:$0xff] }
 0x5f6   : >> { %v4814_v33 = vadd.f32 %v4784_v26, %v4644_v46  ;;  %v9168_v26 = vld [vmem:[%s12904_s5 + $0x50] sm:$0xff] }
 0x5f7   : >> { %v11753_v57 = vadd.f32 %v5121_v17, %v4983_v15  ;;  %v5514_v15 = vld [vmem:[#allocation3 + $0x8c] sm:$0xff]  ;;  %v5774_v17 = vld [vmem:[%s12904_s5 + $0x10] sm:$0xff]  ;;  %6254 = vmatpush.msra.mxu2 %v9168_v26 }
 0x5f8   : >> { %9052 = vmatmul.msk.f32.gmra.mxu1 %vm393_vm3, %v9503_v40  ;;  %v5778_v46 = vld [vmem:[#allocation4 + $0x11] sm:$0xff] }
 0x5f9   : >> { %9078 = vmatmul.msk.f32.gmra.mxu2 %vm393_vm3, %v5340_v21  ;;  %v9197_v21 = vld [vmem:[%s12904_s5 + $0x70] sm:$0xff]  ;;  %6059 = vmatpush.msrb.mxu1 %v5774_v17 }
 0x5fa   : >> { %9104 = vmatmul.msk.f32.gmra.mxu3 %vm393_vm3, %v5510_v62  ;;  %v13001_v40 = vld [vmem:[#allocation29_spill] sm:$0xff]  ;;  %9118 = vmatmul.msk.f32.gmra.mxu0 %vm411_vm5, %v5778_v46 }
 0x5fb   : >> { %6472 = vmatpush.msra.mxu3 %v9197_v21  ;;  %v6354_v26 = vld [vmem:[#allocation4 + $0xf] sm:$0xff] }
 0x5fc   : >> { %v4954_v51 = vpop.f32.mrf.mxu2 }
 0x5fd   : >> { %v4984_v16 = vadd.f32 %v4954_v51, %v4814_v33  ;;  %v5124_v25 = vpop.f32.mrf.mxu3  ;;  %v4787_v45 = vpop.f32.mrf.mxu1  ;;  %v5773_v33 = vld [vmem:[%s12904_s5 + $0x8] sm:$0xff]  ;;  %6473 = vmatpush.msra.mxu3 %v9196_v23  ;;  %v9226_v23 = vld [vmem:[%s12904_s5 + $0x90] sm:$0xff] }
 0x5fe   : >> { %v4815_v63 = vadd.f32 %v4787_v45, %v4645_v54  ;;  %v9167_v51 = vld [vmem:[%s12904_s5 + $0x48] sm:$0xff]  ;;  %6060 = vmatpush.msrb.mxu1 %v5773_v33  ;;  %v9166_v54 = vld [vmem:[%s12904_s5 + $0x40] sm:$0xff] }
 0x5ff   : >> { %v11761_v11 = vadd.f32 %v5124_v25, %v4984_v16  ;;  %6255 = vmatpush.msra.mxu2 %v9167_v51 }
 0x600   : >> { %9053 = vmatmul.msk.f32.gmra.mxu1 %vm393_vm3, %v11380_v50  ;;  %v9227_v50 = vld [vmem:[%s12904_s5 + $0x98] sm:$0xff] }
 0x601   : >> { %9079 = vmatmul.msk.f32.gmra.mxu2 %vm393_vm3, %v5341_v42  ;;  %6689 = vmatpush.msra.mxu0 %v9227_v50  ;;  %v5772_v42 = vld [vmem:[%s12904_s5] sm:$0xff] }
 0x602   : >> { %9105 = vmatmul.msk.f32.gmra.mxu3 %vm393_vm3, %v5511_v37  ;;  %v9195_v37 = vld [vmem:[%s12904_s5 + $0x60] sm:$0xff]  ;;  %6061 = vmatpush.msrb.mxu1 %v5772_v42  ;;  %v6355_v42 = vld [vmem:[#allocation4 + $0x17] sm:$0xff] }
 0x603   : >> { %6256 = vmatpush.msra.mxu2 %v9166_v54  ;;  %6474 = vmatpush.msra.mxu3 %v9195_v37 }
 0x604   : >> { %v4957_v56 = vpop.f32.mrf.mxu2  ;;  %6690 = vmatpush.msra.mxu0 %v9226_v23 }
 0x605   : >> { %v4985_v61 = vadd.f32 %v4957_v56, %v4815_v63  ;;  %v5127_v34 = vpop.f32.mrf.mxu3  ;;  %v4790_v48 = vpop.f32.mrf.mxu1  ;;  %v5175_v56 = vld [vmem:[#allocation3 + $0x92] sm:$0xff] }
 0x606   : >> { %v4816_v52 = vadd.f32 %v4790_v48, %v4646_v8  ;;  %v13002_v48 = vld [vmem:[#allocation12_spill] sm:$0xff] }
 0x607   : >> { %v11770_v20 = vadd.f32 %v5127_v34, %v4985_v61  ;;  %v5515_v34 = vld [vmem:[#allocation3 + $0x94] sm:$0xff] }
 0x608   : >> { %9054 = vmatmul.msk.f32.gmra.mxu1 %vm393_vm3, %v11399_v30  ;;  %v13000_v30 = vld [vmem:[#allocation14_spill] sm:$0xff] }
 0x609   : >> { %9080 = vmatmul.msk.f32.gmra.mxu2 %vm393_vm3, %v5342_v59 }
 0x60a   : >> { %9106 = vmatmul.msk.f32.gmra.mxu3 %vm393_vm3, %v5512_v14 }
 0x60c   : >> { %v4960_v28 = vpop.f32.mrf.mxu2 }
 0x60d   : >> { %v4986_v1 = vadd.f32 %v4960_v28, %v4816_v52  ;;  %v5130_v31 = vpop.f32.mrf.mxu3  ;;  %v4793_v47 = vpop.f32.mrf.mxu1  ;;  %v5176_v52 = vld [vmem:[#allocation3 + $0x9a] sm:$0xff] }
 0x60e   : >> { %v4817_v22 = vadd.f32 %v4793_v47, %v4647_v44  ;;  %v5346_v28 = vld [vmem:[#allocation3 + $0x9b] sm:$0xff] }
 0x60f   : >> { %v11783_v9 = vadd.f32 %v5130_v31, %v4986_v1  ;;  %v5516_v1 = vld [vmem:[#allocation3 + $0x9c] sm:$0xff] }
 0x610   : >> { %9055 = vmatmul.msk.f32.gmra.mxu1 %vm393_vm3, %v13000_v30  ;;  %v11849_v30 = vld [vmem:[%s12903_s4] ss:$0 sm:$0xff] }
 0x611   : >> { %9081 = vmatmul.msk.f32.gmra.mxu2 %vm393_vm3, %v5343_v18 }
 0x612   : >> { %9107 = vmatmul.msk.f32.gmra.mxu3 %vm393_vm3, %v5513_v24 }
 0x614   : >> { %v4963_v3 = vpop.f32.mrf.mxu2 }
 0x615   : >> { %v4987_v53 = vadd.f32 %v4963_v3, %v4817_v22  ;;  %v5133_v35 = vpop.f32.mrf.mxu3  ;;  %v4796_v0 = vpop.f32.mrf.mxu1  ;;  %v5347_v22 = vld [vmem:[#allocation3 + $0xa3] sm:$0x1f] }
 0x616   : >> { %v4818_v62 = vadd.f32 %v4796_v0, %v13001_v40 }
 0x617   : >> { %v11800_v55 = vadd.f32 %v5133_v35, %v4987_v53  ;;  %v5517_v53 = vld [vmem:[#allocation3 + $0xa4] sm:$0x1f] }
 0x618   : >> { %9056 = vmatmul.msk.f32.gmra.mxu1 %vm393_vm3, %v5174_v38 }
 0x619   : >> { %9082 = vmatmul.msk.f32.gmra.mxu2 %vm393_vm3, %v5344_v41  ;;  %v5747_v41 = vld [vmem:[#allocation4] sm:$0xff] }
 0x61a   : >> { %9108 = vmatmul.msk.f32.gmra.mxu3 %vm393_vm3, %v5514_v15  ;;  %v6136_v15 = vld [vmem:[#allocation4 + $0x2] sm:$0xff] }
 0x61c   : >> { %v4966_v16 = vpop.f32.mrf.mxu2 }
 0x61d   : >> { %v4988_v25 = vadd.f32 %v4966_v16, %v4818_v62  ;;  %v5136_v45 = vpop.f32.mrf.mxu3  ;;  %v4799_v63 = vpop.f32.mrf.mxu1 }
 0x61e   : >> { %v4819_v29 = vadd.f32 %v4799_v63, %v13002_v48 }
 0x61f   : >> { %v11834_v61 = vadd.f32 %v5136_v45, %v4988_v25  ;;  %v5748_v25 = vld [vmem:[#allocation4 + $0x8] sm:$0xff] }
 0x620   : >> { %9057 = vmatmul.msk.f32.gmra.mxu1 %vm393_vm3, %v5175_v56  ;;  %v6137_v45 = vld [vmem:[#allocation4 + $0xa] sm:$0xff] }
 0x621   : >> { %9083 = vmatmul.msk.f32.gmra.mxu2 %vm393_vm3, %v5345_v6 }
 0x622   : >> { %9109 = vmatmul.msk.f32.gmra.mxu3 %vm393_vm3, %v5515_v34 }
 0x624   : >> { %v4969_v50 = vpop.f32.mrf.mxu2 }
 0x625   : >> { %v4989_v59 = vadd.f32 %v4969_v50, %v4819_v29  ;;  %v5139_v8 = vpop.f32.mrf.mxu3  ;;  %v5258_v14 = vpop.f32.mrf.mxu1  ;;  %v11881_v50 = vld [vmem:[#allocation4 + $0x10] sm:$0xff] }
 0x626   : >> { %v5312_v31 = vadd.f32 %v5258_v14, %v11662_v58 }
 0x627   : >> { %v11840_v7 = vadd.f32 %v5139_v8, %v4989_v59  ;;  %v6138_v59 = vld [vmem:[#allocation4 + $0x12] sm:$0xff] }
 0x628   : >> { %9058 = vmatmul.msk.f32.gmra.mxu1 %vm393_vm3, %v5176_v52 }
 0x629   : >> { %9084 = vmatmul.msk.f32.gmra.mxu2 %vm393_vm3, %v5346_v28 }
 0x62a   : >> { %9110 = vmatmul.msk.f32.gmra.mxu3 %vm393_vm3, %v5516_v1 }
 0x62c   : >> { %v5428_v47 = vpop.f32.mrf.mxu2 }
 0x62d   : >> { %v5482_v18 = vadd.f32 %v5428_v47, %v5312_v31  ;;  %v5598_v44 = vpop.f32.mrf.mxu3  ;;  %v5261_v24 = vpop.f32.mrf.mxu1 }
 0x62e   : >> { %v5313_v0 = vadd.f32 %v5261_v24, %v11670_v12  ;;  %v11897_v24 = vld [vmem:[#allocation4 + $0x18] sm:$0xff] }
 0x62f   : >> { %v5652_v3 = vadd.f32 %v5598_v44, %v5482_v18 }
 0x630   : >> { %9059 = vmatmul.msk.f32.gmra.mxu1 %vm393_vm3, %v5177_v4 }
 0x631   : >> { %v5674_v35 = vadd.f32 %v11849_v30, %v5652_v3  ;;  %9085 = vmatmul.msk.f32.gmra.mxu2 %vm393_vm3, %v5347_v22 }
 0x632   : >> { %9111 = vmatmul.msk.f32.gmra.mxu3 %vm393_vm3, %v5517_v53 }
 0x633   : >> { %v5692_v58 = vmax.f32 %v5674_v35, 0.0 }
 0x634   : >> { %v5431_v5 = vpop.f32.mrf.mxu2 }
 0x635   : >> { %5710 = vst.msk [vmem:[#allocation4 + $0x20] sm:$0xff] %vm411_vm5, %v5692_v58  ;;  %v5483_v13 = vadd.f32 %v5431_v5, %v5313_v0  ;;  %v5601_v19 = vpop.f32.mrf.mxu3  ;;  %v5264_v38 = vpop.f32.mrf.mxu1 }
 0x636   : >> { %v5314_v46 = vadd.f32 %v5264_v38, %v11681_v36 }
 0x637   : >> { %v5653_v17 = vadd.f32 %v5601_v19, %v5483_v13 }
 0x638   : >> { %9141 = vmatmul.msk.f32.vlgmr.msrb.gmra.mxu1 %vm411_vm5, %v5747_v41 }
 0x639   : >> { %v5675_v21 = vadd.f32 %v11849_v30, %v5653_v17  ;;  %9170 = vmatmul.msk.f32.vlgmr.msra.gmra.mxu2 %vm411_vm5, %v6136_v15 }
 0x63a   : >> { %9199 = vmatmul.msk.f32.vlgmr.msra.gmra.mxu3 %vm411_vm5, %v6354_v26 }
 0x63b   : >> { %v5693_v12 = vmax.f32 %v5675_v21, 0.0 }
 0x63c   : >> { %v5434_v40 = vpop.f32.mrf.mxu2  ;;  %v11862_v62 = vld [vmem:[#allocation4 + $0x19] sm:$0xff] }
 0x63d   : >> { %5712 = vst.msk [vmem:[#allocation4 + $0x28] sm:$0x7] %vm5711_vm11, %v5693_v12  ;;  %v5484_v33 = vadd.f32 %v5434_v40, %v5314_v46  ;;  %v5604_v51 = vpop.f32.mrf.mxu3  ;;  %9119 = vmatmul.msk.f32.gmra.mxu0 %vm411_vm5, %v11862_v62  ;;  %v5267_v16 = vpop.f32.mrf.mxu1  ;;  %v6139_v22 = vld [vmem:[#allocation4 + $0x1a] sm:$0xff] }
 0x63e   : >> { %5714 = vst.msk [vmem:[#allocation4 + $0x2a] sm:$0xe0] %vm5713_vm12, %v5693_v12  ;;  %v5315_v63 = vadd.f32 %v5267_v16, %v11689_v43  ;;  %v11887_v43 = vld [vmem:[#allocation4 + $0x1f] sm:$0xff] }
 0x63f   : >> { %v5654_v36 = vadd.f32 %v5604_v51, %v5484_v33  ;;  %v11913_v41 = vld [vmem:[#allocation4 + $0x20] sm:$0xff] }
 0x640   : >> { %9142 = vmatmul.msk.f32.gmra.mxu1 %vm411_vm5, %v5748_v25 }
 0x641   : >> { %v5676_v54 = vadd.f32 %v11849_v30, %v5654_v36  ;;  %9171 = vmatmul.msk.f32.gmra.mxu2 %vm411_vm5, %v6137_v45 }
 0x642   : >> { %9200 = vmatmul.msk.f32.gmra.mxu3 %vm411_vm5, %v6355_v42 }
 0x643   : >> { %v5694_v37 = vmax.f32 %v5676_v54, 0.0 }
 0x644   : >> { %v5437_v56 = vpop.f32.mrf.mxu2  ;;  %v11876_v6 = vld [vmem:[#allocation4 + $0x21] sm:$0xff] }
 0x645   : >> { %5715 = vst.msk [vmem:[#allocation4 + $0x32] sm:$0xff] %vm411_vm5, %v5694_v37  ;;  %v5485_v34 = vadd.f32 %v5437_v56, %v5315_v63  ;;  %v5607_v48 = vpop.f32.mrf.mxu3  ;;  %9120 = vmatmul.msk.f32.gmra.mxu0 %vm411_vm5, %v11876_v6  ;;  %v5270_v29 = vpop.f32.mrf.mxu1  ;;  %v11892_v31 = vld [vmem:[#allocation4 + $0x29] sm:$0xff] }
 0x646   : >> { %v5316_v28 = vadd.f32 %v5270_v29, %v11697_v60  ;;  %v11903_v60 = vld [vmem:[#allocation4 + $0x27] sm:$0xff] }
 0x647   : >> { %v5655_v8 = vadd.f32 %v5607_v48, %v5485_v34  ;;  %v6140_v15 = vld [vmem:[#allocation4 + $0x22] sm:$0xff]  ;;  %v6141_v25 = vld [vmem:[#allocation4 + $0x2a] sm:$0xff] }
 0x648   : >> { %9143 = vmatmul.msk.f32.gmra.mxu1 %vm411_vm5, %v11881_v50  ;;  %v11929_v16 = vld [vmem:[#allocation4 + $0x28] sm:$0xff] }
 0x649   : >> { %v5677_v14 = vadd.f32 %v11849_v30, %v5655_v8  ;;  %9172 = vmatmul.msk.f32.gmra.mxu2 %vm411_vm5, %v6138_v59 }
 0x64a   : >> { %9201 = vmatmul.msk.f32.gmra.mxu3 %vm411_vm5, %v11887_v43 }
 0x64b   : >> { %v5695_v52 = vmax.f32 %v5677_v14, 0.0 }
 0x64c   : >> { %v5440_v1 = vpop.f32.mrf.mxu2  ;;  %v11908_v0 = vld [vmem:[#allocation4 + $0x31] sm:$0xff] }
 0x64d   : >> { %5717 = vst.msk [vmem:[#allocation4 + $0x3c] sm:$0xfc] %vm5716_vm13, %v5695_v52  ;;  %v5486_v47 = vadd.f32 %v5440_v1, %v5316_v28  ;;  %v5610_v18 = vpop.f32.mrf.mxu3  ;;  %9121 = vmatmul.msk.f32.gmra.mxu0 %vm411_vm5, %v11892_v31  ;;  %v5273_v44 = vpop.f32.mrf.mxu1  ;;  %v11944_v29 = vld [vmem:[#allocation4 + $0x30] sm:$0xff] }
 0x64e   : >> { %v5317_v35 = vadd.f32 %v5273_v44, %v11705_v49  ;;  %v11919_v49 = vld [vmem:[#allocation4 + $0x2f] sm:$0xff] }
 0x64f   : >> { %v5656_v4 = vadd.f32 %v5610_v18, %v5486_v47  ;;  %v6142_v59 = vld [vmem:[#allocation4 + $0x32] sm:$0xff] }
 0x650   : >> { %9144 = vmatmul.msk.f32.gmra.mxu1 %vm411_vm5, %v11897_v24 }
 0x651   : >> { %v5678_v3 = vadd.f32 %v11849_v30, %v5656_v4  ;;  %9173 = vmatmul.msk.f32.gmra.mxu2 %vm411_vm5, %v6139_v22  ;;  %v9225_v4 = vld [vmem:[%s12904_s5 + $0x88] sm:$0xff] }
 0x652   : >> { %9202 = vmatmul.msk.f32.gmra.mxu3 %vm411_vm5, %v11903_v60  ;;  %6691 = vmatpush.msra.mxu0 %v9225_v4 }
 0x653   : >> { %v5696_v53 = vmax.f32 %v5678_v3, 0.0 }
 0x654   : >> { %v5443_v58 = vpop.f32.mrf.mxu2  ;;  %v11924_v46 = vld [vmem:[#allocation4 + $0x39] sm:$0xff] }
 0x655   : >> { %5719 = vst.msk [vmem:[#allocation4 + $0x44] sm:$0x1f] %vm5718_vm14, %v5696_v53  ;;  %v5487_v5 = vadd.f32 %v5443_v58, %v5317_v35  ;;  %v5613_v13 = vpop.f32.mrf.mxu3  ;;  %9122 = vmatmul.msk.f32.gmra.mxu0 %vm411_vm5, %v11908_v0  ;;  %v5276_v19 = vpop.f32.mrf.mxu1  ;;  %v11962_v3 = vld [vmem:[#allocation4 + $0x38] sm:$0xff] }
 0x656   : >> { %5721 = vst.msk [vmem:[#allocation4 + $0x46] sm:$0x80] %vm5720_vm15, %v5696_v53  ;;  %v5318_v21 = vadd.f32 %v5276_v19, %v11713_v2  ;;  %v11935_v2 = vld [vmem:[#allocation4 + $0x37] sm:$0xff]  ;;  %vm5739_vm15 = vcmask 259072  }
 0x657   : >> { %v5657_v38 = vadd.f32 %v5613_v13, %v5487_v5  ;;  %v6143_v53 = vld [vmem:[#allocation4 + $0x3a] sm:$0xff] }
 0x658   : >> { %9145 = vmatmul.msk.f32.gmra.mxu1 %vm411_vm5, %v11913_v41 }
 0x659   : >> { %v5679_v17 = vadd.f32 %v11849_v30, %v5657_v38  ;;  %9174 = vmatmul.msk.f32.gmra.mxu2 %vm411_vm5, %v6140_v15 }
 0x65a   : >> { %9203 = vmatmul.msk.f32.gmra.mxu3 %vm411_vm5, %v11919_v49 }
 0x65b   : >> { %v5697_v26 = vmax.f32 %v5679_v17, 0.0 }
 0x65c   : >> { %v5446_v12 = vpop.f32.mrf.mxu2  ;;  %v11940_v37 = vld [vmem:[#allocation4 + $0x41] sm:$0xff] }
 0x65d   : >> { %5722 = vst.msk [vmem:[#allocation4 + $0x4e] sm:$0xff] %vm411_vm5, %v5697_v26  ;;  %v5488_v40 = vadd.f32 %v5446_v12, %v5318_v21  ;;  %v5616_v33 = vpop.f32.mrf.mxu3  ;;  %9123 = vmatmul.msk.f32.gmra.mxu0 %vm411_vm5, %v11924_v46  ;;  %v5279_v51 = vpop.f32.mrf.mxu1  ;;  %v11977_v21 = vld [vmem:[#allocation4 + $0x40] sm:$0xff] }
 0x65e   : >> { %v5319_v42 = vadd.f32 %v5279_v51, %v11721_v39  ;;  %v11950_v39 = vld [vmem:[#allocation4 + $0x3f] sm:$0xff] }
 0x65f   : >> { %v5658_v23 = vadd.f32 %v5616_v33, %v5488_v40  ;;  %v6144_v12 = vld [vmem:[#allocation4 + $0x42] sm:$0xff] }
 0x660   : >> { %9146 = vmatmul.msk.f32.gmra.mxu1 %vm411_vm5, %v11929_v16 }
 0x661   : >> { %v5680_v45 = vadd.f32 %v11849_v30, %v5658_v23  ;;  %9175 = vmatmul.msk.f32.gmra.mxu2 %vm411_vm5, %v6141_v25 }
 0x662   : >> { %9204 = vmatmul.msk.f32.gmra.mxu3 %vm411_vm5, %v11935_v2 }
 0x663   : >> { %v5698_v36 = vmax.f32 %v5680_v45, 0.0 }
 0x664   : >> { %v5449_v54 = vpop.f32.mrf.mxu2  ;;  %v11955_v1 = vld [vmem:[#allocation4 + $0x49] sm:$0xff] }
 0x665   : >> { %5724 = vst.msk [vmem:[#allocation4 + $0x56] sm:$0x3] %vm5723_vm1, %v5698_v36  ;;  %v5489_v63 = vadd.f32 %v5449_v54, %v5319_v42  ;;  %v5619_v56 = vpop.f32.mrf.mxu3  ;;  %9124 = vmatmul.msk.f32.gmra.mxu0 %vm411_vm5, %v11940_v37  ;;  %v5282_v34 = vpop.f32.mrf.mxu1  ;;  %v11968_v35 = vld [vmem:[#allocation4 + $0x47] sm:$0xff]  ;;  %vm7749_vm1 = vcmask 130054  }
 0x666   : >> { %5726 = vst.msk [vmem:[#allocation4 + $0x58] sm:$0xf0] %vm5725_vm2, %v5698_v36  ;;  %v5320_v52 = vadd.f32 %v5282_v34, %v11729_v10  ;;  %vm7752_vm2 = vcmask 123904  }
 0x667   : >> { %v5659_v48 = vadd.f32 %v5619_v56, %v5489_v63  ;;  %v11993_v63 = vld [vmem:[#allocation4 + $0x48] sm:$0xff] }
 0x668   : >> { %9147 = vmatmul.msk.f32.gmra.mxu1 %vm411_vm5, %v11944_v29  ;;  %v6145_v56 = vld [vmem:[#allocation4 + $0x4a] sm:$0xff] }
 0x669   : >> { %v5681_v8 = vadd.f32 %v11849_v30, %v5659_v48  ;;  %9176 = vmatmul.msk.f32.gmra.mxu2 %vm411_vm5, %v6142_v59 }
 0x66a   : >> { %9205 = vmatmul.msk.f32.gmra.mxu3 %vm411_vm5, %v11950_v39 }
 0x66b   : >> { %v5699_v14 = vmax.f32 %v5681_v8, 0.0 }
 0x66c   : >> { %v5452_v28 = vpop.f32.mrf.mxu2  ;;  %v11973_v19 = vld [vmem:[#allocation4 + $0x51] sm:$0xff] }
 0x66d   : >> { %5728 = vst.msk [vmem:[#allocation4 + $0x60] sm:$0x7f] %vm5727_vm4, %v5699_v14  ;;  %v5490_v47 = vadd.f32 %v5452_v28, %v5320_v52  ;;  %v5622_v18 = vpop.f32.mrf.mxu3  ;;  %9125 = vmatmul.msk.f32.gmra.mxu0 %vm411_vm5, %v11955_v1  ;;  %v5285_v44 = vpop.f32.mrf.mxu1  ;;  %v6146_v4 = vld [vmem:[#allocation4 + $0x52] sm:$0xff]  ;;  %vm7767_vm4 = vcmask 130052  }
 0x66e   : >> { %v5321_v5 = vadd.f32 %v5285_v44, %v11737_v27  ;;  %v11983_v27 = vld [vmem:[#allocation4 + $0x4f] sm:$0xff] }
 0x66f   : >> { %v5660_v22 = vadd.f32 %v5622_v18, %v5490_v47  ;;  %v12009_v44 = vld [vmem:[#allocation4 + $0x50] sm:$0xff] }
 0x670   : >> { %9148 = vmatmul.msk.f32.gmra.mxu1 %vm411_vm5, %v11962_v3 }
 0x671   : >> { %v5682_v10 = vadd.f32 %v11849_v30, %v5660_v22  ;;  %9177 = vmatmul.msk.f32.gmra.mxu2 %vm411_vm5, %v6143_v53 }
 0x672   : >> { %9206 = vmatmul.msk.f32.gmra.mxu3 %vm411_vm5, %v11968_v35 }
 0x673   : >> { %v5700_v58 = vmax.f32 %v5682_v10, 0.0 }
 0x674   : >> { %v5455_v13 = vpop.f32.mrf.mxu2  ;;  %v11988_v25 = vld [vmem:[#allocation4 + $0x59] sm:$0xff]  ;;  %v12004_v14 = vld [vmem:[#allocation4 + $0x61] sm:$0xff] }
 0x675   : >> { %5730 = vst.msk [vmem:[#allocation4 + $0x6a] sm:$0xfe] %vm5729_vm7, %v5700_v58  ;;  %v5491_v38 = vadd.f32 %v5455_v13, %v5321_v5  ;;  %v5625_v15 = vpop.f32.mrf.mxu3  ;;  %9126 = vmatmul.msk.f32.gmra.mxu0 %vm411_vm5, %v11973_v19  ;;  %v5288_v17 = vpop.f32.mrf.mxu1  ;;  %vm7783_vm7 = vcmask 130050  }
 0x676   : >> { %v5322_v51 = vadd.f32 %v5288_v17, %v11745_v32  ;;  %v11999_v32 = vld [vmem:[#allocation4 + $0x57] sm:$0xff] }
 0x677   : >> { %v5661_v26 = vadd.f32 %v5625_v15, %v5491_v38 }
 0x678   : >> { %9149 = vmatmul.msk.f32.gmra.mxu1 %vm411_vm5, %v11977_v21 }
 0x679   : >> { %v5683_v40 = vadd.f32 %v11849_v30, %v5661_v26  ;;  %9178 = vmatmul.msk.f32.gmra.mxu2 %vm411_vm5, %v6144_v12  ;;  %v12024_v26 = vld [vmem:[#allocation4 + $0x58] sm:$0xff] }
 0x67a   : >> { %9207 = vmatmul.msk.f32.gmra.mxu3 %vm411_vm5, %v11983_v27  ;;  %v6147_v12 = vld [vmem:[#allocation4 + $0x5a] sm:$0xff] }
 0x67b   : >> { %v5701_v33 = vmax.f32 %v5683_v40, 0.0 }
 0x67c   : >> { %v5458_v23 = vpop.f32.mrf.mxu2  ;;  %v12020_v5 = vld [vmem:[#allocation4 + $0x69] sm:$0xff] }
 0x67d   : >> { %5731 = vst.msk [vmem:[#allocation4 + $0x72] sm:$0xf] %vm416_vm6, %v5701_v33  ;;  %v5492_v45 = vadd.f32 %v5458_v23, %v5322_v51  ;;  %v5628_v36 = vpop.f32.mrf.mxu3  ;;  %9127 = vmatmul.msk.f32.gmra.mxu0 %vm411_vm5, %v11988_v25  ;;  %v5291_v42 = vpop.f32.mrf.mxu1 }
 0x67e   : >> { %5733 = vst.msk [vmem:[#allocation4 + $0x74] sm:$0xc0] %vm5732_vm8, %v5701_v33  ;;  %v5323_v59 = vadd.f32 %v5291_v42, %v11753_v57  ;;  %v12015_v57 = vld [vmem:[#allocation4 + $0x5f] sm:$0xff]  ;;  %vm8233_vm8 = vcmask 1041408  }
 0x67f   : >> { %v5662_v54 = vadd.f32 %v5628_v36, %v5492_v45 }
 0x680   : >> { %9150 = vmatmul.msk.f32.gmra.mxu1 %vm411_vm5, %v11993_v63 }
 0x681   : >> { %v5684_v34 = vadd.f32 %v11849_v30, %v5662_v54  ;;  %9179 = vmatmul.msk.f32.gmra.mxu2 %vm411_vm5, %v6145_v56 }
 0x682   : >> { %9208 = vmatmul.msk.f32.gmra.mxu3 %vm411_vm5, %v11999_v32 }
 0x683   : >> { %v5702_v48 = vmax.f32 %v5684_v34, 0.0  ;;  %v12039_v34 = vld [vmem:[#allocation4 + $0x60] sm:$0xff] }
 0x684   : >> { %v5461_v8 = vpop.f32.mrf.mxu2  ;;  %v12035_v45 = vld [vmem:[#allocation4 + $0x71] sm:$0xff] }
 0x685   : >> { %5734 = vst.msk [vmem:[#allocation4 + $0x7c] sm:$0xff] %vm411_vm5, %v5702_v48  ;;  %v5493_v52 = vadd.f32 %v5461_v8, %v5323_v59  ;;  %v5631_v28 = vpop.f32.mrf.mxu3  ;;  %9128 = vmatmul.msk.f32.gmra.mxu0 %vm411_vm5, %v12004_v14  ;;  %v5294_v47 = vpop.f32.mrf.mxu1  ;;  %v6148_v48 = vld [vmem:[#allocation4 + $0x62] sm:$0xff] }
 0x686   : >> { %v5324_v10 = vadd.f32 %v5294_v47, %v11761_v11  ;;  %v12030_v11 = vld [vmem:[#allocation4 + $0x67] sm:$0xff] }
 0x687   : >> { %v5663_v18 = vadd.f32 %v5631_v28, %v5493_v52 }
 0x688   : >> { %9151 = vmatmul.msk.f32.gmra.mxu1 %vm411_vm5, %v12009_v44 }
 0x689   : >> { %v5685_v22 = vadd.f32 %v11849_v30, %v5663_v18  ;;  %9180 = vmatmul.msk.f32.gmra.mxu2 %vm411_vm5, %v6146_v4  ;;  %v12052_v18 = vpop.f32.mrf.mxu0 }
 0x68a   : >> { %9209 = vmatmul.msk.f32.gmra.mxu3 %vm411_vm5, %v12015_v57 }
 0x68b   : >> { %v5703_v53 = vmax.f32 %v5685_v22, 0.0 }
 0x68c   : >> { %v5464_v58 = vpop.f32.mrf.mxu2  ;;  %v12050_v47 = vld [vmem:[#allocation4 + $0x79] sm:$0xff] }
 0x68d   : >> { %5736 = vst.msk [vmem:[#allocation4 + $0x84] sm:$0x1] %vm5735_vm9, %v5703_v53  ;;  %v5494_v13 = vadd.f32 %v5464_v58, %v5324_v10  ;;  %v5634_v38 = vpop.f32.mrf.mxu3  ;;  %9129 = vmatmul.msk.f32.gmra.mxu0 %vm411_vm5, %v12020_v5  ;;  %v5297_v15 = vpop.f32.mrf.mxu1  ;;  %vm8229_vm9 = vcmask 15360  }
 0x68e   : >> { %5738 = vst.msk [vmem:[#allocation4 + $0x86] sm:$0xf8] %vm5737_vm10, %v5703_v53  ;;  %v5325_v51 = vadd.f32 %v5297_v15, %v11770_v20  ;;  %v12045_v20 = vld [vmem:[#allocation4 + $0x6f] sm:$0xff]  ;;  %v9224_v53 = vld [vmem:[%s12904_s5 + $0x80] sm:$0xff]  ;;  %v12066_v15 = vld [vmem:[#allocation4 + $0x77] sm:$0xff] }
 0x68f   : >> { %v5664_v17 = vadd.f32 %v5634_v38, %v5494_v13  ;;  %6692 = vmatpush.msra.mxu0 %v9224_v53  ;;  %v6149_v13 = vld [vmem:[#allocation4 + $0x6a] sm:$0xff] }
 0x690   : >> { %9152 = vmatmul.msk.f32.gmra.mxu1 %vm411_vm5, %v12024_v26 }
 0x691   : >> { %v5686_v40 = vadd.f32 %v11849_v30, %v5664_v17  ;;  %9181 = vmatmul.msk.f32.gmra.mxu2 %vm411_vm5, %v6147_v12 }
 0x692   : >> { %9210 = vmatmul.msk.f32.gmra.mxu3 %vm411_vm5, %v12030_v11 }
 0x693   : >> { %v5704_v33 = vmax.f32 %v5686_v40, 0.0 }
 0x694   : >> { %v5467_v23 = vpop.f32.mrf.mxu2 }
 0x695   : >> { %5740 = vst.msk [vmem:[#allocation4 + $0x8e] sm:$0x3f] %vm5739_vm15, %v5704_v33  ;;  %v5495_v36 = vadd.f32 %v5467_v23, %v5325_v51  ;;  %v5637_v42 = vpop.f32.mrf.mxu3  ;;  %9130 = vmatmul.msk.f32.gmra.mxu0 %vm411_vm5, %v12035_v45  ;;  %v5300_v54 = vpop.f32.mrf.mxu1  ;;  %v12071_v33 = vld [vmem:[#allocation4 + $0x81] sm:$0xff] }
 0x696   : >> { %v5326_v52 = vadd.f32 %v5300_v54, %v11783_v9  ;;  %v12060_v9 = vld [vmem:[#allocation4 + $0x68] sm:$0xff] }
 0x697   : >> { %v5665_v56 = vadd.f32 %v5637_v42, %v5495_v36  ;;  %v12077_v42 = vpop.f32.mrf.mxu0 }
 0x698   : >> { %9153 = vmatmul.msk.f32.gmra.mxu1 %vm411_vm5, %v12039_v34 }
 0x699   : >> { %v5687_v59 = vadd.f32 %v11849_v30, %v5665_v56  ;;  %9182 = vmatmul.msk.f32.gmra.mxu2 %vm411_vm5, %v6148_v48  ;;  %v12079_v56 = vld [vmem:[#allocation4 + $0x70] sm:$0xff] }
 0x69a   : >> { %9211 = vmatmul.msk.f32.gmra.mxu3 %vm411_vm5, %v12045_v20  ;;  %v6150_v48 = vld [vmem:[#allocation4 + $0x72] sm:$0xff] }
 0x69b   : >> { %v5705_v8 = vmax.f32 %v5687_v59, 0.0  ;;  %v12085_v59 = vld [vmem:[#allocation4 + $0x7f] sm:$0xff] }
 0x69c   : >> { %v5470_v28 = vpop.f32.mrf.mxu2 }
 0x69d   : >> { %5741 = vst.msk [vmem:[#allocation4 + $0x98] sm:$0xff] %vm411_vm5, %v5705_v8  ;;  %v5496_v4 = vadd.f32 %v5470_v28, %v5326_v52  ;;  %v5640_v22 = vpop.f32.mrf.mxu3  ;;  %9131 = vmatmul.msk.f32.gmra.mxu0 %vm411_vm5, %v12050_v47  ;;  %v5303_v10 = vpop.f32.mrf.mxu1 }
 0x69e   : >> { %v5327_v12 = vadd.f32 %v5303_v10, %v11800_v55 }
 0x69f   : >> { %v5666_v58 = vadd.f32 %v5640_v22, %v5496_v4  ;;  %v12090_v4 = vld [vmem:[#allocation4 + $0x89] sm:$0xff] }
 0x6a0   : >> { %9154 = vmatmul.msk.f32.gmra.mxu1 %vm411_vm5, %v12060_v9  ;;  %13003 = vst [vmem:[#allocation27_spill] sm:$0xff] %v12090_v4 }
 0x6a1   : >> { %v5688_v38 = vadd.f32 %v11849_v30, %v5666_v58  ;;  %9183 = vmatmul.msk.f32.gmra.mxu2 %vm411_vm5, %v6149_v13  ;;  %v12095_v13 = vld [vmem:[#allocation4 + $0x78] sm:$0xff] }
 0x6a2   : >> { %9212 = vmatmul.msk.f32.gmra.mxu3 %vm411_vm5, %v12066_v15 }
 0x6a3   : >> { %v5706_v17 = vmax.f32 %v5688_v38, 0.0  ;;  %v6151_v38 = vld [vmem:[#allocation4 + $0x7a] sm:$0xff] }
 0x6a4   : >> { %v5473_v40 = vpop.f32.mrf.mxu2 }
 0x6a5   : >> { %5742 = vst.msk [vmem:[#allocation4 + $0xa0] sm:$0x7] %vm5711_vm11, %v5706_v17  ;;  %v5497_v51 = vadd.f32 %v5473_v40, %v5327_v12  ;;  %v5643_v23 = vpop.f32.mrf.mxu3  ;;  %9132 = vmatmul.msk.f32.gmra.mxu0 %vm411_vm5, %v12071_v33  ;;  %v5306_v36 = vpop.f32.mrf.mxu1  ;;  %vm7715_vm11 = vcmask 1040384  }
 0x6a6   : >> { %5743 = vst.msk [vmem:[#allocation4 + $0xa2] sm:$0xe0] %vm5713_vm12, %v5706_v17  ;;  %v5328_v52 = vadd.f32 %v5306_v36, %v11834_v61  ;;  %v5904_v17 = vpop.f32.mrf.mxu0  ;;  %v12101_v61 = vld [vmem:[#allocation4 + $0x87] sm:$0xff]  ;;  %v12106_v36 = vld [vmem:[#allocation4 + $0x91] sm:$0xff]  ;;  %vm7725_vm12 = vcmask 130048  }
 0x6a7   : >> { %v5667_v54 = vadd.f32 %v5643_v23, %v5497_v51  ;;  %13004 = vst [vmem:[#allocation15_spill] sm:$0xff] %v12106_v36 }
 0x6a8   : >> { %9155 = vmatmul.msk.f32.gmra.mxu1 %vm411_vm5, %v12079_v56 }
 0x6a9   : >> { %v5689_v55 = vadd.f32 %v11849_v30, %v5667_v54  ;;  %9184 = vmatmul.msk.f32.gmra.mxu2 %vm411_vm5, %v6150_v48 }
 0x6aa   : >> { %9213 = vmatmul.msk.f32.gmra.mxu3 %vm411_vm5, %v12085_v59 }
 0x6ab   : >> { %v5707_v8 = vmax.f32 %v5689_v55, 0.0 }
 0x6ac   : >> { %v5476_v28 = vpop.f32.mrf.mxu2 }
 0x6ad   : >> { %5744 = vst.msk [vmem:[#allocation4 + $0xaa] sm:$0xff] %vm411_vm5, %v5707_v8  ;;  %v5498_v22 = vadd.f32 %v5476_v28, %v5328_v52  ;;  %v5646_v53 = vpop.f32.mrf.mxu3  ;;  %9133 = vmatmul.msk.f32.gmra.mxu0 %vm411_vm5, %v12090_v4  ;;  %v5309_v10 = vpop.f32.mrf.mxu1  ;;  %v12111_v52 = vld [vmem:[#allocation4 + $0x80] sm:$0xff] }
 0x6ae   : >> { %v5329_v51 = vadd.f32 %v5309_v10, %v11840_v7  ;;  %v6152_v28 = vld [vmem:[#allocation4 + $0x82] sm:$0xff]  ;;  %v12117_v7 = vld [vmem:[#allocation4 + $0x8f] sm:$0xff] }
 0x6af   : >> { %v5668_v58 = vadd.f32 %v5646_v53, %v5498_v22 }
 0x6b0   : >> { %9156 = vmatmul.msk.f32.gmra.mxu1 %vm411_vm5, %v12095_v13 }
 0x6b1   : >> { %v5690_v12 = vadd.f32 %v11849_v30, %v5668_v58  ;;  %9185 = vmatmul.msk.f32.gmra.mxu2 %vm411_vm5, %v6151_v38 }
 0x6b2   : >> { %9214 = vmatmul.msk.f32.gmra.mxu3 %vm411_vm5, %v12101_v61 }
 0x6b3   : >> { %v5708_v40 = vmax.f32 %v5690_v12, 0.0  ;;  %v12122_v12 = vld [vmem:[#allocation4 + $0x99] sm:$0xff] }
 0x6b4   : >> { %v5479_v23 = vpop.f32.mrf.mxu2  ;;  %13005 = vst [vmem:[#allocation30_spill] sm:$0xff] %v12122_v12 }
 0x6b5   : >> { %5745 = vst.msk [vmem:[#allocation4 + $0xb4] sm:$0xfc] %vm5716_vm13, %v5708_v40  ;;  %v5499_v54 = vadd.f32 %v5479_v23, %v5329_v51  ;;  %v5649_v48 = vpop.f32.mrf.mxu3  ;;  %9134 = vmatmul.msk.f32.gmra.mxu0 %vm411_vm5, %v12106_v36  ;;  %v6063_v55 = vpop.f32.mrf.mxu1  ;;  %v6156_v36 = vld [vmem:[#allocation4 + $0xa2] sm:$0xff]  ;;  %vm7727_vm13 = vcmask 125952  }
 0x6b6   : >> { %v6064_v58 = vadd.f32 %v6063_v55, %v12052_v18  ;;  %v12134_v18 = vld [vmem:[#allocation4 + $0x97] sm:$0xff] }
 0x6b7   : >> { %v5669_v8 = vadd.f32 %v5649_v48, %v5499_v54  ;;  %v12129_v54 = vld [vmem:[#allocation4 + $0x88] sm:$0xff]  ;;  %13007 = vst [vmem:[#allocation28_spill] sm:$0xff] %v12134_v18 }
 0x6b8   : >> { %9157 = vmatmul.msk.f32.gmra.mxu1 %vm411_vm5, %v12111_v52  ;;  %v6153_v48 = vld [vmem:[#allocation4 + $0x8a] sm:$0xff] }
 0x6b9   : >> { %v5691_v22 = vadd.f32 %v11849_v30, %v5669_v8  ;;  %9186 = vmatmul.msk.f32.gmra.mxu2 %vm411_vm5, %v6152_v28  ;;  %v9285_v8 = vld [vmem:[%s12904_s5 + $0xd8] sm:$0xff] }
 0x6ba   : >> { %9215 = vmatmul.msk.f32.gmra.mxu3 %vm411_vm5, %v12117_v7  ;;  %v5907_v53 = vpop.f32.mrf.mxu0  ;;  %7125 = vmatpush.msrb.mxu2 %v9285_v8  ;;  %v6154_v8 = vld [vmem:[#allocation4 + $0x92] sm:$0xff] }
 0x6bb   : >> { %v5709_v10 = vmax.f32 %v5691_v22, 0.0 }
 0x6bc   : >> { %v6258_v38 = vpop.f32.mrf.mxu2 }
 0x6bd   : >> { %5746 = vst.msk [vmem:[#allocation4 + $0xbc] sm:$0x1f] %vm5718_vm14, %v5709_v10  ;;  %v6331_v30 = vadd.f32 %v6258_v38, %v6064_v58  ;;  %v6476_v40 = vpop.f32.mrf.mxu3  ;;  %9135 = vmatmul.msk.f32.gmra.mxu0 %vm411_vm5, %v12122_v12  ;;  %v6066_v51 = vpop.f32.mrf.mxu1  ;;  %v12142_v10 = vld [vmem:[#allocation4 + $0xa1] sm:$0xff]  ;;  %v12172_v12 = vld [vmem:[#allocation4 + $0x98] sm:$0xff]  ;;  %vm7733_vm14 = vcmask 128000  }
 0x6be   : >> { %v6067_v28 = vadd.f32 %v6066_v51, %v12077_v42  ;;  %13008 = vst [vmem:[#allocation16_spill] sm:$0xff] %v12142_v10  ;;  %v9256_v42 = vld [vmem:[%s12904_s5 + $0xb8] sm:$0xff]  ;;  %v12154_v51 = vld [vmem:[#allocation4 + $0x90] sm:$0xff] }
 0x6bf   : >> { %v12127_v23 = vadd.f32 %v6476_v40, %v6331_v30  ;;  %6907 = vmatpush.msra.mxu1 %v9256_v42 }
 0x6c0   : >> { %9158 = vmatmul.msk.f32.gmra.mxu1 %vm411_vm5, %v12129_v54 }
 0x6c1   : >> { %13006 = vst [vmem:[#allocation13_spill] sm:$0xff] %v12127_v23  ;;  %9187 = vmatmul.msk.f32.gmra.mxu2 %vm411_vm5, %v6153_v48  ;;  %v9314_v48 = vld [vmem:[%s12904_s5 + $0xf8] sm:$0xff]  ;;  %v12163_v23 = vld [vmem:[#allocation4 + $0xa9] sm:$0xff] }
 0x6c2   : >> { %9216 = vmatmul.msk.f32.gmra.mxu3 %vm411_vm5, %v12134_v18  ;;  %v5910_v55 = vpop.f32.mrf.mxu0  ;;  %13011 = vst [vmem:[#allocation34_spill] sm:$0xff] %v12163_v23 }
 0x6c3   : >> { %7343 = vmatpush.msrb.mxu3 %v9314_v48 }
 0x6c4   : >> { %v6261_v22 = vpop.f32.mrf.mxu2 }
 0x6c5   : >> { %v6332_v58 = vadd.f32 %v6261_v22, %v6067_v28  ;;  %v6479_v38 = vpop.f32.mrf.mxu3  ;;  %9136 = vmatmul.msk.f32.gmra.mxu0 %vm411_vm5, %v12142_v10  ;;  %v6069_v30 = vpop.f32.mrf.mxu1  ;;  %v12159_v28 = vld [vmem:[#allocation4 + $0x9f] sm:$0xff] }
 0x6c6   : >> { %13010 = vst [vmem:[#allocation19_spill] sm:$0xff] %v12159_v28 }
 0x6c7   : >> { %v12146_v40 = vadd.f32 %v6479_v38, %v6332_v58  ;;  %v6070_v58 = vadd.f32 %v6069_v30, %v5904_v17  ;;  %v12177_v17 = vld [vmem:[#allocation4 + $0xa7] sm:$0xff] }
 0x6c8   : >> { %9159 = vmatmul.msk.f32.gmra.mxu1 %vm411_vm5, %v12154_v51  ;;  %13013 = vst [vmem:[#allocation32_spill] sm:$0xff] %v12177_v17 }
 0x6c9   : >> { %13009 = vst [vmem:[#allocation31_spill] sm:$0xff] %v12146_v40  ;;  %9188 = vmatmul.msk.f32.gmra.mxu2 %vm411_vm5, %v6154_v8  ;;  %v9343_v8 = vld [vmem:[%s12904_s5 + $0x118] sm:$0xff] }
 0x6ca   : >> { %9217 = vmatmul.msk.f32.gmra.mxu3 %vm411_vm5, %v12159_v28  ;;  %v5913_v22 = vpop.f32.mrf.mxu0  ;;  %v6155_v28 = vld [vmem:[#allocation4 + $0x9a] sm:$0xff]  ;;  %7561 = vmatpush.msrb.mxu0 %v9343_v8 }
 0x6cc   : >> { %v6264_v38 = vpop.f32.mrf.mxu2 }
 0x6cd   : >> { %v6333_v40 = vadd.f32 %v6264_v38, %v6070_v58  ;;  %v6482_v10 = vpop.f32.mrf.mxu3  ;;  %9137 = vmatmul.msk.f32.gmra.mxu0 %vm411_vm5, %v12163_v23  ;;  %v6072_v48 = vpop.f32.mrf.mxu1  ;;  %v12183_v58 = vld [vmem:[#allocation4 + $0xb1] sm:$0xff] }
 0x6ce   : >> { %v6073_v30 = vadd.f32 %v6072_v48, %v5907_v53  ;;  %13014 = vst [vmem:[#allocation20_spill] sm:$0xff] %v12183_v58  ;;  %v12194_v53 = vld [vmem:[#allocation4 + $0xaf] sm:$0xff] }
 0x6cf   : >> { %v12167_v42 = vadd.f32 %v6482_v10, %v6333_v40  ;;  %13017 = vst [vmem:[#allocation33_spill] sm:$0xff] %v12194_v53 }
 0x6d0   : >> { %9160 = vmatmul.msk.f32.gmra.mxu1 %vm411_vm5, %v12172_v12 }
 0x6d1   : >> { %13012 = vst [vmem:[#allocation17_spill] sm:$0xff] %v12167_v42  ;;  %9189 = vmatmul.msk.f32.gmra.mxu2 %vm411_vm5, %v6155_v28  ;;  %v12189_v28 = vld [vmem:[#allocation4 + $0xa0] sm:$0xff] }
 0x6d2   : >> { %9218 = vmatmul.msk.f32.gmra.mxu3 %vm411_vm5, %v12177_v17  ;;  %v12181_v10 = vpop.f32.mrf.mxu0  ;;  %13016 = vst [vmem:[#allocation18_spill] sm:$0xff] %v12189_v28  ;;  %v12204_v17 = vld [vmem:[#allocation4 + $0xa8] sm:$0xff] }
 0x6d3   : >> { %13019 = vst [vmem:[#allocation36_spill] sm:$0xff] %v12204_v17 }
 0x6d4   : >> { %v6267_v40 = vpop.f32.mrf.mxu2 }
 0x6d5   : >> { %v6334_v38 = vadd.f32 %v6267_v40, %v6073_v30  ;;  %v6485_v42 = vpop.f32.mrf.mxu3  ;;  %9138 = vmatmul.msk.f32.gmra.mxu0 %vm411_vm5, %v12183_v58  ;;  %v6075_v8 = vpop.f32.mrf.mxu1  ;;  %v12200_v58 = vld [vmem:[#allocation4 + $0xb9] sm:$0xff] }
 0x6d6   : >> { %v6076_v30 = vadd.f32 %v6075_v8, %v5910_v55  ;;  %13018 = vst [vmem:[#allocation21_spill] sm:$0xff] %v12200_v58  ;;  %v9284_v55 = vld [vmem:[%s12904_s5 + $0xd0] sm:$0xff] }
 0x6d7   : >> { %v12187_v23 = vadd.f32 %v6485_v42, %v6334_v38  ;;  %7126 = vmatpush.msrb.mxu2 %v9284_v55  ;;  %v9313_v8 = vld [vmem:[%s12904_s5 + $0xf0] sm:$0xff]  ;;  %v5800_v55 = vld [vmem:[#allocation4 + $0xc1] sm:$0x1] }
 0x6d8   : >> { %9161 = vmatmul.msk.f32.gmra.mxu1 %vm411_vm5, %v12189_v28  ;;  %v6157_v28 = vld [vmem:[#allocation4 + $0xaa] sm:$0xff]  ;;  %7344 = vmatpush.msrb.mxu3 %v9313_v8  ;;  %v6158_v8 = vld [vmem:[#allocation4 + $0xb2] sm:$0xff] }
 0x6d9   : >> { %13015 = vst [vmem:[#allocation35_spill] sm:$0xff] %v12187_v23  ;;  %9190 = vmatmul.msk.f32.gmra.mxu2 %vm411_vm5, %v6156_v36 }
 0x6da   : >> { %9219 = vmatmul.msk.f32.gmra.mxu3 %vm411_vm5, %v12194_v53  ;;  %v12198_v48 = vpop.f32.mrf.mxu0  ;;  %v9255_v53 = vld [vmem:[%s12904_s5 + $0xb0] sm:$0xff] }
 0x6db   : >> { %6908 = vmatpush.msra.mxu1 %v9255_v53  ;;  %v9253_v53 = vld [vmem:[%s12904_s5 + $0xa0] sm:$0xff] }
 0x6dc   : >> { %v6270_v40 = vpop.f32.mrf.mxu2 }
 0x6dd   : >> { %v6335_v42 = vadd.f32 %v6270_v40, %v6076_v30  ;;  %v6488_v38 = vpop.f32.mrf.mxu3  ;;  %9139 = vmatmul.msk.f32.gmra.mxu0 %vm411_vm5, %v12200_v58  ;;  %v6078_v23 = vpop.f32.mrf.mxu1  ;;  %v9254_v30 = vld [vmem:[%s12904_s5 + $0xa8] sm:$0xff] }
 0x6de   : >> { %v9283_v40 = vld [vmem:[%s12904_s5 + $0xc8] sm:$0xff]  ;;  %6909 = vmatpush.msra.mxu1 %v9254_v30  ;;  %v6079_v58 = vadd.f32 %v6078_v23, %v5913_v22  ;;  %v12245_v22 = vld [vmem:[#allocation4 + $0xb0] sm:$0xff] }
 0x6df   : >> { %v12206_v36 = vadd.f32 %v6488_v38, %v6335_v42  ;;  %v12226_v42 = vld [vmem:[#allocation4 + $0xb7] sm:$0xff]  ;;  %7127 = vmatpush.msrb.mxu2 %v9283_v40  ;;  %v12250_v40 = vld [vmem:[#allocation4 + $0xbf] sm:$0xff] }
 0x6e0   : >> { %9162 = vmatmul.msk.f32.gmra.mxu1 %vm411_vm5, %v12204_v17  ;;  %13021 = vst [vmem:[#allocation39_spill] sm:$0xff] %v12226_v42 }
 0x6e1   : >> { %13020 = vst [vmem:[#allocation24_spill] sm:$0xff] %v12206_v36  ;;  %9191 = vmatmul.msk.f32.gmra.mxu2 %vm411_vm5, %v6157_v28  ;;  %v9312_v36 = vld [vmem:[%s12904_s5 + $0xe8] sm:$0xff]  ;;  %v9282_v28 = vld [vmem:[%s12904_s5 + $0xc0] sm:$0xff]  ;;  %6910 = vmatpush.msra.mxu1 %v9253_v53 }
 0x6e2   : >> { %9220 = vmatmul.msk.f32.gmra.mxu3 %vm411_vm5, %v12226_v42  ;;  %v5922_v38 = vpop.f32.mrf.mxu0  ;;  %v9311_v42 = vld [vmem:[%s12904_s5 + $0xe0] sm:$0xff]  ;;  %7128 = vmatpush.msrb.mxu2 %v9282_v28  ;;  %13023 = vst [vmem:[#allocation37_spill] sm:$0xff] %v12250_v40  ;;  %v12261_v28 = vld [vmem:[#allocation4 + $0xb8] sm:$0xff] }
 0x6e3   : >> { %7345 = vmatpush.msrb.mxu3 %v9312_v36 }
 0x6e4   : >> { %v6273_v17 = vpop.f32.mrf.mxu2 }
 0x6e5   : >> { %v6336_v18 = vadd.f32 %v6273_v17, %v6079_v58  ;;  %v6491_v4 = vpop.f32.mrf.mxu3  ;;  %9140 = vmatmul.msk.f32.gmra.mxu0 %vm411_vm5, %v5800_v55  ;;  %v6081_v30 = vpop.f32.mrf.mxu1  ;;  %7346 = vmatpush.msrb.mxu3 %v9311_v42  ;;  %v12259_v55 = vld [vmem:[#allocation4 + $0xc7] sm:$0xff] }
 0x6e6   : >> { %v6082_v58 = vadd.f32 %v6081_v30, %v12181_v10  ;;  %13025 = vst [vmem:[#allocation40_spill] sm:$0xff] %v12259_v55 }
 0x6e7   : >> { %v12243_v23 = vadd.f32 %v6491_v4, %v6336_v18 }
 0x6e8   : >> { %9163 = vmatmul.msk.f32.gmra.mxu1 %vm411_vm5, %v12245_v22 }
 0x6e9   : >> { %13022 = vst [vmem:[#allocation22_spill] sm:$0xff] %v12243_v23  ;;  %9192 = vmatmul.msk.f32.gmra.mxu2 %vm411_vm5, %v6158_v8  ;;  %v6159_v8 = vld [vmem:[#allocation4 + $0xba] sm:$0xff]  ;;  %v6378_v23 = vld [vmem:[#allocation4 + $0xcf] sm:$0x1] }
 0x6ea   : >> { %9221 = vmatmul.msk.f32.gmra.mxu3 %vm411_vm5, %v12250_v40  ;;  %v5925_v17 = vpop.f32.mrf.mxu0  ;;  %v5771_v40 = vld [vmem:[#allocation4 + $0xc0] sm:$0x1] }
 0x6ec   : >> { %v6276_v36 = vpop.f32.mrf.mxu2 }
 0x6ed   : >> { %v6337_v4 = vadd.f32 %v6276_v36, %v6082_v58  ;;  %v6494_v18 = vpop.f32.mrf.mxu3  ;;  %9228 = vmatmul.msk.f32.vlgmr.msra.gmra.mxu0 %vm411_vm5, %v11881_v50  ;;  %v6084_v42 = vpop.f32.mrf.mxu1 }
 0x6ee   : >> { %v6085_v30 = vadd.f32 %v6084_v42, %v12198_v48 }
 0x6ef   : >> { %v12257_v53 = vadd.f32 %v6494_v18, %v6337_v4  ;;  %v6160_v18 = vld [vmem:[#allocation4 + $0xc2] sm:$0x1] }
 0x6f0   : >> { %9164 = vmatmul.msk.f32.gmra.mxu1 %vm411_vm5, %v12261_v28 }
 0x6f1   : >> { %13024 = vst [vmem:[#allocation25_spill] sm:$0xff] %v12257_v53  ;;  %9193 = vmatmul.msk.f32.gmra.mxu2 %vm411_vm5, %v6159_v8 }
 0x6f2   : >> { %9222 = vmatmul.msk.f32.gmra.mxu3 %vm411_vm5, %v12259_v55  ;;  %v5928_v10 = vpop.f32.mrf.mxu0 }
 0x6f4   : >> { %v6279_v50 = vpop.f32.mrf.mxu2 }
 0x6f5   : >> { %v6338_v58 = vadd.f32 %v6279_v50, %v6085_v30  ;;  %v6497_v36 = vpop.f32.mrf.mxu3  ;;  %9229 = vmatmul.msk.f32.gmra.mxu0 %vm411_vm5, %v11897_v24  ;;  %v6087_v4 = vpop.f32.mrf.mxu1 }
 0x6f6   : >> { %v6088_v48 = vadd.f32 %v6087_v4, %v5922_v38 }
 0x6f7   : >> { %v12271_v53 = vadd.f32 %v6497_v36, %v6338_v58  ;;  %v9342_v58 = vld [vmem:[%s12904_s5 + $0x110] sm:$0xff] }
 0x6f8   : >> { %9165 = vmatmul.msk.f32.gmra.mxu1 %vm411_vm5, %v5771_v40  ;;  %v7008_v40 = vld [vmem:[#allocation4 + $0x1e] sm:$0xff]  ;;  %7562 = vmatpush.msrb.mxu0 %v9342_v58  ;;  %v9504_v36 = vld [vmem:[#allocation4 + $0x11] sm:$0xff] }
 0x6f9   : >> { %9194 = vmatmul.msk.f32.gmra.mxu2 %vm411_vm5, %v6160_v18 }
 0x6fa   : >> { %9223 = vmatmul.msk.f32.gmra.mxu3 %vm411_vm5, %v6378_v23  ;;  %v5931_v8 = vpop.f32.mrf.mxu0 }
 0x6fc   : >> { %v6282_v42 = vpop.f32.mrf.mxu2 }
 0x6fd   : >> { %v6339_v30 = vadd.f32 %v6282_v42, %v6088_v48  ;;  %v6500_v50 = vpop.f32.mrf.mxu3  ;;  %9230 = vmatmul.msk.f32.gmra.mxu0 %vm411_vm5, %v11913_v41  ;;  %v6090_v24 = vpop.f32.mrf.mxu1 }
 0x6fe   : >> { %v6091_v23 = vadd.f32 %v6090_v24, %v5925_v17 }
 0x6ff   : >> { %v12278_v55 = vadd.f32 %v6500_v50, %v6339_v30  ;;  %v7009_v30 = vld [vmem:[#allocation4 + $0x26] sm:$0xff] }
 0x700   : >> { %9257 = vmatmul.msk.f32.vlgmr.msra.gmra.mxu1 %vm411_vm5, %v9504_v36  ;;  %v7010_v36 = vld [vmem:[#allocation4 + $0x2e] sm:$0xff] }
 0x701   : >> { %9286 = vmatmul.msk.f32.vlgmr.msrb.gmra.mxu2 %vm411_vm5, %v7008_v40 }
 0x702   : >> { %9315 = vmatmul.msk.f32.vlgmr.msrb.gmra.mxu3 %vm411_vm5, %v11887_v43  ;;  %v5934_v38 = vpop.f32.mrf.mxu0 }
 0x704   : >> { %v6285_v41 = vpop.f32.mrf.mxu2 }
 0x705   : >> { %v6340_v4 = vadd.f32 %v6285_v41, %v6091_v23  ;;  %v6503_v18 = vpop.f32.mrf.mxu3  ;;  %9231 = vmatmul.msk.f32.gmra.mxu0 %vm411_vm5, %v11929_v16  ;;  %v6093_v48 = vpop.f32.mrf.mxu1 }
 0x706   : >> { %v6094_v17 = vadd.f32 %v6093_v48, %v5928_v10 }
 0x707   : >> { %v12289_v42 = vadd.f32 %v6503_v18, %v6340_v4  ;;  %v7011_v18 = vld [vmem:[#allocation4 + $0x36] sm:$0xff] }
 0x708   : >> { %9258 = vmatmul.msk.f32.gmra.mxu1 %vm411_vm5, %v11862_v62 }
 0x709   : >> { %9287 = vmatmul.msk.f32.gmra.mxu2 %vm411_vm5, %v7009_v30 }
 0x70a   : >> { %9316 = vmatmul.msk.f32.gmra.mxu3 %vm411_vm5, %v11903_v60  ;;  %v5937_v43 = vpop.f32.mrf.mxu0 }
 0x70c   : >> { %v6288_v50 = vpop.f32.mrf.mxu2 }
 0x70d   : >> { %v6341_v24 = vadd.f32 %v6288_v50, %v6094_v17  ;;  %v6506_v58 = vpop.f32.mrf.mxu3  ;;  %9232 = vmatmul.msk.f32.gmra.mxu0 %vm411_vm5, %v11944_v29  ;;  %v6096_v16 = vpop.f32.mrf.mxu1  ;;  %v7012_v50 = vld [vmem:[#allocation4 + $0x3e] sm:$0xff] }
 0x70e   : >> { %v6097_v60 = vadd.f32 %v6096_v16, %v5931_v8 }
 0x70f   : >> { %v12298_v40 = vadd.f32 %v6506_v58, %v6341_v24 }
 0x710   : >> { %9259 = vmatmul.msk.f32.gmra.mxu1 %vm411_vm5, %v11876_v6 }
 0x711   : >> { %9288 = vmatmul.msk.f32.gmra.mxu2 %vm411_vm5, %v7010_v36  ;;  %v7013_v36 = vld [vmem:[#allocation4 + $0x46] sm:$0xff] }
 0x712   : >> { %9317 = vmatmul.msk.f32.gmra.mxu3 %vm411_vm5, %v11919_v49  ;;  %v5940_v62 = vpop.f32.mrf.mxu0 }
 0x714   : >> { %v6291_v10 = vpop.f32.mrf.mxu2 }
 0x715   : >> { %v6342_v23 = vadd.f32 %v6291_v10, %v6097_v60  ;;  %v6509_v41 = vpop.f32.mrf.mxu3  ;;  %9233 = vmatmul.msk.f32.gmra.mxu0 %vm411_vm5, %v11962_v3  ;;  %v6099_v29 = vpop.f32.mrf.mxu1 }
 0x716   : >> { %v6100_v49 = vadd.f32 %v6099_v29, %v5934_v38 }
 0x717   : >> { %v12307_v4 = vadd.f32 %v6509_v41, %v6342_v23  ;;  %v7014_v41 = vld [vmem:[#allocation4 + $0x4e] sm:$0xff] }
 0x718   : >> { %9260 = vmatmul.msk.f32.gmra.mxu1 %vm411_vm5, %v11892_v31 }
 0x719   : >> { %9289 = vmatmul.msk.f32.gmra.mxu2 %vm411_vm5, %v7011_v18 }
 0x71a   : >> { %9318 = vmatmul.msk.f32.gmra.mxu3 %vm411_vm5, %v11935_v2  ;;  %v5943_v6 = vpop.f32.mrf.mxu0 }
 0x71c   : >> { %v6294_v8 = vpop.f32.mrf.mxu2 }
 0x71d   : >> { %v6343_v48 = vadd.f32 %v6294_v8, %v6100_v49  ;;  %v6512_v30 = vpop.f32.mrf.mxu3  ;;  %9234 = vmatmul.msk.f32.gmra.mxu0 %vm411_vm5, %v11977_v21  ;;  %v6102_v3 = vpop.f32.mrf.mxu1  ;;  %v7015_v8 = vld [vmem:[#allocation4 + $0x56] sm:$0xff] }
 0x71e   : >> { %v6103_v2 = vadd.f32 %v6102_v3, %v5937_v43 }
 0x71f   : >> { %v12316_v17 = vadd.f32 %v6512_v30, %v6343_v48 }
 0x720   : >> { %9261 = vmatmul.msk.f32.gmra.mxu1 %vm411_vm5, %v11908_v0 }
 0x721   : >> { %9290 = vmatmul.msk.f32.gmra.mxu2 %vm411_vm5, %v7012_v50 }
 0x722   : >> { %9319 = vmatmul.msk.f32.gmra.mxu3 %vm411_vm5, %v11950_v39  ;;  %v5946_v31 = vpop.f32.mrf.mxu0 }
 0x724   : >> { %v6297_v38 = vpop.f32.mrf.mxu2 }
 0x725   : >> { %v6344_v24 = vadd.f32 %v6297_v38, %v6103_v2  ;;  %v6515_v58 = vpop.f32.mrf.mxu3  ;;  %9235 = vmatmul.msk.f32.gmra.mxu0 %vm411_vm5, %v11993_v63  ;;  %v6105_v21 = vpop.f32.mrf.mxu1  ;;  %v7016_v2 = vld [vmem:[#allocation4 + $0x5e] sm:$0xff] }
 0x726   : >> { %v6106_v39 = vadd.f32 %v6105_v21, %v5940_v62  ;;  %v7017_v21 = vld [vmem:[#allocation4 + $0x66] sm:$0xff] }
 0x727   : >> { %v12325_v16 = vadd.f32 %v6515_v58, %v6344_v24 }
 0x728   : >> { %9262 = vmatmul.msk.f32.gmra.mxu1 %vm411_vm5, %v11924_v46 }
 0x729   : >> { %9291 = vmatmul.msk.f32.gmra.mxu2 %vm411_vm5, %v7013_v36 }
 0x72a   : >> { %9320 = vmatmul.msk.f32.gmra.mxu3 %vm411_vm5, %v11968_v35  ;;  %v5949_v0 = vpop.f32.mrf.mxu0  ;;  %v9341_v35 = vld [vmem:[%s12904_s5 + $0x108] sm:$0xff] }
 0x72b   : >> { %7563 = vmatpush.msrb.mxu0 %v9341_v35  ;;  %v7019_v35 = vld [vmem:[#allocation4 + $0x76] sm:$0xff] }
 0x72c   : >> { %v6300_v43 = vpop.f32.mrf.mxu2 }
 0x72d   : >> { %v6345_v60 = vadd.f32 %v6300_v43, %v6106_v39  ;;  %v6518_v10 = vpop.f32.mrf.mxu3  ;;  %9236 = vmatmul.msk.f32.gmra.mxu0 %vm411_vm5, %v12009_v44  ;;  %v6108_v63 = vpop.f32.mrf.mxu1 }
 0x72e   : >> { %v6109_v62 = vadd.f32 %v6108_v63, %v5943_v6 }
 0x72f   : >> { %v12334_v23 = vadd.f32 %v6518_v10, %v6345_v60  ;;  %v7018_v60 = vld [vmem:[#allocation4 + $0x6e] sm:$0xff] }
 0x730   : >> { %9263 = vmatmul.msk.f32.gmra.mxu1 %vm411_vm5, %v11940_v37 }
 0x731   : >> { %9292 = vmatmul.msk.f32.gmra.mxu2 %vm411_vm5, %v7014_v41 }
 0x732   : >> { %9321 = vmatmul.msk.f32.gmra.mxu3 %vm411_vm5, %v11983_v27  ;;  %v5952_v46 = vpop.f32.mrf.mxu0 }
 0x734   : >> { %v6303_v44 = vpop.f32.mrf.mxu2 }
 0x735   : >> { %v6346_v29 = vadd.f32 %v6303_v44, %v6109_v62  ;;  %v6521_v18 = vpop.f32.mrf.mxu3  ;;  %9237 = vmatmul.msk.f32.gmra.mxu0 %vm411_vm5, %v12024_v26  ;;  %v6111_v49 = vpop.f32.mrf.mxu1 }
 0x736   : >> { %v6112_v6 = vadd.f32 %v6111_v49, %v5946_v31  ;;  %v7020_v49 = vld [vmem:[#allocation4 + $0x7e] sm:$0xff] }
 0x737   : >> { %v12346_v37 = vadd.f32 %v6521_v18, %v6346_v29 }
 0x738   : >> { %9264 = vmatmul.msk.f32.gmra.mxu1 %vm411_vm5, %v11955_v1 }
 0x739   : >> { %9293 = vmatmul.msk.f32.gmra.mxu2 %vm411_vm5, %v7015_v8  ;;  %v9340_v8 = vld [vmem:[%s12904_s5 + $0x100] sm:$0xff] }
 0x73a   : >> { %9322 = vmatmul.msk.f32.gmra.mxu3 %vm411_vm5, %v11999_v32  ;;  %v5955_v27 = vpop.f32.mrf.mxu0  ;;  %7564 = vmatpush.msrb.mxu0 %v9340_v8  ;;  %v13046_v8 = vld [vmem:[#allocation21_spill] sm:$0xff] }
 0x73c   : >> { %v6306_v48 = vpop.f32.mrf.mxu2 }
 0x73d   : >> { %v6347_v30 = vadd.f32 %v6306_v48, %v6112_v6  ;;  %v6524_v3 = vpop.f32.mrf.mxu3  ;;  %9238 = vmatmul.msk.f32.gmra.mxu0 %vm411_vm5, %v12039_v34  ;;  %v6114_v26 = vpop.f32.mrf.mxu1 }
 0x73e   : >> { %v6115_v32 = vadd.f32 %v6114_v26, %v5949_v0 }
 0x73f   : >> { %v12355_v50 = vadd.f32 %v6524_v3, %v6347_v30  ;;  %v7021_v30 = vld [vmem:[#allocation4 + $0x86] sm:$0xff] }
 0x740   : >> { %9265 = vmatmul.msk.f32.gmra.mxu1 %vm411_vm5, %v11973_v19 }
 0x741   : >> { %9294 = vmatmul.msk.f32.gmra.mxu2 %vm411_vm5, %v7016_v2 }
 0x742   : >> { %9323 = vmatmul.msk.f32.gmra.mxu3 %vm411_vm5, %v12015_v57  ;;  %v5958_v1 = vpop.f32.mrf.mxu0 }
 0x744   : >> { %v6309_v31 = vpop.f32.mrf.mxu2 }
 0x745   : >> { %v6348_v38 = vadd.f32 %v6309_v31, %v6115_v32  ;;  %v6527_v24 = vpop.f32.mrf.mxu3  ;;  %9239 = vmatmul.msk.f32.gmra.mxu0 %vm411_vm5, %v12060_v9  ;;  %v6117_v34 = vpop.f32.mrf.mxu1  ;;  %v7022_v31 = vld [vmem:[#allocation4 + $0x8e] sm:$0xff] }
 0x746   : >> { %v6118_v57 = vadd.f32 %v6117_v34, %v5952_v46  ;;  %v13032_v34 = vld [vmem:[#allocation27_spill] sm:$0xff] }
 0x747   : >> { %v12364_v58 = vadd.f32 %v6527_v24, %v6348_v38  ;;  %v7023_v24 = vld [vmem:[#allocation4 + $0x96] sm:$0xff] }
 0x748   : >> { %9266 = vmatmul.msk.f32.gmra.mxu1 %vm411_vm5, %v11988_v25 }
 0x749   : >> { %13026 = vst [vmem:[#allocation23_spill] sm:$0xff] %v12364_v58  ;;  %9295 = vmatmul.msk.f32.gmra.mxu2 %vm411_vm5, %v7017_v21 }
 0x74a   : >> { %9324 = vmatmul.msk.f32.gmra.mxu3 %vm411_vm5, %v12030_v11  ;;  %v5961_v19 = vpop.f32.mrf.mxu0 }
 0x74c   : >> { %v6312_v36 = vpop.f32.mrf.mxu2 }
 0x74d   : >> { %v6349_v0 = vadd.f32 %v6312_v36, %v6118_v57  ;;  %v6530_v39 = vpop.f32.mrf.mxu3  ;;  %9240 = vmatmul.msk.f32.gmra.mxu0 %vm411_vm5, %v12079_v56  ;;  %v6120_v9 = vpop.f32.mrf.mxu1  ;;  %v13034_v57 = vld [vmem:[#allocation18_spill] sm:$0xff] }
 0x74e   : >> { %v6121_v11 = vadd.f32 %v6120_v9, %v5955_v27  ;;  %v7024_v36 = vld [vmem:[#allocation4 + $0x9e] sm:$0xff]  ;;  %v13037_v9 = vld [vmem:[#allocation36_spill] sm:$0xff] }
 0x74f   : >> { %v12373_v43 = vadd.f32 %v6530_v39, %v6349_v0  ;;  %v13035_v0 = vld [vmem:[#allocation15_spill] sm:$0xff] }
 0x750   : >> { %9267 = vmatmul.msk.f32.gmra.mxu1 %vm411_vm5, %v12004_v14 }
 0x751   : >> { %13027 = vst [vmem:[#allocation38_spill] sm:$0xff] %v12373_v43  ;;  %9296 = vmatmul.msk.f32.gmra.mxu2 %vm411_vm5, %v7018_v60  ;;  %v7025_v60 = vld [vmem:[#allocation4 + $0xa6] sm:$0xff] }
 0x752   : >> { %9325 = vmatmul.msk.f32.gmra.mxu3 %vm411_vm5, %v12045_v20  ;;  %v5964_v25 = vpop.f32.mrf.mxu0 }
 0x754   : >> { %v6315_v10 = vpop.f32.mrf.mxu2 }
 0x755   : >> { %v6350_v63 = vadd.f32 %v6315_v10, %v6121_v11  ;;  %v6533_v41 = vpop.f32.mrf.mxu3  ;;  %9241 = vmatmul.msk.f32.gmra.mxu0 %vm411_vm5, %v12095_v13  ;;  %v6123_v56 = vpop.f32.mrf.mxu1  ;;  %v13039_v11 = vld [vmem:[#allocation32_spill] sm:$0xff] }
 0x756   : >> { %v6124_v20 = vadd.f32 %v6123_v56, %v5958_v1  ;;  %v13041_v56 = vld [vmem:[#allocation33_spill] sm:$0xff] }
 0x757   : >> { %v12382_v46 = vadd.f32 %v6533_v41, %v6350_v63  ;;  %v7026_v63 = vld [vmem:[#allocation4 + $0xae] sm:$0xff] }
 0x758   : >> { %9268 = vmatmul.msk.f32.gmra.mxu1 %vm411_vm5, %v12020_v5  ;;  %v13040_v41 = vld [vmem:[#allocation16_spill] sm:$0xff] }
 0x759   : >> { %13028 = vst [vmem:[#allocation26_spill] sm:$0xff] %v12382_v46  ;;  %9297 = vmatmul.msk.f32.gmra.mxu2 %vm411_vm5, %v7019_v35  ;;  %v13057_v46 = vld [vmem:[#allocation17_spill] sm:$0xff] }
 0x75a   : >> { %9326 = vmatmul.msk.f32.gmra.mxu3 %vm411_vm5, %v12066_v15  ;;  %v5967_v14 = vpop.f32.mrf.mxu0 }
 0x75b   : >> { %v7027_v14 = vld [vmem:[#allocation4 + $0xb6] sm:$0xff] }
 0x75c   : >> { %v6318_v62 = vpop.f32.mrf.mxu2 }
 0x75d   : >> { %v6351_v44 = vadd.f32 %v6318_v62, %v6124_v20  ;;  %v6536_v29 = vpop.f32.mrf.mxu3  ;;  %9242 = vmatmul.msk.f32.gmra.mxu0 %vm411_vm5, %v12111_v52  ;;  %v6126_v13 = vpop.f32.mrf.mxu1  ;;  %v13042_v20 = vld [vmem:[#allocation34_spill] sm:$0xff] }
 0x75e   : >> { %v6127_v15 = vadd.f32 %v6126_v13, %v5961_v19  ;;  %v13044_v13 = vld [vmem:[#allocation20_spill] sm:$0xff] }
 0x75f   : >> { %v12391_v18 = vadd.f32 %v6536_v29, %v6351_v44  ;;  %v12468_v44 = vld [vmem:[#allocation4 + $0xc0] sm:$0xff] }
 0x760   : >> { %9269 = vmatmul.msk.f32.gmra.mxu1 %vm411_vm5, %v12035_v45  ;;  %v7028_v29 = vld [vmem:[#allocation4 + $0xbe] sm:$0xff] }
 0x761   : >> { %13029 = vst [vmem:[#allocation41_spill] sm:$0xff] %v12391_v18  ;;  %9298 = vmatmul.msk.f32.gmra.mxu2 %vm411_vm5, %v7020_v49 }
 0x762   : >> { %9327 = vmatmul.msk.f32.gmra.mxu3 %vm411_vm5, %v12085_v59  ;;  %v5969_v5 = vpop.f32.mrf.mxu0 }
 0x763   : >> { %v12479_v5 = vld [vmem:[#allocation4 + $0xc8] sm:$0xff] }
 0x764   : >> { %v6321_v27 = vpop.f32.mrf.mxu2 }
 0x765   : >> { %v6352_v52 = vadd.f32 %v6321_v27, %v6127_v15  ;;  %v6539_v6 = vpop.f32.mrf.mxu3  ;;  %9243 = vmatmul.msk.f32.gmra.mxu0 %vm411_vm5, %v12129_v54  ;;  %v6129_v48 = vpop.f32.mrf.mxu1  ;;  %v7029_v15 = vld [vmem:[#allocation4 + $0xc6] sm:$0xff] }
 0x766   : >> { %v6130_v3 = vadd.f32 %v6129_v48, %v5964_v25  ;;  %v13038_v25 = vld [vmem:[#allocation30_spill] sm:$0xff]  ;;  %v6812_v48 = vld [vmem:[#allocation4 + $0xc1] sm:$0xff] }
 0x767   : >> { %v12403_v45 = vadd.f32 %v6539_v6, %v6352_v52  ;;  %v13047_v52 = vld [vmem:[#allocation40_spill] sm:$0xff]  ;;  %v6596_v6 = vld [vmem:[#allocation4 + $0xd0] sm:$0x1] }
 0x768   : >> { %9270 = vmatmul.msk.f32.gmra.mxu1 %vm411_vm5, %v12050_v47 }
 0x769   : >> { %13030 = vst [vmem:[#allocation14_spill] sm:$0xff] %v12403_v45  ;;  %9299 = vmatmul.msk.f32.gmra.mxu2 %vm411_vm5, %v7021_v30  ;;  %v7030_v30 = vld [vmem:[#allocation4 + $0xce] sm:$0xff] }
 0x76a   : >> { %9328 = vmatmul.msk.f32.gmra.mxu3 %vm411_vm5, %v12101_v61  ;;  %v12410_v59 = vpop.f32.mrf.mxu0 }
 0x76c   : >> { %v6324_v26 = vpop.f32.mrf.mxu2 }
 0x76d   : >> { %v6353_v2 = vadd.f32 %v6324_v26, %v6130_v3  ;;  %v6542_v1 = vpop.f32.mrf.mxu3  ;;  %9244 = vmatmul.msk.f32.gmra.mxu0 %vm411_vm5, %v12154_v51  ;;  %v6132_v54 = vpop.f32.mrf.mxu1  ;;  %v7248_v3 = vld [vmem:[#allocation4 + $0xcf] sm:$0xff] }
 0x76e   : >> { %v7445_v54 = vld [vmem:[#allocation4 + $0x28] sm:$0xff] }
 0x76f   : >> { %v12414_v32 = vadd.f32 %v6542_v1, %v6353_v2  ;;  %v7444_v2 = vld [vmem:[#allocation4 + $0x20] sm:$0xff] }
 0x770   : >> { %9271 = vmatmul.msk.f32.gmra.mxu1 %vm411_vm5, %v12071_v33  ;;  %v13033_v33 = vld [vmem:[#allocation28_spill] sm:$0xff] }
 0x771   : >> { %13031 = vst [vmem:[#allocation29_spill] sm:$0xff] %v12414_v32  ;;  %9300 = vmatmul.msk.f32.gmra.mxu2 %vm411_vm5, %v7022_v31 }
 0x772   : >> { %9329 = vmatmul.msk.f32.gmra.mxu3 %vm411_vm5, %v12117_v7  ;;  %v12421_v47 = vpop.f32.mrf.mxu0 }
 0x774   : >> { %v6327_v61 = vpop.f32.mrf.mxu2 }
 0x775   : >> { %v6545_v38 = vpop.f32.mrf.mxu3  ;;  %9245 = vmatmul.msk.f32.gmra.mxu0 %vm411_vm5, %v12172_v12  ;;  %v6134_v51 = vpop.f32.mrf.mxu1  ;;  %v13036_v12 = vld [vmem:[#allocation19_spill] sm:$0xff]  ;;  %v7446_v61 = vld [vmem:[#allocation4 + $0x30] sm:$0xff] }
 0x776   : >> { %v7447_v51 = vld [vmem:[#allocation4 + $0x38] sm:$0xff] }
 0x778   : >> { %9272 = vmatmul.msk.f32.gmra.mxu1 %vm411_vm5, %v13032_v34  ;;  %v7448_v34 = vld [vmem:[#allocation4 + $0x40] sm:$0xff] }
 0x779   : >> { %9301 = vmatmul.msk.f32.gmra.mxu2 %vm411_vm5, %v7023_v24 }
 0x77a   : >> { %9330 = vmatmul.msk.f32.gmra.mxu3 %vm411_vm5, %v13033_v33  ;;  %v12430_v21 = vpop.f32.mrf.mxu0  ;;  %v7833_v33 = vld [vmem:[%s12906_s7 + $0x8] sm:$0xff] }
 0x77b   : >> { %7898 = vmatpush.msra.mxu2 %v7833_v33 }
 0x77c   : >> { %v6329_v7 = vpop.f32.mrf.mxu2 }
 0x77d   : >> { %v6547_v19 = vpop.f32.mrf.mxu3  ;;  %9246 = vmatmul.msk.f32.gmra.mxu0 %vm411_vm5, %v13034_v57  ;;  %v9378_v7 = vld [vmem:[%s12906_s7 + $0x28] sm:$0xff] }
 0x77e   : >> { %v9370_v19 = vld [vmem:[%s12906_s7 + $0x18] sm:$0xff]  ;;  %7939 = vmatpush.msra.mxu3 %v9378_v7 }
 0x77f   : >> { %7863 = vmatpush.msrb.mxu1 %v9370_v19 }
 0x780   : >> { %9273 = vmatmul.msk.f32.gmra.mxu1 %vm411_vm5, %v13035_v0 }
 0x781   : >> { %9302 = vmatmul.msk.f32.gmra.mxu2 %vm411_vm5, %v7024_v36  ;;  %v7449_v36 = vld [vmem:[#allocation4 + $0x48] sm:$0xff] }
 0x782   : >> { %9331 = vmatmul.msk.f32.gmra.mxu3 %vm411_vm5, %v13036_v12  ;;  %v12439_v39 = vpop.f32.mrf.mxu0  ;;  %v7450_v12 = vld [vmem:[#allocation4 + $0x50] sm:$0xff] }
 0x785   : >> { %9247 = vmatmul.msk.f32.gmra.mxu0 %vm411_vm5, %v13037_v9 }
 0x788   : >> { %9274 = vmatmul.msk.f32.gmra.mxu1 %vm411_vm5, %v13038_v25 }
 0x789   : >> { %9303 = vmatmul.msk.f32.gmra.mxu2 %vm411_vm5, %v7025_v60  ;;  %v7451_v60 = vld [vmem:[#allocation4 + $0x58] sm:$0xff] }
 0x78a   : >> { %9332 = vmatmul.msk.f32.gmra.mxu3 %vm411_vm5, %v13039_v11  ;;  %v12448_v10 = vpop.f32.mrf.mxu0  ;;  %v7452_v11 = vld [vmem:[#allocation4 + $0x60] sm:$0xff] }
 0x78d   : >> { %9248 = vmatmul.msk.f32.gmra.mxu0 %vm411_vm5, %v12245_v22  ;;  %v13043_v22 = vld [vmem:[#allocation39_spill] sm:$0xff] }
 0x790   : >> { %9275 = vmatmul.msk.f32.gmra.mxu1 %vm411_vm5, %v13040_v41 }
 0x791   : >> { %9304 = vmatmul.msk.f32.gmra.mxu2 %vm411_vm5, %v7026_v63  ;;  %v6912_v63 = vpop.f32.mrf.mxu1 }
 0x792   : >> { %9333 = vmatmul.msk.f32.gmra.mxu3 %vm411_vm5, %v13041_v56  ;;  %v12457_v35 = vpop.f32.mrf.mxu0  ;;  %v7453_v56 = vld [vmem:[#allocation4 + $0x68] sm:$0xff] }
 0x795   : >> { %9249 = vmatmul.msk.f32.gmra.mxu0 %vm411_vm5, %v12261_v28  ;;  %v13045_v28 = vld [vmem:[#allocation37_spill] sm:$0xff] }
 0x798   : >> { %9276 = vmatmul.msk.f32.gmra.mxu1 %vm411_vm5, %v13042_v20  ;;  %v7348_v20 = vpop.f32.mrf.mxu3 }
 0x799   : >> { %9305 = vmatmul.msk.f32.gmra.mxu2 %vm411_vm5, %v7027_v14  ;;  %v7130_v14 = vpop.f32.mrf.mxu2 }
 0x79a   : >> { %9334 = vmatmul.msk.f32.gmra.mxu3 %vm411_vm5, %v13043_v22  ;;  %v12466_v62 = vpop.f32.mrf.mxu0  ;;  %v6915_v22 = vpop.f32.mrf.mxu1 }
 0x79d   : >> { %9250 = vmatmul.msk.f32.gmra.mxu0 %vm411_vm5, %v12468_v44 }
 0x7a0   : >> { %9277 = vmatmul.msk.f32.gmra.mxu1 %vm411_vm5, %v13044_v13  ;;  %v7454_v13 = vld [vmem:[#allocation4 + $0x70] sm:$0xff] }
 0x7a1   : >> { %9306 = vmatmul.msk.f32.gmra.mxu2 %vm411_vm5, %v7028_v29 }
 0x7a2   : >> { %9335 = vmatmul.msk.f32.gmra.mxu3 %vm411_vm5, %v13045_v28  ;;  %v12477_v49 = vpop.f32.mrf.mxu0  ;;  %v7133_v28 = vpop.f32.mrf.mxu2 }
 0x7a5   : >> { %9251 = vmatmul.msk.f32.gmra.mxu0 %vm411_vm5, %v12479_v5 }
 0x7a8   : >> { %9278 = vmatmul.msk.f32.gmra.mxu1 %vm411_vm5, %v13046_v8  ;;  %v7351_v8 = vpop.f32.mrf.mxu3 }
 0x7a9   : >> { %9307 = vmatmul.msk.f32.gmra.mxu2 %vm411_vm5, %v7029_v15 }
 0x7aa   : >> { %v12486_v27 = vpop.f32.mrf.mxu0  ;;  %9336 = vmatmul.msk.f32.gmra.mxu3 %vm411_vm5, %v13047_v52  ;;  %v6918_v52 = vpop.f32.mrf.mxu1 }
 0x7ad   : >> { %9252 = vmatmul.msk.f32.gmra.mxu0 %vm411_vm5, %v6596_v6  ;;  %v7455_v6 = vld [vmem:[#allocation4 + $0x78] sm:$0xff] }
 0x7b0   : >> { %9279 = vmatmul.msk.f32.gmra.mxu1 %vm411_vm5, %v6812_v48  ;;  %v7136_v48 = vpop.f32.mrf.mxu2 }
 0x7b1   : >> { %9308 = vmatmul.msk.f32.gmra.mxu2 %vm411_vm5, %v7030_v30 }
 0x7b2   : >> { %v12493_v26 = vpop.f32.mrf.mxu0  ;;  %9337 = vmatmul.msk.f32.gmra.mxu3 %vm411_vm5, %v7248_v3  ;;  %v7456_v3 = vld [vmem:[#allocation4 + $0x80] sm:$0xff] }
 0x7b5   : >> { %9344 = vmatmul.msk.f32.vlgmr.msrb.gmra.mxu0 %vm411_vm5, %v7444_v2  ;;  %v7354_v2 = vpop.f32.mrf.mxu3 }
 0x7ba   : >> { %v12497_v1 = vpop.f32.mrf.mxu0 }
 0x7bd   : >> { %9345 = vmatmul.msk.f32.gmra.mxu0 %vm411_vm5, %v7445_v54  ;;  %v6921_v54 = vpop.f32.mrf.mxu1  ;;  %v7357_v33 = vpop.f32.mrf.mxu3 }
 0x7c2   : >> { %v12500_v31 = vpop.f32.mrf.mxu0 }
 0x7c5   : >> { %9346 = vmatmul.msk.f32.gmra.mxu0 %vm411_vm5, %v7446_v61  ;;  %v12545_v7 = vpop.f32.mrf.mxu1 }
 0x7ca   : >> { %v12503_v38 = vpop.f32.mrf.mxu0 }
 0x7cd   : >> { %9347 = vmatmul.msk.f32.gmra.mxu0 %vm411_vm5, %v7447_v51  ;;  %v7139_v51 = vpop.f32.mrf.mxu2 }
 0x7d2   : >> { %v12506_v24 = vpop.f32.mrf.mxu0 }
 0x7d5   : >> { %9348 = vmatmul.msk.f32.gmra.mxu0 %vm411_vm5, %v7448_v34  ;;  %v7457_v34 = vld [vmem:[#allocation4 + $0x88] sm:$0xff] }
 0x7da   : >> { %v12518_v57 = vpop.f32.mrf.mxu0 }
 0x7dd   : >> { %9349 = vmatmul.msk.f32.gmra.mxu0 %vm411_vm5, %v7449_v36  ;;  %v7458_v36 = vld [vmem:[#allocation4 + $0x90] sm:$0xff] }
 0x7e2   : >> { %v12521_v0 = vpop.f32.mrf.mxu0 }
 0x7e3   : >> { %13048 = vst [vmem:[#allocation12_spill] sm:$0xff] %v12521_v0 }
 0x7e5   : >> { %9350 = vmatmul.msk.f32.gmra.mxu0 %vm411_vm5, %v7450_v12  ;;  %v12548_v12 = vpop.f32.mrf.mxu2 }
 0x7ea   : >> { %v12524_v9 = vpop.f32.mrf.mxu0 }
 0x7ed   : >> { %9351 = vmatmul.msk.f32.gmra.mxu0 %vm411_vm5, %v7451_v60  ;;  %v12550_v60 = vpop.f32.mrf.mxu3 }
 0x7f2   : >> { %v12527_v25 = vpop.f32.mrf.mxu0 }
 0x7f3   : >> { %13049 = vst [vmem:[#allocation27_spill] sm:$0xff] %v12527_v25  ;;  %v7461_v25 = vld [vmem:[#allocation4 + $0xa8] sm:$0xff] }
 0x7f5   : >> { %9352 = vmatmul.msk.f32.gmra.mxu0 %vm411_vm5, %v7452_v11  ;;  %v12552_v11 = vpop.f32.mrf.mxu1 }
 0x7fa   : >> { %v12530_v41 = vpop.f32.mrf.mxu0 }
 0x7fb   : >> { %13050 = vst [vmem:[#allocation28_spill] sm:$0xff] %v12530_v41 }
 0x7fd   : >> { %9353 = vmatmul.msk.f32.gmra.mxu0 %vm411_vm5, %v7453_v56  ;;  %v12561_v32 = vpop.f32.mrf.mxu1 }
 0x802   : >> { %v12533_v29 = vpop.f32.mrf.mxu0 }
 0x803   : >> { %13051 = vst [vmem:[#allocation18_spill] sm:$0xff] %v12533_v29  ;;  %v13056_v29 = vld [vmem:[#allocation13_spill] sm:$0xff] }
 0x805   : >> { %9354 = vmatmul.msk.f32.gmra.mxu0 %vm411_vm5, %v7454_v13  ;;  %v7459_v13 = vld [vmem:[#allocation4 + $0x98] sm:$0xff] }
 0x80a   : >> { %v12536_v15 = vpop.f32.mrf.mxu0 }
 0x80b   : >> { %13052 = vst [vmem:[#allocation15_spill] sm:$0xff] %v12536_v15 }
 0x80d   : >> { %9355 = vmatmul.msk.f32.gmra.mxu0 %vm411_vm5, %v7455_v6  ;;  %v12555_v6 = vpop.f32.mrf.mxu2 }
 0x812   : >> { %v12539_v30 = vpop.f32.mrf.mxu0 }
 0x813   : >> { %13053 = vst [vmem:[#allocation19_spill] sm:$0xff] %v12539_v30 }
 0x815   : >> { %9356 = vmatmul.msk.f32.gmra.mxu0 %vm411_vm5, %v7456_v3  ;;  %v12568_v18 = vpop.f32.mrf.mxu2 }
 0x81a   : >> { %v12542_v61 = vpop.f32.mrf.mxu0 }
 0x81b   : >> { %13054 = vst [vmem:[#allocation36_spill] sm:$0xff] %v12542_v61 }
 0x81d   : >> { %9357 = vmatmul.msk.f32.gmra.mxu0 %vm411_vm5, %v7457_v34  ;;  %v13055_v34 = vld [vmem:[#allocation31_spill] sm:$0xff] }
 0x81e   : >> { %v6768_v61 = vadd.f32 %v12421_v47, %v13055_v34 }
 0x820   : >> { %v6986_v30 = vadd.f32 %v6915_v22, %v6768_v61 }
 0x822   : >> { %v6763_v19 = vpop.f32.mrf.mxu0  ;;  %v7204_v45 = vadd.f32 %v7133_v28, %v6986_v30 }
 0x823   : >> { %v12559_v19 = vpop.f32.mrf.mxu3 }
 0x824   : >> { %v7422_v47 = vadd.f32 %v7351_v8, %v7204_v45 }
 0x825   : >> { %9358 = vmatmul.msk.f32.gmra.mxu0 %vm411_vm5, %v7458_v36  ;;  %v7460_v36 = vld [vmem:[#allocation4 + $0xa0] sm:$0xff] }
 0x82a   : >> { %v6765_v56 = vpop.f32.mrf.mxu0 }
 0x82b   : >> { %v6767_v56 = vadd.f32 %v12410_v59, %v13056_v29  ;;  %v12570_v0 = vpop.f32.mrf.mxu3  ;;  %v7832_v59 = vld [vmem:[%s12906_s7] sm:$0xff]  ;;  %v12576_v29 = vpop.f32.mrf.mxu1 }
 0x82c   : >> { %7899 = vmatpush.msra.mxu2 %v7832_v59 }
 0x82d   : >> { %9359 = vmatmul.msk.f32.gmra.mxu0 %vm411_vm5, %v7459_v13  ;;  %v6769_v13 = vadd.f32 %v12430_v21, %v13057_v46  ;;  %v6985_v15 = vadd.f32 %v6912_v63, %v6767_v56  ;;  %v12581_v46 = vld [vmem:[%s12905_s6] ss:$0 sm:$0xff] }
 0x82e   : >> { %v13058_v21 = vld [vmem:[#allocation35_spill] sm:$0xff] }
 0x82f   : >> { %v6987_v34 = vadd.f32 %v6918_v52, %v6769_v13  ;;  %v7203_v43 = vadd.f32 %v7130_v14, %v6985_v15  ;;  %v6770_v63 = vadd.f32 %v12439_v39, %v13058_v21  ;;  %v12586_v52 = vpop.f32.mrf.mxu2 }
 0x831   : >> { %v7205_v58 = vadd.f32 %v7136_v48, %v6987_v34  ;;  %v7421_v45 = vadd.f32 %v7348_v20, %v7203_v43  ;;  %v6988_v15 = vadd.f32 %v6921_v54, %v6770_v63  ;;  %v7462_v48 = vld [vmem:[#allocation4 + $0xb0] sm:$0xff]  ;;  %v9377_v43 = vld [vmem:[%s12906_s7 + $0x20] sm:$0xff] }
 0x832   : >> { %v7566_v3 = vpop.f32.mrf.mxu0  ;;  %7940 = vmatpush.msra.mxu3 %v9377_v43 }
 0x833   : >> { %v7423_v14 = vadd.f32 %v7354_v2, %v7205_v58  ;;  %v7206_v30 = vadd.f32 %v7139_v51, %v6988_v15  ;;  %v9369_v58 = vld [vmem:[%s12906_s7 + $0x10] sm:$0xff]  ;;  %v12597_v20 = vpop.f32.mrf.mxu3  ;;  %v12599_v54 = vpop.f32.mrf.mxu1 }
 0x834   : >> { %7864 = vmatpush.msrb.mxu1 %v9369_v58 }
 0x835   : >> { %9360 = vmatmul.msk.f32.gmra.mxu0 %vm411_vm5, %v7460_v36  ;;  %v7424_v51 = vadd.f32 %v7357_v33, %v7206_v30  ;;  %v13059_v33 = vld [vmem:[#allocation22_spill] sm:$0xff] }
 0x837   : >> { %v12604_v63 = vpop.f32.mrf.mxu2 }
 0x83a   : >> { %v7569_v41 = vpop.f32.mrf.mxu0 }
 0x83b   : >> { %v7640_v22 = vadd.f32 %v7569_v41, %v7422_v47  ;;  %v12611_v15 = vpop.f32.mrf.mxu1 }
 0x83d   : >> { %9361 = vmatmul.msk.f32.gmra.mxu0 %vm411_vm5, %v7461_v25  ;;  %v7667_v41 = vadd.f32 %v12581_v46, %v7640_v22  ;;  %v7639_v25 = vadd.f32 %v7566_v3, %v7421_v45  ;;  %v7463_v45 = vld [vmem:[#allocation4 + $0xb8] sm:$0xff] }
 0x83f   : >> { %v7690_v61 = vmax.f32 %v7667_v41, 0.0  ;;  %v7666_v39 = vadd.f32 %v12581_v46, %v7639_v25  ;;  %v6772_v41 = vadd.f32 %v12457_v35, %v13059_v33  ;;  %v12609_v25 = vpop.f32.mrf.mxu3  ;;  %v13060_v35 = vld [vmem:[#allocation24_spill] sm:$0xff] }
 0x840   : >> { %v6771_v58 = vadd.f32 %v12448_v10, %v13060_v35 }
 0x841   : >> { %v7716_v3 = vrot.slane %v7690_v61, 7  ;;  %v7689_v13 = vmax.f32 %v7666_v39, 0.0  ;;  %v12621_v39 = vpop.f32.mrf.mxu2 }
 0x842   : >> { %v7572_v28 = vpop.f32.mrf.mxu0 }
 0x843   : >> { %v7641_v8 = vadd.f32 %v7572_v28, %v7423_v14 }
 0x845   : >> { %v7668_v36 = vadd.f32 %v12581_v46, %v7641_v8  ;;  %9362 = vmatmul.msk.f32.gmra.mxu0 %vm411_vm5, %v7462_v48  ;;  %v6990_v48 = vadd.f32 %v12552_v11, %v6772_v41 }
 0x847   : >> { %v7691_v2 = vmax.f32 %v7668_v36, 0.0  ;;  %v7208_v43 = vadd.f32 %v12555_v6, %v6990_v48  ;;  %v7466_v48 = vld [vmem:[#allocation4 + $0xd0] sm:$0xff] }
 0x849   : >> { %v7717_v56 = vrot.slane %v7691_v2, 7  ;;  %v13061_v2 = vld [vmem:[#allocation25_spill] sm:$0xff]  ;;  %v7426_v11 = vadd.f32 %v12559_v19, %v7208_v43  ;;  %v7160_v33 = vpop.f32.mrf.mxu2 }
 0x84a   : >> { %v7575_v47 = vpop.f32.mrf.mxu0  ;;  %v7031_v19 = vld [vmem:[#allocation4 + $0xd6] sm:$0xff] }
 0x84b   : >> { %v7718_v34 = vsel %vm7715_vm11, %v7716_v3, %v7717_v56  ;;  %v7642_v22 = vadd.f32 %v7575_v47, %v7424_v51  ;;  %v6773_v51 = vadd.f32 %v12466_v62, %v13061_v2  ;;  %v6989_v3 = vadd.f32 %v12545_v7, %v6771_v58  ;;  %v12631_v47 = vpop.f32.mrf.mxu1  ;;  %v6813_v7 = vld [vmem:[#allocation4 + $0xc9] sm:$0xff]  ;;  %9309 = vmatmul.msk.f32.gmra.mxu2 %vm411_vm5, %v7031_v19  ;;  %v7250_v2 = vld [vmem:[#allocation4 + $0xdf] sm:$0x1] }
 0x84c   : >> { %v7723_v59 = vmax.f32 %v7689_v13, %v7718_v34  ;;  %9280 = vmatmul.msk.f32.gmra.mxu1 %vm411_vm5, %v6813_v7 }
 0x84d   : >> { %v7669_v21 = vadd.f32 %v12581_v46, %v7642_v22  ;;  %9363 = vmatmul.msk.f32.gmra.mxu0 %vm411_vm5, %v7463_v45  ;;  %v6991_v6 = vadd.f32 %v12561_v32, %v6773_v51  ;;  %v7207_v13 = vadd.f32 %v12548_v12, %v6989_v3  ;;  %v7249_v32 = vld [vmem:[#allocation4 + $0xd7] sm:$0xff] }
 0x84e   : >> { %7726 = vst.msk [vmem:[#allocation7] sm:$0xff] %vm7725_vm12, %v7723_v59  ;;  %9338 = vmatmul.msk.f32.gmra.mxu3 %vm411_vm5, %v7249_v32 }
 0x84f   : >> { %v7692_v14 = vmax.f32 %v7669_v21, 0.0  ;;  %v7209_v10 = vadd.f32 %v12568_v18, %v6991_v6  ;;  %v7425_v12 = vadd.f32 %v12550_v60, %v7207_v13  ;;  %v6774_v18 = vadd.f32 %v12477_v49, %v12271_v53  ;;  %v6814_v53 = vld [vmem:[#allocation4 + $0xd1] sm:$0x1]  ;;  %v7032_v49 = vld [vmem:[#allocation4 + $0xde] sm:$0x1] }
 0x851   : >> { %v7719_v28 = vrot.slane %v7692_v14, 7  ;;  %v12658_v6 = vpop.f32.mrf.mxu2 }
 0x852   : >> { %v7578_v8 = vpop.f32.mrf.mxu0 }
 0x853   : >> { %v7720_v30 = vsel %vm7715_vm11, %v7717_v56, %v7719_v28  ;;  %v12628_v56 = vpop.f32.mrf.mxu3  ;;  %v7643_v41 = vadd.f32 %v7578_v8, %v7425_v12  ;;  %9310 = vmatmul.msk.f32.gmra.mxu2 %vm411_vm5, %v7032_v49 }
 0x854   : >> { %v7724_v36 = vmax.f32 %v7690_v61, %v7720_v30  ;;  %v6992_v30 = vadd.f32 %v12576_v29, %v6774_v18  ;;  %9281 = vmatmul.msk.f32.gmra.mxu1 %vm411_vm5, %v6814_v53 }
 0x855   : >> { %9364 = vmatmul.msk.f32.gmra.mxu0 %vm411_vm5, %v12468_v44  ;;  %v7670_v8 = vadd.f32 %v12581_v46, %v7643_v41 }
 0x856   : >> { %7728 = vst.msk [vmem:[#allocation7 + $0x8] sm:$0xf] %vm7727_vm13, %v7724_v36  ;;  %v7210_v60 = vadd.f32 %v12586_v52, %v6992_v30  ;;  %9339 = vmatmul.msk.f32.gmra.mxu3 %vm411_vm5, %v7250_v2 }
 0x858   : >> { %v7428_v29 = vadd.f32 %v12597_v20, %v7210_v60  ;;  %v6776_v20 = vadd.f32 %v12493_v26, %v12289_v42  ;;  %v6777_v42 = vadd.f32 %v12497_v1, %v12298_v40 }
 0x859   : >> { %v12671_v18 = vpop.f32.mrf.mxu2 }
 0x85a   : >> { %v7581_v61 = vpop.f32.mrf.mxu0  ;;  %v6994_v19 = vadd.f32 %v12611_v15, %v6776_v20  ;;  %v6778_v20 = vadd.f32 %v12500_v31, %v12307_v4  ;;  %v6779_v4 = vadd.f32 %v12503_v38, %v12316_v17  ;;  %v6781_v31 = vadd.f32 %v12518_v57, %v12334_v23 }
 0x85b   : >> { %v7644_v44 = vadd.f32 %v7581_v61, %v7426_v11  ;;  %v7378_v35 = vpop.f32.mrf.mxu3 }
 0x85c   : >> { %v7212_v12 = vadd.f32 %v12621_v39, %v6994_v19  ;;  %v6995_v39 = vadd.f32 %v12631_v47, %v6777_v42 }
 0x85d   : >> { %v7729_v34 = vld [vmem:[#allocation7] ss:$2 sm:$0x3f]  ;;  %v7731_v22 = vld [vmem:[#allocation7 + $0x1] ss:$2 sm:$0x3f]  ;;  %v7671_v62 = vadd.f32 %v12581_v46, %v7644_v44  ;;  %9365 = vmatmul.msk.f32.gmra.mxu0 %vm411_vm5, %v12479_v5  ;;  %v7427_v5 = vadd.f32 %v12570_v0, %v7209_v10  ;;  %v12650_v0 = vpop.f32.mrf.mxu1 }
 0x85e   : >> { %v7732_v59 = vmax.f32 %v7729_v34, %v7731_v22  ;;  %v7430_v26 = vadd.f32 %v12628_v56, %v7212_v12  ;;  %v7213_v30 = vadd.f32 %v7160_v33, %v6995_v39 }
 0x85f   : >> { %v7694_v45 = vmax.f32 %v7671_v62, 0.0 }
 0x860   : >> { %7734 = vst.msk [vmem:[#allocation5] sm:$0x3f] %vm7733_vm14, %v7732_v59 }
 0x861   : >> { %v7738_v21 = vrot.slane %v7694_v45, 7  ;;  %v7169_v56 = vpop.f32.mrf.mxu2 }
 0x862   : >> { %v7584_v28 = vpop.f32.mrf.mxu0 }
 0x863   : >> { %v7746_v36 = vmax.f32 %v7692_v14, %v7738_v21  ;;  %v7645_v43 = vadd.f32 %v7584_v28, %v7427_v5  ;;  %v7693_v14 = vmax.f32 %v7670_v8, 0.0  ;;  %v12662_v10 = vpop.f32.mrf.mxu3  ;;  %v6775_v5 = vadd.f32 %v12486_v27, %v12278_v55 }
 0x865   : >> { %7750 = vst.msk [vmem:[#allocation7 - $0x6] sm:$0xc0] %vm7749_vm1, %v7746_v36  ;;  %v7672_v58 = vadd.f32 %v12581_v46, %v7645_v43  ;;  %9366 = vmatmul.msk.f32.gmra.mxu0 %vm411_vm5, %v7466_v48  ;;  %v12664_v22 = vpop.f32.mrf.mxu1  ;;  %v6993_v15 = vadd.f32 %v12599_v54, %v6775_v5  ;;  %v7431_v54 = vadd.f32 %v7378_v35, %v7213_v30 }
 0x867   : >> { %v7695_v51 = vmax.f32 %v7672_v58, 0.0  ;;  %v7211_v48 = vadd.f32 %v12604_v63, %v6993_v15 }
 0x869   : >> { %v7739_v52 = vrot.slane %v7695_v51, 7  ;;  %v7429_v1 = vadd.f32 %v12609_v25, %v7211_v48 }
 0x86a   : >> { %v7587_v11 = vpop.f32.mrf.mxu0 }
 0x86b   : >> { %v7740_v3 = vsel %vm7715_vm11, %v7738_v21, %v7739_v52  ;;  %v7646_v61 = vadd.f32 %v7587_v11, %v7428_v29  ;;  %v12679_v21 = vpop.f32.mrf.mxu3 }
 0x86c   : >> { %v7747_v44 = vmax.f32 %v7693_v14, %v7740_v3  ;;  %v7172_v14 = vpop.f32.mrf.mxu2 }
 0x86d   : >> { %v7673_v13 = vadd.f32 %v12581_v46, %v7646_v61  ;;  %v6951_v41 = vpop.f32.mrf.mxu1 }
 0x86e   : >> { %7751 = vst.msk [vmem:[#allocation7 + $0x2] sm:$0xff] %vm7725_vm12, %v7747_v44 }
 0x86f   : >> { %v7696_v34 = vmax.f32 %v7673_v13, 0.0 }
 0x871   : >> { %v7741_v62 = vrot.slane %v7696_v34, 7 }
 0x872   : >> { %v7590_v7 = vpop.f32.mrf.mxu0 }
 0x873   : >> { %v7742_v32 = vsel %vm7715_vm11, %v7739_v52, %v7741_v62  ;;  %v7647_v58 = vadd.f32 %v7590_v7, %v7429_v1  ;;  %v7387_v53 = vpop.f32.mrf.mxu3  ;;  %v6780_v62 = vadd.f32 %v12506_v24, %v12325_v16  ;;  %v6996_v7 = vadd.f32 %v12650_v0, %v6778_v20 }
 0x874   : >> { %v7748_v59 = vmax.f32 %v7694_v45, %v7742_v32  ;;  %v12702_v12 = vpop.f32.mrf.mxu2 }
 0x875   : >> { %v6954_v33 = vpop.f32.mrf.mxu1  ;;  %v7674_v2 = vadd.f32 %v12581_v46, %v7647_v58  ;;  %v7214_v32 = vadd.f32 %v12658_v6, %v6996_v7  ;;  %v6997_v6 = vadd.f32 %v12664_v22, %v6779_v4  ;;  %v13063_v7 = vld [vmem:[#allocation23_spill] sm:$0xff] }
 0x876   : >> { %7753 = vst.msk [vmem:[#allocation7 + $0xa] sm:$0x3] %vm7752_vm2, %v7748_v59  ;;  %v6998_v59 = vadd.f32 %v6951_v41, %v6780_v62 }
 0x877   : >> { %v7697_v11 = vmax.f32 %v7674_v2, 0.0 }
 0x878   : >> { %v7216_v5 = vadd.f32 %v7169_v56, %v6998_v59 }
 0x87a   : >> { %v7593_v45 = vpop.f32.mrf.mxu0  ;;  %v7434_v24 = vadd.f32 %v7387_v53, %v7216_v5  ;;  %v9393_v53 = vld [vmem:[%s12906_s7 + $0x58] sm:$0xff] }
 0x87b   : >> { %v7648_v28 = vadd.f32 %v7593_v45, %v7430_v26  ;;  %v7390_v13 = vpop.f32.mrf.mxu3  ;;  %v7432_v45 = vadd.f32 %v12662_v10, %v7214_v32  ;;  %v7215_v10 = vadd.f32 %v12671_v18, %v6997_v6  ;;  %8071 = vmatpush.msrb.mxu3 %v9393_v53 }
 0x87c   : >> { %v7178_v38 = vpop.f32.mrf.mxu2 }
 0x87d   : >> { %v7754_v36 = vld [vmem:[#allocation7] ss:$2 sm:$0x3f]  ;;  %v7755_v43 = vld [vmem:[#allocation7 + $0x1] ss:$2 sm:$0x3f]  ;;  %v7675_v55 = vadd.f32 %v12581_v46, %v7648_v28  ;;  %v6999_v28 = vadd.f32 %v6954_v33, %v6781_v31  ;;  %v7433_v57 = vadd.f32 %v12679_v21, %v7215_v10 }
 0x87e   : >> { %v7756_v27 = vmax.f32 %v7754_v36, %v7755_v43  ;;  %v9388_v21 = vld [vmem:[%s12906_s7 + $0x48] sm:$0xff]  ;;  %v9383_v33 = vld [vmem:[%s12906_s7 + $0x38] sm:$0xff] }
 0x87f   : >> { %v7698_v40 = vmax.f32 %v7675_v55, 0.0  ;;  %v7217_v30 = vadd.f32 %v7172_v14, %v6999_v28  ;;  %8027 = vmatpush.msrb.mxu2 %v9388_v21  ;;  %7983 = vmatpush.msra.mxu1 %v9383_v33  ;;  %v13065_v28 = vld [vmem:[#allocation38_spill] sm:$0xff] }
 0x880   : >> { %7757 = vst.msk [vmem:[#allocation5 + $0x6] sm:$0x3f] %vm7733_vm14, %v7756_v27 }
 0x881   : >> { %v7760_v60 = vrot.slane %v7698_v40, 7  ;;  %v7435_v22 = vadd.f32 %v7390_v13, %v7217_v30  ;;  %v9392_v13 = vld [vmem:[%s12906_s7 + $0x50] sm:$0xff] }
 0x882   : >> { %v7596_v47 = vpop.f32.mrf.mxu0  ;;  %8072 = vmatpush.msrb.mxu3 %v9392_v13 }
 0x883   : >> { %v7765_v49 = vmax.f32 %v7696_v34, %v7760_v60  ;;  %v7649_v63 = vadd.f32 %v7596_v47, %v7431_v54  ;;  %v12693_v34 = vpop.f32.mrf.mxu1  ;;  %v12705_v39 = vpop.f32.mrf.mxu3 }
 0x884   : >> { %v7181_v2 = vpop.f32.mrf.mxu2 }
 0x885   : >> { %7768 = vst.msk [vmem:[#allocation7 - $0x4] sm:$0xf0] %vm7767_vm4, %v7765_v49  ;;  %v7676_v8 = vadd.f32 %v12581_v46, %v7649_v63 }
 0x887   : >> { %v7699_v51 = vmax.f32 %v7676_v8, 0.0  ;;  %v7834_v29 = vld [vmem:[#allocation5 + $0x1] sm:$0xff] }
 0x888   : >> { %v7829_v25 = vld [vmem:[#allocation5] sm:$0xff]  ;;  %9371 = vmatmul.msk.f32.vlgmr.msrb.gmra.mxu1 %vm7725_vm12, %v7834_v29 }
 0x889   : >> { %v7910_v52 = vld [vmem:[#allocation5 + $0x2] sm:$0xff]  ;;  %9374 = vmatmul.msk.f32.vlgmr.msra.gmra.mxu2 %vm7725_vm12, %v7829_v25  ;;  %v7761_v35 = vrot.slane %v7699_v51, 7 }
 0x88a   : >> { %9379 = vmatmul.msk.f32.vlgmr.msra.gmra.mxu3 %vm7725_vm12, %v7910_v52  ;;  %v7599_v3 = vpop.f32.mrf.mxu0  ;;  %v6783_v52 = vadd.f32 %v12524_v9, %v12355_v50  ;;  %v13062_v9 = vld [vmem:[#allocation12_spill] sm:$0xff] }
 0x88b   : >> { %v7762_v61 = vsel %vm7715_vm11, %v7760_v60, %v7761_v35  ;;  %v6960_v16 = vpop.f32.mrf.mxu1  ;;  %v7650_v0 = vadd.f32 %v7599_v3, %v7432_v45  ;;  %v7396_v18 = vpop.f32.mrf.mxu3  ;;  %v6782_v62 = vadd.f32 %v13062_v9, %v12346_v37 }
 0x88c   : >> { %v7766_v44 = vmax.f32 %v7697_v11, %v7762_v61  ;;  %v9382_v61 = vld [vmem:[%s12906_s7 + $0x30] sm:$0xff]  ;;  %v7001_v20 = vadd.f32 %v6960_v16, %v6783_v52  ;;  %v7184_v5 = vpop.f32.mrf.mxu2 }
 0x88d   : >> { %v7677_v36 = vadd.f32 %v12581_v46, %v7650_v0  ;;  %7984 = vmatpush.msra.mxu1 %v9382_v61  ;;  %v7000_v59 = vadd.f32 %v12693_v34, %v6782_v62  ;;  %v13066_v34 = vld [vmem:[#allocation28_spill] sm:$0xff]  ;;  %v9402_v52 = vld [vmem:[%s12906_s7 + $0x70] sm:$0xff]  ;;  %v13068_v61 = vld [vmem:[#allocation15_spill] sm:$0xff] }
 0x88e   : >> { %7769 = vst.msk [vmem:[#allocation7 + $0x4] sm:$0xff] %vm7725_vm12, %v7766_v44  ;;  %v9387_v44 = vld [vmem:[%s12906_s7 + $0x40] sm:$0xff]  ;;  %v7219_v50 = vadd.f32 %v7178_v38, %v7001_v20 }
 0x88f   : >> { %v7700_v40 = vmax.f32 %v7677_v36, 0.0  ;;  %8028 = vmatpush.msrb.mxu2 %v9387_v44  ;;  %v7218_v45 = vadd.f32 %v12702_v12, %v7000_v59  ;;  %v9397_v59 = vld [vmem:[%s12906_s7 + $0x60] sm:$0xff] }
 0x891   : >> { %v7436_v37 = vadd.f32 %v12705_v39, %v7218_v45  ;;  %v9408_v39 = vld [vmem:[%s12906_s7 + $0x88] sm:$0xff] }
 0x892   : >> { %v7602_v19 = vpop.f32.mrf.mxu0  ;;  %8203 = vmatpush.msra.mxu3 %v9408_v39 }
 0x893   : >> { %v6963_v56 = vpop.f32.mrf.mxu1  ;;  %v7651_v54 = vadd.f32 %v7602_v19, %v7433_v57  ;;  %v7399_v35 = vpop.f32.mrf.mxu3  ;;  %v13064_v19 = vld [vmem:[#allocation27_spill] sm:$0xff] }
 0x894   : >> { %v6784_v32 = vadd.f32 %v13064_v19, %v13063_v7 }
 0x895   : >> { %v7770_v42 = vld [vmem:[#allocation7] ss:$2 sm:$0x3f]  ;;  %v7771_v26 = vld [vmem:[#allocation7 + $0x1] ss:$2 sm:$0x3f]  ;;  %v7678_v63 = vadd.f32 %v12581_v46, %v7651_v54 }
 0x896   : >> { %v7772_v15 = vmax.f32 %v7770_v42, %v7771_v26  ;;  %v7437_v26 = vadd.f32 %v7396_v18, %v7219_v50 }
 0x897   : >> { %v7701_v29 = vmax.f32 %v7678_v63, 0.0 }
 0x898   : >> { %7773 = vst.msk [vmem:[#allocation5 + $0xc] sm:$0x3f] %vm7733_vm14, %v7772_v15  ;;  %v7002_v15 = vadd.f32 %v6963_v56, %v6784_v32  ;;  %v9407_v32 = vld [vmem:[%s12906_s7 + $0x80] sm:$0xff] }
 0x899   : >> { %8204 = vmatpush.msra.mxu3 %v9407_v32 }
 0x89a   : >> { %v7605_v41 = vpop.f32.mrf.mxu0  ;;  %v7220_v4 = vadd.f32 %v7181_v2, %v7002_v15  ;;  %v13070_v15 = vld [vmem:[#allocation18_spill] sm:$0xff] }
 0x89b   : >> { %v7652_v48 = vadd.f32 %v7605_v41, %v7434_v24  ;;  %v6966_v11 = vpop.f32.mrf.mxu1  ;;  %v7402_v16 = vpop.f32.mrf.mxu3 }
 0x89c   : >> { %v7438_v10 = vadd.f32 %v7399_v35, %v7220_v4 }
 0x89d   : >> { %v7679_v17 = vadd.f32 %v12581_v46, %v7652_v48  ;;  %v6785_v48 = vadd.f32 %v13066_v34, %v13065_v28 }
 0x89f   : >> { %v7702_v43 = vmax.f32 %v7679_v17, 0.0  ;;  %v7835_v55 = vld [vmem:[#allocation5 + $0x9] sm:$0xff]  ;;  %v7003_v17 = vadd.f32 %v6966_v11, %v6785_v48 }
 0x8a0   : >> { %v12716_v27 = vld [vmem:[#allocation5 + $0x8] sm:$0xff]  ;;  %9372 = vmatmul.msk.f32.gmra.mxu1 %vm7725_vm12, %v7835_v55  ;;  %v9398_v55 = vld [vmem:[%s12906_s7 + $0x68] sm:$0xff] }
 0x8a1   : >> { %v7911_v23 = vld [vmem:[#allocation5 + $0xa] sm:$0xff]  ;;  %9375 = vmatmul.msk.f32.gmra.mxu2 %vm7725_vm12, %v12716_v27  ;;  %v7776_v1 = vrot.slane %v7702_v43, 7  ;;  %v7221_v57 = vadd.f32 %v7184_v5, %v7003_v17  ;;  %8115 = vmatpush.msrb.mxu1 %v9398_v55 }
 0x8a2   : >> { %9380 = vmatmul.msk.f32.gmra.mxu3 %vm7725_vm12, %v7911_v23  ;;  %v7608_v60 = vpop.f32.mrf.mxu0  ;;  %v9403_v43 = vld [vmem:[%s12906_s7 + $0x78] sm:$0xff]  ;;  %v12769_v23 = vpop.f32.mrf.mxu2  ;;  %v7998_v11 = vld [vmem:[#allocation5 + $0x7] sm:$0xff] }
 0x8a3   : >> { %v7781_v58 = vmax.f32 %v7700_v40, %v7776_v1  ;;  %v7653_v47 = vadd.f32 %v7608_v60, %v7435_v22  ;;  %v12753_v6 = vpop.f32.mrf.mxu1  ;;  %8159 = vmatpush.msra.mxu2 %v9403_v43  ;;  %v7439_v21 = vadd.f32 %v7402_v16, %v7221_v57  ;;  %8116 = vmatpush.msrb.mxu1 %v9397_v59 }
 0x8a5   : >> { %7784 = vst.msk [vmem:[#allocation7 - $0x2] sm:$0xfc] %vm7783_vm7, %v7781_v58  ;;  %v7680_v49 = vadd.f32 %v12581_v46, %v7653_v47  ;;  %8160 = vmatpush.msra.mxu2 %v9402_v52 }
 0x8a7   : >> { %v7703_v8 = vmax.f32 %v7680_v49, 0.0 }
 0x8a9   : >> { %v7777_v51 = vrot.slane %v7703_v8, 7 }
 0x8aa   : >> { %v7611_v25 = vpop.f32.mrf.mxu0 }
 0x8ab   : >> { %v7778_v14 = vsel %vm7715_vm11, %v7776_v1, %v7777_v51  ;;  %v7654_v36 = vadd.f32 %v7611_v25, %v7436_v37  ;;  %v12773_v1 = vpop.f32.mrf.mxu3  ;;  %v6972_v58 = vpop.f32.mrf.mxu1 }
 0x8ac   : >> { %v7782_v3 = vmax.f32 %v7701_v29, %v7778_v14  ;;  %v7190_v25 = vpop.f32.mrf.mxu2  ;;  %v7954_v14 = vld [vmem:[#allocation5 + $0x6] sm:$0xff] }
 0x8ad   : >> { %v7681_v40 = vadd.f32 %v12581_v46, %v7654_v36 }
 0x8ae   : >> { %7785 = vst.msk [vmem:[#allocation7 + $0x6] sm:$0x3f] %vm7733_vm14, %v7782_v3  ;;  %v13067_v3 = vld [vmem:[#allocation41_spill] sm:$0xff] }
 0x8af   : >> { %v7704_v63 = vmax.f32 %v7681_v40, 0.0  ;;  %v6787_v44 = vadd.f32 %v13068_v61, %v13067_v3 }
 0x8b1   : >> { %v7005_v62 = vadd.f32 %v6972_v58, %v6787_v44 }
 0x8b2   : >> { %v7614_v42 = vpop.f32.mrf.mxu0 }
 0x8b3   : >> { %v7655_v31 = vadd.f32 %v7614_v42, %v7437_v26  ;;  %v7408_v13 = vpop.f32.mrf.mxu3  ;;  %v6975_v50 = vpop.f32.mrf.mxu1  ;;  %v7223_v5 = vadd.f32 %v7190_v25, %v7005_v62  ;;  %v13069_v26 = vld [vmem:[#allocation26_spill] sm:$0xff] }
 0x8b4   : >> { %v6786_v45 = vadd.f32 %v13070_v15, %v13069_v26  ;;  %v7193_v4 = vpop.f32.mrf.mxu2 }
 0x8b5   : >> { %v7786_v24 = vld [vmem:[#allocation7] ss:$2 sm:$0x3f]  ;;  %v7787_v0 = vld [vmem:[#allocation7 + $0x1] ss:$2 sm:$0x3f]  ;;  %v7682_v30 = vadd.f32 %v12581_v46, %v7655_v31 }
 0x8b6   : >> { %v7788_v41 = vmax.f32 %v7786_v24, %v7787_v0  ;;  %v13071_v31 = vld [vmem:[#allocation14_spill] sm:$0xff]  ;;  %v13072_v24 = vld [vmem:[#allocation19_spill] sm:$0xff]  ;;  %v7004_v28 = vadd.f32 %v12753_v6, %v6786_v45 }
 0x8b7   : >> { %v7705_v22 = vmax.f32 %v7682_v30, 0.0  ;;  %v6788_v0 = vadd.f32 %v13072_v24, %v13071_v31 }
 0x8b8   : >> { %7789 = vst.msk [vmem:[#allocation5 + $0x12] sm:$0x3f] %vm7733_vm14, %v7788_v41  ;;  %v7441_v41 = vadd.f32 %v7408_v13, %v7223_v5  ;;  %v7222_v30 = vadd.f32 %v12769_v23, %v7004_v28 }
 0x8b9   : >> { %v7793_v53 = vrot.slane %v7705_v22, 7  ;;  %v7006_v48 = vadd.f32 %v6975_v50, %v6788_v0 }
 0x8ba   : >> { %v7617_v12 = vpop.f32.mrf.mxu0  ;;  %v7440_v57 = vadd.f32 %v12773_v1, %v7222_v30  ;;  %v9418_v30 = vld [vmem:[%s8227_s25 + $0x2] sm:$0x3] }
 0x8bb   : >> { %v7656_v38 = vadd.f32 %v7617_v12, %v7438_v10  ;;  %v7411_v37 = vpop.f32.mrf.mxu3  ;;  %v6978_v36 = vpop.f32.mrf.mxu1  ;;  %v7224_v12 = vadd.f32 %v7193_v4, %v7006_v48 }
 0x8bd   : >> { %v7683_v18 = vadd.f32 %v12581_v46, %v7656_v38  ;;  %v7442_v40 = vadd.f32 %v7411_v37, %v7224_v12 }
 0x8bf   : >> { %v7706_v56 = vmax.f32 %v7683_v18, 0.0  ;;  %v7836_v54 = vld [vmem:[#allocation5 + $0x11] sm:$0x3f]  ;;  %v13074_v18 = vld [vmem:[#allocation36_spill] sm:$0xff] }
 0x8c0   : >> { %v7831_v60 = vld [vmem:[#allocation5 + $0x10] sm:$0x3f]  ;;  %9373 = vmatmul.msk.f32.gmra.mxu1 %vm7725_vm12, %v7836_v54  ;;  %v7196_v54 = vpop.f32.mrf.mxu2 }
 0x8c1   : >> { %9376 = vmatmul.msk.f32.gmra.mxu2 %vm7725_vm12, %v7831_v60  ;;  %v7912_v47 = vld [vmem:[#allocation5 + $0x12] sm:$0x3f]  ;;  %v7794_v49 = vrot.slane %v7706_v56, 7 }
 0x8c2   : >> { %9381 = vmatmul.msk.f32.gmra.mxu3 %vm7725_vm12, %v7912_v47  ;;  %v7620_v33 = vpop.f32.mrf.mxu0  ;;  %v7999_v42 = vld [vmem:[#allocation5 + $0xf] sm:$0xff] }
 0x8c3   : >> { %v7795_v8 = vsel %vm7715_vm11, %v7793_v53, %v7794_v49  ;;  %v7657_v2 = vadd.f32 %v7620_v33, %v7439_v21  ;;  %v8043_v16 = vld [vmem:[#allocation5 + $0x10] sm:$0xff]  ;;  %v7414_v47 = vpop.f32.mrf.mxu3 }
 0x8c4   : >> { %v7800_v51 = vmax.f32 %v7704_v63, %v7795_v8  ;;  %v8086_v62 = vld [vmem:[#allocation5 + $0xc] sm:$0xff] }
 0x8c5   : >> { %v7684_v29 = vadd.f32 %v12581_v46, %v7657_v2 }
 0x8c6   : >> { %7802 = vst.msk [vmem:[#allocation7] sm:$0xff] %vm7725_vm12, %v7800_v51 }
 0x8c7   : >> { %v7707_v35 = vmax.f32 %v7684_v29, 0.0 }
 0x8c8   : >> { %9384 = vmatmul.msk.f32.vlgmr.msra.gmra.mxu1 %vm7725_vm12, %v7954_v14 }
 0x8c9   : >> { %9389 = vmatmul.msk.f32.vlgmr.msrb.gmra.mxu2 %vm7725_vm12, %v7998_v11  ;;  %v7796_v20 = vrot.slane %v7707_v35, 7 }
 0x8ca   : >> { %9394 = vmatmul.msk.f32.vlgmr.msrb.gmra.mxu3 %vm7725_vm12, %v12716_v27  ;;  %v7623_v9 = vpop.f32.mrf.mxu0  ;;  %v12798_v27 = vld [vmem:[#allocation5 + $0xe] sm:$0xff]  ;;  %9419 = vmatpush.msk.msrb.mxu2 %vm8233_vm8, %v9418_v30 }
 0x8cb   : >> { %v7797_v7 = vsel %vm7715_vm11, %v7794_v49, %v7796_v20  ;;  %v7658_v60 = vadd.f32 %v7623_v9, %v7440_v57  ;;  %v6981_v49 = vpop.f32.mrf.mxu1 }
 0x8cc   : >> { %v7801_v19 = vmax.f32 %v7705_v22, %v7797_v7  ;;  %v13073_v22 = vld [vmem:[#allocation29_spill] sm:$0xff] }
 0x8cd   : >> { %v6789_v6 = vadd.f32 %v13074_v18, %v13073_v22  ;;  %v7685_v1 = vadd.f32 %v12581_v46, %v7658_v60  ;;  %v8130_v7 = vld [vmem:[#allocation5 + $0xd] sm:$0xff] }
 0x8ce   : >> { %7803 = vst.msk [vmem:[#allocation7 + $0x8] sm:$0xf] %vm7727_vm13, %v7801_v19  ;;  %v7199_v11 = vpop.f32.mrf.mxu2 }
 0x8cf   : >> { %v7007_v58 = vadd.f32 %v6978_v36, %v6789_v6 }
 0x8d0   : >> { %9385 = vmatmul.msk.f32.gmra.mxu1 %vm7725_vm12, %v12798_v27 }
 0x8d1   : >> { %9390 = vmatmul.msk.f32.gmra.mxu2 %vm7725_vm12, %v7999_v42  ;;  %v7225_v63 = vadd.f32 %v7196_v54, %v7007_v58  ;;  %v7417_v44 = vpop.f32.mrf.mxu3 }
 0x8d2   : >> { %9395 = vmatmul.msk.f32.gmra.mxu3 %vm7725_vm12, %v8043_v16  ;;  %v7626_v34 = vpop.f32.mrf.mxu0 }
 0x8d3   : >> { %v7659_v10 = vadd.f32 %v7626_v34, %v7441_v41  ;;  %v7443_v25 = vadd.f32 %v7414_v47, %v7225_v63  ;;  %v6983_v20 = vpop.f32.mrf.mxu1 }
 0x8d5   : >> { %v7686_v17 = vadd.f32 %v12581_v46, %v7659_v10  ;;  %v7804_v38 = vld [vmem:[#allocation7] ss:$2 sm:$0x3f]  ;;  %v7805_v43 = vld [vmem:[#allocation7 + $0x1] ss:$2 sm:$0x3f] }
 0x8d6   : >> { %v7806_v39 = vmax.f32 %v7804_v38, %v7805_v43  ;;  %v7201_v32 = vpop.f32.mrf.mxu2 }
 0x8d7   : >> { %v7709_v55 = vmax.f32 %v7686_v17, 0.0 }
 0x8d8   : >> { %7807 = vst.msk [vmem:[#allocation5 + $0x18] sm:$0x3f] %vm7733_vm14, %v7806_v39  ;;  %v8228_v39 = vld [vmem:[%s8227_s25] sm:$0x3] }
 0x8d9   : >> { %v7811_v56 = vrot.slane %v7709_v55, 7  ;;  %v7419_v5 = vpop.f32.mrf.mxu3  ;;  %9414 = vmatpush.msk.msra.mxu1 %vm8233_vm8, %v8228_v39 }
 0x8da   : >> { %v7629_v23 = vpop.f32.mrf.mxu0 }
 0x8db   : >> { %v7819_v21 = vmax.f32 %v7707_v35, %v7811_v56  ;;  %v7660_v53 = vadd.f32 %v7629_v23, %v7442_v40  ;;  %v7708_v35 = vmax.f32 %v7685_v1, 0.0  ;;  %v9428_v1 = vld [vmem:[%s8227_s25 + $0x6] sm:$0x3] }
 0x8dd   : >> { %v7687_v33 = vadd.f32 %v12581_v46, %v7660_v53  ;;  %7822 = vst.msk [vmem:[#allocation7 - $0x6] sm:$0xc0] %vm7749_vm1, %v7819_v21 }
 0x8df   : >> { %v7710_v8 = vmax.f32 %v7687_v33, 0.0  ;;  %v7956_v2 = vld [vmem:[#allocation5 + $0x16] sm:$0x3f] }
 0x8e0   : >> { %v8000_v51 = vld [vmem:[#allocation5 + $0x17] sm:$0x3f]  ;;  %9386 = vmatmul.msk.f32.gmra.mxu1 %vm7725_vm12, %v7956_v2 }
 0x8e1   : >> { %9391 = vmatmul.msk.f32.gmra.mxu2 %vm7725_vm12, %v8000_v51  ;;  %v8044_v29 = vld [vmem:[#allocation5 + $0x18] sm:$0x3f]  ;;  %v7812_v52 = vrot.slane %v7710_v8, 7  ;;  %v7467_v8 = vld [vmem:[#allocation4 + $0xd8] sm:$0xff] }
 0x8e2   : >> { %9396 = vmatmul.msk.f32.gmra.mxu3 %vm7725_vm12, %v8044_v29  ;;  %v7632_v14 = vpop.f32.mrf.mxu0  ;;  %v8131_v26 = vld [vmem:[#allocation5 + $0x15] sm:$0xff]  ;;  %9367 = vmatmul.msk.f32.gmra.mxu0 %vm411_vm5, %v7467_v8 }
 0x8e3   : >> { %v7813_v3 = vsel %vm7715_vm11, %v7811_v56, %v7812_v52  ;;  %v7661_v61 = vadd.f32 %v7632_v14, %v7443_v25  ;;  %v8175_v15 = vld [vmem:[#allocation5 + $0x16] sm:$0xff] }
 0x8e4   : >> { %v7820_v13 = vmax.f32 %v7708_v35, %v7813_v3 }
 0x8e5   : >> { %v7688_v50 = vadd.f32 %v12581_v46, %v7661_v61  ;;  %v8087_v46 = vld [vmem:[#allocation5 + $0x14] sm:$0xff] }
 0x8e6   : >> { %7823 = vst.msk [vmem:[#allocation7 + $0x2] sm:$0xff] %vm7725_vm12, %v7820_v13  ;;  %v7468_v61 = vld [vmem:[#allocation4 + $0xe0] sm:$0x1] }
 0x8e7   : >> { %v7711_v9 = vmax.f32 %v7688_v50, 0.0 }
 0x8e8   : >> { %9399 = vmatmul.msk.f32.vlgmr.msrb.gmra.mxu1 %vm7725_vm12, %v8086_v62 }
 0x8e9   : >> { %9404 = vmatmul.msk.f32.vlgmr.msra.gmra.mxu2 %vm7725_vm12, %v8130_v7  ;;  %v7814_v19 = vrot.slane %v7711_v9, 7  ;;  %9429 = vmatpush.msk.msrb.mxu1 %vm8233_vm8, %v9428_v1 }
 0x8ea   : >> { %9409 = vmatmul.msk.f32.vlgmr.msra.gmra.mxu3 %vm7725_vm12, %v12798_v27  ;;  %9368 = vmatmul.msk.f32.gmra.mxu0 %vm411_vm5, %v7468_v61 }
 0x8eb   : >> { %v7815_v59 = vsel %vm7715_vm11, %v7812_v52, %v7814_v19  ;;  %v9501_v52 = vld [vmem:[%s12907_s8] ss:$0 sm:$0xff] }
 0x8ec   : >> { %v7821_v42 = vmax.f32 %v7709_v55, %v7815_v59  ;;  %v9423_v55 = vld [vmem:[%s8227_s25 + $0x4] sm:$0x3]  ;;  %s13079_s25 = sand.u32 (%p433_p11), 1, %s9567_s14  }
 0x8ed   : >> { %9424 = vmatpush.msk.msrb.mxu3 %vm8233_vm8, %v9423_v55  ;;  %s8357_s18 = scalar_lea.sflag (%p433_p11), [#allocation9], %s13079_s25 }
 0x8ee   : >> { %7824 = vst.msk [vmem:[#allocation7 + $0xa] sm:$0x3] %vm7752_vm2, %v7821_v42 }
 0x8f0   : >> { %9400 = vmatmul.msk.f32.gmra.mxu1 %vm7725_vm12, %v8087_v46 }
 0x8f1   : >> { %9405 = vmatmul.msk.f32.gmra.mxu2 %vm7725_vm12, %v8131_v26 }
 0x8f2   : >> { %9410 = vmatmul.msk.f32.gmra.mxu3 %vm7725_vm12, %v8175_v15 }
 0x8f5   : >> { %v7825_v45 = vld [vmem:[#allocation7] ss:$2 sm:$0x3f]  ;;  %v7826_v4 = vld [vmem:[#allocation7 + $0x1] ss:$2 sm:$0x3f] }
 0x8f6   : >> { %v7827_v27 = vmax.f32 %v7825_v45, %v7826_v4 }
 0x8f8   : >> { %7828 = vst.msk [vmem:[#allocation5 + $0x1e] sm:$0x3f] %vm7733_vm14, %v7827_v27 }
 0x8ff   : >> { %v8088_v16 = vld [vmem:[#allocation5 + $0x1c] sm:$0x3f] }
 0x900   : >> { %v8132_v31 = vld [vmem:[#allocation5 + $0x1d] sm:$0x3f]  ;;  %9401 = vmatmul.msk.f32.gmra.mxu1 %vm7725_vm12, %v8088_v16 }
 0x901   : >> { %v8176_v24 = vld [vmem:[#allocation5 + $0x1e] sm:$0x3f]  ;;  %9406 = vmatmul.msk.f32.gmra.mxu2 %vm7725_vm12, %v8132_v31 }
 0x902   : >> { %9411 = vmatmul.msk.f32.gmra.mxu3 %vm7725_vm12, %v8176_v24 }
 0x905   : >> { %v7866_v0 = vpop.f32.mrf.mxu1 }
 0x90c   : >> { %v7901_v41 = vpop.f32.mrf.mxu2 }
 0x90d   : >> { %v7942_v37 = vpop.f32.mrf.mxu3  ;;  %v7902_v18 = vadd.f32 %v7901_v41, %v7866_v0 }
 0x90f   : >> { %v7951_v56 = vadd.f32 %v7942_v37, %v7902_v18 }
 0x91d   : >> { %v7869_v28 = vpop.f32.mrf.mxu1 }
 0x924   : >> { %v7904_v34 = vpop.f32.mrf.mxu2 }
 0x925   : >> { %v7945_v48 = vpop.f32.mrf.mxu3  ;;  %v7905_v23 = vadd.f32 %v7904_v34, %v7869_v28 }
 0x927   : >> { %v7952_v53 = vadd.f32 %v7945_v48, %v7905_v23 }
 0x93d   : >> { %v7872_v10 = vpop.f32.mrf.mxu1 }
 0x944   : >> { %v7907_v36 = vpop.f32.mrf.mxu2 }
 0x945   : >> { %v7948_v12 = vpop.f32.mrf.mxu3  ;;  %v7986_v17 = vpop.f32.mrf.mxu1  ;;  %v7908_v20 = vadd.f32 %v7907_v36, %v7872_v10  ;;  %v13075_v10 = vld [vmem:[#allocation11_spill] sm:$0xff] }
 0x946   : >> { %v7995_v54 = vadd.f32 %v7986_v17, %v7951_v56 }
 0x947   : >> { %v7953_v7 = vadd.f32 %v7948_v12, %v7908_v20 }
 0x94c   : >> { %v8030_v38 = vpop.f32.mrf.mxu2 }
 0x94d   : >> { %v8074_v43 = vpop.f32.mrf.mxu3  ;;  %v7989_v57 = vpop.f32.mrf.mxu1  ;;  %v8039_v58 = vadd.f32 %v8030_v38, %v7995_v54 }
 0x94e   : >> { %v7996_v63 = vadd.f32 %v7989_v57, %v7952_v53 }
 0x94f   : >> { %v8083_v49 = vadd.f32 %v8074_v43, %v8039_v58 }
 0x954   : >> { %v8033_v22 = vpop.f32.mrf.mxu2 }
 0x955   : >> { %v8077_v6 = vpop.f32.mrf.mxu3  ;;  %v8040_v51 = vadd.f32 %v8033_v22, %v7996_v63 }
 0x957   : >> { %v8084_v11 = vadd.f32 %v8077_v6, %v8040_v51 }
 0x95d   : >> { %v7992_v40 = vpop.f32.mrf.mxu1 }
 0x95e   : >> { %v7997_v32 = vadd.f32 %v7992_v40, %v7953_v7 }
 0x95f   : >> { %v7635_v37 = vpop.f32.mrf.mxu0 }
 0x964   : >> { %v8036_v60 = vpop.f32.mrf.mxu2 }
 0x965   : >> { %v8080_v47 = vpop.f32.mrf.mxu3  ;;  %v8118_v21 = vpop.f32.mrf.mxu1  ;;  %v8041_v46 = vadd.f32 %v8036_v60, %v7997_v32 }
 0x966   : >> { %v8127_v33 = vadd.f32 %v8118_v21, %v8083_v49 }
 0x967   : >> { %v8085_v45 = vadd.f32 %v8080_v47, %v8041_v46  ;;  %v7637_v28 = vpop.f32.mrf.mxu0 }
 0x96c   : >> { %v8162_v2 = vpop.f32.mrf.mxu2 }
 0x96d   : >> { %v8171_v29 = vadd.f32 %v8162_v2, %v8127_v33  ;;  %v8206_v25 = vpop.f32.mrf.mxu3  ;;  %v8121_v14 = vpop.f32.mrf.mxu1 }
 0x96e   : >> { %v8128_v44 = vadd.f32 %v8121_v14, %v8084_v11 }
 0x96f   : >> { %v8215_v35 = vadd.f32 %v8206_v25, %v8171_v29 }
 0x971   : >> { %v8222_v3 = vadd.f32 %v9501_v52, %v8215_v35 }
 0x973   : >> { %9415 = vmatmul.msk.f32.vlgmr.msra.gmra.mxu1 %vm8229_vm9, %v8222_v3  ;;  %v8263_v59 = vrot.slane %v8222_v3, 6 }
 0x974   : >> { %v8165_v13 = vpop.f32.mrf.mxu2 }
 0x975   : >> { %v8172_v50 = vadd.f32 %v8165_v13, %v8128_v44  ;;  %v8209_v9 = vpop.f32.mrf.mxu3 }
 0x977   : >> { %v8216_v62 = vadd.f32 %v8209_v9, %v8172_v50 }
 0x979   : >> { %v8223_v19 = vadd.f32 %v9501_v52, %v8216_v62 }
 0x97b   : >> { %v8264_v5 = vrot.slane %v8223_v19, 6  ;;  %v8296_v42 = vrot.slane %v8223_v19, 4 }
 0x97d   : >> { %9425 = vmatmul.msk.f32.vlgmr.msrb.gmra.mxu3 %vm8229_vm9, %v8296_v42  ;;  %v8265_v26 = vsel %vm8233_vm8, %v8263_v59, %v8264_v5  ;;  %v8124_v15 = vpop.f32.mrf.mxu1 }
 0x97e   : >> { %9420 = vmatmul.msk.f32.vlgmr.msrb.gmra.mxu2 %vm8229_vm9, %v8265_v26  ;;  %v8129_v4 = vadd.f32 %v8124_v15, %v8085_v45 }
 0x984   : >> { %v8168_v27 = vpop.f32.mrf.mxu2 }
 0x985   : >> { %v8173_v16 = vadd.f32 %v8168_v27, %v8129_v4  ;;  %v8212_v31 = vpop.f32.mrf.mxu3 }
 0x987   : >> { %v8217_v24 = vadd.f32 %v8212_v31, %v8173_v16 }
 0x989   : >> { %v8224_v0 = vadd.f32 %v9501_v52, %v8217_v24 }
 0x98b   : >> { %v8328_v41 = vrot.slane %v8224_v0, 2 }
 0x98d   : >> { %9430 = vmatmul.msk.f32.vlgmr.msrb.gmra.mxu1 %vm8229_vm9, %v8328_v41 }
 0x9f0   : >> { %v8254_v34 = vpop.f32.mrf.mxu1 }
 0x9f1   : >> { %v8257_v30 = vadd.f32 %v13075_v10, %v8254_v34 }
 0xa00   : >> { %v8319_v12 = vpop.f32.mrf.mxu3 }
 0xa01   : >> { %v8288_v48 = vpop.f32.mrf.mxu2 }
 0xa02   : >> { %v8291_v36 = vadd.f32 %v8288_v48, %v8257_v30 }
 0xa04   : >> { %v8322_v17 = vadd.f32 %v8319_v12, %v8291_v36 }
 0xa09   : > { %435 = sbr.rel (!%p433_p11) target bundleno = 85 (0x55), region = 143 }
 0xa0a   : >> { %v8351_v38 = vpop.f32.mrf.mxu1 }
 0xa0b   : >> { %v8354_v43 = vadd.f32 %v8351_v38, %v8322_v17  }
 0xa0d   : >> { %v13076_v1 = vmov %v8354_v43  ;;  %8355 = vst.msk [vmem:[%s13077_s1] sm:$0xf] (%p433_p11), %vm416_vm6, %v8354_v43 }
 0xa0e   : > { %9532 = shalt.err (!%p9529_p4)
}
 0xa0f   : > { %9442 = dma.vmem_to_hbm [thread:$0]  (%p9676_p5), %s8370_s11, 64, %s8372_s20, %s8357_s18  }
 0xa10 PF: > { %p9448_p7 = scmp.ge.s32.totalorder %s9575_s16, 2  ;;  %s8383_s27 = sand.u32 1, %s9563_s13  }
 0xa11   : > { %s8384_s28 = scalar_lea.sflag [#allocation9], %s8383_s27 }
 0xa12   : > { %p9445_p8 = pnand %p9448_p7, %p9680_p6 }
 0xa14   : > { %p9446_p9 = pneg %p9445_p8 }
 0xa16   : > { %9558 = dma.done.wait (%p9446_p9), %s8384_s28, 64  }
 0xa17   : > { %9560 = vsyncadd (%p9446_p9), %s8384_s28, 4294967232  ;;  %p20_p10 = scmp.ge.s32.totalorder %s9664_s19, 4   ;;  %s13080_s13 = smov %s9567_s14 }
 0xa18   : > { %s13081_s14 = smov %s9571_s15  ;;  %s13082_s15 = smov %s9674_s22 }
 0xa19   : > { %s13083_s16 = smov %s9664_s19  ;;  %22 = sbr.rel (!%p20_p10) target bundleno = 7 (0x7), region = 154 }
 0xa1e   :  { %8390 = vsyncpa [#allocation9], 1 }
 0xa1f   :  { %8392 = vsyncpa [#allocation9 + $0x1], 1 }

</bundles_post_ra>
